<compile_context>
chip_gen: v7x
topology: tpu7x:2x2x1
jax: 0.10.0
libtpu: 0.0.40
codegen_flags: <defaults>
</compile_context>

<pallas_src>
import functools

import jax
import jax.numpy as jnp
from jax.experimental import pallas as pl
from jax.experimental.pallas import tpu as pltpu


# ----------------------------------------------------------------------------
# Tiling helpers (shared between one-time weight packing and kernel launch)
# ----------------------------------------------------------------------------
def _round_up(x, m):
    return (x + m - 1) // m * m


def _kp_tk(k):
    """Padded K and K-tile.  K that is not a multiple of 128 stays full-extent
    (pad only to the bf16 sublane multiple of 16), so e.g. the upsampler's
    K=21 is padded to 32 instead of 128."""
    kp = k if k % 128 == 0 else _round_up(k, 16)
    if kp % 128 == 0 and kp > 512:
        if kp % 512 == 0:
            return kp, 512
        if kp % 256 == 0:
            return kp, 256
        return kp, 128
    return kp, kp


def _np_tn(n):
    np_ = _round_up(n, 128)
    for tn in (1024, 512, 256, 128):
        if np_ % tn == 0:
            return np_, tn
    return np_, 128


def _mp_tm(m):
    if m > 256:
        return _round_up(m, 256), 256
    mp = _round_up(m, 16)          # bf16 sublane packing
    return mp, mp


# ----------------------------------------------------------------------------
# Pallas fused matmul kernels: out = relu?((A @ B) + bias (+ residual))
# (BN scale is already folded into B's columns at pack time.)
# ----------------------------------------------------------------------------
def _mm_kernel(a_ref, b_ref, c_ref, o_ref, acc_ref, *, relu):
    kk = pl.program_id(2)

    @pl.when(kk == 0)
    def _():
        acc_ref[...] = jnp.zeros_like(acc_ref)

    acc_ref[...] += jnp.dot(a_ref[...], b_ref[...],
                            preferred_element_type=jnp.float32)

    @pl.when(kk == pl.num_programs(2) - 1)
    def _():
        y = acc_ref[...] + c_ref[...]
        if relu:
            y = jnp.maximum(y, 0.0)
        o_ref[...] = y.astype(o_ref.dtype)


def _mm_kernel_res(a_ref, b_ref, c_ref, r_ref, o_ref, acc_ref, *, relu):
    kk = pl.program_id(2)

    @pl.when(kk == 0)
    def _():
        acc_ref[...] = jnp.zeros_like(acc_ref)

    acc_ref[...] += jnp.dot(a_ref[...], b_ref[...],
                            preferred_element_type=jnp.float32)

    @pl.when(kk == pl.num_programs(2) - 1)
    def _():
        y = acc_ref[...] + c_ref[...] + r_ref[...].astype(jnp.float32)
        if relu:
            y = jnp.maximum(y, 0.0)
        o_ref[...] = y.astype(o_ref.dtype)


def fused_matmul(a, b_packed, bias_packed, n_true, residual=None, relu=False,
                 out_dtype=jnp.bfloat16):
    """act((a @ b_packed) + bias (+ residual)); bf16 MXU operands, f32 acc.

    b_packed (kp, np_) bf16 and bias_packed (1, np_) f32 are pre-padded and
    pre-transposed at init time (BN scale folded in)."""
    m, k = a.shape
    kp, np_ = b_packed.shape
    mp, tm = _mp_tm(m)
    kp2, tk = _kp_tk(k)
    _, tn = _np_tn(n_true)
    assert kp2 == kp and kp % tk == 0 and np_ % tn == 0

    a_p = a.astype(jnp.bfloat16)
    if (mp, kp) != (m, k):
        a_p = jnp.pad(a_p, ((0, mp - m), (0, kp - k)))

    args = [a_p, b_packed, bias_packed]
    in_specs = [
        pl.BlockSpec((tm, tk), lambda i, j, kk: (i, kk)),
        pl.BlockSpec((tk, tn), lambda i, j, kk: (kk, j)),
        pl.BlockSpec((1, tn), lambda i, j, kk: (0, j)),
    ]
    if residual is not None:
        r_p = residual.astype(jnp.bfloat16)
        if (mp, np_) != residual.shape:
            r_p = jnp.pad(r_p, ((0, mp - residual.shape[0]),
                                (0, np_ - residual.shape[1])))
        args.append(r_p)
        in_specs.append(pl.BlockSpec((tm, tn), lambda i, j, kk: (i, j)))
        kernel = functools.partial(_mm_kernel_res, relu=relu)
    else:
        kernel = functools.partial(_mm_kernel, relu=relu)

    out = pl.pallas_call(
        kernel,
        out_shape=jax.ShapeDtypeStruct((mp, np_), out_dtype),
        grid_spec=pltpu.PrefetchScalarGridSpec(
            num_scalar_prefetch=0,
            grid=(mp // tm, np_ // tn, kp // tk),
            in_specs=in_specs,
            out_specs=pl.BlockSpec((tm, tn), lambda i, j, kk: (i, j)),
            scratch_shapes=[pltpu.VMEM((tm, tn), jnp.float32)],
        ),
        compiler_params=pltpu.CompilerParams(
            dimension_semantics=("parallel", "parallel", "arbitrary")),
    )(*args)
    return out[:m, :n_true]


# ----------------------------------------------------------------------------
# Conv / pool / transposed-conv built on the Pallas matmul (NHWC activations)
# ----------------------------------------------------------------------------
def im2col(x, kh, kw, stride, padding):
    """NHWC patches with (c, kh, kw) feature ordering so the columns match
    torch's weight.reshape(cout, -1)."""
    # TODO(synk): im2col patch extraction stays in plain JAX; fusing it into
    # the Pallas kernel (manual DMA gather) would remove one HBM round trip.
    n, h, w, c = x.shape
    ho = (h + 2 * padding - kh) // stride + 1
    wo = (w + 2 * padding - kw) // stride + 1
    xp = jnp.pad(x, ((0, 0), (padding, padding), (padding, padding), (0, 0)))
    cols = []
    for i in range(kh):
        for j in range(kw):
            cols.append(xp[:, i:i + stride * (ho - 1) + 1:stride,
                           j:j + stride * (wo - 1) + 1:stride, :])
    patches = jnp.stack(cols, axis=-1)            # (n, ho, wo, c, kh*kw)
    return patches.reshape(n * ho * wo, c * kh * kw), (n, ho, wo)


def conv2d_fused(x, pw, n_out, kh, kw, stride, padding, relu, residual=None,
                 out_dtype=jnp.bfloat16):
    """pw holds only arrays ({'b','bias'}); n_out/kh/kw are static ints."""
    if kh == 1 and kw == 1 and padding == 0:
        if stride != 1:
            x = x[:, ::stride, ::stride, :]
        n, ho, wo, c = x.shape
        a = x.reshape(n * ho * wo, c)
    else:
        a, (n, ho, wo) = im2col(x, kh, kw, stride, padding)
    res = None
    if residual is not None:
        res = residual.reshape(n * ho * wo, residual.shape[-1])
    out = fused_matmul(a, pw['b'], pw['bias'], n_out,
                       residual=res, relu=relu, out_dtype=out_dtype)
    return out.reshape(n, ho, wo, n_out)


def maxpool2d(x, k=3, s=2, p=1):
    # TODO(synk): 3x3 max-pool reduction stays in plain JAX (9 elementwise
    # maxima); the matmul hot paths are in the Pallas kernel.
    n, h, w, c = x.shape
    ho = (h + 2 * p - k) // s + 1
    wo = (w + 2 * p - k) // s + 1
    xp = jnp.pad(x, ((0, 0), (p, p), (p, p), (0, 0)),
                 constant_values=-jnp.inf)
    out = jnp.full((n, ho, wo, c), -jnp.inf, x.dtype)
    for i in range(k):
        for j in range(k):
            out = jnp.maximum(out, xp[:, i:i + s * (ho - 1) + 1:s,
                                      j:j + s * (wo - 1) + 1:s, :])
    return out


def conv_transpose2d(x, pw, cout, kh, kw, stride, padding):
    """ConvTranspose2d as one Pallas matmul producing per-input-pixel
    (cout, kh, kw) patches, followed by an overlap-add scatter."""
    # TODO(synk): overlap-add scatter (.at[].add over hin*win windows) stays
    # in plain JAX.
    n, hin, win, cin = x.shape
    n_cols = cout * kh * kw
    a = x.reshape(n * hin * win, cin)
    patches = fused_matmul(a, pw['b'], pw['bias'], n_cols,
                           relu=False, out_dtype=jnp.float32)
    patches = patches.reshape(n, hin, win, cout, kh, kw)
    hout = (hin - 1) * stride - 2 * padding + kh
    wout = (win - 1) * stride - 2 * padding + kw
    canvas = jnp.zeros((n, cout, hout + 2 * padding, wout + 2 * padding),
                       jnp.float32)
    for ih in range(hin):
        for iw in range(win):
            canvas = canvas.at[:, :, ih * stride:ih * stride + kh,
                               iw * stride:iw * stride + kw].add(
                                   patches[:, ih, iw])
    return canvas[:, :, padding:padding + hout, padding:padding + wout]


# ----------------------------------------------------------------------------
# One-time weight packing (runs eagerly, outside jit).  Packed pytree contains
# ONLY arrays; kernel sizes / channel counts are static (BLOCK_CFG / literals).
# ----------------------------------------------------------------------------
def bn_fold(bn, eps=1e-5):
    gamma, beta, mean, var = bn
    scale = gamma / jnp.sqrt(var + eps)
    return scale, beta - mean * scale


def pack_conv(w, bn=None):
    cout, cin, kh, kw = w.shape
    k = cin * kh * kw
    wm = w.reshape(cout, k)
    if bn is not None:
        scale, bias = bn_fold(bn)
        wm = wm * scale[:, None]                 # fold BN scale into weights
    else:
        bias = jnp.zeros((cout,), jnp.float32)
    kp, _ = _kp_tk(k)
    np_, _ = _np_tn(cout)
    b = jnp.zeros((kp, np_), jnp.bfloat16).at[:k, :cout].set(
        wm.T.astype(jnp.bfloat16))
    c = jnp.zeros((1, np_), jnp.float32).at[0, :cout].set(bias)
    return {'b': b, 'bias': c}


def pack_deconv(w):
    # PyTorch ConvTranspose2d weight layout: (Cin, Cout, KH, KW), bias=False.
    cin, cout, kh, kw = w.shape
    k, n = cin, cout * kh * kw
    kp, _ = _kp_tk(k)                            # 21 -> 32, NOT 128
    np_, _ = _np_tn(n)
    b = jnp.zeros((kp, np_), jnp.bfloat16).at[:k, :n].set(
        w.reshape(k, n).astype(jnp.bfloat16))
    return {'b': b, 'bias': jnp.zeros((1, np_), jnp.float32)}


def pack_params(params):
    packed = {'conv1': pack_conv(params['conv1'], params['bn1']),
              'layers': [],
              'final_conv': pack_conv(params['final_conv']),
              'up': pack_deconv(params['up_w'])}
    for blk in params['layers']:
        pb = {'conv1': pack_conv(blk['conv1_w'], blk['bn1']),
              'conv2': pack_conv(blk['conv2_w'], blk['bn2'])}
        if 'ds_w' in blk:
            pb['ds'] = pack_conv(blk['ds_w'], blk['ds_bn'])
        packed['layers'].append(pb)
    return packed


# ----------------------------------------------------------------------------
# Parameter initialization (deterministic, synthetic)
# ----------------------------------------------------------------------------
BLOCK_CFG = [(64, 64, 1), (64, 64, 1),
             (64, 128, 2), (128, 128, 1),
             (128, 256, 2), (256, 256, 1),
             (256, 512, 2), (512, 512, 1)]


def init_params(key):
    keys = iter(jax.random.split(key, 256))

    def nk():
        return next(keys)

    def conv_w(cout, cin, kh, kw):
        fan_in, fan_out = cin * kh * kw, cout * kh * kw
        std = (2.0 / (fan_in + fan_out)) ** 0.5  # xavier-normal style
        return std * jax.random.normal(nk(), (cout, cin, kh, kw), jnp.float32)

    def bn_p(c):
        return (jax.random.uniform(nk(), (c,), jnp.float32, 0.8, 1.2),  # gamma
                0.1 * jax.random.normal(nk(), (c,), jnp.float32),        # beta
                0.1 * jax.random.normal(nk(), (c,), jnp.float32),        # mean
                jax.random.uniform(nk(), (c,), jnp.float32, 0.8, 1.2))   # var

    params = {'conv1': conv_w(64, 3, 7, 7), 'bn1': bn_p(64), 'layers': []}
    for cin, cout, stride in BLOCK_CFG:
        blk = {'conv1_w': conv_w(cout, cin, 3, 3), 'bn1': bn_p(cout),
               'conv2_w': conv_w(cout, cout, 3, 3), 'bn2': bn_p(cout)}
        if stride != 1 or cin != cout:
            blk['ds_w'] = conv_w(cout, cin, 1, 1)
            blk['ds_bn'] = bn_p(cout)
        params['layers'].append(blk)

    params['final_conv'] = conv_w(21, 512, 1, 1)               # xavier
    std_up = (2.0 / (21 * 64 * 64 + 21 * 64 * 64)) ** 0.5      # xavier
    params['up_w'] = std_up * jax.random.normal(nk(), (21, 21, 64, 64),
                                                jnp.float32)
    return params


# ----------------------------------------------------------------------------
# Forward pass (ResNet18 backbone -> 1x1 conv -> ConvTranspose upsampling)
# ----------------------------------------------------------------------------
def forward(packed, x):
    # NCHW f32 module input -> NHWC bf16 activations end-to-end.
    x = jnp.transpose(x, (0, 2, 3, 1)).astype(jnp.bfloat16)

    # stem: 7x7/s2 conv + folded BN + ReLU, then 3x3/s2 max-pool
    x = conv2d_fused(x, packed['conv1'], 64, 7, 7, stride=2, padding=3,
                     relu=True)
    x = maxpool2d(x, 3, 2, 1)

    # residual layers 1-4 (BasicBlocks)
    # TODO(synk): deep blocks (M<=32) are launch-overhead bound; a whole-block
    # fused pallas_call (emit_pipeline over the two matmuls) would help there.
    for pb, (_, cout, stride) in zip(packed['layers'], BLOCK_CFG):
        identity = x
        out = conv2d_fused(x, pb['conv1'], cout, 3, 3, stride=stride,
                           padding=1, relu=True)
        if 'ds' in pb:
            identity = conv2d_fused(x, pb['ds'], cout, 1, 1, stride=stride,
                                    padding=0, relu=False)
        # bn2(conv2(out)) + identity, then ReLU (all fused in the kernel)
        x = conv2d_fused(out, pb['conv2'], cout, 3, 3, stride=1, padding=1,
                         relu=True, residual=identity)

    # final 1x1 conv (no BN / bias / activation)
    x = conv2d_fused(x, packed['final_conv'], 21, 1, 1, stride=1, padding=0,
                     relu=False)

    # ConvTranspose2d(21, 21, kernel=64, stride=32, padding=16, bias=False)
    return conv_transpose2d(x, packed['up'], 21, 64, 64, stride=32,
                            padding=16)


if __name__ == "__main__":
    key = jax.random.PRNGKey(0)
    pkey, xkey = jax.random.split(key)
    params = init_params(pkey)
    packed = pack_params(params)       # one-time weight packing, outside jit
    x = jax.random.normal(xkey, (2, 3, 64, 64), jnp.float32)  # NCHW

    fwd = jax.jit(forward)
    y = jax.block_until_ready(fwd(packed, x))

    assert y.shape == (2, 21, 64, 64), y.shape
    assert bool(jnp.all(jnp.isfinite(y)))
    print("KERNEL_OK")
</pallas_src>

<mosaic_0001>
module attributes {stable_mosaic.version = 11 : i64} {
  func.func @_mm_kernel(%arg0: i32, %arg1: i32, %arg2: i32, %arg3: memref<256x160xbf16, #tpu.memory_space<vmem>>, %arg4: memref<160x128xbf16, #tpu.memory_space<vmem>>, %arg5: memref<1x128xf32, #tpu.memory_space<vmem>>, %arg6: memref<256x128xbf16, #tpu.memory_space<vmem>>, %arg7: memref<256x128xf32, #tpu.memory_space<vmem>>) attributes {dimension_semantics = [#tpu.dimension_semantics<parallel>, #tpu.dimension_semantics<parallel>, #tpu.dimension_semantics<arbitrary>], iteration_bounds = array<i64: 8, 1, 1>, scalar_prefetch = 0 : i64, scratch_operands = 1 : i64, tpu.core_type = #tpu.core_type<tc>, window_params = [{transform_indices = @transform_0, window_bounds = array<i64: 256, 160>}, {transform_indices = @transform_1, window_bounds = array<i64: 160, 128>}, {transform_indices = @transform_2, window_bounds = array<i64: 1, 128>}, {transform_indices = @transform_3, window_bounds = array<i64: 256, 128>}]} {
    %c0_i32 = arith.constant 0 : i32
    %0 = arith.cmpi eq, %arg2, %c0_i32 : i32
    %1 = arith.extui %0 : i1 to i32
    %c0_i32_0 = arith.constant 0 : i32
    %2 = arith.cmpi ne, %1, %c0_i32_0 : i32
    scf.if %2 {
      %cst_10 = arith.constant 0.000000e+00 : f32
      %12 = vector.broadcast %cst_10 : f32 to vector<256x128xf32>
      %c0_11 = arith.constant 0 : index
      %c0_12 = arith.constant 0 : index
      %13 = vector.load %arg7[%c0_11, %c0_12] : memref<256x128xf32, #tpu.memory_space<vmem>>, vector<256x128xf32>
      tpu.vector_store %arg7[%c0_11, %c0_12], %12 {strides = array<i32>} : memref<256x128xf32, #tpu.memory_space<vmem>>, vector<256x128xf32>,
    } else {
    }
    %c0 = arith.constant 0 : index
    %c0_1 = arith.constant 0 : index
    %3 = vector.load %arg7[%c0, %c0_1] : memref<256x128xf32, #tpu.memory_space<vmem>>, vector<256x128xf32>
    %c0_2 = arith.constant 0 : index
    %c0_3 = arith.constant 0 : index
    %4 = vector.load %arg3[%c0_2, %c0_3] : memref<256x160xbf16, #tpu.memory_space<vmem>>, vector<256x160xbf16>
    %c0_4 = arith.constant 0 : index
    %c0_5 = arith.constant 0 : index
    %5 = vector.load %arg4[%c0_4, %c0_5] : memref<160x128xbf16, #tpu.memory_space<vmem>>, vector<160x128xbf16>
    %cst = arith.constant dense<0.000000e+00> : vector<256x128xf32>
    %6 = tpu.matmul %4, %5, %cst {dimension_numbers = #tpu.dot_dimension_numbers<[1], [0], [0], [1], [0, 0, 1, 1], [], []>} : vector<256x160xbf16>, vector<160x128xbf16>, vector<256x128xf32> -> vector<256x128xf32>
    %7 = arith.addf %3, %6 : vector<256x128xf32>
    %c0_6 = arith.constant 0 : index
    %c0_7 = arith.constant 0 : index
    %8 = vector.load %arg7[%c0_6, %c0_7] : memref<256x128xf32, #tpu.memory_space<vmem>>, vector<256x128xf32>
    tpu.vector_store %arg7[%c0_6, %c0_7], %7 {strides = array<i32>} : memref<256x128xf32, #tpu.memory_space<vmem>>, vector<256x128xf32>,
    %c0_i32_8 = arith.constant 0 : i32
    %9 = arith.cmpi eq, %arg2, %c0_i32_8 : i32
    %10 = arith.extui %9 : i1 to i32
    %c0_i32_9 = arith.constant 0 : i32
    %11 = arith.cmpi ne, %10, %c0_i32_9 : i32
    scf.if %11 {
      %c0_10 = arith.constant 0 : index
      %c0_11 = arith.constant 0 : index
      %12 = vector.load %arg7[%c0_10, %c0_11] : memref<256x128xf32, #tpu.memory_space<vmem>>, vector<256x128xf32>
      %c0_12 = arith.constant 0 : index
      %c0_13 = arith.constant 0 : index
      %13 = vector.load %arg5[%c0_12, %c0_13] : memref<1x128xf32, #tpu.memory_space<vmem>>, vector<1x128xf32>
      %14 = vector.broadcast %13 : vector<1x128xf32> to vector<256x128xf32>
      %15 = arith.addf %12, %14 : vector<256x128xf32>
      %cst_14 = arith.constant 0.000000e+00 : f32
      %16 = vector.broadcast %cst_14 : f32 to vector<256x128xf32>
      %17 = arith.maximumf %15, %16 : vector<256x128xf32>
      %18 = arith.truncf %17 : vector<256x128xf32> to vector<256x128xbf16>
      %c0_15 = arith.constant 0 : index
      %c0_16 = arith.constant 0 : index
      %19 = vector.load %arg6[%c0_15, %c0_16] : memref<256x128xbf16, #tpu.memory_space<vmem>>, vector<256x128xbf16>
      tpu.vector_store %arg6[%c0_15, %c0_16], %18 {strides = array<i32>} : memref<256x128xbf16, #tpu.memory_space<vmem>>, vector<256x128xbf16>,
    } else {
    }
    return
  }
  func.func @transform_0(%arg0: i32, %arg1: i32, %arg2: i32) -> (i32, i32) {
    %c0_i32 = arith.constant 0 : i32
    return %arg0, %arg2 : i32, i32
  }
  func.func @transform_1(%arg0: i32, %arg1: i32, %arg2: i32) -> (i32, i32) {
    %c0_i32 = arith.constant 0 : i32
    return %arg2, %arg1 : i32, i32
  }
  func.func @transform_2(%arg0: i32, %arg1: i32, %arg2: i32) -> (i32, i32) {
    %c0_i32 = arith.constant 0 : i32
    %c0_i32_0 = arith.constant 0 : i32
    return %c0_i32, %arg1 : i32, i32
  }
  func.func @transform_3(%arg0: i32, %arg1: i32, %arg2: i32) -> (i32, i32) {
    %c0_i32 = arith.constant 0 : i32
    return %arg0, %arg1 : i32, i32
  }
}

module attributes {stable_mosaic.version = 11 : i64} {
  func.func @_mm_kernel(%arg0: i32, %arg1: i32, %arg2: i32, %arg3: memref<256x576xbf16, #tpu.memory_space<vmem>>, %arg4: memref<576x128xbf16, #tpu.memory_space<vmem>>, %arg5: memref<1x128xf32, #tpu.memory_space<vmem>>, %arg6: memref<256x128xbf16, #tpu.memory_space<vmem>>, %arg7: memref<256x128xf32, #tpu.memory_space<vmem>>) attributes {dimension_semantics = [#tpu.dimension_semantics<parallel>, #tpu.dimension_semantics<parallel>, #tpu.dimension_semantics<arbitrary>], iteration_bounds = array<i64: 2, 1, 1>, scalar_prefetch = 0 : i64, scratch_operands = 1 : i64, tpu.core_type = #tpu.core_type<tc>, window_params = [{transform_indices = @transform_0, window_bounds = array<i64: 256, 576>}, {transform_indices = @transform_1, window_bounds = array<i64: 576, 128>}, {transform_indices = @transform_2, window_bounds = array<i64: 1, 128>}, {transform_indices = @transform_3, window_bounds = array<i64: 256, 128>}]} {
    %c0_i32 = arith.constant 0 : i32
    %0 = arith.cmpi eq, %arg2, %c0_i32 : i32
    %1 = arith.extui %0 : i1 to i32
    %c0_i32_0 = arith.constant 0 : i32
    %2 = arith.cmpi ne, %1, %c0_i32_0 : i32
    scf.if %2 {
      %cst_10 = arith.constant 0.000000e+00 : f32
      %12 = vector.broadcast %cst_10 : f32 to vector<256x128xf32>
      %c0_11 = arith.constant 0 : index
      %c0_12 = arith.constant 0 : index
      %13 = vector.load %arg7[%c0_11, %c0_12] : memref<256x128xf32, #tpu.memory_space<vmem>>, vector<256x128xf32>
      tpu.vector_store %arg7[%c0_11, %c0_12], %12 {strides = array<i32>} : memref<256x128xf32, #tpu.memory_space<vmem>>, vector<256x128xf32>,
    } else {
    }
    %c0 = arith.constant 0 : index
    %c0_1 = arith.constant 0 : index
    %3 = vector.load %arg7[%c0, %c0_1] : memref<256x128xf32, #tpu.memory_space<vmem>>, vector<256x128xf32>
    %c0_2 = arith.constant 0 : index
    %c0_3 = arith.constant 0 : index
    %4 = vector.load %arg3[%c0_2, %c0_3] : memref<256x576xbf16, #tpu.memory_space<vmem>>, vector<256x576xbf16>
    %c0_4 = arith.constant 0 : index
    %c0_5 = arith.constant 0 : index
    %5 = vector.load %arg4[%c0_4, %c0_5] : memref<576x128xbf16, #tpu.memory_space<vmem>>, vector<576x128xbf16>
    %cst = arith.constant dense<0.000000e+00> : vector<256x128xf32>
    %6 = tpu.matmul %4, %5, %cst {dimension_numbers = #tpu.dot_dimension_numbers<[1], [0], [0], [1], [0, 0, 1, 1], [], []>} : vector<256x576xbf16>, vector<576x128xbf16>, vector<256x128xf32> -> vector<256x128xf32>
    %7 = arith.addf %3, %6 : vector<256x128xf32>
    %c0_6 = arith.constant 0 : index
    %c0_7 = arith.constant 0 : index
    %8 = vector.load %arg7[%c0_6, %c0_7] : memref<256x128xf32, #tpu.memory_space<vmem>>, vector<256x128xf32>
    tpu.vector_store %arg7[%c0_6, %c0_7], %7 {strides = array<i32>} : memref<256x128xf32, #tpu.memory_space<vmem>>, vector<256x128xf32>,
    %c0_i32_8 = arith.constant 0 : i32
    %9 = arith.cmpi eq, %arg2, %c0_i32_8 : i32
    %10 = arith.extui %9 : i1 to i32
    %c0_i32_9 = arith.constant 0 : i32
    %11 = arith.cmpi ne, %10, %c0_i32_9 : i32
    scf.if %11 {
      %c0_10 = arith.constant 0 : index
      %c0_11 = arith.constant 0 : index
      %12 = vector.load %arg7[%c0_10, %c0_11] : memref<256x128xf32, #tpu.memory_space<vmem>>, vector<256x128xf32>
      %c0_12 = arith.constant 0 : index
      %c0_13 = arith.constant 0 : index
      %13 = vector.load %arg5[%c0_12, %c0_13] : memref<1x128xf32, #tpu.memory_space<vmem>>, vector<1x128xf32>
      %14 = vector.broadcast %13 : vector<1x128xf32> to vector<256x128xf32>
      %15 = arith.addf %12, %14 : vector<256x128xf32>
      %cst_14 = arith.constant 0.000000e+00 : f32
      %16 = vector.broadcast %cst_14 : f32 to vector<256x128xf32>
      %17 = arith.maximumf %15, %16 : vector<256x128xf32>
      %18 = arith.truncf %17 : vector<256x128xf32> to vector<256x128xbf16>
      %c0_15 = arith.constant 0 : index
      %c0_16 = arith.constant 0 : index
      %19 = vector.load %arg6[%c0_15, %c0_16] : memref<256x128xbf16, #tpu.memory_space<vmem>>, vector<256x128xbf16>
      tpu.vector_store %arg6[%c0_15, %c0_16], %18 {strides = array<i32>} : memref<256x128xbf16, #tpu.memory_space<vmem>>, vector<256x128xbf16>,
    } else {
    }
    return
  }
  func.func @transform_0(%arg0: i32, %arg1: i32, %arg2: i32) -> (i32, i32) {
    %c0_i32 = arith.constant 0 : i32
    return %arg0, %arg2 : i32, i32
  }
  func.func @transform_1(%arg0: i32, %arg1: i32, %arg2: i32) -> (i32, i32) {
    %c0_i32 = arith.constant 0 : i32
    return %arg2, %arg1 : i32, i32
  }
  func.func @transform_2(%arg0: i32, %arg1: i32, %arg2: i32) -> (i32, i32) {
    %c0_i32 = arith.constant 0 : i32
    %c0_i32_0 = arith.constant 0 : i32
    return %c0_i32, %arg1 : i32, i32
  }
  func.func @transform_3(%arg0: i32, %arg1: i32, %arg2: i32) -> (i32, i32) {
    %c0_i32 = arith.constant 0 : i32
    return %arg0, %arg1 : i32, i32
  }
}

module attributes {stable_mosaic.version = 11 : i64} {
  func.func @_mm_kernel_res(%arg0: i32, %arg1: i32, %arg2: i32, %arg3: memref<256x576xbf16, #tpu.memory_space<vmem>>, %arg4: memref<576x128xbf16, #tpu.memory_space<vmem>>, %arg5: memref<1x128xf32, #tpu.memory_space<vmem>>, %arg6: memref<256x128xbf16, #tpu.memory_space<vmem>>, %arg7: memref<256x128xbf16, #tpu.memory_space<vmem>>, %arg8: memref<256x128xf32, #tpu.memory_space<vmem>>) attributes {dimension_semantics = [#tpu.dimension_semantics<parallel>, #tpu.dimension_semantics<parallel>, #tpu.dimension_semantics<arbitrary>], iteration_bounds = array<i64: 2, 1, 1>, scalar_prefetch = 0 : i64, scratch_operands = 1 : i64, tpu.core_type = #tpu.core_type<tc>, window_params = [{transform_indices = @transform_0, window_bounds = array<i64: 256, 576>}, {transform_indices = @transform_1, window_bounds = array<i64: 576, 128>}, {transform_indices = @transform_2, window_bounds = array<i64: 1, 128>}, {transform_indices = @transform_3, window_bounds = array<i64: 256, 128>}, {transform_indices = @transform_4, window_bounds = array<i64: 256, 128>}]} {
    %c0_i32 = arith.constant 0 : i32
    %0 = arith.cmpi eq, %arg2, %c0_i32 : i32
    %1 = arith.extui %0 : i1 to i32
    %c0_i32_0 = arith.constant 0 : i32
    %2 = arith.cmpi ne, %1, %c0_i32_0 : i32
    scf.if %2 {
      %cst_10 = arith.constant 0.000000e+00 : f32
      %12 = vector.broadcast %cst_10 : f32 to vector<256x128xf32>
      %c0_11 = arith.constant 0 : index
      %c0_12 = arith.constant 0 : index
      %13 = vector.load %arg8[%c0_11, %c0_12] : memref<256x128xf32, #tpu.memory_space<vmem>>, vector<256x128xf32>
      tpu.vector_store %arg8[%c0_11, %c0_12], %12 {strides = array<i32>} : memref<256x128xf32, #tpu.memory_space<vmem>>, vector<256x128xf32>,
    } else {
    }
    %c0 = arith.constant 0 : index
    %c0_1 = arith.constant 0 : index
    %3 = vector.load %arg8[%c0, %c0_1] : memref<256x128xf32, #tpu.memory_space<vmem>>, vector<256x128xf32>
    %c0_2 = arith.constant 0 : index
    %c0_3 = arith.constant 0 : index
    %4 = vector.load %arg3[%c0_2, %c0_3] : memref<256x576xbf16, #tpu.memory_space<vmem>>, vector<256x576xbf16>
    %c0_4 = arith.constant 0 : index
    %c0_5 = arith.constant 0 : index
    %5 = vector.load %arg4[%c0_4, %c0_5] : memref<576x128xbf16, #tpu.memory_space<vmem>>, vector<576x128xbf16>
    %cst = arith.constant dense<0.000000e+00> : vector<256x128xf32>
    %6 = tpu.matmul %4, %5, %cst {dimension_numbers = #tpu.dot_dimension_numbers<[1], [0], [0], [1], [0, 0, 1, 1], [], []>} : vector<256x576xbf16>, vector<576x128xbf16>, vector<256x128xf32> -> vector<256x128xf32>
    %7 = arith.addf %3, %6 : vector<256x128xf32>
    %c0_6 = arith.constant 0 : index
    %c0_7 = arith.constant 0 : index
    %8 = vector.load %arg8[%c0_6, %c0_7] : memref<256x128xf32, #tpu.memory_space<vmem>>, vector<256x128xf32>
    tpu.vector_store %arg8[%c0_6, %c0_7], %7 {strides = array<i32>} : memref<256x128xf32, #tpu.memory_space<vmem>>, vector<256x128xf32>,
    %c0_i32_8 = arith.constant 0 : i32
    %9 = arith.cmpi eq, %arg2, %c0_i32_8 : i32
    %10 = arith.extui %9 : i1 to i32
    %c0_i32_9 = arith.constant 0 : i32
    %11 = arith.cmpi ne, %10, %c0_i32_9 : i32
    scf.if %11 {
      %c0_10 = arith.constant 0 : index
      %c0_11 = arith.constant 0 : index
      %12 = vector.load %arg8[%c0_10, %c0_11] : memref<256x128xf32, #tpu.memory_space<vmem>>, vector<256x128xf32>
      %c0_12 = arith.constant 0 : index
      %c0_13 = arith.constant 0 : index
      %13 = vector.load %arg5[%c0_12, %c0_13] : memref<1x128xf32, #tpu.memory_space<vmem>>, vector<1x128xf32>
      %14 = vector.broadcast %13 : vector<1x128xf32> to vector<256x128xf32>
      %15 = arith.addf %12, %14 : vector<256x128xf32>
      %c0_14 = arith.constant 0 : index
      %c0_15 = arith.constant 0 : index
      %16 = vector.load %arg6[%c0_14, %c0_15] : memref<256x128xbf16, #tpu.memory_space<vmem>>, vector<256x128xbf16>
      %17 = arith.extf %16 : vector<256x128xbf16> to vector<256x128xf32>
      %18 = arith.addf %15, %17 : vector<256x128xf32>
      %cst_16 = arith.constant 0.000000e+00 : f32
      %19 = vector.broadcast %cst_16 : f32 to vector<256x128xf32>
      %20 = arith.maximumf %18, %19 : vector<256x128xf32>
      %21 = arith.truncf %20 : vector<256x128xf32> to vector<256x128xbf16>
      %c0_17 = arith.constant 0 : index
      %c0_18 = arith.constant 0 : index
      %22 = vector.load %arg7[%c0_17, %c0_18] : memref<256x128xbf16, #tpu.memory_space<vmem>>, vector<256x128xbf16>
      tpu.vector_store %arg7[%c0_17, %c0_18], %21 {strides = array<i32>} : memref<256x128xbf16, #tpu.memory_space<vmem>>, vector<256x128xbf16>,
    } else {
    }
    return
  }
  func.func @transform_0(%arg0: i32, %arg1: i32, %arg2: i32) -> (i32, i32) {
    %c0_i32 = arith.constant 0 : i32
    return %arg0, %arg2 : i32, i32
  }
  func.func @transform_1(%arg0: i32, %arg1: i32, %arg2: i32) -> (i32, i32) {
    %c0_i32 = arith.constant 0 : i32
    return %arg2, %arg1 : i32, i32
  }
  func.func @transform_2(%arg0: i32, %arg1: i32, %arg2: i32) -> (i32, i32) {
    %c0_i32 = arith.constant 0 : i32
    %c0_i32_0 = arith.constant 0 : i32
    return %c0_i32, %arg1 : i32, i32
  }
  func.func @transform_3(%arg0: i32, %arg1: i32, %arg2: i32) -> (i32, i32) {
    %c0_i32 = arith.constant 0 : i32
    return %arg0, %arg1 : i32, i32
  }
  func.func @transform_4(%arg0: i32, %arg1: i32, %arg2: i32) -> (i32, i32) {
    %c0_i32 = arith.constant 0 : i32
    return %arg0, %arg1 : i32, i32
  }
}

module attributes {stable_mosaic.version = 11 : i64} {
  func.func @_mm_kernel(%arg0: i32, %arg1: i32, %arg2: i32, %arg3: memref<128x64xbf16, #tpu.memory_space<vmem>>, %arg4: memref<64x128xbf16, #tpu.memory_space<vmem>>, %arg5: memref<1x128xf32, #tpu.memory_space<vmem>>, %arg6: memref<128x128xbf16, #tpu.memory_space<vmem>>, %arg7: memref<128x128xf32, #tpu.memory_space<vmem>>) attributes {dimension_semantics = [#tpu.dimension_semantics<parallel>, #tpu.dimension_semantics<parallel>, #tpu.dimension_semantics<arbitrary>], iteration_bounds = array<i64: 1, 1, 1>, scalar_prefetch = 0 : i64, scratch_operands = 1 : i64, tpu.core_type = #tpu.core_type<tc>, window_params = [{transform_indices = @transform_0, window_bounds = array<i64: 128, 64>}, {transform_indices = @transform_1, window_bounds = array<i64: 64, 128>}, {transform_indices = @transform_2, window_bounds = array<i64: 1, 128>}, {transform_indices = @transform_3, window_bounds = array<i64: 128, 128>}]} {
    %c0_i32 = arith.constant 0 : i32
    %0 = arith.cmpi eq, %arg2, %c0_i32 : i32
    %1 = arith.extui %0 : i1 to i32
    %c0_i32_0 = arith.constant 0 : i32
    %2 = arith.cmpi ne, %1, %c0_i32_0 : i32
    scf.if %2 {
      %cst_10 = arith.constant 0.000000e+00 : f32
      %12 = vector.broadcast %cst_10 : f32 to vector<128x128xf32>
      %c0_11 = arith.constant 0 : index
      %c0_12 = arith.constant 0 : index
      %13 = vector.load %arg7[%c0_11, %c0_12] : memref<128x128xf32, #tpu.memory_space<vmem>>, vector<128x128xf32>
      tpu.vector_store %arg7[%c0_11, %c0_12], %12 {strides = array<i32>} : memref<128x128xf32, #tpu.memory_space<vmem>>, vector<128x128xf32>,
    } else {
    }
    %c0 = arith.constant 0 : index
    %c0_1 = arith.constant 0 : index
    %3 = vector.load %arg7[%c0, %c0_1] : memref<128x128xf32, #tpu.memory_space<vmem>>, vector<128x128xf32>
    %c0_2 = arith.constant 0 : index
    %c0_3 = arith.constant 0 : index
    %4 = vector.load %arg3[%c0_2, %c0_3] : memref<128x64xbf16, #tpu.memory_space<vmem>>, vector<128x64xbf16>
    %c0_4 = arith.constant 0 : index
    %c0_5 = arith.constant 0 : index
    %5 = vector.load %arg4[%c0_4, %c0_5] : memref<64x128xbf16, #tpu.memory_space<vmem>>, vector<64x128xbf16>
    %cst = arith.constant dense<0.000000e+00> : vector<128x128xf32>
    %6 = tpu.matmul %4, %5, %cst {dimension_numbers = #tpu.dot_dimension_numbers<[1], [0], [0], [1], [0, 0, 1, 1], [], []>} : vector<128x64xbf16>, vector<64x128xbf16>, vector<128x128xf32> -> vector<128x128xf32>
    %7 = arith.addf %3, %6 : vector<128x128xf32>
    %c0_6 = arith.constant 0 : index
    %c0_7 = arith.constant 0 : index
    %8 = vector.load %arg7[%c0_6, %c0_7] : memref<128x128xf32, #tpu.memory_space<vmem>>, vector<128x128xf32>
    tpu.vector_store %arg7[%c0_6, %c0_7], %7 {strides = array<i32>} : memref<128x128xf32, #tpu.memory_space<vmem>>, vector<128x128xf32>,
    %c0_i32_8 = arith.constant 0 : i32
    %9 = arith.cmpi eq, %arg2, %c0_i32_8 : i32
    %10 = arith.extui %9 : i1 to i32
    %c0_i32_9 = arith.constant 0 : i32
    %11 = arith.cmpi ne, %10, %c0_i32_9 : i32
    scf.if %11 {
      %c0_10 = arith.constant 0 : index
      %c0_11 = arith.constant 0 : index
      %12 = vector.load %arg7[%c0_10, %c0_11] : memref<128x128xf32, #tpu.memory_space<vmem>>, vector<128x128xf32>
      %c0_12 = arith.constant 0 : index
      %c0_13 = arith.constant 0 : index
      %13 = vector.load %arg5[%c0_12, %c0_13] : memref<1x128xf32, #tpu.memory_space<vmem>>, vector<1x128xf32>
      %14 = vector.broadcast %13 : vector<1x128xf32> to vector<128x128xf32>
      %15 = arith.addf %12, %14 : vector<128x128xf32>
      %16 = arith.truncf %15 : vector<128x128xf32> to vector<128x128xbf16>
      %c0_14 = arith.constant 0 : index
      %c0_15 = arith.constant 0 : index
      %17 = vector.load %arg6[%c0_14, %c0_15] : memref<128x128xbf16, #tpu.memory_space<vmem>>, vector<128x128xbf16>
      tpu.vector_store %arg6[%c0_14, %c0_15], %16 {strides = array<i32>} : memref<128x128xbf16, #tpu.memory_space<vmem>>, vector<128x128xbf16>,
    } else {
    }
    return
  }
  func.func @transform_0(%arg0: i32, %arg1: i32, %arg2: i32) -> (i32, i32) {
    %c0_i32 = arith.constant 0 : i32
    return %arg0, %arg2 : i32, i32
  }
  func.func @transform_1(%arg0: i32, %arg1: i32, %arg2: i32) -> (i32, i32) {
    %c0_i32 = arith.constant 0 : i32
    return %arg2, %arg1 : i32, i32
  }
  func.func @transform_2(%arg0: i32, %arg1: i32, %arg2: i32) -> (i32, i32) {
    %c0_i32 = arith.constant 0 : i32
    %c0_i32_0 = arith.constant 0 : i32
    return %c0_i32, %arg1 : i32, i32
  }
  func.func @transform_3(%arg0: i32, %arg1: i32, %arg2: i32) -> (i32, i32) {
    %c0_i32 = arith.constant 0 : i32
    return %arg0, %arg1 : i32, i32
  }
}

module attributes {stable_mosaic.version = 11 : i64} {
  func.func @_mm_kernel(%arg0: i32, %arg1: i32, %arg2: i32, %arg3: memref<128x576xbf16, #tpu.memory_space<vmem>>, %arg4: memref<576x128xbf16, #tpu.memory_space<vmem>>, %arg5: memref<1x128xf32, #tpu.memory_space<vmem>>, %arg6: memref<128x128xbf16, #tpu.memory_space<vmem>>, %arg7: memref<128x128xf32, #tpu.memory_space<vmem>>) attributes {dimension_semantics = [#tpu.dimension_semantics<parallel>, #tpu.dimension_semantics<parallel>, #tpu.dimension_semantics<arbitrary>], iteration_bounds = array<i64: 1, 1, 1>, scalar_prefetch = 0 : i64, scratch_operands = 1 : i64, tpu.core_type = #tpu.core_type<tc>, window_params = [{transform_indices = @transform_0, window_bounds = array<i64: 128, 576>}, {transform_indices = @transform_1, window_bounds = array<i64: 576, 128>}, {transform_indices = @transform_2, window_bounds = array<i64: 1, 128>}, {transform_indices = @transform_3, window_bounds = array<i64: 128, 128>}]} {
    %c0_i32 = arith.constant 0 : i32
    %0 = arith.cmpi eq, %arg2, %c0_i32 : i32
    %1 = arith.extui %0 : i1 to i32
    %c0_i32_0 = arith.constant 0 : i32
    %2 = arith.cmpi ne, %1, %c0_i32_0 : i32
    scf.if %2 {
      %cst_10 = arith.constant 0.000000e+00 : f32
      %12 = vector.broadcast %cst_10 : f32 to vector<128x128xf32>
      %c0_11 = arith.constant 0 : index
      %c0_12 = arith.constant 0 : index
      %13 = vector.load %arg7[%c0_11, %c0_12] : memref<128x128xf32, #tpu.memory_space<vmem>>, vector<128x128xf32>
      tpu.vector_store %arg7[%c0_11, %c0_12], %12 {strides = array<i32>} : memref<128x128xf32, #tpu.memory_space<vmem>>, vector<128x128xf32>,
    } else {
    }
    %c0 = arith.constant 0 : index
    %c0_1 = arith.constant 0 : index
    %3 = vector.load %arg7[%c0, %c0_1] : memref<128x128xf32, #tpu.memory_space<vmem>>, vector<128x128xf32>
    %c0_2 = arith.constant 0 : index
    %c0_3 = arith.constant 0 : index
    %4 = vector.load %arg3[%c0_2, %c0_3] : memref<128x576xbf16, #tpu.memory_space<vmem>>, vector<128x576xbf16>
    %c0_4 = arith.constant 0 : index
    %c0_5 = arith.constant 0 : index
    %5 = vector.load %arg4[%c0_4, %c0_5] : memref<576x128xbf16, #tpu.memory_space<vmem>>, vector<576x128xbf16>
    %cst = arith.constant dense<0.000000e+00> : vector<128x128xf32>
    %6 = tpu.matmul %4, %5, %cst {dimension_numbers = #tpu.dot_dimension_numbers<[1], [0], [0], [1], [0, 0, 1, 1], [], []>} : vector<128x576xbf16>, vector<576x128xbf16>, vector<128x128xf32> -> vector<128x128xf32>
    %7 = arith.addf %3, %6 : vector<128x128xf32>
    %c0_6 = arith.constant 0 : index
    %c0_7 = arith.constant 0 : index
    %8 = vector.load %arg7[%c0_6, %c0_7] : memref<128x128xf32, #tpu.memory_space<vmem>>, vector<128x128xf32>
    tpu.vector_store %arg7[%c0_6, %c0_7], %7 {strides = array<i32>} : memref<128x128xf32, #tpu.memory_space<vmem>>, vector<128x128xf32>,
    %c0_i32_8 = arith.constant 0 : i32
    %9 = arith.cmpi eq, %arg2, %c0_i32_8 : i32
    %10 = arith.extui %9 : i1 to i32
    %c0_i32_9 = arith.constant 0 : i32
    %11 = arith.cmpi ne, %10, %c0_i32_9 : i32
    scf.if %11 {
      %c0_10 = arith.constant 0 : index
      %c0_11 = arith.constant 0 : index
      %12 = vector.load %arg7[%c0_10, %c0_11] : memref<128x128xf32, #tpu.memory_space<vmem>>, vector<128x128xf32>
      %c0_12 = arith.constant 0 : index
      %c0_13 = arith.constant 0 : index
      %13 = vector.load %arg5[%c0_12, %c0_13] : memref<1x128xf32, #tpu.memory_space<vmem>>, vector<1x128xf32>
      %14 = vector.broadcast %13 : vector<1x128xf32> to vector<128x128xf32>
      %15 = arith.addf %12, %14 : vector<128x128xf32>
      %cst_14 = arith.constant 0.000000e+00 : f32
      %16 = vector.broadcast %cst_14 : f32 to vector<128x128xf32>
      %17 = arith.maximumf %15, %16 : vector<128x128xf32>
      %18 = arith.truncf %17 : vector<128x128xf32> to vector<128x128xbf16>
      %c0_15 = arith.constant 0 : index
      %c0_16 = arith.constant 0 : index
      %19 = vector.load %arg6[%c0_15, %c0_16] : memref<128x128xbf16, #tpu.memory_space<vmem>>, vector<128x128xbf16>
      tpu.vector_store %arg6[%c0_15, %c0_16], %18 {strides = array<i32>} : memref<128x128xbf16, #tpu.memory_space<vmem>>, vector<128x128xbf16>,
    } else {
    }
    return
  }
  func.func @transform_0(%arg0: i32, %arg1: i32, %arg2: i32) -> (i32, i32) {
    %c0_i32 = arith.constant 0 : i32
    return %arg0, %arg2 : i32, i32
  }
  func.func @transform_1(%arg0: i32, %arg1: i32, %arg2: i32) -> (i32, i32) {
    %c0_i32 = arith.constant 0 : i32
    return %arg2, %arg1 : i32, i32
  }
  func.func @transform_2(%arg0: i32, %arg1: i32, %arg2: i32) -> (i32, i32) {
    %c0_i32 = arith.constant 0 : i32
    %c0_i32_0 = arith.constant 0 : i32
    return %c0_i32, %arg1 : i32, i32
  }
  func.func @transform_3(%arg0: i32, %arg1: i32, %arg2: i32) -> (i32, i32) {
    %c0_i32 = arith.constant 0 : i32
    return %arg0, %arg1 : i32, i32
  }
}

module attributes {stable_mosaic.version = 11 : i64} {
  func.func @_mm_kernel_res(%arg0: i32, %arg1: i32, %arg2: i32, %arg3: memref<128x128xbf16, #tpu.memory_space<vmem>>, %arg4: memref<128x128xbf16, #tpu.memory_space<vmem>>, %arg5: memref<1x128xf32, #tpu.memory_space<vmem>>, %arg6: memref<128x128xbf16, #tpu.memory_space<vmem>>, %arg7: memref<128x128xbf16, #tpu.memory_space<vmem>>, %arg8: memref<128x128xf32, #tpu.memory_space<vmem>>) attributes {dimension_semantics = [#tpu.dimension_semantics<parallel>, #tpu.dimension_semantics<parallel>, #tpu.dimension_semantics<arbitrary>], iteration_bounds = array<i64: 1, 1, 9>, scalar_prefetch = 0 : i64, scratch_operands = 1 : i64, tpu.core_type = #tpu.core_type<tc>, window_params = [{transform_indices = @transform_0, window_bounds = array<i64: 128, 128>}, {transform_indices = @transform_1, window_bounds = array<i64: 128, 128>}, {transform_indices = @transform_2, window_bounds = array<i64: 1, 128>}, {transform_indices = @transform_3, window_bounds = array<i64: 128, 128>}, {transform_indices = @transform_4, window_bounds = array<i64: 128, 128>}]} {
    %c0_i32 = arith.constant 0 : i32
    %0 = arith.cmpi eq, %arg2, %c0_i32 : i32
    %1 = arith.extui %0 : i1 to i32
    %c0_i32_0 = arith.constant 0 : i32
    %2 = arith.cmpi ne, %1, %c0_i32_0 : i32
    scf.if %2 {
      %cst_9 = arith.constant 0.000000e+00 : f32
      %12 = vector.broadcast %cst_9 : f32 to vector<128x128xf32>
      %c0_10 = arith.constant 0 : index
      %c0_11 = arith.constant 0 : index
      %13 = vector.load %arg8[%c0_10, %c0_11] : memref<128x128xf32, #tpu.memory_space<vmem>>, vector<128x128xf32>
      tpu.vector_store %arg8[%c0_10, %c0_11], %12 {strides = array<i32>} : memref<128x128xf32, #tpu.memory_space<vmem>>, vector<128x128xf32>,
    } else {
    }
    %c0 = arith.constant 0 : index
    %c0_1 = arith.constant 0 : index
    %3 = vector.load %arg8[%c0, %c0_1] : memref<128x128xf32, #tpu.memory_space<vmem>>, vector<128x128xf32>
    %c0_2 = arith.constant 0 : index
    %c0_3 = arith.constant 0 : index
    %4 = vector.load %arg3[%c0_2, %c0_3] : memref<128x128xbf16, #tpu.memory_space<vmem>>, vector<128x128xbf16>
    %c0_4 = arith.constant 0 : index
    %c0_5 = arith.constant 0 : index
    %5 = vector.load %arg4[%c0_4, %c0_5] : memref<128x128xbf16, #tpu.memory_space<vmem>>, vector<128x128xbf16>
    %cst = arith.constant dense<0.000000e+00> : vector<128x128xf32>
    %6 = tpu.matmul %4, %5, %cst {dimension_numbers = #tpu.dot_dimension_numbers<[1], [0], [0], [1], [0, 0, 1, 1], [], []>} : vector<128x128xbf16>, vector<128x128xbf16>, vector<128x128xf32> -> vector<128x128xf32>
    %7 = arith.addf %3, %6 : vector<128x128xf32>
    %c0_6 = arith.constant 0 : index
    %c0_7 = arith.constant 0 : index
    %8 = vector.load %arg8[%c0_6, %c0_7] : memref<128x128xf32, #tpu.memory_space<vmem>>, vector<128x128xf32>
    tpu.vector_store %arg8[%c0_6, %c0_7], %7 {strides = array<i32>} : memref<128x128xf32, #tpu.memory_space<vmem>>, vector<128x128xf32>,
    %c8_i32 = arith.constant 8 : i32
    %9 = arith.cmpi eq, %arg2, %c8_i32 : i32
    %10 = arith.extui %9 : i1 to i32
    %c0_i32_8 = arith.constant 0 : i32
    %11 = arith.cmpi ne, %10, %c0_i32_8 : i32
    scf.if %11 {
      %c0_9 = arith.constant 0 : index
      %c0_10 = arith.constant 0 : index
      %12 = vector.load %arg8[%c0_9, %c0_10] : memref<128x128xf32, #tpu.memory_space<vmem>>, vector<128x128xf32>
      %c0_11 = arith.constant 0 : index
      %c0_12 = arith.constant 0 : index
      %13 = vector.load %arg5[%c0_11, %c0_12] : memref<1x128xf32, #tpu.memory_space<vmem>>, vector<1x128xf32>
      %14 = vector.broadcast %13 : vector<1x128xf32> to vector<128x128xf32>
      %15 = arith.addf %12, %14 : vector<128x128xf32>
      %c0_13 = arith.constant 0 : index
      %c0_14 = arith.constant 0 : index
      %16 = vector.load %arg6[%c0_13, %c0_14] : memref<128x128xbf16, #tpu.memory_space<vmem>>, vector<128x128xbf16>
      %17 = arith.extf %16 : vector<128x128xbf16> to vector<128x128xf32>
      %18 = arith.addf %15, %17 : vector<128x128xf32>
      %cst_15 = arith.constant 0.000000e+00 : f32
      %19 = vector.broadcast %cst_15 : f32 to vector<128x128xf32>
      %20 = arith.maximumf %18, %19 : vector<128x128xf32>
      %21 = arith.truncf %20 : vector<128x128xf32> to vector<128x128xbf16>
      %c0_16 = arith.constant 0 : index
      %c0_17 = arith.constant 0 : index
      %22 = vector.load %arg7[%c0_16, %c0_17] : memref<128x128xbf16, #tpu.memory_space<vmem>>, vector<128x128xbf16>
      tpu.vector_store %arg7[%c0_16, %c0_17], %21 {strides = array<i32>} : memref<128x128xbf16, #tpu.memory_space<vmem>>, vector<128x128xbf16>,
    } else {
    }
    return
  }
  func.func @transform_0(%arg0: i32, %arg1: i32, %arg2: i32) -> (i32, i32) {
    %c0_i32 = arith.constant 0 : i32
    return %arg0, %arg2 : i32, i32
  }
  func.func @transform_1(%arg0: i32, %arg1: i32, %arg2: i32) -> (i32, i32) {
    %c0_i32 = arith.constant 0 : i32
    return %arg2, %arg1 : i32, i32
  }
  func.func @transform_2(%arg0: i32, %arg1: i32, %arg2: i32) -> (i32, i32) {
    %c0_i32 = arith.constant 0 : i32
    %c0_i32_0 = arith.constant 0 : i32
    return %c0_i32, %arg1 : i32, i32
  }
  func.func @transform_3(%arg0: i32, %arg1: i32, %arg2: i32) -> (i32, i32) {
    %c0_i32 = arith.constant 0 : i32
    return %arg0, %arg1 : i32, i32
  }
  func.func @transform_4(%arg0: i32, %arg1: i32, %arg2: i32) -> (i32, i32) {
    %c0_i32 = arith.constant 0 : i32
    return %arg0, %arg1 : i32, i32
  }
}

module attributes {stable_mosaic.version = 11 : i64} {
  func.func @_mm_kernel(%arg0: i32, %arg1: i32, %arg2: i32, %arg3: memref<128x128xbf16, #tpu.memory_space<vmem>>, %arg4: memref<128x128xbf16, #tpu.memory_space<vmem>>, %arg5: memref<1x128xf32, #tpu.memory_space<vmem>>, %arg6: memref<128x128xbf16, #tpu.memory_space<vmem>>, %arg7: memref<128x128xf32, #tpu.memory_space<vmem>>) attributes {dimension_semantics = [#tpu.dimension_semantics<parallel>, #tpu.dimension_semantics<parallel>, #tpu.dimension_semantics<arbitrary>], iteration_bounds = array<i64: 1, 1, 9>, scalar_prefetch = 0 : i64, scratch_operands = 1 : i64, tpu.core_type = #tpu.core_type<tc>, window_params = [{transform_indices = @transform_0, window_bounds = array<i64: 128, 128>}, {transform_indices = @transform_1, window_bounds = array<i64: 128, 128>}, {transform_indices = @transform_2, window_bounds = array<i64: 1, 128>}, {transform_indices = @transform_3, window_bounds = array<i64: 128, 128>}]} {
    %c0_i32 = arith.constant 0 : i32
    %0 = arith.cmpi eq, %arg2, %c0_i32 : i32
    %1 = arith.extui %0 : i1 to i32
    %c0_i32_0 = arith.constant 0 : i32
    %2 = arith.cmpi ne, %1, %c0_i32_0 : i32
    scf.if %2 {
      %cst_9 = arith.constant 0.000000e+00 : f32
      %12 = vector.broadcast %cst_9 : f32 to vector<128x128xf32>
      %c0_10 = arith.constant 0 : index
      %c0_11 = arith.constant 0 : index
      %13 = vector.load %arg7[%c0_10, %c0_11] : memref<128x128xf32, #tpu.memory_space<vmem>>, vector<128x128xf32>
      tpu.vector_store %arg7[%c0_10, %c0_11], %12 {strides = array<i32>} : memref<128x128xf32, #tpu.memory_space<vmem>>, vector<128x128xf32>,
    } else {
    }
    %c0 = arith.constant 0 : index
    %c0_1 = arith.constant 0 : index
    %3 = vector.load %arg7[%c0, %c0_1] : memref<128x128xf32, #tpu.memory_space<vmem>>, vector<128x128xf32>
    %c0_2 = arith.constant 0 : index
    %c0_3 = arith.constant 0 : index
    %4 = vector.load %arg3[%c0_2, %c0_3] : memref<128x128xbf16, #tpu.memory_space<vmem>>, vector<128x128xbf16>
    %c0_4 = arith.constant 0 : index
    %c0_5 = arith.constant 0 : index
    %5 = vector.load %arg4[%c0_4, %c0_5] : memref<128x128xbf16, #tpu.memory_space<vmem>>, vector<128x128xbf16>
    %cst = arith.constant dense<0.000000e+00> : vector<128x128xf32>
    %6 = tpu.matmul %4, %5, %cst {dimension_numbers = #tpu.dot_dimension_numbers<[1], [0], [0], [1], [0, 0, 1, 1], [], []>} : vector<128x128xbf16>, vector<128x128xbf16>, vector<128x128xf32> -> vector<128x128xf32>
    %7 = arith.addf %3, %6 : vector<128x128xf32>
    %c0_6 = arith.constant 0 : index
    %c0_7 = arith.constant 0 : index
    %8 = vector.load %arg7[%c0_6, %c0_7] : memref<128x128xf32, #tpu.memory_space<vmem>>, vector<128x128xf32>
    tpu.vector_store %arg7[%c0_6, %c0_7], %7 {strides = array<i32>} : memref<128x128xf32, #tpu.memory_space<vmem>>, vector<128x128xf32>,
    %c8_i32 = arith.constant 8 : i32
    %9 = arith.cmpi eq, %arg2, %c8_i32 : i32
    %10 = arith.extui %9 : i1 to i32
    %c0_i32_8 = arith.constant 0 : i32
    %11 = arith.cmpi ne, %10, %c0_i32_8 : i32
    scf.if %11 {
      %c0_9 = arith.constant 0 : index
      %c0_10 = arith.constant 0 : index
      %12 = vector.load %arg7[%c0_9, %c0_10] : memref<128x128xf32, #tpu.memory_space<vmem>>, vector<128x128xf32>
      %c0_11 = arith.constant 0 : index
      %c0_12 = arith.constant 0 : index
      %13 = vector.load %arg5[%c0_11, %c0_12] : memref<1x128xf32, #tpu.memory_space<vmem>>, vector<1x128xf32>
      %14 = vector.broadcast %13 : vector<1x128xf32> to vector<128x128xf32>
      %15 = arith.addf %12, %14 : vector<128x128xf32>
      %cst_13 = arith.constant 0.000000e+00 : f32
      %16 = vector.broadcast %cst_13 : f32 to vector<128x128xf32>
      %17 = arith.maximumf %15, %16 : vector<128x128xf32>
      %18 = arith.truncf %17 : vector<128x128xf32> to vector<128x128xbf16>
      %c0_14 = arith.constant 0 : index
      %c0_15 = arith.constant 0 : index
      %19 = vector.load %arg6[%c0_14, %c0_15] : memref<128x128xbf16, #tpu.memory_space<vmem>>, vector<128x128xbf16>
      tpu.vector_store %arg6[%c0_14, %c0_15], %18 {strides = array<i32>} : memref<128x128xbf16, #tpu.memory_space<vmem>>, vector<128x128xbf16>,
    } else {
    }
    return
  }
  func.func @transform_0(%arg0: i32, %arg1: i32, %arg2: i32) -> (i32, i32) {
    %c0_i32 = arith.constant 0 : i32
    return %arg0, %arg2 : i32, i32
  }
  func.func @transform_1(%arg0: i32, %arg1: i32, %arg2: i32) -> (i32, i32) {
    %c0_i32 = arith.constant 0 : i32
    return %arg2, %arg1 : i32, i32
  }
  func.func @transform_2(%arg0: i32, %arg1: i32, %arg2: i32) -> (i32, i32) {
    %c0_i32 = arith.constant 0 : i32
    %c0_i32_0 = arith.constant 0 : i32
    return %c0_i32, %arg1 : i32, i32
  }
  func.func @transform_3(%arg0: i32, %arg1: i32, %arg2: i32) -> (i32, i32) {
    %c0_i32 = arith.constant 0 : i32
    return %arg0, %arg1 : i32, i32
  }
}

module attributes {stable_mosaic.version = 11 : i64} {
  func.func @_mm_kernel(%arg0: i32, %arg1: i32, %arg2: i32, %arg3: memref<32x128xbf16, #tpu.memory_space<vmem>>, %arg4: memref<128x256xbf16, #tpu.memory_space<vmem>>, %arg5: memref<1x256xf32, #tpu.memory_space<vmem>>, %arg6: memref<32x256xbf16, #tpu.memory_space<vmem>>, %arg7: memref<32x256xf32, #tpu.memory_space<vmem>>) attributes {dimension_semantics = [#tpu.dimension_semantics<parallel>, #tpu.dimension_semantics<parallel>, #tpu.dimension_semantics<arbitrary>], iteration_bounds = array<i64: 1, 1, 1>, scalar_prefetch = 0 : i64, scratch_operands = 1 : i64, tpu.core_type = #tpu.core_type<tc>, window_params = [{transform_indices = @transform_0, window_bounds = array<i64: 32, 128>}, {transform_indices = @transform_1, window_bounds = array<i64: 128, 256>}, {transform_indices = @transform_2, window_bounds = array<i64: 1, 256>}, {transform_indices = @transform_3, window_bounds = array<i64: 32, 256>}]} {
    %c0_i32 = arith.constant 0 : i32
    %0 = arith.cmpi eq, %arg2, %c0_i32 : i32
    %1 = arith.extui %0 : i1 to i32
    %c0_i32_0 = arith.constant 0 : i32
    %2 = arith.cmpi ne, %1, %c0_i32_0 : i32
    scf.if %2 {
      %cst_10 = arith.constant 0.000000e+00 : f32
      %12 = vector.broadcast %cst_10 : f32 to vector<32x256xf32>
      %c0_11 = arith.constant 0 : index
      %c0_12 = arith.constant 0 : index
      %13 = vector.load %arg7[%c0_11, %c0_12] : memref<32x256xf32, #tpu.memory_space<vmem>>, vector<32x256xf32>
      tpu.vector_store %arg7[%c0_11, %c0_12], %12 {strides = array<i32>} : memref<32x256xf32, #tpu.memory_space<vmem>>, vector<32x256xf32>,
    } else {
    }
    %c0 = arith.constant 0 : index
    %c0_1 = arith.constant 0 : index
    %3 = vector.load %arg7[%c0, %c0_1] : memref<32x256xf32, #tpu.memory_space<vmem>>, vector<32x256xf32>
    %c0_2 = arith.constant 0 : index
    %c0_3 = arith.constant 0 : index
    %4 = vector.load %arg3[%c0_2, %c0_3] : memref<32x128xbf16, #tpu.memory_space<vmem>>, vector<32x128xbf16>
    %c0_4 = arith.constant 0 : index
    %c0_5 = arith.constant 0 : index
    %5 = vector.load %arg4[%c0_4, %c0_5] : memref<128x256xbf16, #tpu.memory_space<vmem>>, vector<128x256xbf16>
    %cst = arith.constant dense<0.000000e+00> : vector<32x256xf32>
    %6 = tpu.matmul %4, %5, %cst {dimension_numbers = #tpu.dot_dimension_numbers<[1], [0], [0], [1], [0, 0, 1, 1], [], []>} : vector<32x128xbf16>, vector<128x256xbf16>, vector<32x256xf32> -> vector<32x256xf32>
    %7 = arith.addf %3, %6 : vector<32x256xf32>
    %c0_6 = arith.constant 0 : index
    %c0_7 = arith.constant 0 : index
    %8 = vector.load %arg7[%c0_6, %c0_7] : memref<32x256xf32, #tpu.memory_space<vmem>>, vector<32x256xf32>
    tpu.vector_store %arg7[%c0_6, %c0_7], %7 {strides = array<i32>} : memref<32x256xf32, #tpu.memory_space<vmem>>, vector<32x256xf32>,
    %c0_i32_8 = arith.constant 0 : i32
    %9 = arith.cmpi eq, %arg2, %c0_i32_8 : i32
    %10 = arith.extui %9 : i1 to i32
    %c0_i32_9 = arith.constant 0 : i32
    %11 = arith.cmpi ne, %10, %c0_i32_9 : i32
    scf.if %11 {
      %c0_10 = arith.constant 0 : index
      %c0_11 = arith.constant 0 : index
      %12 = vector.load %arg7[%c0_10, %c0_11] : memref<32x256xf32, #tpu.memory_space<vmem>>, vector<32x256xf32>
      %c0_12 = arith.constant 0 : index
      %c0_13 = arith.constant 0 : index
      %13 = vector.load %arg5[%c0_12, %c0_13] : memref<1x256xf32, #tpu.memory_space<vmem>>, vector<1x256xf32>
      %14 = vector.broadcast %13 : vector<1x256xf32> to vector<32x256xf32>
      %15 = arith.addf %12, %14 : vector<32x256xf32>
      %16 = arith.truncf %15 : vector<32x256xf32> to vector<32x256xbf16>
      %c0_14 = arith.constant 0 : index
      %c0_15 = arith.constant 0 : index
      %17 = vector.load %arg6[%c0_14, %c0_15] : memref<32x256xbf16, #tpu.memory_space<vmem>>, vector<32x256xbf16>
      tpu.vector_store %arg6[%c0_14, %c0_15], %16 {strides = array<i32>} : memref<32x256xbf16, #tpu.memory_space<vmem>>, vector<32x256xbf16>,
    } else {
    }
    return
  }
  func.func @transform_0(%arg0: i32, %arg1: i32, %arg2: i32) -> (i32, i32) {
    %c0_i32 = arith.constant 0 : i32
    return %arg0, %arg2 : i32, i32
  }
  func.func @transform_1(%arg0: i32, %arg1: i32, %arg2: i32) -> (i32, i32) {
    %c0_i32 = arith.constant 0 : i32
    return %arg2, %arg1 : i32, i32
  }
  func.func @transform_2(%arg0: i32, %arg1: i32, %arg2: i32) -> (i32, i32) {
    %c0_i32 = arith.constant 0 : i32
    %c0_i32_0 = arith.constant 0 : i32
    return %c0_i32, %arg1 : i32, i32
  }
  func.func @transform_3(%arg0: i32, %arg1: i32, %arg2: i32) -> (i32, i32) {
    %c0_i32 = arith.constant 0 : i32
    return %arg0, %arg1 : i32, i32
  }
}

module attributes {stable_mosaic.version = 11 : i64} {
  func.func @_mm_kernel(%arg0: i32, %arg1: i32, %arg2: i32, %arg3: memref<32x128xbf16, #tpu.memory_space<vmem>>, %arg4: memref<128x256xbf16, #tpu.memory_space<vmem>>, %arg5: memref<1x256xf32, #tpu.memory_space<vmem>>, %arg6: memref<32x256xbf16, #tpu.memory_space<vmem>>, %arg7: memref<32x256xf32, #tpu.memory_space<vmem>>) attributes {dimension_semantics = [#tpu.dimension_semantics<parallel>, #tpu.dimension_semantics<parallel>, #tpu.dimension_semantics<arbitrary>], iteration_bounds = array<i64: 1, 1, 9>, scalar_prefetch = 0 : i64, scratch_operands = 1 : i64, tpu.core_type = #tpu.core_type<tc>, window_params = [{transform_indices = @transform_0, window_bounds = array<i64: 32, 128>}, {transform_indices = @transform_1, window_bounds = array<i64: 128, 256>}, {transform_indices = @transform_2, window_bounds = array<i64: 1, 256>}, {transform_indices = @transform_3, window_bounds = array<i64: 32, 256>}]} {
    %c0_i32 = arith.constant 0 : i32
    %0 = arith.cmpi eq, %arg2, %c0_i32 : i32
    %1 = arith.extui %0 : i1 to i32
    %c0_i32_0 = arith.constant 0 : i32
    %2 = arith.cmpi ne, %1, %c0_i32_0 : i32
    scf.if %2 {
      %cst_9 = arith.constant 0.000000e+00 : f32
      %12 = vector.broadcast %cst_9 : f32 to vector<32x256xf32>
      %c0_10 = arith.constant 0 : index
      %c0_11 = arith.constant 0 : index
      %13 = vector.load %arg7[%c0_10, %c0_11] : memref<32x256xf32, #tpu.memory_space<vmem>>, vector<32x256xf32>
      tpu.vector_store %arg7[%c0_10, %c0_11], %12 {strides = array<i32>} : memref<32x256xf32, #tpu.memory_space<vmem>>, vector<32x256xf32>,
    } else {
    }
    %c0 = arith.constant 0 : index
    %c0_1 = arith.constant 0 : index
    %3 = vector.load %arg7[%c0, %c0_1] : memref<32x256xf32, #tpu.memory_space<vmem>>, vector<32x256xf32>
    %c0_2 = arith.constant 0 : index
    %c0_3 = arith.constant 0 : index
    %4 = vector.load %arg3[%c0_2, %c0_3] : memref<32x128xbf16, #tpu.memory_space<vmem>>, vector<32x128xbf16>
    %c0_4 = arith.constant 0 : index
    %c0_5 = arith.constant 0 : index
    %5 = vector.load %arg4[%c0_4, %c0_5] : memref<128x256xbf16, #tpu.memory_space<vmem>>, vector<128x256xbf16>
    %cst = arith.constant dense<0.000000e+00> : vector<32x256xf32>
    %6 = tpu.matmul %4, %5, %cst {dimension_numbers = #tpu.dot_dimension_numbers<[1], [0], [0], [1], [0, 0, 1, 1], [], []>} : vector<32x128xbf16>, vector<128x256xbf16>, vector<32x256xf32> -> vector<32x256xf32>
    %7 = arith.addf %3, %6 : vector<32x256xf32>
    %c0_6 = arith.constant 0 : index
    %c0_7 = arith.constant 0 : index
    %8 = vector.load %arg7[%c0_6, %c0_7] : memref<32x256xf32, #tpu.memory_space<vmem>>, vector<32x256xf32>
    tpu.vector_store %arg7[%c0_6, %c0_7], %7 {strides = array<i32>} : memref<32x256xf32, #tpu.memory_space<vmem>>, vector<32x256xf32>,
    %c8_i32 = arith.constant 8 : i32
    %9 = arith.cmpi eq, %arg2, %c8_i32 : i32
    %10 = arith.extui %9 : i1 to i32
    %c0_i32_8 = arith.constant 0 : i32
    %11 = arith.cmpi ne, %10, %c0_i32_8 : i32
    scf.if %11 {
      %c0_9 = arith.constant 0 : index
      %c0_10 = arith.constant 0 : index
      %12 = vector.load %arg7[%c0_9, %c0_10] : memref<32x256xf32, #tpu.memory_space<vmem>>, vector<32x256xf32>
      %c0_11 = arith.constant 0 : index
      %c0_12 = arith.constant 0 : index
      %13 = vector.load %arg5[%c0_11, %c0_12] : memref<1x256xf32, #tpu.memory_space<vmem>>, vector<1x256xf32>
      %14 = vector.broadcast %13 : vector<1x256xf32> to vector<32x256xf32>
      %15 = arith.addf %12, %14 : vector<32x256xf32>
      %cst_13 = arith.constant 0.000000e+00 : f32
      %16 = vector.broadcast %cst_13 : f32 to vector<32x256xf32>
      %17 = arith.maximumf %15, %16 : vector<32x256xf32>
      %18 = arith.truncf %17 : vector<32x256xf32> to vector<32x256xbf16>
      %c0_14 = arith.constant 0 : index
      %c0_15 = arith.constant 0 : index
      %19 = vector.load %arg6[%c0_14, %c0_15] : memref<32x256xbf16, #tpu.memory_space<vmem>>, vector<32x256xbf16>
      tpu.vector_store %arg6[%c0_14, %c0_15], %18 {strides = array<i32>} : memref<32x256xbf16, #tpu.memory_space<vmem>>, vector<32x256xbf16>,
    } else {
    }
    return
  }
  func.func @transform_0(%arg0: i32, %arg1: i32, %arg2: i32) -> (i32, i32) {
    %c0_i32 = arith.constant 0 : i32
    return %arg0, %arg2 : i32, i32
  }
  func.func @transform_1(%arg0: i32, %arg1: i32, %arg2: i32) -> (i32, i32) {
    %c0_i32 = arith.constant 0 : i32
    return %arg2, %arg1 : i32, i32
  }
  func.func @transform_2(%arg0: i32, %arg1: i32, %arg2: i32) -> (i32, i32) {
    %c0_i32 = arith.constant 0 : i32
    %c0_i32_0 = arith.constant 0 : i32
    return %c0_i32, %arg1 : i32, i32
  }
  func.func @transform_3(%arg0: i32, %arg1: i32, %arg2: i32) -> (i32, i32) {
    %c0_i32 = arith.constant 0 : i32
    return %arg0, %arg1 : i32, i32
  }
}

module attributes {stable_mosaic.version = 11 : i64} {
  func.func @_mm_kernel_res(%arg0: i32, %arg1: i32, %arg2: i32, %arg3: memref<32x256xbf16, #tpu.memory_space<vmem>>, %arg4: memref<256x256xbf16, #tpu.memory_space<vmem>>, %arg5: memref<1x256xf32, #tpu.memory_space<vmem>>, %arg6: memref<32x256xbf16, #tpu.memory_space<vmem>>, %arg7: memref<32x256xbf16, #tpu.memory_space<vmem>>, %arg8: memref<32x256xf32, #tpu.memory_space<vmem>>) attributes {dimension_semantics = [#tpu.dimension_semantics<parallel>, #tpu.dimension_semantics<parallel>, #tpu.dimension_semantics<arbitrary>], iteration_bounds = array<i64: 1, 1, 9>, scalar_prefetch = 0 : i64, scratch_operands = 1 : i64, tpu.core_type = #tpu.core_type<tc>, window_params = [{transform_indices = @transform_0, window_bounds = array<i64: 32, 256>}, {transform_indices = @transform_1, window_bounds = array<i64: 256, 256>}, {transform_indices = @transform_2, window_bounds = array<i64: 1, 256>}, {transform_indices = @transform_3, window_bounds = array<i64: 32, 256>}, {transform_indices = @transform_4, window_bounds = array<i64: 32, 256>}]} {
    %c0_i32 = arith.constant 0 : i32
    %0 = arith.cmpi eq, %arg2, %c0_i32 : i32
    %1 = arith.extui %0 : i1 to i32
    %c0_i32_0 = arith.constant 0 : i32
    %2 = arith.cmpi ne, %1, %c0_i32_0 : i32
    scf.if %2 {
      %cst_9 = arith.constant 0.000000e+00 : f32
      %12 = vector.broadcast %cst_9 : f32 to vector<32x256xf32>
      %c0_10 = arith.constant 0 : index
      %c0_11 = arith.constant 0 : index
      %13 = vector.load %arg8[%c0_10, %c0_11] : memref<32x256xf32, #tpu.memory_space<vmem>>, vector<32x256xf32>
      tpu.vector_store %arg8[%c0_10, %c0_11], %12 {strides = array<i32>} : memref<32x256xf32, #tpu.memory_space<vmem>>, vector<32x256xf32>,
    } else {
    }
    %c0 = arith.constant 0 : index
    %c0_1 = arith.constant 0 : index
    %3 = vector.load %arg8[%c0, %c0_1] : memref<32x256xf32, #tpu.memory_space<vmem>>, vector<32x256xf32>
    %c0_2 = arith.constant 0 : index
    %c0_3 = arith.constant 0 : index
    %4 = vector.load %arg3[%c0_2, %c0_3] : memref<32x256xbf16, #tpu.memory_space<vmem>>, vector<32x256xbf16>
    %c0_4 = arith.constant 0 : index
    %c0_5 = arith.constant 0 : index
    %5 = vector.load %arg4[%c0_4, %c0_5] : memref<256x256xbf16, #tpu.memory_space<vmem>>, vector<256x256xbf16>
    %cst = arith.constant dense<0.000000e+00> : vector<32x256xf32>
    %6 = tpu.matmul %4, %5, %cst {dimension_numbers = #tpu.dot_dimension_numbers<[1], [0], [0], [1], [0, 0, 1, 1], [], []>} : vector<32x256xbf16>, vector<256x256xbf16>, vector<32x256xf32> -> vector<32x256xf32>
    %7 = arith.addf %3, %6 : vector<32x256xf32>
    %c0_6 = arith.constant 0 : index
    %c0_7 = arith.constant 0 : index
    %8 = vector.load %arg8[%c0_6, %c0_7] : memref<32x256xf32, #tpu.memory_space<vmem>>, vector<32x256xf32>
    tpu.vector_store %arg8[%c0_6, %c0_7], %7 {strides = array<i32>} : memref<32x256xf32, #tpu.memory_space<vmem>>, vector<32x256xf32>,
    %c8_i32 = arith.constant 8 : i32
    %9 = arith.cmpi eq, %arg2, %c8_i32 : i32
    %10 = arith.extui %9 : i1 to i32
    %c0_i32_8 = arith.constant 0 : i32
    %11 = arith.cmpi ne, %10, %c0_i32_8 : i32
    scf.if %11 {
      %c0_9 = arith.constant 0 : index
      %c0_10 = arith.constant 0 : index
      %12 = vector.load %arg8[%c0_9, %c0_10] : memref<32x256xf32, #tpu.memory_space<vmem>>, vector<32x256xf32>
      %c0_11 = arith.constant 0 : index
      %c0_12 = arith.constant 0 : index
      %13 = vector.load %arg5[%c0_11, %c0_12] : memref<1x256xf32, #tpu.memory_space<vmem>>, vector<1x256xf32>
      %14 = vector.broadcast %13 : vector<1x256xf32> to vector<32x256xf32>
      %15 = arith.addf %12, %14 : vector<32x256xf32>
      %c0_13 = arith.constant 0 : index
      %c0_14 = arith.constant 0 : index
      %16 = vector.load %arg6[%c0_13, %c0_14] : memref<32x256xbf16, #tpu.memory_space<vmem>>, vector<32x256xbf16>
      %17 = arith.extf %16 : vector<32x256xbf16> to vector<32x256xf32>
      %18 = arith.addf %15, %17 : vector<32x256xf32>
      %cst_15 = arith.constant 0.000000e+00 : f32
      %19 = vector.broadcast %cst_15 : f32 to vector<32x256xf32>
      %20 = arith.maximumf %18, %19 : vector<32x256xf32>
      %21 = arith.truncf %20 : vector<32x256xf32> to vector<32x256xbf16>
      %c0_16 = arith.constant 0 : index
      %c0_17 = arith.constant 0 : index
      %22 = vector.load %arg7[%c0_16, %c0_17] : memref<32x256xbf16, #tpu.memory_space<vmem>>, vector<32x256xbf16>
      tpu.vector_store %arg7[%c0_16, %c0_17], %21 {strides = array<i32>} : memref<32x256xbf16, #tpu.memory_space<vmem>>, vector<32x256xbf16>,
    } else {
    }
    return
  }
  func.func @transform_0(%arg0: i32, %arg1: i32, %arg2: i32) -> (i32, i32) {
    %c0_i32 = arith.constant 0 : i32
    return %arg0, %arg2 : i32, i32
  }
  func.func @transform_1(%arg0: i32, %arg1: i32, %arg2: i32) -> (i32, i32) {
    %c0_i32 = arith.constant 0 : i32
    return %arg2, %arg1 : i32, i32
  }
  func.func @transform_2(%arg0: i32, %arg1: i32, %arg2: i32) -> (i32, i32) {
    %c0_i32 = arith.constant 0 : i32
    %c0_i32_0 = arith.constant 0 : i32
    return %c0_i32, %arg1 : i32, i32
  }
  func.func @transform_3(%arg0: i32, %arg1: i32, %arg2: i32) -> (i32, i32) {
    %c0_i32 = arith.constant 0 : i32
    return %arg0, %arg1 : i32, i32
  }
  func.func @transform_4(%arg0: i32, %arg1: i32, %arg2: i32) -> (i32, i32) {
    %c0_i32 = arith.constant 0 : i32
    return %arg0, %arg1 : i32, i32
  }
}

module attributes {stable_mosaic.version = 11 : i64} {
  func.func @_mm_kernel(%arg0: i32, %arg1: i32, %arg2: i32, %arg3: memref<32x256xbf16, #tpu.memory_space<vmem>>, %arg4: memref<256x256xbf16, #tpu.memory_space<vmem>>, %arg5: memref<1x256xf32, #tpu.memory_space<vmem>>, %arg6: memref<32x256xbf16, #tpu.memory_space<vmem>>, %arg7: memref<32x256xf32, #tpu.memory_space<vmem>>) attributes {dimension_semantics = [#tpu.dimension_semantics<parallel>, #tpu.dimension_semantics<parallel>, #tpu.dimension_semantics<arbitrary>], iteration_bounds = array<i64: 1, 1, 9>, scalar_prefetch = 0 : i64, scratch_operands = 1 : i64, tpu.core_type = #tpu.core_type<tc>, window_params = [{transform_indices = @transform_0, window_bounds = array<i64: 32, 256>}, {transform_indices = @transform_1, window_bounds = array<i64: 256, 256>}, {transform_indices = @transform_2, window_bounds = array<i64: 1, 256>}, {transform_indices = @transform_3, window_bounds = array<i64: 32, 256>}]} {
    %c0_i32 = arith.constant 0 : i32
    %0 = arith.cmpi eq, %arg2, %c0_i32 : i32
    %1 = arith.extui %0 : i1 to i32
    %c0_i32_0 = arith.constant 0 : i32
    %2 = arith.cmpi ne, %1, %c0_i32_0 : i32
    scf.if %2 {
      %cst_9 = arith.constant 0.000000e+00 : f32
      %12 = vector.broadcast %cst_9 : f32 to vector<32x256xf32>
      %c0_10 = arith.constant 0 : index
      %c0_11 = arith.constant 0 : index
      %13 = vector.load %arg7[%c0_10, %c0_11] : memref<32x256xf32, #tpu.memory_space<vmem>>, vector<32x256xf32>
      tpu.vector_store %arg7[%c0_10, %c0_11], %12 {strides = array<i32>} : memref<32x256xf32, #tpu.memory_space<vmem>>, vector<32x256xf32>,
    } else {
    }
    %c0 = arith.constant 0 : index
    %c0_1 = arith.constant 0 : index
    %3 = vector.load %arg7[%c0, %c0_1] : memref<32x256xf32, #tpu.memory_space<vmem>>, vector<32x256xf32>
    %c0_2 = arith.constant 0 : index
    %c0_3 = arith.constant 0 : index
    %4 = vector.load %arg3[%c0_2, %c0_3] : memref<32x256xbf16, #tpu.memory_space<vmem>>, vector<32x256xbf16>
    %c0_4 = arith.constant 0 : index
    %c0_5 = arith.constant 0 : index
    %5 = vector.load %arg4[%c0_4, %c0_5] : memref<256x256xbf16, #tpu.memory_space<vmem>>, vector<256x256xbf16>
    %cst = arith.constant dense<0.000000e+00> : vector<32x256xf32>
    %6 = tpu.matmul %4, %5, %cst {dimension_numbers = #tpu.dot_dimension_numbers<[1], [0], [0], [1], [0, 0, 1, 1], [], []>} : vector<32x256xbf16>, vector<256x256xbf16>, vector<32x256xf32> -> vector<32x256xf32>
    %7 = arith.addf %3, %6 : vector<32x256xf32>
    %c0_6 = arith.constant 0 : index
    %c0_7 = arith.constant 0 : index
    %8 = vector.load %arg7[%c0_6, %c0_7] : memref<32x256xf32, #tpu.memory_space<vmem>>, vector<32x256xf32>
    tpu.vector_store %arg7[%c0_6, %c0_7], %7 {strides = array<i32>} : memref<32x256xf32, #tpu.memory_space<vmem>>, vector<32x256xf32>,
    %c8_i32 = arith.constant 8 : i32
    %9 = arith.cmpi eq, %arg2, %c8_i32 : i32
    %10 = arith.extui %9 : i1 to i32
    %c0_i32_8 = arith.constant 0 : i32
    %11 = arith.cmpi ne, %10, %c0_i32_8 : i32
    scf.if %11 {
      %c0_9 = arith.constant 0 : index
      %c0_10 = arith.constant 0 : index
      %12 = vector.load %arg7[%c0_9, %c0_10] : memref<32x256xf32, #tpu.memory_space<vmem>>, vector<32x256xf32>
      %c0_11 = arith.constant 0 : index
      %c0_12 = arith.constant 0 : index
      %13 = vector.load %arg5[%c0_11, %c0_12] : memref<1x256xf32, #tpu.memory_space<vmem>>, vector<1x256xf32>
      %14 = vector.broadcast %13 : vector<1x256xf32> to vector<32x256xf32>
      %15 = arith.addf %12, %14 : vector<32x256xf32>
      %cst_13 = arith.constant 0.000000e+00 : f32
      %16 = vector.broadcast %cst_13 : f32 to vector<32x256xf32>
      %17 = arith.maximumf %15, %16 : vector<32x256xf32>
      %18 = arith.truncf %17 : vector<32x256xf32> to vector<32x256xbf16>
      %c0_14 = arith.constant 0 : index
      %c0_15 = arith.constant 0 : index
      %19 = vector.load %arg6[%c0_14, %c0_15] : memref<32x256xbf16, #tpu.memory_space<vmem>>, vector<32x256xbf16>
      tpu.vector_store %arg6[%c0_14, %c0_15], %18 {strides = array<i32>} : memref<32x256xbf16, #tpu.memory_space<vmem>>, vector<32x256xbf16>,
    } else {
    }
    return
  }
  func.func @transform_0(%arg0: i32, %arg1: i32, %arg2: i32) -> (i32, i32) {
    %c0_i32 = arith.constant 0 : i32
    return %arg0, %arg2 : i32, i32
  }
  func.func @transform_1(%arg0: i32, %arg1: i32, %arg2: i32) -> (i32, i32) {
    %c0_i32 = arith.constant 0 : i32
    return %arg2, %arg1 : i32, i32
  }
  func.func @transform_2(%arg0: i32, %arg1: i32, %arg2: i32) -> (i32, i32) {
    %c0_i32 = arith.constant 0 : i32
    %c0_i32_0 = arith.constant 0 : i32
    return %c0_i32, %arg1 : i32, i32
  }
  func.func @transform_3(%arg0: i32, %arg1: i32, %arg2: i32) -> (i32, i32) {
    %c0_i32 = arith.constant 0 : i32
    return %arg0, %arg1 : i32, i32
  }
}

module attributes {stable_mosaic.version = 11 : i64} {
  func.func @_mm_kernel(%arg0: i32, %arg1: i32, %arg2: i32, %arg3: memref<16x256xbf16, #tpu.memory_space<vmem>>, %arg4: memref<256x512xbf16, #tpu.memory_space<vmem>>, %arg5: memref<1x512xf32, #tpu.memory_space<vmem>>, %arg6: memref<16x512xbf16, #tpu.memory_space<vmem>>, %arg7: memref<16x512xf32, #tpu.memory_space<vmem>>) attributes {dimension_semantics = [#tpu.dimension_semantics<parallel>, #tpu.dimension_semantics<parallel>, #tpu.dimension_semantics<arbitrary>], iteration_bounds = array<i64: 1, 1, 1>, scalar_prefetch = 0 : i64, scratch_operands = 1 : i64, tpu.core_type = #tpu.core_type<tc>, window_params = [{transform_indices = @transform_0, window_bounds = array<i64: 16, 256>}, {transform_indices = @transform_1, window_bounds = array<i64: 256, 512>}, {transform_indices = @transform_2, window_bounds = array<i64: 1, 512>}, {transform_indices = @transform_3, window_bounds = array<i64: 16, 512>}]} {
    %c0_i32 = arith.constant 0 : i32
    %0 = arith.cmpi eq, %arg2, %c0_i32 : i32
    %1 = arith.extui %0 : i1 to i32
    %c0_i32_0 = arith.constant 0 : i32
    %2 = arith.cmpi ne, %1, %c0_i32_0 : i32
    scf.if %2 {
      %cst_10 = arith.constant 0.000000e+00 : f32
      %12 = vector.broadcast %cst_10 : f32 to vector<16x512xf32>
      %c0_11 = arith.constant 0 : index
      %c0_12 = arith.constant 0 : index
      %13 = vector.load %arg7[%c0_11, %c0_12] : memref<16x512xf32, #tpu.memory_space<vmem>>, vector<16x512xf32>
      tpu.vector_store %arg7[%c0_11, %c0_12], %12 {strides = array<i32>} : memref<16x512xf32, #tpu.memory_space<vmem>>, vector<16x512xf32>,
    } else {
    }
    %c0 = arith.constant 0 : index
    %c0_1 = arith.constant 0 : index
    %3 = vector.load %arg7[%c0, %c0_1] : memref<16x512xf32, #tpu.memory_space<vmem>>, vector<16x512xf32>
    %c0_2 = arith.constant 0 : index
    %c0_3 = arith.constant 0 : index
    %4 = vector.load %arg3[%c0_2, %c0_3] : memref<16x256xbf16, #tpu.memory_space<vmem>>, vector<16x256xbf16>
    %c0_4 = arith.constant 0 : index
    %c0_5 = arith.constant 0 : index
    %5 = vector.load %arg4[%c0_4, %c0_5] : memref<256x512xbf16, #tpu.memory_space<vmem>>, vector<256x512xbf16>
    %cst = arith.constant dense<0.000000e+00> : vector<16x512xf32>
    %6 = tpu.matmul %4, %5, %cst {dimension_numbers = #tpu.dot_dimension_numbers<[1], [0], [0], [1], [0, 0, 1, 1], [], []>} : vector<16x256xbf16>, vector<256x512xbf16>, vector<16x512xf32> -> vector<16x512xf32>
    %7 = arith.addf %3, %6 : vector<16x512xf32>
    %c0_6 = arith.constant 0 : index
    %c0_7 = arith.constant 0 : index
    %8 = vector.load %arg7[%c0_6, %c0_7] : memref<16x512xf32, #tpu.memory_space<vmem>>, vector<16x512xf32>
    tpu.vector_store %arg7[%c0_6, %c0_7], %7 {strides = array<i32>} : memref<16x512xf32, #tpu.memory_space<vmem>>, vector<16x512xf32>,
    %c0_i32_8 = arith.constant 0 : i32
    %9 = arith.cmpi eq, %arg2, %c0_i32_8 : i32
    %10 = arith.extui %9 : i1 to i32
    %c0_i32_9 = arith.constant 0 : i32
    %11 = arith.cmpi ne, %10, %c0_i32_9 : i32
    scf.if %11 {
      %c0_10 = arith.constant 0 : index
      %c0_11 = arith.constant 0 : index
      %12 = vector.load %arg7[%c0_10, %c0_11] : memref<16x512xf32, #tpu.memory_space<vmem>>, vector<16x512xf32>
      %c0_12 = arith.constant 0 : index
      %c0_13 = arith.constant 0 : index
      %13 = vector.load %arg5[%c0_12, %c0_13] : memref<1x512xf32, #tpu.memory_space<vmem>>, vector<1x512xf32>
      %14 = vector.broadcast %13 : vector<1x512xf32> to vector<16x512xf32>
      %15 = arith.addf %12, %14 : vector<16x512xf32>
      %16 = arith.truncf %15 : vector<16x512xf32> to vector<16x512xbf16>
      %c0_14 = arith.constant 0 : index
      %c0_15 = arith.constant 0 : index
      %17 = vector.load %arg6[%c0_14, %c0_15] : memref<16x512xbf16, #tpu.memory_space<vmem>>, vector<16x512xbf16>
      tpu.vector_store %arg6[%c0_14, %c0_15], %16 {strides = array<i32>} : memref<16x512xbf16, #tpu.memory_space<vmem>>, vector<16x512xbf16>,
    } else {
    }
    return
  }
  func.func @transform_0(%arg0: i32, %arg1: i32, %arg2: i32) -> (i32, i32) {
    %c0_i32 = arith.constant 0 : i32
    return %arg0, %arg2 : i32, i32
  }
  func.func @transform_1(%arg0: i32, %arg1: i32, %arg2: i32) -> (i32, i32) {
    %c0_i32 = arith.constant 0 : i32
    return %arg2, %arg1 : i32, i32
  }
  func.func @transform_2(%arg0: i32, %arg1: i32, %arg2: i32) -> (i32, i32) {
    %c0_i32 = arith.constant 0 : i32
    %c0_i32_0 = arith.constant 0 : i32
    return %c0_i32, %arg1 : i32, i32
  }
  func.func @transform_3(%arg0: i32, %arg1: i32, %arg2: i32) -> (i32, i32) {
    %c0_i32 = arith.constant 0 : i32
    return %arg0, %arg1 : i32, i32
  }
}

module attributes {stable_mosaic.version = 11 : i64} {
  func.func @_mm_kernel(%arg0: i32, %arg1: i32, %arg2: i32, %arg3: memref<16x256xbf16, #tpu.memory_space<vmem>>, %arg4: memref<256x512xbf16, #tpu.memory_space<vmem>>, %arg5: memref<1x512xf32, #tpu.memory_space<vmem>>, %arg6: memref<16x512xbf16, #tpu.memory_space<vmem>>, %arg7: memref<16x512xf32, #tpu.memory_space<vmem>>) attributes {dimension_semantics = [#tpu.dimension_semantics<parallel>, #tpu.dimension_semantics<parallel>, #tpu.dimension_semantics<arbitrary>], iteration_bounds = array<i64: 1, 1, 9>, scalar_prefetch = 0 : i64, scratch_operands = 1 : i64, tpu.core_type = #tpu.core_type<tc>, window_params = [{transform_indices = @transform_0, window_bounds = array<i64: 16, 256>}, {transform_indices = @transform_1, window_bounds = array<i64: 256, 512>}, {transform_indices = @transform_2, window_bounds = array<i64: 1, 512>}, {transform_indices = @transform_3, window_bounds = array<i64: 16, 512>}]} {
    %c0_i32 = arith.constant 0 : i32
    %0 = arith.cmpi eq, %arg2, %c0_i32 : i32
    %1 = arith.extui %0 : i1 to i32
    %c0_i32_0 = arith.constant 0 : i32
    %2 = arith.cmpi ne, %1, %c0_i32_0 : i32
    scf.if %2 {
      %cst_9 = arith.constant 0.000000e+00 : f32
      %12 = vector.broadcast %cst_9 : f32 to vector<16x512xf32>
      %c0_10 = arith.constant 0 : index
      %c0_11 = arith.constant 0 : index
      %13 = vector.load %arg7[%c0_10, %c0_11] : memref<16x512xf32, #tpu.memory_space<vmem>>, vector<16x512xf32>
      tpu.vector_store %arg7[%c0_10, %c0_11], %12 {strides = array<i32>} : memref<16x512xf32, #tpu.memory_space<vmem>>, vector<16x512xf32>,
    } else {
    }
    %c0 = arith.constant 0 : index
    %c0_1 = arith.constant 0 : index
    %3 = vector.load %arg7[%c0, %c0_1] : memref<16x512xf32, #tpu.memory_space<vmem>>, vector<16x512xf32>
    %c0_2 = arith.constant 0 : index
    %c0_3 = arith.constant 0 : index
    %4 = vector.load %arg3[%c0_2, %c0_3] : memref<16x256xbf16, #tpu.memory_space<vmem>>, vector<16x256xbf16>
    %c0_4 = arith.constant 0 : index
    %c0_5 = arith.constant 0 : index
    %5 = vector.load %arg4[%c0_4, %c0_5] : memref<256x512xbf16, #tpu.memory_space<vmem>>, vector<256x512xbf16>
    %cst = arith.constant dense<0.000000e+00> : vector<16x512xf32>
    %6 = tpu.matmul %4, %5, %cst {dimension_numbers = #tpu.dot_dimension_numbers<[1], [0], [0], [1], [0, 0, 1, 1], [], []>} : vector<16x256xbf16>, vector<256x512xbf16>, vector<16x512xf32> -> vector<16x512xf32>
    %7 = arith.addf %3, %6 : vector<16x512xf32>
    %c0_6 = arith.constant 0 : index
    %c0_7 = arith.constant 0 : index
    %8 = vector.load %arg7[%c0_6, %c0_7] : memref<16x512xf32, #tpu.memory_space<vmem>>, vector<16x512xf32>
    tpu.vector_store %arg7[%c0_6, %c0_7], %7 {strides = array<i32>} : memref<16x512xf32, #tpu.memory_space<vmem>>, vector<16x512xf32>,
    %c8_i32 = arith.constant 8 : i32
    %9 = arith.cmpi eq, %arg2, %c8_i32 : i32
    %10 = arith.extui %9 : i1 to i32
    %c0_i32_8 = arith.constant 0 : i32
    %11 = arith.cmpi ne, %10, %c0_i32_8 : i32
    scf.if %11 {
      %c0_9 = arith.constant 0 : index
      %c0_10 = arith.constant 0 : index
      %12 = vector.load %arg7[%c0_9, %c0_10] : memref<16x512xf32, #tpu.memory_space<vmem>>, vector<16x512xf32>
      %c0_11 = arith.constant 0 : index
      %c0_12 = arith.constant 0 : index
      %13 = vector.load %arg5[%c0_11, %c0_12] : memref<1x512xf32, #tpu.memory_space<vmem>>, vector<1x512xf32>
      %14 = vector.broadcast %13 : vector<1x512xf32> to vector<16x512xf32>
      %15 = arith.addf %12, %14 : vector<16x512xf32>
      %cst_13 = arith.constant 0.000000e+00 : f32
      %16 = vector.broadcast %cst_13 : f32 to vector<16x512xf32>
      %17 = arith.maximumf %15, %16 : vector<16x512xf32>
      %18 = arith.truncf %17 : vector<16x512xf32> to vector<16x512xbf16>
      %c0_14 = arith.constant 0 : index
      %c0_15 = arith.constant 0 : index
      %19 = vector.load %arg6[%c0_14, %c0_15] : memref<16x512xbf16, #tpu.memory_space<vmem>>, vector<16x512xbf16>
      tpu.vector_store %arg6[%c0_14, %c0_15], %18 {strides = array<i32>} : memref<16x512xbf16, #tpu.memory_space<vmem>>, vector<16x512xbf16>,
    } else {
    }
    return
  }
  func.func @transform_0(%arg0: i32, %arg1: i32, %arg2: i32) -> (i32, i32) {
    %c0_i32 = arith.constant 0 : i32
    return %arg0, %arg2 : i32, i32
  }
  func.func @transform_1(%arg0: i32, %arg1: i32, %arg2: i32) -> (i32, i32) {
    %c0_i32 = arith.constant 0 : i32
    return %arg2, %arg1 : i32, i32
  }
  func.func @transform_2(%arg0: i32, %arg1: i32, %arg2: i32) -> (i32, i32) {
    %c0_i32 = arith.constant 0 : i32
    %c0_i32_0 = arith.constant 0 : i32
    return %c0_i32, %arg1 : i32, i32
  }
  func.func @transform_3(%arg0: i32, %arg1: i32, %arg2: i32) -> (i32, i32) {
    %c0_i32 = arith.constant 0 : i32
    return %arg0, %arg1 : i32, i32
  }
}

module attributes {stable_mosaic.version = 11 : i64} {
  func.func @_mm_kernel_res(%arg0: i32, %arg1: i32, %arg2: i32, %arg3: memref<16x512xbf16, #tpu.memory_space<vmem>>, %arg4: memref<512x512xbf16, #tpu.memory_space<vmem>>, %arg5: memref<1x512xf32, #tpu.memory_space<vmem>>, %arg6: memref<16x512xbf16, #tpu.memory_space<vmem>>, %arg7: memref<16x512xbf16, #tpu.memory_space<vmem>>, %arg8: memref<16x512xf32, #tpu.memory_space<vmem>>) attributes {dimension_semantics = [#tpu.dimension_semantics<parallel>, #tpu.dimension_semantics<parallel>, #tpu.dimension_semantics<arbitrary>], iteration_bounds = array<i64: 1, 1, 9>, scalar_prefetch = 0 : i64, scratch_operands = 1 : i64, tpu.core_type = #tpu.core_type<tc>, window_params = [{transform_indices = @transform_0, window_bounds = array<i64: 16, 512>}, {transform_indices = @transform_1, window_bounds = array<i64: 512, 512>}, {transform_indices = @transform_2, window_bounds = array<i64: 1, 512>}, {transform_indices = @transform_3, window_bounds = array<i64: 16, 512>}, {transform_indices = @transform_4, window_bounds = array<i64: 16, 512>}]} {
    %c0_i32 = arith.constant 0 : i32
    %0 = arith.cmpi eq, %arg2, %c0_i32 : i32
    %1 = arith.extui %0 : i1 to i32
    %c0_i32_0 = arith.constant 0 : i32
    %2 = arith.cmpi ne, %1, %c0_i32_0 : i32
    scf.if %2 {
      %cst_9 = arith.constant 0.000000e+00 : f32
      %12 = vector.broadcast %cst_9 : f32 to vector<16x512xf32>
      %c0_10 = arith.constant 0 : index
      %c0_11 = arith.constant 0 : index
      %13 = vector.load %arg8[%c0_10, %c0_11] : memref<16x512xf32, #tpu.memory_space<vmem>>, vector<16x512xf32>
      tpu.vector_store %arg8[%c0_10, %c0_11], %12 {strides = array<i32>} : memref<16x512xf32, #tpu.memory_space<vmem>>, vector<16x512xf32>,
    } else {
    }
    %c0 = arith.constant 0 : index
    %c0_1 = arith.constant 0 : index
    %3 = vector.load %arg8[%c0, %c0_1] : memref<16x512xf32, #tpu.memory_space<vmem>>, vector<16x512xf32>
    %c0_2 = arith.constant 0 : index
    %c0_3 = arith.constant 0 : index
    %4 = vector.load %arg3[%c0_2, %c0_3] : memref<16x512xbf16, #tpu.memory_space<vmem>>, vector<16x512xbf16>
    %c0_4 = arith.constant 0 : index
    %c0_5 = arith.constant 0 : index
    %5 = vector.load %arg4[%c0_4, %c0_5] : memref<512x512xbf16, #tpu.memory_space<vmem>>, vector<512x512xbf16>
    %cst = arith.constant dense<0.000000e+00> : vector<16x512xf32>
    %6 = tpu.matmul %4, %5, %cst {dimension_numbers = #tpu.dot_dimension_numbers<[1], [0], [0], [1], [0, 0, 1, 1], [], []>} : vector<16x512xbf16>, vector<512x512xbf16>, vector<16x512xf32> -> vector<16x512xf32>
    %7 = arith.addf %3, %6 : vector<16x512xf32>
    %c0_6 = arith.constant 0 : index
    %c0_7 = arith.constant 0 : index
    %8 = vector.load %arg8[%c0_6, %c0_7] : memref<16x512xf32, #tpu.memory_space<vmem>>, vector<16x512xf32>
    tpu.vector_store %arg8[%c0_6, %c0_7], %7 {strides = array<i32>} : memref<16x512xf32, #tpu.memory_space<vmem>>, vector<16x512xf32>,
    %c8_i32 = arith.constant 8 : i32
    %9 = arith.cmpi eq, %arg2, %c8_i32 : i32
    %10 = arith.extui %9 : i1 to i32
    %c0_i32_8 = arith.constant 0 : i32
    %11 = arith.cmpi ne, %10, %c0_i32_8 : i32
    scf.if %11 {
      %c0_9 = arith.constant 0 : index
      %c0_10 = arith.constant 0 : index
      %12 = vector.load %arg8[%c0_9, %c0_10] : memref<16x512xf32, #tpu.memory_space<vmem>>, vector<16x512xf32>
      %c0_11 = arith.constant 0 : index
      %c0_12 = arith.constant 0 : index
      %13 = vector.load %arg5[%c0_11, %c0_12] : memref<1x512xf32, #tpu.memory_space<vmem>>, vector<1x512xf32>
      %14 = vector.broadcast %13 : vector<1x512xf32> to vector<16x512xf32>
      %15 = arith.addf %12, %14 : vector<16x512xf32>
      %c0_13 = arith.constant 0 : index
      %c0_14 = arith.constant 0 : index
      %16 = vector.load %arg6[%c0_13, %c0_14] : memref<16x512xbf16, #tpu.memory_space<vmem>>, vector<16x512xbf16>
      %17 = arith.extf %16 : vector<16x512xbf16> to vector<16x512xf32>
      %18 = arith.addf %15, %17 : vector<16x512xf32>
      %cst_15 = arith.constant 0.000000e+00 : f32
      %19 = vector.broadcast %cst_15 : f32 to vector<16x512xf32>
      %20 = arith.maximumf %18, %19 : vector<16x512xf32>
      %21 = arith.truncf %20 : vector<16x512xf32> to vector<16x512xbf16>
      %c0_16 = arith.constant 0 : index
      %c0_17 = arith.constant 0 : index
      %22 = vector.load %arg7[%c0_16, %c0_17] : memref<16x512xbf16, #tpu.memory_space<vmem>>, vector<16x512xbf16>
      tpu.vector_store %arg7[%c0_16, %c0_17], %21 {strides = array<i32>} : memref<16x512xbf16, #tpu.memory_space<vmem>>, vector<16x512xbf16>,
    } else {
    }
    return
  }
  func.func @transform_0(%arg0: i32, %arg1: i32, %arg2: i32) -> (i32, i32) {
    %c0_i32 = arith.constant 0 : i32
    return %arg0, %arg2 : i32, i32
  }
  func.func @transform_1(%arg0: i32, %arg1: i32, %arg2: i32) -> (i32, i32) {
    %c0_i32 = arith.constant 0 : i32
    return %arg2, %arg1 : i32, i32
  }
  func.func @transform_2(%arg0: i32, %arg1: i32, %arg2: i32) -> (i32, i32) {
    %c0_i32 = arith.constant 0 : i32
    %c0_i32_0 = arith.constant 0 : i32
    return %c0_i32, %arg1 : i32, i32
  }
  func.func @transform_3(%arg0: i32, %arg1: i32, %arg2: i32) -> (i32, i32) {
    %c0_i32 = arith.constant 0 : i32
    return %arg0, %arg1 : i32, i32
  }
  func.func @transform_4(%arg0: i32, %arg1: i32, %arg2: i32) -> (i32, i32) {
    %c0_i32 = arith.constant 0 : i32
    return %arg0, %arg1 : i32, i32
  }
}

module attributes {stable_mosaic.version = 11 : i64} {
  func.func @_mm_kernel(%arg0: i32, %arg1: i32, %arg2: i32, %arg3: memref<16x512xbf16, #tpu.memory_space<vmem>>, %arg4: memref<512x512xbf16, #tpu.memory_space<vmem>>, %arg5: memref<1x512xf32, #tpu.memory_space<vmem>>, %arg6: memref<16x512xbf16, #tpu.memory_space<vmem>>, %arg7: memref<16x512xf32, #tpu.memory_space<vmem>>) attributes {dimension_semantics = [#tpu.dimension_semantics<parallel>, #tpu.dimension_semantics<parallel>, #tpu.dimension_semantics<arbitrary>], iteration_bounds = array<i64: 1, 1, 9>, scalar_prefetch = 0 : i64, scratch_operands = 1 : i64, tpu.core_type = #tpu.core_type<tc>, window_params = [{transform_indices = @transform_0, window_bounds = array<i64: 16, 512>}, {transform_indices = @transform_1, window_bounds = array<i64: 512, 512>}, {transform_indices = @transform_2, window_bounds = array<i64: 1, 512>}, {transform_indices = @transform_3, window_bounds = array<i64: 16, 512>}]} {
    %c0_i32 = arith.constant 0 : i32
    %0 = arith.cmpi eq, %arg2, %c0_i32 : i32
    %1 = arith.extui %0 : i1 to i32
    %c0_i32_0 = arith.constant 0 : i32
    %2 = arith.cmpi ne, %1, %c0_i32_0 : i32
    scf.if %2 {
      %cst_9 = arith.constant 0.000000e+00 : f32
      %12 = vector.broadcast %cst_9 : f32 to vector<16x512xf32>
      %c0_10 = arith.constant 0 : index
      %c0_11 = arith.constant 0 : index
      %13 = vector.load %arg7[%c0_10, %c0_11] : memref<16x512xf32, #tpu.memory_space<vmem>>, vector<16x512xf32>
      tpu.vector_store %arg7[%c0_10, %c0_11], %12 {strides = array<i32>} : memref<16x512xf32, #tpu.memory_space<vmem>>, vector<16x512xf32>,
    } else {
    }
    %c0 = arith.constant 0 : index
    %c0_1 = arith.constant 0 : index
    %3 = vector.load %arg7[%c0, %c0_1] : memref<16x512xf32, #tpu.memory_space<vmem>>, vector<16x512xf32>
    %c0_2 = arith.constant 0 : index
    %c0_3 = arith.constant 0 : index
    %4 = vector.load %arg3[%c0_2, %c0_3] : memref<16x512xbf16, #tpu.memory_space<vmem>>, vector<16x512xbf16>
    %c0_4 = arith.constant 0 : index
    %c0_5 = arith.constant 0 : index
    %5 = vector.load %arg4[%c0_4, %c0_5] : memref<512x512xbf16, #tpu.memory_space<vmem>>, vector<512x512xbf16>
    %cst = arith.constant dense<0.000000e+00> : vector<16x512xf32>
    %6 = tpu.matmul %4, %5, %cst {dimension_numbers = #tpu.dot_dimension_numbers<[1], [0], [0], [1], [0, 0, 1, 1], [], []>} : vector<16x512xbf16>, vector<512x512xbf16>, vector<16x512xf32> -> vector<16x512xf32>
    %7 = arith.addf %3, %6 : vector<16x512xf32>
    %c0_6 = arith.constant 0 : index
    %c0_7 = arith.constant 0 : index
    %8 = vector.load %arg7[%c0_6, %c0_7] : memref<16x512xf32, #tpu.memory_space<vmem>>, vector<16x512xf32>
    tpu.vector_store %arg7[%c0_6, %c0_7], %7 {strides = array<i32>} : memref<16x512xf32, #tpu.memory_space<vmem>>, vector<16x512xf32>,
    %c8_i32 = arith.constant 8 : i32
    %9 = arith.cmpi eq, %arg2, %c8_i32 : i32
    %10 = arith.extui %9 : i1 to i32
    %c0_i32_8 = arith.constant 0 : i32
    %11 = arith.cmpi ne, %10, %c0_i32_8 : i32
    scf.if %11 {
      %c0_9 = arith.constant 0 : index
      %c0_10 = arith.constant 0 : index
      %12 = vector.load %arg7[%c0_9, %c0_10] : memref<16x512xf32, #tpu.memory_space<vmem>>, vector<16x512xf32>
      %c0_11 = arith.constant 0 : index
      %c0_12 = arith.constant 0 : index
      %13 = vector.load %arg5[%c0_11, %c0_12] : memref<1x512xf32, #tpu.memory_space<vmem>>, vector<1x512xf32>
      %14 = vector.broadcast %13 : vector<1x512xf32> to vector<16x512xf32>
      %15 = arith.addf %12, %14 : vector<16x512xf32>
      %cst_13 = arith.constant 0.000000e+00 : f32
      %16 = vector.broadcast %cst_13 : f32 to vector<16x512xf32>
      %17 = arith.maximumf %15, %16 : vector<16x512xf32>
      %18 = arith.truncf %17 : vector<16x512xf32> to vector<16x512xbf16>
      %c0_14 = arith.constant 0 : index
      %c0_15 = arith.constant 0 : index
      %19 = vector.load %arg6[%c0_14, %c0_15] : memref<16x512xbf16, #tpu.memory_space<vmem>>, vector<16x512xbf16>
      tpu.vector_store %arg6[%c0_14, %c0_15], %18 {strides = array<i32>} : memref<16x512xbf16, #tpu.memory_space<vmem>>, vector<16x512xbf16>,
    } else {
    }
    return
  }
  func.func @transform_0(%arg0: i32, %arg1: i32, %arg2: i32) -> (i32, i32) {
    %c0_i32 = arith.constant 0 : i32
    return %arg0, %arg2 : i32, i32
  }
  func.func @transform_1(%arg0: i32, %arg1: i32, %arg2: i32) -> (i32, i32) {
    %c0_i32 = arith.constant 0 : i32
    return %arg2, %arg1 : i32, i32
  }
  func.func @transform_2(%arg0: i32, %arg1: i32, %arg2: i32) -> (i32, i32) {
    %c0_i32 = arith.constant 0 : i32
    %c0_i32_0 = arith.constant 0 : i32
    return %c0_i32, %arg1 : i32, i32
  }
  func.func @transform_3(%arg0: i32, %arg1: i32, %arg2: i32) -> (i32, i32) {
    %c0_i32 = arith.constant 0 : i32
    return %arg0, %arg1 : i32, i32
  }
}

module attributes {stable_mosaic.version = 11 : i64} {
  func.func @_mm_kernel(%arg0: i32, %arg1: i32, %arg2: i32, %arg3: memref<16x512xbf16, #tpu.memory_space<vmem>>, %arg4: memref<512x128xbf16, #tpu.memory_space<vmem>>, %arg5: memref<1x128xf32, #tpu.memory_space<vmem>>, %arg6: memref<16x128xbf16, #tpu.memory_space<vmem>>, %arg7: memref<16x128xf32, #tpu.memory_space<vmem>>) attributes {dimension_semantics = [#tpu.dimension_semantics<parallel>, #tpu.dimension_semantics<parallel>, #tpu.dimension_semantics<arbitrary>], iteration_bounds = array<i64: 1, 1, 1>, scalar_prefetch = 0 : i64, scratch_operands = 1 : i64, tpu.core_type = #tpu.core_type<tc>, window_params = [{transform_indices = @transform_0, window_bounds = array<i64: 16, 512>}, {transform_indices = @transform_1, window_bounds = array<i64: 512, 128>}, {transform_indices = @transform_2, window_bounds = array<i64: 1, 128>}, {transform_indices = @transform_3, window_bounds = array<i64: 16, 128>}]} {
    %c0_i32 = arith.constant 0 : i32
    %0 = arith.cmpi eq, %arg2, %c0_i32 : i32
    %1 = arith.extui %0 : i1 to i32
    %c0_i32_0 = arith.constant 0 : i32
    %2 = arith.cmpi ne, %1, %c0_i32_0 : i32
    scf.if %2 {
      %cst_10 = arith.constant 0.000000e+00 : f32
      %12 = vector.broadcast %cst_10 : f32 to vector<16x128xf32>
      %c0_11 = arith.constant 0 : index
      %c0_12 = arith.constant 0 : index
      %13 = vector.load %arg7[%c0_11, %c0_12] : memref<16x128xf32, #tpu.memory_space<vmem>>, vector<16x128xf32>
      tpu.vector_store %arg7[%c0_11, %c0_12], %12 {strides = array<i32>} : memref<16x128xf32, #tpu.memory_space<vmem>>, vector<16x128xf32>,
    } else {
    }
    %c0 = arith.constant 0 : index
    %c0_1 = arith.constant 0 : index
    %3 = vector.load %arg7[%c0, %c0_1] : memref<16x128xf32, #tpu.memory_space<vmem>>, vector<16x128xf32>
    %c0_2 = arith.constant 0 : index
    %c0_3 = arith.constant 0 : index
    %4 = vector.load %arg3[%c0_2, %c0_3] : memref<16x512xbf16, #tpu.memory_space<vmem>>, vector<16x512xbf16>
    %c0_4 = arith.constant 0 : index
    %c0_5 = arith.constant 0 : index
    %5 = vector.load %arg4[%c0_4, %c0_5] : memref<512x128xbf16, #tpu.memory_space<vmem>>, vector<512x128xbf16>
    %cst = arith.constant dense<0.000000e+00> : vector<16x128xf32>
    %6 = tpu.matmul %4, %5, %cst {dimension_numbers = #tpu.dot_dimension_numbers<[1], [0], [0], [1], [0, 0, 1, 1], [], []>} : vector<16x512xbf16>, vector<512x128xbf16>, vector<16x128xf32> -> vector<16x128xf32>
    %7 = arith.addf %3, %6 : vector<16x128xf32>
    %c0_6 = arith.constant 0 : index
    %c0_7 = arith.constant 0 : index
    %8 = vector.load %arg7[%c0_6, %c0_7] : memref<16x128xf32, #tpu.memory_space<vmem>>, vector<16x128xf32>
    tpu.vector_store %arg7[%c0_6, %c0_7], %7 {strides = array<i32>} : memref<16x128xf32, #tpu.memory_space<vmem>>, vector<16x128xf32>,
    %c0_i32_8 = arith.constant 0 : i32
    %9 = arith.cmpi eq, %arg2, %c0_i32_8 : i32
    %10 = arith.extui %9 : i1 to i32
    %c0_i32_9 = arith.constant 0 : i32
    %11 = arith.cmpi ne, %10, %c0_i32_9 : i32
    scf.if %11 {
      %c0_10 = arith.constant 0 : index
      %c0_11 = arith.constant 0 : index
      %12 = vector.load %arg7[%c0_10, %c0_11] : memref<16x128xf32, #tpu.memory_space<vmem>>, vector<16x128xf32>
      %c0_12 = arith.constant 0 : index
      %c0_13 = arith.constant 0 : index
      %13 = vector.load %arg5[%c0_12, %c0_13] : memref<1x128xf32, #tpu.memory_space<vmem>>, vector<1x128xf32>
      %14 = vector.broadcast %13 : vector<1x128xf32> to vector<16x128xf32>
      %15 = arith.addf %12, %14 : vector<16x128xf32>
      %16 = arith.truncf %15 : vector<16x128xf32> to vector<16x128xbf16>
      %c0_14 = arith.constant 0 : index
      %c0_15 = arith.constant 0 : index
      %17 = vector.load %arg6[%c0_14, %c0_15] : memref<16x128xbf16, #tpu.memory_space<vmem>>, vector<16x128xbf16>
      tpu.vector_store %arg6[%c0_14, %c0_15], %16 {strides = array<i32>} : memref<16x128xbf16, #tpu.memory_space<vmem>>, vector<16x128xbf16>,
    } else {
    }
    return
  }
  func.func @transform_0(%arg0: i32, %arg1: i32, %arg2: i32) -> (i32, i32) {
    %c0_i32 = arith.constant 0 : i32
    return %arg0, %arg2 : i32, i32
  }
  func.func @transform_1(%arg0: i32, %arg1: i32, %arg2: i32) -> (i32, i32) {
    %c0_i32 = arith.constant 0 : i32
    return %arg2, %arg1 : i32, i32
  }
  func.func @transform_2(%arg0: i32, %arg1: i32, %arg2: i32) -> (i32, i32) {
    %c0_i32 = arith.constant 0 : i32
    %c0_i32_0 = arith.constant 0 : i32
    return %c0_i32, %arg1 : i32, i32
  }
  func.func @transform_3(%arg0: i32, %arg1: i32, %arg2: i32) -> (i32, i32) {
    %c0_i32 = arith.constant 0 : i32
    return %arg0, %arg1 : i32, i32
  }
}

module attributes {stable_mosaic.version = 11 : i64} {
  func.func @_mm_kernel(%arg0: i32, %arg1: i32, %arg2: i32, %arg3: memref<16x32xbf16, #tpu.memory_space<vmem>>, %arg4: memref<32x1024xbf16, #tpu.memory_space<vmem>>, %arg5: memref<1x1024xf32, #tpu.memory_space<vmem>>, %arg6: memref<16x1024xf32, #tpu.memory_space<vmem>>, %arg7: memref<16x1024xf32, #tpu.memory_space<vmem>>) attributes {dimension_semantics = [#tpu.dimension_semantics<parallel>, #tpu.dimension_semantics<parallel>, #tpu.dimension_semantics<arbitrary>], iteration_bounds = array<i64: 1, 84, 1>, scalar_prefetch = 0 : i64, scratch_operands = 1 : i64, tpu.core_type = #tpu.core_type<tc>, window_params = [{transform_indices = @transform_0, window_bounds = array<i64: 16, 32>}, {transform_indices = @transform_1, window_bounds = array<i64: 32, 1024>}, {transform_indices = @transform_2, window_bounds = array<i64: 1, 1024>}, {transform_indices = @transform_3, window_bounds = array<i64: 16, 1024>}]} {
    %c0_i32 = arith.constant 0 : i32
    %0 = arith.cmpi eq, %arg2, %c0_i32 : i32
    %1 = arith.extui %0 : i1 to i32
    %c0_i32_0 = arith.constant 0 : i32
    %2 = arith.cmpi ne, %1, %c0_i32_0 : i32
    scf.if %2 {
      %cst_10 = arith.constant 0.000000e+00 : f32
      %12 = vector.broadcast %cst_10 : f32 to vector<16x1024xf32>
      %c0_11 = arith.constant 0 : index
      %c0_12 = arith.constant 0 : index
      %13 = vector.load %arg7[%c0_11, %c0_12] : memref<16x1024xf32, #tpu.memory_space<vmem>>, vector<16x1024xf32>
      tpu.vector_store %arg7[%c0_11, %c0_12], %12 {strides = array<i32>} : memref<16x1024xf32, #tpu.memory_space<vmem>>, vector<16x1024xf32>,
    } else {
    }
    %c0 = arith.constant 0 : index
    %c0_1 = arith.constant 0 : index
    %3 = vector.load %arg7[%c0, %c0_1] : memref<16x1024xf32, #tpu.memory_space<vmem>>, vector<16x1024xf32>
    %c0_2 = arith.constant 0 : index
    %c0_3 = arith.constant 0 : index
    %4 = vector.load %arg3[%c0_2, %c0_3] : memref<16x32xbf16, #tpu.memory_space<vmem>>, vector<16x32xbf16>
    %c0_4 = arith.constant 0 : index
    %c0_5 = arith.constant 0 : index
    %5 = vector.load %arg4[%c0_4, %c0_5] : memref<32x1024xbf16, #tpu.memory_space<vmem>>, vector<32x1024xbf16>
    %cst = arith.constant dense<0.000000e+00> : vector<16x1024xf32>
    %6 = tpu.matmul %4, %5, %cst {dimension_numbers = #tpu.dot_dimension_numbers<[1], [0], [0], [1], [0, 0, 1, 1], [], []>} : vector<16x32xbf16>, vector<32x1024xbf16>, vector<16x1024xf32> -> vector<16x1024xf32>
    %7 = arith.addf %3, %6 : vector<16x1024xf32>
    %c0_6 = arith.constant 0 : index
    %c0_7 = arith.constant 0 : index
    %8 = vector.load %arg7[%c0_6, %c0_7] : memref<16x1024xf32, #tpu.memory_space<vmem>>, vector<16x1024xf32>
    tpu.vector_store %arg7[%c0_6, %c0_7], %7 {strides = array<i32>} : memref<16x1024xf32, #tpu.memory_space<vmem>>, vector<16x1024xf32>,
    %c0_i32_8 = arith.constant 0 : i32
    %9 = arith.cmpi eq, %arg2, %c0_i32_8 : i32
    %10 = arith.extui %9 : i1 to i32
    %c0_i32_9 = arith.constant 0 : i32
    %11 = arith.cmpi ne, %10, %c0_i32_9 : i32
    scf.if %11 {
      %c0_10 = arith.constant 0 : index
      %c0_11 = arith.constant 0 : index
      %12 = vector.load %arg7[%c0_10, %c0_11] : memref<16x1024xf32, #tpu.memory_space<vmem>>, vector<16x1024xf32>
      %c0_12 = arith.constant 0 : index
      %c0_13 = arith.constant 0 : index
      %13 = vector.load %arg5[%c0_12, %c0_13] : memref<1x1024xf32, #tpu.memory_space<vmem>>, vector<1x1024xf32>
      %14 = vector.broadcast %13 : vector<1x1024xf32> to vector<16x1024xf32>
      %15 = arith.addf %12, %14 : vector<16x1024xf32>
      %c0_14 = arith.constant 0 : index
      %c0_15 = arith.constant 0 : index
      %16 = vector.load %arg6[%c0_14, %c0_15] : memref<16x1024xf32, #tpu.memory_space<vmem>>, vector<16x1024xf32>
      tpu.vector_store %arg6[%c0_14, %c0_15], %15 {strides = array<i32>} : memref<16x1024xf32, #tpu.memory_space<vmem>>, vector<16x1024xf32>,
    } else {
    }
    return
  }
  func.func @transform_0(%arg0: i32, %arg1: i32, %arg2: i32) -> (i32, i32) {
    %c0_i32 = arith.constant 0 : i32
    return %arg0, %arg2 : i32, i32
  }
  func.func @transform_1(%arg0: i32, %arg1: i32, %arg2: i32) -> (i32, i32) {
    %c0_i32 = arith.constant 0 : i32
    return %arg2, %arg1 : i32, i32
  }
  func.func @transform_2(%arg0: i32, %arg1: i32, %arg2: i32) -> (i32, i32) {
    %c0_i32 = arith.constant 0 : i32
    %c0_i32_0 = arith.constant 0 : i32
    return %c0_i32, %arg1 : i32, i32
  }
  func.func @transform_3(%arg0: i32, %arg1: i32, %arg2: i32) -> (i32, i32) {
    %c0_i32 = arith.constant 0 : i32
    return %arg0, %arg1 : i32, i32
  }
}

</mosaic_0001>

<bundles_post_ra>
// kernel: forward.22
= control target key start
LH: loop header
LB: loop body
LE: loop exit
PB: predicated region body
PF: predicated region fallthrough
CT: control target
= control target key end

     0   :  { %s1627_s12 = smov 0   ;;  %s1629_s13 = smov 0   ;;  %s1799_s0 = inlined_call_operand.vmem [shape: bf16[2048,160], index: 0, kind: input, shape index: {}]   ;;  %s1800_s1 = inlined_call_operand.vmem [shape: bf16[160,128], index: 1, kind: input, shape index: {}]   ;;  %s1801_s2 = inlined_call_operand.vmem [shape: f32[1,128], index: 2, kind: input, shape index: {}]   ;;  %s1802_s3 = inlined_call_operand.vmem [shape: bf16[2048,128], index: 3, kind: output, shape index: {}]  }
   0x1   :  { %s1631_s14 = smov 0  }
   0x2 LB: > { %s32_s15 = sadd.s32 1, %s1600_s13  ;;  %p1252_p0 = scmp.ge.s32.totalorder %s1604_s14, 1  ;;  %s1604_s14 = sphi %s1631_s14, %s13_s14   ;;  %s1600_s13 = sphi %s1629_s13, %s1804_s13   ;;  %s1596_s12 = sphi %s1627_s12, %s1803_s12  }
   0x3   : > { %p34_p1 = scmp.ge.s32.totalorder %s32_s15, 8  ;;  %p191_p2 = scmp.lt.s32.totalorder %s1604_s14, 9 }
   0x5   : > { %s1806_s15 = smov (%p34_p1, %s32_s15), 0  ;;  %p192_p3 = pnand %p1252_p0, %p191_p2 }
   0x6   : > { %v1524_v0 = vld [vmem:[%s1800_s1] sm:$0xff] (!%p192_p3)   ;;  %v1606_v1 = vmov (!%p192_p3), 0   ;;  %s1253_s18 = sshll.u32 (!%p192_p3), %s1596_s12, 5  ;;  %v1525_v2 = vld [vmem:[%s1800_s1 + $0x8] sm:$0xff] (!%p192_p3)   ;;  %v1526_v3 = vld [vmem:[%s1800_s1 + $0x10] sm:$0xff] (!%p192_p3)   ;;  %vm592_vm0 = vcmask (!%p192_p3), 261120  }
   0x7   : > { %195 = sbr.rel (%p192_p3) target bundleno = 324 (0x144), region = 32  ;;  %641 = vmatprep.subr.bf16.mxu0 (!%p192_p3), %v1606_v1  ;;  %1479 = vmatprep.subr.bf16.mxu1 (!%p192_p3), %v1606_v1  ;;  %p236_p4 = scmp.lt.s32.totalorder (!%p192_p3), %s1253_s18, 255  ;;  %v1527_v4 = vld [vmem:[%s1800_s1 + $0x18] sm:$0xff] (!%p192_p3)   ;;  %v1528_v7 = vld [vmem:[%s1800_s1 + $0x20] sm:$0xff] (!%p192_p3)   ;;  %v1529_v8 = vld [vmem:[%s1800_s1 + $0x28] sm:$0xff] (!%p192_p3)  }
   0x8   : > { %642 = vmatpush1.bf16.msra.mxu0 (!%p192_p3), %v1524_v0  ;;  %1489 = vmatpush1.bf16.msra.mxu1 (!%p192_p3), %v1524_v0  ;;  %v1530_v9 = vld [vmem:[%s1800_s1 + $0x30] sm:$0xff] (!%p192_p3)   ;;  %v1531_v10 = vld [vmem:[%s1800_s1 + $0x38] sm:$0xff] (!%p192_p3)   ;;  %v1532_v11 = vld [vmem:[%s1800_s1 + $0x40] sm:$0xff] (!%p192_p3)  }
   0x9   : > { %643 = vmatprep.subr.bf16.mxu0 (!%p192_p3), %v1606_v1  ;;  %1480 = vmatprep.subr.bf16.mxu1 (!%p192_p3), %v1606_v1  ;;  %v1533_v12 = vld [vmem:[%s1800_s1 + $0x48] sm:$0xff] (!%p192_p3)   ;;  %v1734_v43 = vld [vmem:[%s1801_s2] ss:$0 sm:$0xff] (!%p192_p3) }
   0xc   : > { %644 = vmatpush1.bf16.msra.mxu0 (!%p192_p3), %v1525_v2  ;;  %1490 = vmatpush1.bf16.msra.mxu1 (!%p192_p3), %v1525_v2 }
   0xd   : > { %645 = vmatprep.subr.bf16.mxu0 (!%p192_p3), %v1606_v1  ;;  %1481 = vmatprep.subr.bf16.mxu1 (!%p192_p3), %v1606_v1 }
   0xe   : > { %s1808_s18 = smov (!%p236_p4, %s1253_s18), 255 }
   0xf   : > { %s1351_s23 = sshll.u32 %s1808_s18, 3  ;;  %s1257_s20 = sshll.u32 %s1808_s18, 2 }
  0x10   : > { %s1660_s26 = scalar_lea.vmem %s1799_s0, %s1351_s23  ;;  %646 = vmatpush1.bf16.msra.mxu0 %v1526_v3  ;;  %1491 = vmatpush1.bf16.msra.mxu1 %v1526_v3  ;;  %s1744_s23 = scalar_lea.vmem %s1802_s3, %s1257_s20 }
  0x11   : > { %647 = vmatprep.subr.bf16.mxu0 %v1606_v1  ;;  %1482 = vmatprep.subr.bf16.mxu1 %v1606_v1  ;;  %v1536_v5 = vld [vmem:[%s1660_s26 + $0x4] ss:$8 sps:$4 sm:$0xff]   ;;  %v1534_v13 = vld [vmem:[%s1660_s26] ss:$8 sps:$4 sm:$0xff]   ;;  %v1540_v15 = vld [vmem:[%s1660_s26 + $0x14] ss:$8 sps:$4 sm:$0xff]  }
  0x12   : > { %v1539_v6 = vld [vmem:[%s1660_s26 + $0x84] ss:$8 sps:$4 sm:$0xff]   ;;  %1300 = vmatprep.mubr.msk.bf16.mxu0 %vm592_vm0, %v1536_v5  ;;  %v1537_v14 = vld [vmem:[%s1660_s26 + $0x80] ss:$8 sps:$4 sm:$0xff]   ;;  %v1542_v16 = vld [vmem:[%s1660_s26 + $0x94] ss:$8 sps:$4 sm:$0xff]  }
  0x13   : > { %1308 = vmatprep.mubr.msk.bf16.mxu1 %vm592_vm0, %v1539_v6  ;;  %v1544_v17 = vld [vmem:[%s1660_s26 + $0x10] ss:$8 sps:$4 sm:$0xff]   ;;  %v1546_v19 = vld [vmem:[%s1660_s26 + $0x24] ss:$8 sps:$4 sm:$0xff]   ;;  %v1550_v21 = vld [vmem:[%s1660_s26 + $0x20] ss:$8 sps:$4 sm:$0xff]  }
  0x14   : > { %648 = vmatpush1.bf16.msra.mxu0 %v1527_v4  ;;  %1492 = vmatpush1.bf16.msra.mxu1 %v1527_v4  ;;  %v1545_v18 = vld [vmem:[%s1660_s26 + $0x90] ss:$8 sps:$4 sm:$0xff]   ;;  %v1548_v20 = vld [vmem:[%s1660_s26 + $0xa4] ss:$8 sps:$4 sm:$0xff]   ;;  %v1551_v22 = vld [vmem:[%s1660_s26 + $0xa0] ss:$8 sps:$4 sm:$0xff]  }
  0x15   : > { %649 = vmatprep.subr.bf16.mxu0 %v1606_v1  ;;  %1483 = vmatprep.subr.bf16.mxu1 %v1606_v1  ;;  %v1552_v23 = vld [vmem:[%s1660_s26 + $0x34] ss:$8 sps:$4 sm:$0xff]   ;;  %v1556_v25 = vld [vmem:[%s1660_s26 + $0x30] ss:$8 sps:$4 sm:$0xff]   ;;  %v1558_v27 = vld [vmem:[%s1660_s26 + $0x44] ss:$8 sps:$4 sm:$0xff]  }
  0x16   : > { %v1554_v24 = vld [vmem:[%s1660_s26 + $0xb4] ss:$8 sps:$4 sm:$0xff]   ;;  %v1557_v26 = vld [vmem:[%s1660_s26 + $0xb0] ss:$8 sps:$4 sm:$0xff]   ;;  %v1560_v28 = vld [vmem:[%s1660_s26 + $0xc4] ss:$8 sps:$4 sm:$0xff]  }
  0x17   : > { %v1562_v29 = vld [vmem:[%s1660_s26 + $0x40] ss:$8 sps:$4 sm:$0xff]   ;;  %v1564_v31 = vld [vmem:[%s1660_s26 + $0x54] ss:$8 sps:$4 sm:$0xff]   ;;  %v1568_v33 = vld [vmem:[%s1660_s26 + $0x50] ss:$8 sps:$4 sm:$0xff]  }
  0x18   : > { %650 = vmatpush1.bf16.msra.mxu0 %v1528_v7  ;;  %1493 = vmatpush1.bf16.msra.mxu1 %v1528_v7  ;;  %v1563_v30 = vld [vmem:[%s1660_s26 + $0xc0] ss:$8 sps:$4 sm:$0xff]   ;;  %v1566_v32 = vld [vmem:[%s1660_s26 + $0xd4] ss:$8 sps:$4 sm:$0xff]   ;;  %v1569_v34 = vld [vmem:[%s1660_s26 + $0xd0] ss:$8 sps:$4 sm:$0xff]  }
  0x19   : > { %651 = vmatprep.subr.bf16.mxu0 %v1606_v1  ;;  %1484 = vmatprep.subr.bf16.mxu1 %v1606_v1  ;;  %v1570_v35 = vld [vmem:[%s1660_s26 + $0x64] ss:$8 sps:$4 sm:$0xff]   ;;  %v1574_v37 = vld [vmem:[%s1660_s26 + $0x60] ss:$8 sps:$4 sm:$0xff]   ;;  %v1576_v39 = vld [vmem:[%s1660_s26 + $0x74] ss:$8 sps:$4 sm:$0xff]  }
  0x1a   : > { %v1572_v36 = vld [vmem:[%s1660_s26 + $0xe4] ss:$8 sps:$4 sm:$0xff]   ;;  %v1575_v38 = vld [vmem:[%s1660_s26 + $0xe0] ss:$8 sps:$4 sm:$0xff]   ;;  %v1578_v40 = vld [vmem:[%s1660_s26 + $0xf4] ss:$8 sps:$4 sm:$0xff]  }
  0x1b   : > { %v1580_v41 = vld [vmem:[%s1660_s26 + $0x70] ss:$8 sps:$4 sm:$0xff]  }
  0x1c   : > { %652 = vmatpush1.bf16.msra.mxu0 %v1529_v8  ;;  %1494 = vmatpush1.bf16.msra.mxu1 %v1529_v8  ;;  %v1581_v42 = vld [vmem:[%s1660_s26 + $0xf0] ss:$8 sps:$4 sm:$0xff]  }
  0x1d   : > { %653 = vmatprep.subr.bf16.mxu0 %v1606_v1  ;;  %1485 = vmatprep.subr.bf16.mxu1 %v1606_v1 }
  0x20   : > { %654 = vmatpush1.bf16.msra.mxu0 %v1530_v9  ;;  %1495 = vmatpush1.bf16.msra.mxu1 %v1530_v9 }
  0x21   : > { %655 = vmatprep.subr.bf16.mxu0 %v1606_v1  ;;  %1486 = vmatprep.subr.bf16.mxu1 %v1606_v1 }
  0x24   : > { %656 = vmatpush1.bf16.msra.mxu0 %v1531_v10  ;;  %1496 = vmatpush1.bf16.msra.mxu1 %v1531_v10 }
  0x25   : > { %657 = vmatprep.subr.bf16.mxu0 %v1606_v1  ;;  %1487 = vmatprep.subr.bf16.mxu1 %v1606_v1 }
  0x28   : > { %658 = vmatpush1.bf16.msra.mxu0 %v1532_v11  ;;  %1497 = vmatpush1.bf16.msra.mxu1 %v1532_v11 }
  0x29   : > { %659 = vmatprep.subr.bf16.mxu0 %v1606_v1  ;;  %1488 = vmatprep.subr.bf16.mxu1 %v1606_v1 }
  0x2c   : > { %660 = vmatpush1.bf16.msra.mxu0 %v1533_v12  ;;  %1498 = vmatpush1.bf16.msra.mxu1 %v1533_v12 }
  0x2f   : > { %674 = vmatmul.mubr.bf16.vlgmr.msra.gmra.mrb[0].mxu0 %v1534_v13  ;;  %738 = vmatmul.mubr.bf16.vlgmr.msra.gmra.mrb[0].mxu1 %v1537_v14 }
  0x30   : > { %1301 = vmatprep.mubr.msk.bf16.mxu0 %vm592_vm0, %v1540_v15  ;;  %1309 = vmatprep.mubr.msk.bf16.mxu1 %vm592_vm0, %v1542_v16 }
  0x37   : > { %682 = vmatmul.mubr.bf16.gmra.mrb[4].mxu0 %v1544_v17  ;;  %746 = vmatmul.mubr.bf16.gmra.mrb[4].mxu1 %v1545_v18 }
  0x38   : > { %1302 = vmatprep.mubr.msk.bf16.mxu0 %vm592_vm0, %v1546_v19  ;;  %1310 = vmatprep.mubr.msk.bf16.mxu1 %vm592_vm0, %v1548_v20 }
  0x3f   : > { %690 = vmatmul.mubr.bf16.gmra.mrb[8].mxu0 %v1550_v21  ;;  %754 = vmatmul.mubr.bf16.gmra.mrb[8].mxu1 %v1551_v22 }
  0x40   : > { %1303 = vmatprep.mubr.msk.bf16.mxu0 %vm592_vm0, %v1552_v23  ;;  %1311 = vmatprep.mubr.msk.bf16.mxu1 %vm592_vm0, %v1554_v24 }
  0x47   : > { %698 = vmatmul.mubr.bf16.gmra.mrb[12].mxu0 %v1556_v25  ;;  %762 = vmatmul.mubr.bf16.gmra.mrb[12].mxu1 %v1557_v26 }
  0x48   : > { %1304 = vmatprep.mubr.msk.bf16.mxu0 %vm592_vm0, %v1558_v27  ;;  %1312 = vmatprep.mubr.msk.bf16.mxu1 %vm592_vm0, %v1560_v28 }
  0x4f   : > { %706 = vmatmul.mubr.bf16.gmra.mrb[16].mxu0 %v1562_v29  ;;  %770 = vmatmul.mubr.bf16.gmra.mrb[16].mxu1 %v1563_v30 }
  0x50   : > { %1305 = vmatprep.mubr.msk.bf16.mxu0 %vm592_vm0, %v1564_v31  ;;  %1313 = vmatprep.mubr.msk.bf16.mxu1 %vm592_vm0, %v1566_v32 }
  0x57   : > { %714 = vmatmul.mubr.bf16.gmra.mrb[20].mxu0 %v1568_v33  ;;  %778 = vmatmul.mubr.bf16.gmra.mrb[20].mxu1 %v1569_v34 }
  0x58   : > { %1306 = vmatprep.mubr.msk.bf16.mxu0 %vm592_vm0, %v1570_v35  ;;  %1314 = vmatprep.mubr.msk.bf16.mxu1 %vm592_vm0, %v1572_v36 }
  0x5f   : > { %722 = vmatmul.mubr.bf16.gmra.mrb[24].mxu0 %v1574_v37  ;;  %786 = vmatmul.mubr.bf16.gmra.mrb[24].mxu1 %v1575_v38 }
  0x60   : > { %1307 = vmatprep.mubr.msk.bf16.mxu0 %vm592_vm0, %v1576_v39  ;;  %1315 = vmatprep.mubr.msk.bf16.mxu1 %vm592_vm0, %v1578_v40 }
  0x67   : > { %730 = vmatmul.mubr.bf16.gmra.mrb[28].mxu0 %v1580_v41  ;;  %794 = vmatmul.mubr.bf16.gmra.mrb[28].mxu1 %v1581_v42 }
 0x102   : > { %v675_v44 = vpop.f32.mrb[0].mxu0  ;;  %v739_v45 = vpop.f32.mrb[0].mxu1 }
 0x103   : > { %v908_v46 = vadd.f32 %v1734_v43, %v675_v44  ;;  %v924_v47 = vadd.f32 %v1734_v43, %v739_v45  ;;  %v677_v48 = vpop.f32.mrb[1].mxu0  ;;  %v741_v49 = vpop.f32.mrb[1].mxu1 }
 0x104   : > { %v678_v50 = vpop.f32.mrb[2].mxu0  ;;  %v742_v51 = vpop.f32.mrb[2].mxu1 }
 0x105   : > { %v909_v52 = vadd.f32 %v1734_v43, %v678_v50  ;;  %v925_v53 = vadd.f32 %v1734_v43, %v742_v51  ;;  %v680_v54 = vpop.f32.mrb[3].mxu0  ;;  %v744_v55 = vpop.f32.mrb[3].mxu1  ;;  %v940_v56 = vmax.f32 %v908_v46, 0.0  ;;  %v956_v57 = vmax.f32 %v924_v47, 0.0 }
 0x107   : > { %v941_v58 = vmax.f32 %v909_v52, 0.0  ;;  %v957_v59 = vmax.f32 %v925_v53, 0.0 }
 0x109   : > { %v1387_v60 = vpack.c.bf16 %v941_v58, %v940_v56  ;;  %v1427_v61 = vpack.c.bf16 %v957_v59, %v956_v57 }
 0x10a   : > { %v683_v62 = vpop.f32.mrb[4].mxu0  ;;  %v747_v63 = vpop.f32.mrb[4].mxu1 }
 0x10b   : > { %1388 = vst [vmem:[%s1744_s23] sm:$0xff] %v1387_v60   ;;  %1471 = vst [vmem:[%s1744_s23 + $0x40] sm:$0xff] %v1427_v61   ;;  %v910_v0 = vadd.f32 %v1734_v43, %v683_v62  ;;  %v926_v1 = vadd.f32 %v1734_v43, %v747_v63  ;;  %v685_v2 = vpop.f32.mrb[5].mxu0  ;;  %v749_v3 = vpop.f32.mrb[5].mxu1 }
 0x10c   : > { %v686_v4 = vpop.f32.mrb[6].mxu0  ;;  %v750_v5 = vpop.f32.mrb[6].mxu1 }
 0x10d   : > { %v911_v6 = vadd.f32 %v1734_v43, %v686_v4  ;;  %v927_v7 = vadd.f32 %v1734_v43, %v750_v5  ;;  %v688_v8 = vpop.f32.mrb[7].mxu0  ;;  %v752_v9 = vpop.f32.mrb[7].mxu1  ;;  %v942_v10 = vmax.f32 %v910_v0, 0.0  ;;  %v958_v11 = vmax.f32 %v926_v1, 0.0 }
 0x10f   : > { %v943_v12 = vmax.f32 %v911_v6, 0.0  ;;  %v959_v13 = vmax.f32 %v927_v7, 0.0 }
 0x111   : > { %v1392_v14 = vpack.c.bf16 %v943_v12, %v942_v10  ;;  %v1432_v15 = vpack.c.bf16 %v959_v13, %v958_v11 }
 0x112   : > { %v691_v16 = vpop.f32.mrb[8].mxu0  ;;  %v755_v17 = vpop.f32.mrb[8].mxu1 }
 0x113   : > { %1464 = vst [vmem:[%s1744_s23 + $0x8] sm:$0xff] %v1392_v14   ;;  %1472 = vst [vmem:[%s1744_s23 + $0x48] sm:$0xff] %v1432_v15   ;;  %v912_v18 = vadd.f32 %v1734_v43, %v691_v16  ;;  %v928_v19 = vadd.f32 %v1734_v43, %v755_v17  ;;  %v693_v20 = vpop.f32.mrb[9].mxu0  ;;  %v757_v21 = vpop.f32.mrb[9].mxu1 }
 0x114   : > { %v694_v22 = vpop.f32.mrb[10].mxu0  ;;  %v758_v23 = vpop.f32.mrb[10].mxu1 }
 0x115   : > { %v913_v24 = vadd.f32 %v1734_v43, %v694_v22  ;;  %v929_v25 = vadd.f32 %v1734_v43, %v758_v23  ;;  %v696_v26 = vpop.f32.mrb[11].mxu0  ;;  %v760_v27 = vpop.f32.mrb[11].mxu1  ;;  %v944_v28 = vmax.f32 %v912_v18, 0.0  ;;  %v960_v29 = vmax.f32 %v928_v19, 0.0 }
 0x117   : > { %v945_v30 = vmax.f32 %v913_v24, 0.0  ;;  %v961_v31 = vmax.f32 %v929_v25, 0.0 }
 0x119   : > { %v1397_v32 = vpack.c.bf16 %v945_v30, %v944_v28  ;;  %v1437_v33 = vpack.c.bf16 %v961_v31, %v960_v29 }
 0x11a   : > { %v699_v34 = vpop.f32.mrb[12].mxu0  ;;  %v763_v35 = vpop.f32.mrb[12].mxu1 }
 0x11b   : > { %1465 = vst [vmem:[%s1744_s23 + $0x10] sm:$0xff] %v1397_v32   ;;  %1473 = vst [vmem:[%s1744_s23 + $0x50] sm:$0xff] %v1437_v33   ;;  %v914_v36 = vadd.f32 %v1734_v43, %v699_v34  ;;  %v930_v37 = vadd.f32 %v1734_v43, %v763_v35  ;;  %v701_v38 = vpop.f32.mrb[13].mxu0  ;;  %v765_v39 = vpop.f32.mrb[13].mxu1 }
 0x11c   : > { %v702_v40 = vpop.f32.mrb[14].mxu0  ;;  %v766_v41 = vpop.f32.mrb[14].mxu1 }
 0x11d   : > { %v915_v42 = vadd.f32 %v1734_v43, %v702_v40  ;;  %v931_v44 = vadd.f32 %v1734_v43, %v766_v41  ;;  %v704_v45 = vpop.f32.mrb[15].mxu0  ;;  %v768_v46 = vpop.f32.mrb[15].mxu1  ;;  %v946_v47 = vmax.f32 %v914_v36, 0.0  ;;  %v962_v48 = vmax.f32 %v930_v37, 0.0 }
 0x11f   : > { %v947_v49 = vmax.f32 %v915_v42, 0.0  ;;  %v963_v50 = vmax.f32 %v931_v44, 0.0 }
 0x121   : > { %v1402_v51 = vpack.c.bf16 %v947_v49, %v946_v47  ;;  %v1442_v52 = vpack.c.bf16 %v963_v50, %v962_v48 }
 0x122   : > { %v707_v53 = vpop.f32.mrb[16].mxu0  ;;  %v771_v54 = vpop.f32.mrb[16].mxu1 }
 0x123   : > { %1466 = vst [vmem:[%s1744_s23 + $0x18] sm:$0xff] %v1402_v51   ;;  %1474 = vst [vmem:[%s1744_s23 + $0x58] sm:$0xff] %v1442_v52   ;;  %v916_v55 = vadd.f32 %v1734_v43, %v707_v53  ;;  %v932_v56 = vadd.f32 %v1734_v43, %v771_v54  ;;  %v709_v57 = vpop.f32.mrb[17].mxu0  ;;  %v773_v58 = vpop.f32.mrb[17].mxu1 }
 0x124   : > { %v710_v59 = vpop.f32.mrb[18].mxu0  ;;  %v774_v60 = vpop.f32.mrb[18].mxu1 }
 0x125   : > { %v917_v61 = vadd.f32 %v1734_v43, %v710_v59  ;;  %v933_v62 = vadd.f32 %v1734_v43, %v774_v60  ;;  %v712_v63 = vpop.f32.mrb[19].mxu0  ;;  %v776_v0 = vpop.f32.mrb[19].mxu1  ;;  %v948_v1 = vmax.f32 %v916_v55, 0.0  ;;  %v964_v2 = vmax.f32 %v932_v56, 0.0 }
 0x127   : > { %v949_v3 = vmax.f32 %v917_v61, 0.0  ;;  %v965_v4 = vmax.f32 %v933_v62, 0.0 }
 0x129   : > { %v1407_v5 = vpack.c.bf16 %v949_v3, %v948_v1  ;;  %v1447_v6 = vpack.c.bf16 %v965_v4, %v964_v2 }
 0x12a   : > { %v715_v7 = vpop.f32.mrb[20].mxu0  ;;  %v779_v8 = vpop.f32.mrb[20].mxu1 }
 0x12b   : > { %1467 = vst [vmem:[%s1744_s23 + $0x20] sm:$0xff] %v1407_v5   ;;  %1475 = vst [vmem:[%s1744_s23 + $0x60] sm:$0xff] %v1447_v6   ;;  %v918_v9 = vadd.f32 %v1734_v43, %v715_v7  ;;  %v934_v10 = vadd.f32 %v1734_v43, %v779_v8  ;;  %v717_v11 = vpop.f32.mrb[21].mxu0  ;;  %v781_v12 = vpop.f32.mrb[21].mxu1 }
 0x12c   : > { %v718_v13 = vpop.f32.mrb[22].mxu0  ;;  %v782_v14 = vpop.f32.mrb[22].mxu1 }
 0x12d   : > { %v919_v15 = vadd.f32 %v1734_v43, %v718_v13  ;;  %v935_v16 = vadd.f32 %v1734_v43, %v782_v14  ;;  %v720_v17 = vpop.f32.mrb[23].mxu0  ;;  %v784_v18 = vpop.f32.mrb[23].mxu1  ;;  %v950_v19 = vmax.f32 %v918_v9, 0.0  ;;  %v966_v20 = vmax.f32 %v934_v10, 0.0 }
 0x12f   : > { %v951_v21 = vmax.f32 %v919_v15, 0.0  ;;  %v967_v22 = vmax.f32 %v935_v16, 0.0 }
 0x131   : > { %v1412_v23 = vpack.c.bf16 %v951_v21, %v950_v19  ;;  %v1452_v24 = vpack.c.bf16 %v967_v22, %v966_v20 }
 0x132   : > { %v723_v25 = vpop.f32.mrb[24].mxu0  ;;  %v787_v26 = vpop.f32.mrb[24].mxu1 }
 0x133   : > { %1468 = vst [vmem:[%s1744_s23 + $0x28] sm:$0xff] %v1412_v23   ;;  %1476 = vst [vmem:[%s1744_s23 + $0x68] sm:$0xff] %v1452_v24   ;;  %v920_v27 = vadd.f32 %v1734_v43, %v723_v25  ;;  %v936_v28 = vadd.f32 %v1734_v43, %v787_v26  ;;  %v725_v29 = vpop.f32.mrb[25].mxu0  ;;  %v789_v30 = vpop.f32.mrb[25].mxu1 }
 0x134   : > { %v726_v31 = vpop.f32.mrb[26].mxu0  ;;  %v790_v32 = vpop.f32.mrb[26].mxu1 }
 0x135   : > { %v921_v33 = vadd.f32 %v1734_v43, %v726_v31  ;;  %v937_v34 = vadd.f32 %v1734_v43, %v790_v32  ;;  %v728_v35 = vpop.f32.mrb[27].mxu0  ;;  %v792_v36 = vpop.f32.mrb[27].mxu1  ;;  %v952_v37 = vmax.f32 %v920_v27, 0.0  ;;  %v968_v38 = vmax.f32 %v936_v28, 0.0 }
 0x137   : > { %v953_v39 = vmax.f32 %v921_v33, 0.0  ;;  %v969_v40 = vmax.f32 %v937_v34, 0.0 }
 0x139   : > { %v1417_v41 = vpack.c.bf16 %v953_v39, %v952_v37  ;;  %v1457_v42 = vpack.c.bf16 %v969_v40, %v968_v38 }
 0x13a   : > { %v731_v44 = vpop.f32.mrb[28].mxu0  ;;  %v795_v45 = vpop.f32.mrb[28].mxu1 }
 0x13b   : > { %1469 = vst [vmem:[%s1744_s23 + $0x30] sm:$0xff] %v1417_v41   ;;  %1477 = vst [vmem:[%s1744_s23 + $0x70] sm:$0xff] %v1457_v42   ;;  %v922_v46 = vadd.f32 %v1734_v43, %v731_v44  ;;  %v938_v47 = vadd.f32 %v1734_v43, %v795_v45  ;;  %v733_v48 = vpop.f32.mrb[29].mxu0  ;;  %v797_v49 = vpop.f32.mrb[29].mxu1 }
 0x13c   : > { %v734_v50 = vpop.f32.mrb[30].mxu0  ;;  %v798_v51 = vpop.f32.mrb[30].mxu1 }
 0x13d   : > { %v923_v52 = vadd.f32 %v1734_v43, %v734_v50  ;;  %v939_v53 = vadd.f32 %v1734_v43, %v798_v51  ;;  %v736_v54 = vpop.f32.mrb[31].mxu0  ;;  %v800_v55 = vpop.f32.mrb[31].mxu1  ;;  %v954_v56 = vmax.f32 %v922_v46, 0.0  ;;  %v970_v57 = vmax.f32 %v938_v47, 0.0 }
 0x13f   : > { %v955_v58 = vmax.f32 %v923_v52, 0.0  ;;  %v971_v59 = vmax.f32 %v939_v53, 0.0 }
 0x141   : > { %v1422_v60 = vpack.c.bf16 %v955_v58, %v954_v56  ;;  %v1462_v61 = vpack.c.bf16 %v971_v59, %v970_v57 }
 0x143   : > { %1470 = vst [vmem:[%s1744_s23 + $0x38] sm:$0xff] %v1422_v60   ;;  %1478 = vst [vmem:[%s1744_s23 + $0x78] sm:$0xff] %v1462_v61  }
 0x144 PF: > { %s13_s14 = sadd.s32 1, %s1604_s14   ;;  %s1803_s12 = smov %s1600_s13 }
 0x145   : > { %p10_p5 = scmp.ge.s32.totalorder %s13_s14, 10   ;;  %s1804_s13 = smov %s1806_s15 }
 0x147   :  { %12 = sbr.rel (!%p10_p5) target bundleno = 2 (0x2), region = 76 }

// kernel: forward.23
= control target key start
LH: loop header
LB: loop body
LE: loop exit
PB: predicated region body
PF: predicated region fallthrough
CT: control target
= control target key end

     0   :  { %s2918_s12 = smov 0   ;;  %s2920_s13 = smov 0   ;;  %s3330_s0 = inlined_call_operand.vmem [shape: bf16[512,576], index: 0, kind: input, shape index: {}]   ;;  %s3331_s1 = inlined_call_operand.vmem [shape: bf16[576,128], index: 1, kind: input, shape index: {}]   ;;  %s3332_s2 = inlined_call_operand.vmem [shape: f32[1,128], index: 2, kind: input, shape index: {}]   ;;  %s3333_s3 = inlined_call_operand.vmem [shape: bf16[512,128], index: 3, kind: output, shape index: {}]  }
   0x1   :  { %s2922_s14 = smov 0  }
   0x2 LB: > { %s32_s15 = sadd.s32 1, %s2892_s13  ;;  %p2102_p0 = scmp.ge.s32.totalorder %s2896_s14, 1  ;;  %s2896_s14 = sphi %s2922_s14, %s13_s14   ;;  %s2892_s13 = sphi %s2920_s13, %s3335_s13   ;;  %s2888_s12 = sphi %s2918_s12, %s3334_s12  }
   0x3   : > { %p34_p1 = scmp.ge.s32.totalorder %s32_s15, 2  ;;  %p191_p2 = scmp.lt.s32.totalorder %s2896_s14, 3 }
   0x5   : > { %s3337_s15 = smov (%p34_p1, %s32_s15), 0  ;;  %p192_p3 = pnand %p2102_p0, %p191_p2 }
   0x6   : > { %v2726_v0 = vld [vmem:[%s3331_s1 + $0x40] sm:$0xff] (!%p192_p3)   ;;  %s2103_s18 = sshll.u32 (!%p192_p3), %s2888_s12, 5  ;;  %v2728_v2 = vld [vmem:[%s3331_s1 + $0x48] sm:$0xff] (!%p192_p3)   ;;  %v2730_v4 = vld [vmem:[%s3331_s1 + $0x50] sm:$0xff] (!%p192_p3)   ;;  %vm1120_vm0 = vcmask (!%p192_p3), 523264  }
   0x7   : > { %195 = sbr.rel (%p192_p3) target bundleno = 419 (0x1a3), region = 32  ;;  %v2727_v1 = vld [vmem:[%s3331_s1] sm:$0xff] (!%p192_p3)   ;;  %2401 = vmatprep.subr.bf16.mxu0 (!%p192_p3), %v2726_v0  ;;  %2685 = vmatprep.subr.bf16.mxu1 (!%p192_p3), %v2726_v0  ;;  %p236_p4 = scmp.lt.s32.totalorder (!%p192_p3), %s2103_s18, 63  ;;  %v2729_v3 = vld [vmem:[%s3331_s1 + $0x8] sm:$0xff] (!%p192_p3)   ;;  %v2731_v5 = vld [vmem:[%s3331_s1 + $0x10] sm:$0xff] (!%p192_p3)  }
   0x8   : > { %2402 = vmatpush3.bf16.msra.mxu0 (!%p192_p3), %v2727_v1  ;;  %2693 = vmatpush3.bf16.msra.mxu1 (!%p192_p3), %v2727_v1  ;;  %v2732_v6 = vld [vmem:[%s3331_s1 + $0x58] sm:$0xff] (!%p192_p3)   ;;  %v2734_v8 = vld [vmem:[%s3331_s1 + $0x60] sm:$0xff] (!%p192_p3)   ;;  %v2736_v10 = vld [vmem:[%s3331_s1 + $0x68] sm:$0xff] (!%p192_p3)  }
   0x9   : > { %2403 = vmatprep.subr.bf16.mxu0 (!%p192_p3), %v2728_v2  ;;  %2686 = vmatprep.subr.bf16.mxu1 (!%p192_p3), %v2728_v2  ;;  %v2733_v7 = vld [vmem:[%s3331_s1 + $0x18] sm:$0xff] (!%p192_p3)   ;;  %v2735_v9 = vld [vmem:[%s3331_s1 + $0x20] sm:$0xff] (!%p192_p3)   ;;  %v2737_v13 = vld [vmem:[%s3331_s1 + $0x28] sm:$0xff] (!%p192_p3)  }
   0xa   : > { %v2738_v14 = vld [vmem:[%s3331_s1 + $0x70] sm:$0xff] (!%p192_p3)   ;;  %v2740_v16 = vld [vmem:[%s3331_s1 + $0x78] sm:$0xff] (!%p192_p3)   ;;  %v2748_v18 = vld [vmem:[%s3331_s1 + $0xc0] sm:$0xff] (!%p192_p3)  }
   0xb   : > { %v2739_v15 = vld [vmem:[%s3331_s1 + $0x30] sm:$0xff] (!%p192_p3)   ;;  %v2741_v17 = vld [vmem:[%s3331_s1 + $0x38] sm:$0xff] (!%p192_p3)   ;;  %v2751_v19 = vld [vmem:[%s3331_s1 + $0x100] sm:$0xff] (!%p192_p3)  }
   0xc   : > { %2404 = vmatpush3.bf16.msra.mxu0 (!%p192_p3), %v2729_v3  ;;  %2694 = vmatpush3.bf16.msra.mxu1 (!%p192_p3), %v2729_v3  ;;  %v2749_v22 = vld [vmem:[%s3331_s1 + $0x80] sm:$0xff] (!%p192_p3)   ;;  %v2750_v23 = vld [vmem:[%s3331_s1 + $0xc8] sm:$0xff] (!%p192_p3)   ;;  %v2759_v28 = vld [vmem:[%s3331_s1 + $0xd0] sm:$0xff] (!%p192_p3)  }
   0xd   : > { %2405 = vmatprep.subr.bf16.mxu0 (!%p192_p3), %v2730_v4  ;;  %2687 = vmatprep.subr.bf16.mxu1 (!%p192_p3), %v2730_v4  ;;  %v2752_v26 = vld [vmem:[%s3331_s1 + $0x88] sm:$0xff] (!%p192_p3)   ;;  %v2760_v30 = vld [vmem:[%s3331_s1 + $0x90] sm:$0xff] (!%p192_p3)   ;;  %v2761_v31 = vld [vmem:[%s3331_s1 + $0xd8] sm:$0xff] (!%p192_p3)  }
   0xe   : > { %s3339_s18 = smov (!%p236_p4, %s2103_s18), 63  ;;  %v2762_v34 = vld [vmem:[%s3331_s1 + $0x98] sm:$0xff]   ;;  %v2782_v35 = vld [vmem:[%s3331_s1 + $0x108] sm:$0xff]   ;;  %v2769_v37 = vld [vmem:[%s3331_s1 + $0xe0] sm:$0xff]  }
   0xf   : > { %s2701_s4 = smul.u32 20, %s3339_s18  ;;  %v2770_v39 = vld [vmem:[%s3331_s1 + $0xa0] sm:$0xff]   ;;  %v2771_v40 = vld [vmem:[%s3331_s1 + $0xe8] sm:$0xff]   ;;  %v2779_v46 = vld [vmem:[%s3331_s1 + $0xf0] sm:$0xff]   ;;  %s2106_s27 = sshll.u32 %s3339_s18, 2 }
  0x10   : > { %2406 = vmatpush3.bf16.msra.mxu0 %v2731_v5  ;;  %2695 = vmatpush3.bf16.msra.mxu1 %v2731_v5  ;;  %v2772_v43 = vld [vmem:[%s3331_s1 + $0xa8] sm:$0xff]   ;;  %v2802_v47 = vld [vmem:[%s3331_s1 + $0x110] sm:$0xff]   ;;  %v2781_v49 = vld [vmem:[%s3331_s1 + $0xf8] sm:$0xff]   ;;  %s3235_s30 = scalar_lea.vmem %s3333_s3, %s2106_s27 }
  0x11   : > { %2407 = vmatprep.subr.bf16.mxu0 %v2732_v6  ;;  %2688 = vmatprep.subr.bf16.mxu1 %v2732_v6  ;;  %s2969_s11 = scalar_lea.vmem %s3330_s0, %s2701_s4  ;;  %v2780_v48 = vld [vmem:[%s3331_s1 + $0xb0] sm:$0xff]   ;;  %v2783_v52 = vld [vmem:[%s3331_s1 + $0xb8] sm:$0xff]  }
  0x12   : > { %v2744_v11 = vld [vmem:[%s2969_s11 + $0x4] ss:$20 sps:$4 sm:$0xff]   ;;  %v2742_v20 = vld [vmem:[%s2969_s11] ss:$20 sps:$4 sm:$0xff]   ;;  %v2757_v27 = vld [vmem:[%s2969_s11 + $0x28] ss:$20 sps:$4 sm:$0xff]  }
  0x13   : > { %v2747_v12 = vld [vmem:[%s2969_s11 + $0x1e4] ss:$20 sps:$4 sm:$0xff]   ;;  %1201 = vmatprep.mubr.bf16.mxu0 %v2744_v11  ;;  %v2745_v21 = vld [vmem:[%s2969_s11 + $0x1e0] ss:$20 sps:$4 sm:$0xff]   ;;  %v2758_v29 = vld [vmem:[%s2969_s11 + $0x208] ss:$20 sps:$4 sm:$0xff]  }
  0x14   : > { %2408 = vmatpush3.bf16.msra.mxu0 %v2733_v7  ;;  %2696 = vmatpush3.bf16.msra.mxu1 %v2733_v7  ;;  %v2753_v24 = vld [vmem:[%s2969_s11 + $0x2c] ss:$20 sps:$4 sm:$0xff]   ;;  %v2763_v32 = vld [vmem:[%s2969_s11 + $0x54] ss:$20 sps:$4 sm:$0xff]   ;;  %v2767_v36 = vld [vmem:[%s2969_s11 + $0x50] ss:$20 sps:$4 sm:$0xff]  }
  0x15   : > { %2409 = vmatprep.subr.bf16.mxu0 %v2734_v8  ;;  %2689 = vmatprep.subr.bf16.mxu1 %v2734_v8  ;;  %v2755_v25 = vld [vmem:[%s2969_s11 + $0x20c] ss:$20 sps:$4 sm:$0xff]   ;;  %v2765_v33 = vld [vmem:[%s2969_s11 + $0x234] ss:$20 sps:$4 sm:$0xff]   ;;  %v2768_v38 = vld [vmem:[%s2969_s11 + $0x230] ss:$20 sps:$4 sm:$0xff]  }
  0x16   : > { %1297 = vmatprep.mubr.bf16.mxu1 %v2747_v12  ;;  %v2773_v41 = vld [vmem:[%s2969_s11 + $0x7c] ss:$20 sps:$4 sm:$0xff]   ;;  %v2777_v44 = vld [vmem:[%s2969_s11 + $0x78] ss:$20 sps:$4 sm:$0xff]   ;;  %v2789_v54 = vld [vmem:[%s2969_s11 + $0xa0] ss:$20 sps:$4 sm:$0xff]  }
  0x17   : > { %v2775_v42 = vld [vmem:[%s2969_s11 + $0x25c] ss:$20 sps:$4 sm:$0xff]   ;;  %v2778_v45 = vld [vmem:[%s2969_s11 + $0x258] ss:$20 sps:$4 sm:$0xff]   ;;  %v2792_v57 = vld [vmem:[%s2969_s11 + $0x34] ss:$20 sps:$4 sm:$0xff]  }
  0x18   : > { %2410 = vmatpush3.bf16.msra.mxu0 %v2735_v9  ;;  %2697 = vmatpush3.bf16.msra.mxu1 %v2735_v9  ;;  %v2784_v50 = vld [vmem:[%s2969_s11 + $0xa4] ss:$20 sps:$4 sm:$0xff]   ;;  %v2788_v51 = vld [vmem:[%s2969_s11 + $0xc] ss:$20 sps:$4 sm:$0xff]   ;;  %v2786_v53 = vld [vmem:[%s2969_s11 + $0x8] ss:$20 sps:$4 sm:$0xff]  }
  0x19   : > { %2411 = vmatprep.subr.bf16.mxu0 %v2736_v10  ;;  %2690 = vmatprep.subr.bf16.mxu1 %v2736_v10  ;;  %v2790_v55 = vld [vmem:[%s2969_s11 + $0xcc] ss:$20 sps:$4 sm:$0xff]   ;;  %v2821_v56 = vld [vmem:[%s3331_s1 + $0x118] sm:$0xff]   ;;  %v2795_v59 = vld [vmem:[%s2969_s11 + $0x30] ss:$20 sps:$4 sm:$0xff]  }
  0x1a   : > { %v2794_v58 = vld [vmem:[%s2969_s11 + $0xc8] ss:$20 sps:$4 sm:$0xff]   ;;  %v2800_v62 = vld [vmem:[%s2969_s11 + $0xf0] ss:$20 sps:$4 sm:$0xff]   ;;  %v2801_v63 = vld [vmem:[%s2969_s11 + $0x58] ss:$20 sps:$4 sm:$0xff]  }
  0x1b   : > { %v2796_v60 = vld [vmem:[%s2969_s11 + $0xf4] ss:$20 sps:$4 sm:$0xff]   ;;  %v2798_v61 = vld [vmem:[%s2969_s11 + $0x5c] ss:$20 sps:$4 sm:$0xff]   ;;  %v2805_v1 = vld [vmem:[%s2969_s11 + $0x84] ss:$20 sps:$4 sm:$0xff]  }
  0x1c   : > { %2412 = vmatpush3.bf16.msra.mxu0 %v2737_v13  ;;  %2698 = vmatpush3.bf16.msra.mxu1 %v2737_v13  ;;  %v2803_v0 = vld [vmem:[%s2969_s11 + $0x11c] ss:$20 sps:$4 sm:$0xff]   ;;  %v2807_v2 = vld [vmem:[%s2969_s11 + $0x118] ss:$20 sps:$4 sm:$0xff]   ;;  %v2808_v3 = vld [vmem:[%s2969_s11 + $0x80] ss:$20 sps:$4 sm:$0xff]  }
  0x1d   : > { %2413 = vmatprep.subr.bf16.mxu0 %v2738_v14  ;;  %2691 = vmatprep.subr.bf16.mxu1 %v2738_v14  ;;  %v2809_v4 = vld [vmem:[%s2969_s11 + $0x144] ss:$20 sps:$4 sm:$0xff]   ;;  %v2811_v5 = vld [vmem:[%s2969_s11 + $0xac] ss:$20 sps:$4 sm:$0xff]   ;;  %v2814_v7 = vld [vmem:[%s2969_s11 + $0xa8] ss:$20 sps:$4 sm:$0xff]  }
  0x1e   : > { %v2813_v6 = vld [vmem:[%s2969_s11 + $0x140] ss:$20 sps:$4 sm:$0xff]   ;;  %v2819_v10 = vld [vmem:[%s2969_s11 + $0x168] ss:$20 sps:$4 sm:$0xff]   ;;  %v2820_v11 = vld [vmem:[%s2969_s11 + $0xd0] ss:$20 sps:$4 sm:$0xff]  }
  0x1f   : > { %v2815_v8 = vld [vmem:[%s2969_s11 + $0x16c] ss:$20 sps:$4 sm:$0xff]   ;;  %v2817_v9 = vld [vmem:[%s2969_s11 + $0xd4] ss:$20 sps:$4 sm:$0xff]   ;;  %v2824_v13 = vld [vmem:[%s2969_s11 + $0xfc] ss:$20 sps:$4 sm:$0xff]  }
  0x20   : > { %2414 = vmatpush3.bf16.msra.mxu0 %v2739_v15  ;;  %2699 = vmatpush3.bf16.msra.mxu1 %v2739_v15  ;;  %v2822_v12 = vld [vmem:[%s2969_s11 + $0x194] ss:$20 sps:$4 sm:$0xff]   ;;  %v2826_v14 = vld [vmem:[%s2969_s11 + $0x190] ss:$20 sps:$4 sm:$0xff]   ;;  %v2827_v15 = vld [vmem:[%s2969_s11 + $0xf8] ss:$20 sps:$4 sm:$0xff]  }
  0x21   : > { %2415 = vmatprep.subr.bf16.mxu0 %v2740_v16  ;;  %2692 = vmatprep.subr.bf16.mxu1 %v2740_v16  ;;  %v2828_v16 = vld [vmem:[%s2969_s11 + $0x1bc] ss:$20 sps:$4 sm:$0xff]  }
  0x24   : > { %2416 = vmatpush3.bf16.msra.mxu0 %v2741_v17  ;;  %2700 = vmatpush3.bf16.msra.mxu1 %v2741_v17  ;;  %v2830_v17 = vld [vmem:[%s2969_s11 + $0x124] ss:$20 sps:$4 sm:$0xff]  }
  0x25   : > { %2513 = vmatprep.subr.bf16.mxu1 %v2748_v18  ;;  %2645 = vmatprep.subr.bf16.mxu0 %v2751_v19  ;;  %v2832_v18 = vld [vmem:[%s2969_s11 + $0x1b8] ss:$20 sps:$4 sm:$0xff]  }
  0x27   : > { %1202 = vmatmul.mubr.bf16.vlgmr.msra.gmra.mrb[0].mxu0 %v2742_v20  ;;  %1298 = vmatmul.mubr.bf16.vlgmr.msra.gmra.mrb[0].mxu1 %v2745_v21  ;;  %v2834_v20 = vld [vmem:[%s2969_s11 + $0x14c] ss:$20 sps:$4 sm:$0xff]   ;;  %v2836_v21 = vld [vmem:[%s2969_s11 + $0x10] ss:$20 sps:$4 sm:$0xff]  }
  0x28   : > { %2514 = vmatpush3.bf16.msra.mxu1 %v2749_v22  ;;  %2646 = vmatpush3.bf16.msra.mxu0 %v2751_v19  ;;  %v2833_v19 = vld [vmem:[%s2969_s11 + $0x120] ss:$20 sps:$4 sm:$0xff]   ;;  %v2837_v22 = vld [vmem:[%s2969_s11 + $0x148] ss:$20 sps:$4 sm:$0xff]  }
  0x29   : > { %2515 = vmatprep.subr.bf16.mxu1 %v2750_v23  ;;  %1209 = vmatprep.mubr.bf16.mxu0 %v2753_v24  ;;  %v2838_v23 = vld [vmem:[%s2969_s11 + $0x38] ss:$20 sps:$4 sm:$0xff]   ;;  %v2839_v24 = vld [vmem:[%s2969_s11 + $0x174] ss:$20 sps:$4 sm:$0xff]  }
  0x2a   : > { %1305 = vmatprep.mubr.bf16.mxu1 %v2755_v25  ;;  %2647 = vmatprep.subr.bf16.mxu0 %v2782_v35  ;;  %v2841_v25 = vld [vmem:[%s2969_s11 + $0x60] ss:$20 sps:$4 sm:$0xff]  }
  0x2c   : > { %2516 = vmatpush3.bf16.msra.mxu1 %v2752_v26  ;;  %2648 = vmatpush3.bf16.msra.mxu0 %v2782_v35  ;;  %v2842_v26 = vld [vmem:[%s2969_s11 + $0x170] ss:$20 sps:$4 sm:$0xff]   ;;  %v2853_v35 = vld [vmem:[%s2969_s11 + $0x128] ss:$20 sps:$4 sm:$0xff]  }
  0x2d   : > { %2517 = vmatprep.subr.bf16.mxu1 %v2759_v28  ;;  %2649 = vmatprep.subr.bf16.mxu0 %v2802_v47  ;;  %v2844_v28 = vld [vmem:[%s2969_s11 + $0x19c] ss:$20 sps:$4 sm:$0xff]  }
  0x2f   : > { %1210 = vmatmul.mubr.bf16.gmra.mrb[4].mxu0 %v2757_v27  ;;  %1306 = vmatmul.mubr.bf16.gmra.mrb[4].mxu1 %v2758_v29  ;;  %v2843_v27 = vld [vmem:[%s2969_s11 + $0x88] ss:$20 sps:$4 sm:$0xff]   ;;  %v2846_v29 = vld [vmem:[%s2969_s11 + $0xb0] ss:$20 sps:$4 sm:$0xff]  }
  0x30   : > { %2518 = vmatpush3.bf16.msra.mxu1 %v2760_v30  ;;  %1217 = vmatprep.mubr.bf16.mxu0 %v2763_v32  ;;  %v2847_v30 = vld [vmem:[%s2969_s11 + $0x198] ss:$20 sps:$4 sm:$0xff]  }
  0x31   : > { %2519 = vmatprep.subr.bf16.mxu1 %v2761_v31  ;;  %1313 = vmatprep.mubr.bf16.mxu1 %v2765_v33  ;;  %v2848_v31 = vld [vmem:[%s2969_s11 + $0xd8] ss:$20 sps:$4 sm:$0xff]   ;;  %v2851_v33 = vld [vmem:[%s2969_s11 + $0x100] ss:$20 sps:$4 sm:$0xff]  }
  0x32   : > { %2650 = vmatpush3.bf16.msra.mxu0 %v2802_v47  ;;  %v2849_v32 = vld [vmem:[%s2969_s11 + $0x1c4] ss:$20 sps:$4 sm:$0xff]  }
  0x33   : > { %2651 = vmatprep.subr.bf16.mxu0 %v2821_v56  ;;  %v2868_v47 = vld [vmem:[%s2969_s11 + $0x218] ss:$20 sps:$4 sm:$0xff]  }
  0x34   : > { %2520 = vmatpush3.bf16.msra.mxu1 %v2762_v34  ;;  %v2852_v34 = vld [vmem:[%s2969_s11 + $0x1c0] ss:$20 sps:$4 sm:$0xff]  }
  0x35   : > { %2521 = vmatprep.subr.bf16.mxu1 %v2769_v37  ;;  %v2856_v37 = vld [vmem:[%s2969_s11 + $0x150] ss:$20 sps:$4 sm:$0xff]  }
  0x36   : > { %2652 = vmatpush3.bf16.msra.mxu0 %v2821_v56 }
  0x37   : > { %1218 = vmatmul.mubr.bf16.gmra.mrb[8].mxu0 %v2767_v36  ;;  %1314 = vmatmul.mubr.bf16.gmra.mrb[8].mxu1 %v2768_v38  ;;  %v2854_v36 = vld [vmem:[%s2969_s11 + $0x1ec] ss:$20 sps:$4 sm:$0xff]   ;;  %v2857_v38 = vld [vmem:[%s2969_s11 + $0x1e8] ss:$20 sps:$4 sm:$0xff]  }
  0x38   : > { %2522 = vmatpush3.bf16.msra.mxu1 %v2770_v39  ;;  %1225 = vmatprep.mubr.bf16.mxu0 %v2773_v41  ;;  %v2858_v39 = vld [vmem:[%s2969_s11 + $0x178] ss:$20 sps:$4 sm:$0xff]   ;;  %v2861_v41 = vld [vmem:[%s2969_s11 + $0x1a0] ss:$20 sps:$4 sm:$0xff]  }
  0x39   : > { %2523 = vmatprep.subr.bf16.mxu1 %v2771_v40  ;;  %1321 = vmatprep.mubr.bf16.mxu1 %v2775_v42  ;;  %v2859_v40 = vld [vmem:[%s2969_s11 + $0x214] ss:$20 sps:$4 sm:$0xff]   ;;  %v2862_v42 = vld [vmem:[%s2969_s11 + $0x210] ss:$20 sps:$4 sm:$0xff]  }
  0x3c   : > { %2524 = vmatpush3.bf16.msra.mxu1 %v2772_v43  ;;  %v2863_v43 = vld [vmem:[%s2969_s11 + $0x1c8] ss:$20 sps:$4 sm:$0xff]  }
  0x3d   : > { %2525 = vmatprep.subr.bf16.mxu1 %v2779_v46  ;;  %v2867_v46 = vld [vmem:[%s2969_s11 + $0x238] ss:$20 sps:$4 sm:$0xff]  }
  0x3f   : > { %1226 = vmatmul.mubr.bf16.gmra.mrb[12].mxu0 %v2777_v44  ;;  %1322 = vmatmul.mubr.bf16.gmra.mrb[12].mxu1 %v2778_v45  ;;  %v2864_v44 = vld [vmem:[%s2969_s11 + $0x23c] ss:$20 sps:$4 sm:$0xff]  }
  0x40   : > { %2526 = vmatpush3.bf16.msra.mxu1 %v2780_v48  ;;  %1233 = vmatprep.mubr.bf16.mxu0 %v2784_v50  ;;  %v2866_v45 = vld [vmem:[%s2969_s11 + $0x1f0] ss:$20 sps:$4 sm:$0xff]   ;;  %v2872_v50 = vld [vmem:[%s2969_s11 + $0x260] ss:$20 sps:$4 sm:$0xff]  }
  0x41   : > { %2527 = vmatprep.subr.bf16.mxu1 %v2781_v49  ;;  %1362 = vmatprep.mubr.bf16.mxu1 %v2788_v51  ;;  %v2869_v48 = vld [vmem:[%s2969_s11 + $0x264] ss:$20 sps:$4 sm:$0xff]   ;;  %v2871_v49 = vld [vmem:[%s2969_s11 + $0x240] ss:$20 sps:$4 sm:$0xff]   ;;  %v2873_v51 = vld [vmem:[%s2969_s11 + $0x268] ss:$20 sps:$4 sm:$0xff]  }
  0x44   : > { %2528 = vmatpush3.bf16.msra.mxu1 %v2783_v52 }
  0x47   : > { %1234 = vmatmul.mubr.bf16.gmra.mrb[16].mxu0 %v2789_v54  ;;  %1363 = vmatmul.mubr.bf16.vlgmr.msra.gmra.mrb[16].mxu1 %v2786_v53 }
  0x48   : > { %1241 = vmatprep.mubr.bf16.mxu0 %v2790_v55  ;;  %1370 = vmatprep.mubr.bf16.mxu1 %v2792_v57 }
  0x4f   : > { %1242 = vmatmul.mubr.bf16.gmra.mrb[20].mxu0 %v2794_v58  ;;  %1371 = vmatmul.mubr.bf16.gmra.mrb[20].mxu1 %v2795_v59 }
  0x50   : > { %1249 = vmatprep.mubr.bf16.mxu0 %v2796_v60  ;;  %1378 = vmatprep.mubr.bf16.mxu1 %v2798_v61 }
  0x57   : > { %1250 = vmatmul.mubr.bf16.gmra.mrb[24].mxu0 %v2800_v62  ;;  %1379 = vmatmul.mubr.bf16.gmra.mrb[24].mxu1 %v2801_v63 }
  0x58   : > { %1257 = vmatprep.mubr.bf16.mxu0 %v2803_v0  ;;  %1386 = vmatprep.mubr.bf16.mxu1 %v2805_v1 }
  0x5f   : > { %1258 = vmatmul.mubr.bf16.gmra.mrb[28].mxu0 %v2807_v2  ;;  %1387 = vmatmul.mubr.bf16.gmra.mrb[28].mxu1 %v2808_v3 }
  0x60   : > { %1265 = vmatprep.mubr.bf16.mxu0 %v2809_v4  ;;  %1394 = vmatprep.mubr.bf16.mxu1 %v2811_v5 }
  0x67   : > { %1266 = vmatmul.mubr.bf16.gmra.mrb[32].mxu0 %v2813_v6  ;;  %1395 = vmatmul.mubr.bf16.gmra.mrb[32].mxu1 %v2814_v7 }
  0x68   : > { %1273 = vmatprep.mubr.bf16.mxu0 %v2815_v8  ;;  %1402 = vmatprep.mubr.bf16.mxu1 %v2817_v9 }
  0x6f   : > { %1274 = vmatmul.mubr.bf16.gmra.mrb[36].mxu0 %v2819_v10  ;;  %1403 = vmatmul.mubr.bf16.gmra.mrb[36].mxu1 %v2820_v11 }
  0x70   : > { %1281 = vmatprep.mubr.bf16.mxu0 %v2822_v12  ;;  %1410 = vmatprep.mubr.bf16.mxu1 %v2824_v13 }
  0x77   : > { %1282 = vmatmul.mubr.bf16.gmra.mrb[40].mxu0 %v2826_v14  ;;  %1411 = vmatmul.mubr.bf16.gmra.mrb[40].mxu1 %v2827_v15 }
  0x78   : > { %1289 = vmatprep.mubr.bf16.mxu0 %v2828_v16  ;;  %1418 = vmatprep.mubr.bf16.mxu1 %v2830_v17 }
  0x7f   : > { %1290 = vmatmul.mubr.bf16.gmra.mrb[44].mxu0 %v2832_v18  ;;  %1419 = vmatmul.mubr.bf16.gmra.mrb[44].mxu1 %v2833_v19 }
  0x80   : > { %1426 = vmatprep.mubr.bf16.mxu1 %v2834_v20  ;;  %2653 = vmatprep.mubr.msk.bf16.mxu0 %vm1120_vm0, %v2836_v21 }
  0x87   : > { %1427 = vmatmul.mubr.bf16.gmra.mrb[48].mxu1 %v2837_v22  ;;  %2654 = vmatmul.mubr.msk.bf16.vlgmr.msra.gmra.mrb[48].mxu0 %vm1120_vm0, %v2838_v23 }
  0x88   : > { %1434 = vmatprep.mubr.bf16.mxu1 %v2839_v24  ;;  %2657 = vmatprep.mubr.msk.bf16.mxu0 %vm1120_vm0, %v2841_v25 }
  0x8f   : > { %1435 = vmatmul.mubr.bf16.gmra.mrb[52].mxu1 %v2842_v26  ;;  %2658 = vmatmul.mubr.msk.bf16.gmra.mrb[52].mxu0 %vm1120_vm0, %v2843_v27 }
  0x90   : > { %1442 = vmatprep.mubr.bf16.mxu1 %v2844_v28  ;;  %2661 = vmatprep.mubr.msk.bf16.mxu0 %vm1120_vm0, %v2846_v29 }
  0x97   : > { %1443 = vmatmul.mubr.bf16.gmra.mrb[56].mxu1 %v2847_v30  ;;  %2662 = vmatmul.mubr.msk.bf16.gmra.mrb[56].mxu0 %vm1120_vm0, %v2848_v31 }
  0x98   : > { %1450 = vmatprep.mubr.bf16.mxu1 %v2849_v32  ;;  %2665 = vmatprep.mubr.msk.bf16.mxu0 %vm1120_vm0, %v2851_v33 }
  0x9f   : > { %1451 = vmatmul.mubr.bf16.gmra.mrb[60].mxu1 %v2852_v34  ;;  %2666 = vmatmul.mubr.msk.bf16.gmra.mrb[60].mxu0 %vm1120_vm0, %v2853_v35 }
  0xa0   : > { %1458 = vmatprep.mubr.bf16.mxu1 %v2854_v36  ;;  %2669 = vmatprep.mubr.msk.bf16.mxu0 %vm1120_vm0, %v2856_v37 }
  0xa7   : > { %1459 = vmatmul.mubr.bf16.gmra.mrb[64].mxu1 %v2857_v38  ;;  %2670 = vmatmul.mubr.msk.bf16.gmra.mrb[64].mxu0 %vm1120_vm0, %v2858_v39 }
  0xa8   : > { %1466 = vmatprep.mubr.bf16.mxu1 %v2859_v40  ;;  %2673 = vmatprep.mubr.msk.bf16.mxu0 %vm1120_vm0, %v2861_v41 }
  0xaf   : > { %1467 = vmatmul.mubr.bf16.gmra.mrb[68].mxu1 %v2862_v42  ;;  %2674 = vmatmul.mubr.msk.bf16.gmra.mrb[68].mxu0 %vm1120_vm0, %v2863_v43 }
  0xb0   : > { %1474 = vmatprep.mubr.bf16.mxu1 %v2864_v44  ;;  %2677 = vmatprep.mubr.msk.bf16.mxu0 %vm1120_vm0, %v2866_v45 }
  0xb7   : > { %1475 = vmatmul.mubr.bf16.gmra.mrb[72].mxu1 %v2867_v46  ;;  %2678 = vmatmul.mubr.msk.bf16.gmra.mrb[72].mxu0 %vm1120_vm0, %v2868_v47 }
  0xb8   : > { %1482 = vmatprep.mubr.bf16.mxu1 %v2869_v48  ;;  %2681 = vmatprep.mubr.msk.bf16.mxu0 %vm1120_vm0, %v2871_v49 }
  0xbf   : > { %1483 = vmatmul.mubr.bf16.gmra.mrb[76].mxu1 %v2872_v50  ;;  %2682 = vmatmul.mubr.msk.bf16.gmra.mrb[76].mxu0 %vm1120_vm0, %v2873_v51 }
  0xfa   : > { %v2489_v52 = vpop.f32.mrb[0].mxu1  ;;  %v2417_v53 = vpop.f32.mrb[0].mxu0 }
  0xfb   : > { %v2490_v54 = vpop.f32.mrb[1].mxu1  ;;  %v2418_v55 = vpop.f32.mrb[1].mxu0 }
  0xfc   : > { %v3148_v56 = vadd.f32 %v2490_v54, %v2489_v52  ;;  %v2492_v57 = vpop.f32.mrb[2].mxu1  ;;  %v2419_v58 = vadd.f32 %v2418_v55, %v2417_v53  ;;  %v2420_v59 = vpop.f32.mrb[2].mxu0 }
  0xfd   : > { %v2493_v60 = vpop.f32.mrb[3].mxu1  ;;  %v2421_v61 = vpop.f32.mrb[3].mxu0 }
  0xfe   : > { %v3150_v62 = vadd.f32 %v2493_v60, %v2492_v57  ;;  %v2422_v63 = vadd.f32 %v2421_v61, %v2420_v59 }
 0x102   : > { %v2495_v0 = vpop.f32.mrb[4].mxu1  ;;  %v2423_v1 = vpop.f32.mrb[4].mxu0 }
 0x103   : > { %v2496_v2 = vpop.f32.mrb[5].mxu1  ;;  %v2424_v3 = vpop.f32.mrb[5].mxu0 }
 0x104   : > { %v3152_v4 = vadd.f32 %v2496_v2, %v2495_v0  ;;  %v2498_v5 = vpop.f32.mrb[6].mxu1  ;;  %v2425_v6 = vadd.f32 %v2424_v3, %v2423_v1  ;;  %v2426_v7 = vpop.f32.mrb[6].mxu0 }
 0x105   : > { %v2499_v8 = vpop.f32.mrb[7].mxu1  ;;  %v2427_v9 = vpop.f32.mrb[7].mxu0 }
 0x106   : > { %v3154_v10 = vadd.f32 %v2499_v8, %v2498_v5  ;;  %v2428_v11 = vadd.f32 %v2427_v9, %v2426_v7 }
 0x10a   : > { %v2501_v12 = vpop.f32.mrb[8].mxu1  ;;  %v2429_v13 = vpop.f32.mrb[8].mxu0 }
 0x10b   : > { %v2502_v14 = vpop.f32.mrb[9].mxu1  ;;  %v2430_v15 = vpop.f32.mrb[9].mxu0 }
 0x10c   : > { %v3156_v16 = vadd.f32 %v2502_v14, %v2501_v12  ;;  %v2504_v17 = vpop.f32.mrb[10].mxu1  ;;  %v2431_v18 = vadd.f32 %v2430_v15, %v2429_v13  ;;  %v2432_v19 = vpop.f32.mrb[10].mxu0 }
 0x10d   : > { %v2505_v20 = vpop.f32.mrb[11].mxu1  ;;  %v2433_v21 = vpop.f32.mrb[11].mxu0 }
 0x10e   : > { %v3158_v22 = vadd.f32 %v2505_v20, %v2504_v17  ;;  %v2434_v23 = vadd.f32 %v2433_v21, %v2432_v19 }
 0x112   : > { %v2507_v24 = vpop.f32.mrb[12].mxu1  ;;  %v2435_v25 = vpop.f32.mrb[12].mxu0 }
 0x113   : > { %v2508_v26 = vpop.f32.mrb[13].mxu1  ;;  %v2436_v27 = vpop.f32.mrb[13].mxu0 }
 0x114   : > { %v3160_v28 = vadd.f32 %v2508_v26, %v2507_v24  ;;  %v2510_v29 = vpop.f32.mrb[14].mxu1  ;;  %v2437_v30 = vadd.f32 %v2436_v27, %v2435_v25  ;;  %v2438_v31 = vpop.f32.mrb[14].mxu0 }
 0x115   : > { %v2511_v32 = vpop.f32.mrb[15].mxu1  ;;  %v2439_v33 = vpop.f32.mrb[15].mxu0 }
 0x116   : > { %v3162_v34 = vadd.f32 %v2511_v32, %v2510_v29  ;;  %v2440_v35 = vadd.f32 %v2439_v33, %v2438_v31 }
 0x11a   : > { %v2529_v36 = vpop.f32.mrb[16].mxu1  ;;  %v2441_v37 = vpop.f32.mrb[16].mxu0 }
 0x11b   : > { %v2530_v38 = vpop.f32.mrb[17].mxu1  ;;  %v2442_v39 = vpop.f32.mrb[17].mxu0 }
 0x11c   : > { %v2531_v40 = vadd.f32 %v2530_v38, %v2529_v36  ;;  %v2532_v41 = vpop.f32.mrb[18].mxu1  ;;  %v2443_v42 = vadd.f32 %v2442_v39, %v2441_v37  ;;  %v2444_v43 = vpop.f32.mrb[18].mxu0 }
 0x11d   : > { %v2533_v44 = vpop.f32.mrb[19].mxu1  ;;  %v2445_v45 = vpop.f32.mrb[19].mxu0 }
 0x11e   : > { %v2534_v46 = vadd.f32 %v2533_v44, %v2532_v41  ;;  %v2446_v47 = vadd.f32 %v2445_v45, %v2444_v43  ;;  %v3164_v48 = vadd.f32 %v2531_v40, %v2419_v58 }
 0x120   : > { %v3166_v49 = vadd.f32 %v2534_v46, %v2422_v63 }
 0x122   : > { %v2535_v50 = vpop.f32.mrb[20].mxu1  ;;  %v2447_v51 = vpop.f32.mrb[20].mxu0 }
 0x123   : > { %v2536_v52 = vpop.f32.mrb[21].mxu1  ;;  %v2448_v53 = vpop.f32.mrb[21].mxu0 }
 0x124   : > { %v2537_v54 = vadd.f32 %v2536_v52, %v2535_v50  ;;  %v2538_v55 = vpop.f32.mrb[22].mxu1  ;;  %v2449_v57 = vadd.f32 %v2448_v53, %v2447_v51  ;;  %v2450_v59 = vpop.f32.mrb[22].mxu0 }
 0x125   : > { %v2539_v60 = vpop.f32.mrb[23].mxu1  ;;  %v2451_v61 = vpop.f32.mrb[23].mxu0 }
 0x126   : > { %v2540_v0 = vadd.f32 %v2539_v60, %v2538_v55  ;;  %v2452_v1 = vadd.f32 %v2451_v61, %v2450_v59  ;;  %v3168_v2 = vadd.f32 %v2537_v54, %v2425_v6 }
 0x128   : > { %v3170_v3 = vadd.f32 %v2540_v0, %v2428_v11 }
 0x12a   : > { %v2541_v58 = vpop.f32.mrb[24].mxu1  ;;  %v2453_v5 = vpop.f32.mrb[24].mxu0 }
 0x12b   : > { %v2542_v63 = vpop.f32.mrb[25].mxu1  ;;  %v2454_v7 = vpop.f32.mrb[25].mxu0 }
 0x12c   : > { %v2543_v8 = vadd.f32 %v2542_v63, %v2541_v58  ;;  %v2544_v9 = vpop.f32.mrb[26].mxu1  ;;  %v2455_v12 = vadd.f32 %v2454_v7, %v2453_v5  ;;  %v2456_v13 = vpop.f32.mrb[26].mxu0 }
 0x12d   : > { %v2545_v14 = vpop.f32.mrb[27].mxu1  ;;  %v2457_v15 = vpop.f32.mrb[27].mxu0 }
 0x12e   : > { %v2546_v17 = vadd.f32 %v2545_v14, %v2544_v9  ;;  %v2458_v19 = vadd.f32 %v2457_v15, %v2456_v13  ;;  %v3172_v20 = vadd.f32 %v2543_v8, %v2431_v18 }
 0x130   : > { %v3174_v21 = vadd.f32 %v2546_v17, %v2434_v23 }
 0x132   : > { %v2547_v6 = vpop.f32.mrb[28].mxu1  ;;  %v2459_v24 = vpop.f32.mrb[28].mxu0 }
 0x133   : > { %v2548_v11 = vpop.f32.mrb[29].mxu1  ;;  %v2460_v25 = vpop.f32.mrb[29].mxu0 }
 0x134   : > { %v2549_v26 = vadd.f32 %v2548_v11, %v2547_v6  ;;  %v2550_v27 = vpop.f32.mrb[30].mxu1  ;;  %v2461_v29 = vadd.f32 %v2460_v25, %v2459_v24  ;;  %v2462_v31 = vpop.f32.mrb[30].mxu0 }
 0x135   : > { %v2551_v32 = vpop.f32.mrb[31].mxu1  ;;  %v2463_v33 = vpop.f32.mrb[31].mxu0 }
 0x136   : > { %v2552_v36 = vadd.f32 %v2551_v32, %v2550_v27  ;;  %v2464_v37 = vadd.f32 %v2463_v33, %v2462_v31  ;;  %v3176_v38 = vadd.f32 %v2549_v26, %v2437_v30 }
 0x138   : > { %v3178_v39 = vadd.f32 %v2552_v36, %v2440_v35 }
 0x13a   : > { %v2553_v18 = vpop.f32.mrb[32].mxu1  ;;  %v2465_v40 = vpop.f32.mrb[32].mxu0 }
 0x13b   : > { %v2554_v23 = vpop.f32.mrb[33].mxu1  ;;  %v2466_v41 = vpop.f32.mrb[33].mxu0 }
 0x13c   : > { %v2555_v43 = vadd.f32 %v2554_v23, %v2553_v18  ;;  %v2556_v44 = vpop.f32.mrb[34].mxu1  ;;  %v3180_v45 = vadd.f32 %v2466_v41, %v2465_v40  ;;  %v2468_v46 = vpop.f32.mrb[34].mxu0 }
 0x13d   : > { %v2557_v50 = vpop.f32.mrb[35].mxu1  ;;  %v2469_v51 = vpop.f32.mrb[35].mxu0 }
 0x13e   : > { %v2558_v52 = vadd.f32 %v2557_v50, %v2556_v44  ;;  %v3182_v53 = vadd.f32 %v2469_v51, %v2468_v46  ;;  %v3184_v54 = vadd.f32 %v2555_v43, %v2443_v42 }
 0x140   : > { %v3186_v30 = vadd.f32 %v2558_v52, %v2446_v47 }
 0x142   : > { %v2559_v35 = vpop.f32.mrb[36].mxu1  ;;  %v2471_v55 = vpop.f32.mrb[36].mxu0 }
 0x143   : > { %v2560_v59 = vpop.f32.mrb[37].mxu1  ;;  %v2472_v60 = vpop.f32.mrb[37].mxu0 }
 0x144   : > { %v2561_v61 = vadd.f32 %v2560_v59, %v2559_v35  ;;  %v2562_v0 = vpop.f32.mrb[38].mxu1  ;;  %v3188_v58 = vadd.f32 %v2472_v60, %v2471_v55  ;;  %v2474_v5 = vpop.f32.mrb[38].mxu0  ;;  %v3215_v59 = vld [vmem:[%s3332_s2] ss:$0 sm:$0xff] }
 0x145   : > { %v2563_v63 = vpop.f32.mrb[39].mxu1  ;;  %v2475_v7 = vpop.f32.mrb[39].mxu0 }
 0x146   : > { %v2564_v8 = vadd.f32 %v2563_v63, %v2562_v0  ;;  %v3190_v9 = vadd.f32 %v2475_v7, %v2474_v5  ;;  %v3192_v13 = vadd.f32 %v2561_v61, %v2449_v57 }
 0x148   : > { %v3194_v42 = vadd.f32 %v2564_v8, %v2452_v1 }
 0x14a   : > { %v2565_v47 = vpop.f32.mrb[40].mxu1  ;;  %v2477_v14 = vpop.f32.mrb[40].mxu0 }
 0x14b   : > { %v2566_v15 = vpop.f32.mrb[41].mxu1  ;;  %v2478_v17 = vpop.f32.mrb[41].mxu0 }
 0x14c   : > { %v2567_v6 = vadd.f32 %v2566_v15, %v2565_v47  ;;  %v2568_v24 = vpop.f32.mrb[42].mxu1  ;;  %v3196_v11 = vadd.f32 %v2478_v17, %v2477_v14  ;;  %v2480_v25 = vpop.f32.mrb[42].mxu0 }
 0x14d   : > { %v2569_v26 = vpop.f32.mrb[43].mxu1  ;;  %v2481_v27 = vpop.f32.mrb[43].mxu0 }
 0x14e   : > { %v2570_v31 = vadd.f32 %v2569_v26, %v2568_v24  ;;  %v3198_v32 = vadd.f32 %v2481_v27, %v2480_v25  ;;  %v3200_v33 = vadd.f32 %v2567_v6, %v2455_v12 }
 0x150   : > { %v3202_v57 = vadd.f32 %v2570_v31, %v2458_v19 }
 0x152   : > { %v2571_v1 = vpop.f32.mrb[44].mxu1  ;;  %v2483_v36 = vpop.f32.mrb[44].mxu0 }
 0x153   : > { %v2572_v18 = vpop.f32.mrb[45].mxu1  ;;  %v2484_v40 = vpop.f32.mrb[45].mxu0 }
 0x154   : > { %v2573_v23 = vadd.f32 %v2572_v18, %v2571_v1  ;;  %v2574_v41 = vpop.f32.mrb[46].mxu1  ;;  %v3204_v43 = vadd.f32 %v2484_v40, %v2483_v36  ;;  %v2486_v44 = vpop.f32.mrb[46].mxu0 }
 0x155   : > { %v2575_v46 = vpop.f32.mrb[47].mxu1  ;;  %v2487_v50 = vpop.f32.mrb[47].mxu0 }
 0x156   : > { %v2576_v51 = vadd.f32 %v2575_v46, %v2574_v41  ;;  %v3206_v52 = vadd.f32 %v2487_v50, %v2486_v44  ;;  %v3208_v35 = vadd.f32 %v2573_v23, %v2461_v29 }
 0x158   : > { %v3210_v12 = vadd.f32 %v2576_v51, %v2464_v37 }
 0x15a   : > { %v2577_v19 = vpop.f32.mrb[48].mxu1  ;;  %v2655_v55 = vpop.f32.mrb[48].mxu0 }
 0x15b   : > { %v1534_v60 = vadd.f32 %v2655_v55, %v3168_v2  ;;  %v2578_v61 = vpop.f32.mrb[49].mxu1  ;;  %v1525_v0 = vpop.f32.mrb[49].mxu0 }
 0x15c   : > { %v2579_v5 = vadd.f32 %v2578_v61, %v2577_v19  ;;  %v1526_v63 = vadd.f32 %v1525_v0, %v3164_v48  ;;  %v2580_v7 = vpop.f32.mrb[50].mxu1  ;;  %v2656_v29 = vpop.f32.mrb[50].mxu0 }
 0x15d   : > { %v1760_v37 = vadd.f32 %v3215_v59, %v1534_v60  ;;  %v1537_v8 = vadd.f32 %v2656_v29, %v3170_v3  ;;  %v2581_v47 = vpop.f32.mrb[51].mxu1  ;;  %v1528_v14 = vpop.f32.mrb[51].mxu0 }
 0x15e   : > { %v1758_v15 = vadd.f32 %v3215_v59, %v1526_v63  ;;  %v2582_v17 = vadd.f32 %v2581_v47, %v2580_v7  ;;  %v1529_v6 = vadd.f32 %v1528_v14, %v3166_v49  ;;  %v3224_v2 = vadd.f32 %v2579_v5, %v3180_v45 }
 0x15f   : > { %v1761_v24 = vadd.f32 %v3215_v59, %v1537_v8  ;;  %v1792_v26 = vmax.f32 %v1760_v37, 0.0 }
 0x160   : > { %v1759_v48 = vadd.f32 %v3215_v59, %v1529_v6  ;;  %v3230_v25 = vadd.f32 %v2582_v17, %v3182_v53  ;;  %v1790_v27 = vmax.f32 %v1758_v15, 0.0 }
 0x161   : > { %v1793_v3 = vmax.f32 %v1761_v24, 0.0 }
 0x162   : > { %v1791_v49 = vmax.f32 %v1759_v48, 0.0  ;;  %v2583_v45 = vpop.f32.mrb[52].mxu1  ;;  %v2659_v31 = vpop.f32.mrb[52].mxu0 }
 0x163   : > { %v2314_v1 = vpack.c.bf16 %v1793_v3, %v1792_v26  ;;  %v1550_v36 = vadd.f32 %v2659_v31, %v3176_v38  ;;  %v2584_v18 = vpop.f32.mrb[53].mxu1  ;;  %v1541_v40 = vpop.f32.mrb[53].mxu0 }
 0x164   : > { %v2309_v53 = vpack.c.bf16 %v1791_v49, %v1790_v27  ;;  %v2585_v23 = vadd.f32 %v2584_v18, %v2583_v45  ;;  %v1542_v41 = vadd.f32 %v1541_v40, %v3172_v20  ;;  %v2586_v44 = vpop.f32.mrb[54].mxu1  ;;  %v2660_v46 = vpop.f32.mrb[54].mxu0 }
 0x165   : > { %2386 = vst [vmem:[%s3235_s30 + $0x8] sm:$0xff] %v2314_v1   ;;  %v1764_v50 = vadd.f32 %v3215_v59, %v1550_v36  ;;  %v1553_v51 = vadd.f32 %v2660_v46, %v3178_v39  ;;  %v2587_v19 = vpop.f32.mrb[55].mxu1  ;;  %v1544_v55 = vpop.f32.mrb[55].mxu0 }
 0x166   : > { %2310 = vst [vmem:[%s3235_s30] sm:$0xff] %v2309_v53   ;;  %v1762_v60 = vadd.f32 %v3215_v59, %v1542_v41  ;;  %v2588_v61 = vadd.f32 %v2587_v19, %v2586_v44  ;;  %v1545_v38 = vadd.f32 %v1544_v55, %v3174_v21  ;;  %v3246_v0 = vadd.f32 %v2585_v23, %v3188_v58 }
 0x167   : > { %v1765_v20 = vadd.f32 %v3215_v59, %v1553_v51  ;;  %v1796_v39 = vmax.f32 %v1764_v50, 0.0 }
 0x168   : > { %v1763_v5 = vadd.f32 %v3215_v59, %v1545_v38  ;;  %v3251_v63 = vadd.f32 %v2588_v61, %v3190_v9  ;;  %v1794_v29 = vmax.f32 %v1762_v60, 0.0 }
 0x169   : > { %v1797_v7 = vmax.f32 %v1765_v20, 0.0 }
 0x16a   : > { %v1795_v37 = vmax.f32 %v1763_v5, 0.0  ;;  %v2589_v8 = vpop.f32.mrb[56].mxu1  ;;  %v2663_v47 = vpop.f32.mrb[56].mxu0 }
 0x16b   : > { %v2324_v14 = vpack.c.bf16 %v1797_v7, %v1796_v39  ;;  %v1566_v21 = vadd.f32 %v2663_v47, %v3192_v13  ;;  %v2590_v58 = vpop.f32.mrb[57].mxu1  ;;  %v1557_v15 = vpop.f32.mrb[57].mxu0 }
 0x16c   : > { %v2319_v17 = vpack.c.bf16 %v1795_v37, %v1794_v29  ;;  %v2591_v6 = vadd.f32 %v2590_v58, %v2589_v8  ;;  %v1558_v24 = vadd.f32 %v1557_v15, %v3184_v54  ;;  %v2592_v48 = vpop.f32.mrb[58].mxu1  ;;  %v2664_v9 = vpop.f32.mrb[58].mxu0 }
 0x16d   : > { %2388 = vst [vmem:[%s3235_s30 + $0x18] sm:$0xff] %v2324_v14   ;;  %v1768_v26 = vadd.f32 %v3215_v59, %v1566_v21  ;;  %v1569_v3 = vadd.f32 %v2664_v9, %v3194_v42  ;;  %v2593_v27 = vpop.f32.mrb[59].mxu1  ;;  %v1560_v49 = vpop.f32.mrb[59].mxu0 }
 0x16e   : > { %2387 = vst [vmem:[%s3235_s30 + $0x10] sm:$0xff] %v2319_v17   ;;  %v1766_v45 = vadd.f32 %v3215_v59, %v1558_v24  ;;  %v2594_v31 = vadd.f32 %v2593_v27, %v2592_v48  ;;  %v1561_v13 = vadd.f32 %v1560_v49, %v3186_v30  ;;  %v3262_v1 = vadd.f32 %v2591_v6, %v3196_v11 }
 0x16f   : > { %v1769_v54 = vadd.f32 %v3215_v59, %v1569_v3  ;;  %v1800_v42 = vmax.f32 %v1768_v26, 0.0 }
 0x170   : > { %v1767_v36 = vadd.f32 %v3215_v59, %v1561_v13  ;;  %v3267_v18 = vadd.f32 %v2594_v31, %v3198_v32  ;;  %v1798_v53 = vmax.f32 %v1766_v45, 0.0 }
 0x171   : > { %v1801_v40 = vmax.f32 %v1769_v54, 0.0 }
 0x172   : > { %v1799_v23 = vmax.f32 %v1767_v36, 0.0  ;;  %v2595_v41 = vpop.f32.mrb[60].mxu1  ;;  %v2667_v44 = vpop.f32.mrb[60].mxu0 }
 0x173   : > { %v2334_v46 = vpack.c.bf16 %v1801_v40, %v1800_v42  ;;  %v1582_v30 = vadd.f32 %v2667_v44, %v3208_v35  ;;  %v2596_v11 = vpop.f32.mrb[61].mxu1  ;;  %v1573_v50 = vpop.f32.mrb[61].mxu0 }
 0x174   : > { %v2329_v51 = vpack.c.bf16 %v1799_v23, %v1798_v53  ;;  %v2597_v19 = vadd.f32 %v2596_v11, %v2595_v41  ;;  %v1574_v55 = vadd.f32 %v1573_v50, %v3200_v33  ;;  %v2598_v60 = vpop.f32.mrb[62].mxu1  ;;  %v2668_v32 = vpop.f32.mrb[62].mxu0 }
 0x175   : > { %2390 = vst [vmem:[%s3235_s30 + $0x28] sm:$0xff] %v2334_v46   ;;  %v1772_v61 = vadd.f32 %v3215_v59, %v1582_v30  ;;  %v1585_v38 = vadd.f32 %v2668_v32, %v3210_v12  ;;  %v2599_v20 = vpop.f32.mrb[63].mxu1  ;;  %v1576_v5 = vpop.f32.mrb[63].mxu0 }
 0x176   : > { %2389 = vst [vmem:[%s3235_s30 + $0x20] sm:$0xff] %v2329_v51   ;;  %v1770_v39 = vadd.f32 %v3215_v59, %v1574_v55  ;;  %v2600_v7 = vadd.f32 %v2599_v20, %v2598_v60  ;;  %v1577_v35 = vadd.f32 %v1576_v5, %v3202_v57  ;;  %v1453_v29 = vadd.f32 %v2597_v19, %v3204_v43 }
 0x177   : > { %v1773_v37 = vadd.f32 %v3215_v59, %v1585_v38  ;;  %v1804_v47 = vmax.f32 %v1772_v61, 0.0 }
 0x178   : > { %v1771_v33 = vadd.f32 %v3215_v59, %v1577_v35  ;;  %v1456_v8 = vadd.f32 %v2600_v7, %v3206_v52  ;;  %v1802_v12 = vmax.f32 %v1770_v39, 0.0 }
 0x179   : > { %v1805_v14 = vmax.f32 %v1773_v37, 0.0 }
 0x17a   : > { %v1803_v21 = vmax.f32 %v1771_v33, 0.0  ;;  %v2601_v58 = vpop.f32.mrb[64].mxu1  ;;  %v2671_v15 = vpop.f32.mrb[64].mxu0 }
 0x17b   : > { %v2344_v17 = vpack.c.bf16 %v1805_v14, %v1804_v47  ;;  %v1598_v6 = vadd.f32 %v2671_v15, %v3246_v0  ;;  %v2602_v57 = vpop.f32.mrb[65].mxu1  ;;  %v1589_v24 = vpop.f32.mrb[65].mxu0 }
 0x17c   : > { %v2339_v43 = vpack.c.bf16 %v1803_v21, %v1802_v12  ;;  %v2603_v48 = vadd.f32 %v2602_v57, %v2601_v58  ;;  %v1590_v9 = vadd.f32 %v1589_v24, %v3224_v2  ;;  %v2604_v26 = vpop.f32.mrb[66].mxu1  ;;  %v2672_v3 = vpop.f32.mrb[66].mxu0 }
 0x17d   : > { %2392 = vst [vmem:[%s3235_s30 + $0x38] sm:$0xff] %v2344_v17   ;;  %v1776_v52 = vadd.f32 %v3215_v59, %v1598_v6  ;;  %v1601_v27 = vadd.f32 %v2672_v3, %v3251_v63  ;;  %v2605_v49 = vpop.f32.mrb[67].mxu1  ;;  %v1592_v45 = vpop.f32.mrb[67].mxu0 }
 0x17e   : > { %2391 = vst [vmem:[%s3235_s30 + $0x30] sm:$0xff] %v2339_v43   ;;  %v1774_v31 = vadd.f32 %v3215_v59, %v1590_v9  ;;  %v2606_v13 = vadd.f32 %v2605_v49, %v2604_v26  ;;  %v1593_v0 = vadd.f32 %v1592_v45, %v3230_v25  ;;  %v1461_v54 = vadd.f32 %v2603_v48, %v3148_v56 }
 0x17f   : > { %v1777_v36 = vadd.f32 %v3215_v59, %v1601_v27  ;;  %v1808_v40 = vmax.f32 %v1776_v52, 0.0 }
 0x180   : > { %v1775_v2 = vadd.f32 %v3215_v59, %v1593_v0  ;;  %v1464_v42 = vadd.f32 %v2606_v13, %v3150_v62  ;;  %v1806_v63 = vmax.f32 %v1774_v31, 0.0 }
 0x181   : > { %v1809_v53 = vmax.f32 %v1777_v36, 0.0 }
 0x182   : > { %v1807_v23 = vmax.f32 %v1775_v2, 0.0  ;;  %v2607_v41 = vpop.f32.mrb[68].mxu1  ;;  %v2675_v44 = vpop.f32.mrb[68].mxu0 }
 0x183   : > { %v2354_v46 = vpack.c.bf16 %v1809_v53, %v1808_v40  ;;  %v1614_v30 = vadd.f32 %v2675_v44, %v1453_v29  ;;  %v2608_v11 = vpop.f32.mrb[69].mxu1  ;;  %v1605_v25 = vpop.f32.mrb[69].mxu0 }
 0x184   : > { %v2349_v50 = vpack.c.bf16 %v1807_v23, %v1806_v63  ;;  %v2609_v56 = vadd.f32 %v2608_v11, %v2607_v41  ;;  %v1606_v51 = vadd.f32 %v1605_v25, %v3262_v1  ;;  %v2610_v19 = vpop.f32.mrb[70].mxu1  ;;  %v2676_v55 = vpop.f32.mrb[70].mxu0 }
 0x185   : > { %2394 = vst [vmem:[%s3235_s30 + $0x48] sm:$0xff] %v2354_v46   ;;  %v1780_v62 = vadd.f32 %v3215_v59, %v1614_v30  ;;  %v1617_v60 = vadd.f32 %v2676_v55, %v1456_v8  ;;  %v2611_v32 = vpop.f32.mrb[71].mxu1  ;;  %v1608_v61 = vpop.f32.mrb[71].mxu0 }
 0x186   : > { %2393 = vst [vmem:[%s3235_s30 + $0x40] sm:$0xff] %v2349_v50   ;;  %v1778_v38 = vadd.f32 %v3215_v59, %v1606_v51  ;;  %v2612_v20 = vadd.f32 %v2611_v32, %v2610_v19  ;;  %v1609_v5 = vadd.f32 %v1608_v61, %v3267_v18  ;;  %v1469_v39 = vadd.f32 %v2609_v56, %v3152_v4 }
 0x187   : > { %v1781_v7 = vadd.f32 %v3215_v59, %v1617_v60  ;;  %v1812_v29 = vmax.f32 %v1780_v62, 0.0 }
 0x188   : > { %v1779_v1 = vadd.f32 %v3215_v59, %v1609_v5  ;;  %v1472_v35 = vadd.f32 %v2612_v20, %v3154_v10  ;;  %v1810_v33 = vmax.f32 %v1778_v38, 0.0 }
 0x189   : > { %v1813_v37 = vmax.f32 %v1781_v7, 0.0 }
 0x18a   : > { %v1811_v8 = vmax.f32 %v1779_v1, 0.0  ;;  %v2613_v47 = vpop.f32.mrb[72].mxu1  ;;  %v2679_v14 = vpop.f32.mrb[72].mxu0 }
 0x18b   : > { %v2364_v12 = vpack.c.bf16 %v1813_v37, %v1812_v29  ;;  %v1630_v21 = vadd.f32 %v2679_v14, %v1469_v39  ;;  %v2614_v58 = vpop.f32.mrb[73].mxu1  ;;  %v1621_v18 = vpop.f32.mrb[73].mxu0 }
 0x18c   : > { %v2359_v15 = vpack.c.bf16 %v1811_v8, %v1810_v33  ;;  %v2615_v4 = vadd.f32 %v2614_v58, %v2613_v47  ;;  %v1622_v17 = vadd.f32 %v1621_v18, %v1461_v54  ;;  %v2616_v6 = vpop.f32.mrb[74].mxu1  ;;  %v2680_v57 = vpop.f32.mrb[74].mxu0 }
 0x18d   : > { %2396 = vst [vmem:[%s3235_s30 + $0x58] sm:$0xff] %v2364_v12   ;;  %v1784_v10 = vadd.f32 %v3215_v59, %v1630_v21  ;;  %v1633_v24 = vadd.f32 %v2680_v57, %v1472_v35  ;;  %v2617_v43 = vpop.f32.mrb[75].mxu1  ;;  %v1624_v48 = vpop.f32.mrb[75].mxu0 }
 0x18e   : > { %2395 = vst [vmem:[%s3235_s30 + $0x50] sm:$0xff] %v2359_v15   ;;  %v1782_v9 = vadd.f32 %v3215_v59, %v1622_v17  ;;  %v2618_v26 = vadd.f32 %v2617_v43, %v2616_v6  ;;  %v1625_v3 = vadd.f32 %v1624_v48, %v1464_v42  ;;  %v1477_v52 = vadd.f32 %v2615_v4, %v3156_v16 }
 0x18f   : > { %v1785_v27 = vadd.f32 %v3215_v59, %v1633_v24  ;;  %v1816_v31 = vmax.f32 %v1784_v10, 0.0 }
 0x190   : > { %v1783_v49 = vadd.f32 %v3215_v59, %v1625_v3  ;;  %v1480_v45 = vadd.f32 %v2618_v26, %v3158_v22  ;;  %v1814_v0 = vmax.f32 %v1782_v9, 0.0 }
 0x191   : > { %v1817_v13 = vmax.f32 %v1785_v27, 0.0 }
 0x192   : > { %v1815_v54 = vmax.f32 %v1783_v49, 0.0  ;;  %v2619_v36 = vpop.f32.mrb[76].mxu1  ;;  %v2683_v2 = vpop.f32.mrb[76].mxu0 }
 0x193   : > { %v2374_v40 = vpack.c.bf16 %v1817_v13, %v1816_v31  ;;  %v2620_v53 = vpop.f32.mrb[77].mxu1  ;;  %v1637_v63 = vpop.f32.mrb[77].mxu0 }
 0x194   : > { %v2369_v42 = vpack.c.bf16 %v1815_v54, %v1814_v0  ;;  %v2621_v23 = vadd.f32 %v2620_v53, %v2619_v36  ;;  %v1638_v16 = vadd.f32 %v1637_v63, %v1477_v52  ;;  %v2622_v41 = vpop.f32.mrb[78].mxu1  ;;  %v2684_v44 = vpop.f32.mrb[78].mxu0 }
 0x195   : > { %2398 = vst [vmem:[%s3235_s30 + $0x68] sm:$0xff] %v2374_v40   ;;  %v2623_v46 = vpop.f32.mrb[79].mxu1  ;;  %v1640_v30 = vpop.f32.mrb[79].mxu0 }
 0x196   : > { %2397 = vst [vmem:[%s3235_s30 + $0x60] sm:$0xff] %v2369_v42   ;;  %v1485_v22 = vadd.f32 %v2621_v23, %v3160_v28  ;;  %v1786_v11 = vadd.f32 %v3215_v59, %v1638_v16  ;;  %v2624_v25 = vadd.f32 %v2623_v46, %v2622_v41  ;;  %v1641_v50 = vadd.f32 %v1640_v30, %v1480_v45 }
 0x198   : > { %v1646_v56 = vadd.f32 %v2683_v2, %v1485_v22  ;;  %v1488_v51 = vadd.f32 %v2624_v25, %v3162_v34  ;;  %v1787_v19 = vadd.f32 %v3215_v59, %v1641_v50  ;;  %v1818_v62 = vmax.f32 %v1786_v11, 0.0 }
 0x19a   : > { %v1788_v55 = vadd.f32 %v3215_v59, %v1646_v56  ;;  %v1649_v60 = vadd.f32 %v2684_v44, %v1488_v51  ;;  %v1819_v32 = vmax.f32 %v1787_v19, 0.0 }
 0x19c   : > { %v1789_v61 = vadd.f32 %v3215_v59, %v1649_v60  ;;  %v2379_v38 = vpack.c.bf16 %v1819_v32, %v1818_v62  ;;  %v1820_v20 = vmax.f32 %v1788_v55, 0.0 }
 0x19e   : > { %v1821_v28 = vmax.f32 %v1789_v61, 0.0  ;;  %2399 = vst [vmem:[%s3235_s30 + $0x70] sm:$0xff] %v2379_v38  }
 0x1a0   : > { %v2384_v5 = vpack.c.bf16 %v1821_v28, %v1820_v20 }
 0x1a2   : > { %2400 = vst [vmem:[%s3235_s30 + $0x78] sm:$0xff] %v2384_v5  }
 0x1a3 PF: > { %s13_s14 = sadd.s32 1, %s2896_s14   ;;  %s3334_s12 = smov %s2892_s13 }
 0x1a4   : > { %p10_p5 = scmp.ge.s32.totalorder %s13_s14, 4   ;;  %s3335_s13 = smov %s3337_s15 }
 0x1a6   :  { %12 = sbr.rel (!%p10_p5) target bundleno = 2 (0x2), region = 76 }

// kernel: forward.28
= control target key start
LH: loop header
LB: loop body
LE: loop exit
PB: predicated region body
PF: predicated region fallthrough
CT: control target
= control target key end

     0   :  { %vm139_vm0 = vcmask 523264   ;;  %s666_s1 = inlined_call_operand.vmem [shape: bf16[64,128], index: 1, kind: input, shape index: {}]   ;;  %s667_s0 = inlined_call_operand.vmem [shape: bf16[128,64], index: 0, kind: input, shape index: {}]   ;;  %s668_s2 = inlined_call_operand.vmem [shape: f32[1,128], index: 2, kind: input, shape index: {}]   ;;  %s669_s3 = inlined_call_operand.vmem [shape: bf16[128,128], index: 3, kind: output, shape index: {}]  }
   0x1   :  { %v563_v0 = vld [vmem:[%s666_s1] sm:$0xff]   ;;  %v564_v1 = vld [vmem:[%s666_s1 + $0x8] sm:$0xff]   ;;  %v565_v2 = vld [vmem:[%s666_s1 + $0x10] sm:$0xff]  }
   0x2   :  { %531 = vmatprep.subr.bf16.mxu0 %v563_v0  ;;  %555 = vmatprep.subr.bf16.mxu1 %v563_v0  ;;  %v567_v3 = vld [vmem:[%s667_s0] sm:$0xff]   ;;  %v566_v5 = vld [vmem:[%s666_s1 + $0x18] sm:$0xff]   ;;  %v569_v6 = vld [vmem:[%s667_s0 + $0x8] sm:$0xff]  }
   0x3   :  { %532 = vmatpush3.bf16.msra.mxu0 %v563_v0  ;;  %559 = vmatpush3.bf16.msra.mxu1 %v563_v0  ;;  %v568_v4 = vld [vmem:[%s667_s0 + $0x20] sm:$0xff]   ;;  %v570_v7 = vld [vmem:[%s667_s0 + $0x28] sm:$0xff]   ;;  %v571_v8 = vld [vmem:[%s667_s0 + $0x10] sm:$0xff]  }
   0x4   :  { %533 = vmatprep.subr.bf16.mxu0 %v564_v1  ;;  %556 = vmatprep.subr.bf16.mxu1 %v564_v1  ;;  %v572_v9 = vld [vmem:[%s667_s0 + $0x30] sm:$0xff]   ;;  %v573_v10 = vld [vmem:[%s667_s0 + $0x18] sm:$0xff]   ;;  %v439_v13 = vld [vmem:[%s668_s2] ss:$0 sm:$0xff] }
   0x5   :  { %539 = vmatprep.mubr.msk.bf16.mxu0 %vm139_vm0, %v567_v3  ;;  %547 = vmatprep.mubr.msk.bf16.mxu1 %vm139_vm0, %v568_v4  ;;  %v574_v11 = vld [vmem:[%s667_s0 + $0x38] sm:$0xff]  }
   0x7   :  { %534 = vmatpush3.bf16.msra.mxu0 %v564_v1  ;;  %560 = vmatpush3.bf16.msra.mxu1 %v564_v1 }
   0x8   :  { %535 = vmatprep.subr.bf16.mxu0 %v565_v2  ;;  %557 = vmatprep.subr.bf16.mxu1 %v565_v2 }
   0xb   :  { %536 = vmatpush3.bf16.msra.mxu0 %v565_v2  ;;  %561 = vmatpush3.bf16.msra.mxu1 %v565_v2 }
   0xc   :  { %537 = vmatprep.subr.bf16.mxu0 %v566_v5  ;;  %558 = vmatprep.subr.bf16.mxu1 %v566_v5 }
   0xf   :  { %538 = vmatpush3.bf16.msra.mxu0 %v566_v5  ;;  %562 = vmatpush3.bf16.msra.mxu1 %v566_v5 }
  0x12   :  { %540 = vmatmul.mubr.msk.bf16.vlgmr.msra.gmra.mrb[0].mxu0 %vm139_vm0, %v569_v6  ;;  %548 = vmatmul.mubr.msk.bf16.vlgmr.msra.gmra.mrb[0].mxu1 %vm139_vm0, %v570_v7 }
  0x13   :  { %543 = vmatprep.mubr.msk.bf16.mxu0 %vm139_vm0, %v571_v8  ;;  %551 = vmatprep.mubr.msk.bf16.mxu1 %vm139_vm0, %v572_v9 }
  0x1a   :  { %544 = vmatmul.mubr.msk.bf16.gmra.mrb[4].mxu0 %vm139_vm0, %v573_v10  ;;  %552 = vmatmul.mubr.msk.bf16.gmra.mrb[4].mxu1 %vm139_vm0, %v574_v11 }
  0xe5   :  { %v541_v12 = vpop.f32.mrb[0].mxu0  ;;  %v549_v14 = vpop.f32.mrb[0].mxu1 }
  0xe6   :  { %v198_v15 = vpop.f32.mrb[1].mxu0  ;;  %v230_v16 = vpop.f32.mrb[1].mxu1  ;;  %v321_v19 = vadd.f32 %v541_v12, %v439_v13  ;;  %v329_v20 = vadd.f32 %v549_v14, %v439_v13 }
  0xe7   :  { %v542_v17 = vpop.f32.mrb[2].mxu0  ;;  %v550_v18 = vpop.f32.mrb[2].mxu1  ;;  %v319_v25 = vadd.f32 %v439_v13, %v198_v15  ;;  %v327_v26 = vadd.f32 %v439_v13, %v230_v16 }
  0xe8   :  { %v322_v21 = vadd.f32 %v542_v17, %v439_v13  ;;  %v330_v22 = vadd.f32 %v550_v18, %v439_v13  ;;  %v201_v23 = vpop.f32.mrb[3].mxu0  ;;  %v233_v24 = vpop.f32.mrb[3].mxu1 }
  0xe9   :  { %v320_v27 = vadd.f32 %v439_v13, %v201_v23  ;;  %v328_v28 = vadd.f32 %v439_v13, %v233_v24 }
  0xea   :  { %v480_v29 = vpack.c.bf16 %v322_v21, %v321_v19  ;;  %v500_v30 = vpack.c.bf16 %v330_v22, %v329_v20 }
  0xeb   :  { %v475_v31 = vpack.c.bf16 %v320_v27, %v319_v25  ;;  %v495_v32 = vpack.c.bf16 %v328_v28, %v327_v26 }
  0xec   :  { %512 = vst [vmem:[%s669_s3 + $0x8] sm:$0xff] %v480_v29   ;;  %516 = vst [vmem:[%s669_s3 + $0x28] sm:$0xff] %v500_v30  }
  0xed   :  { %476 = vst [vmem:[%s669_s3] sm:$0xff] %v475_v31   ;;  %515 = vst [vmem:[%s669_s3 + $0x20] sm:$0xff] %v495_v32   ;;  %v545_v33 = vpop.f32.mrb[4].mxu0  ;;  %v553_v34 = vpop.f32.mrb[4].mxu1 }
  0xee   :  { %v214_v35 = vpop.f32.mrb[5].mxu0  ;;  %v246_v36 = vpop.f32.mrb[5].mxu1  ;;  %v325_v39 = vadd.f32 %v545_v33, %v439_v13  ;;  %v333_v40 = vadd.f32 %v553_v34, %v439_v13 }
  0xef   :  { %v546_v37 = vpop.f32.mrb[6].mxu0  ;;  %v554_v38 = vpop.f32.mrb[6].mxu1  ;;  %v323_v45 = vadd.f32 %v439_v13, %v214_v35  ;;  %v331_v46 = vadd.f32 %v439_v13, %v246_v36 }
  0xf0   :  { %v326_v41 = vadd.f32 %v546_v37, %v439_v13  ;;  %v334_v42 = vadd.f32 %v554_v38, %v439_v13  ;;  %v217_v43 = vpop.f32.mrb[7].mxu0  ;;  %v249_v44 = vpop.f32.mrb[7].mxu1 }
  0xf1   :  { %v324_v47 = vadd.f32 %v439_v13, %v217_v43  ;;  %v332_v48 = vadd.f32 %v439_v13, %v249_v44 }
  0xf2   :  { %v490_v49 = vpack.c.bf16 %v326_v41, %v325_v39  ;;  %v510_v50 = vpack.c.bf16 %v334_v42, %v333_v40 }
  0xf3   :  { %v485_v51 = vpack.c.bf16 %v324_v47, %v323_v45  ;;  %v505_v52 = vpack.c.bf16 %v332_v48, %v331_v46 }
  0xf4   :  { %514 = vst [vmem:[%s669_s3 + $0x18] sm:$0xff] %v490_v49   ;;  %518 = vst [vmem:[%s669_s3 + $0x38] sm:$0xff] %v510_v50  }
  0xf5   :  { %513 = vst [vmem:[%s669_s3 + $0x10] sm:$0xff] %v485_v51   ;;  %517 = vst [vmem:[%s669_s3 + $0x30] sm:$0xff] %v505_v52  }

// kernel: forward.24
= control target key start
LH: loop header
LB: loop body
LE: loop exit
PB: predicated region body
PF: predicated region fallthrough
CT: control target
= control target key end

     0   :  { %s3175_s15 = smov 0   ;;  %s3177_s16 = smov 0   ;;  %s3618_s0 = inlined_call_operand.vmem [shape: bf16[512,576], index: 0, kind: input, shape index: {}]   ;;  %s3619_s1 = inlined_call_operand.vmem [shape: bf16[576,128], index: 1, kind: input, shape index: {}]   ;;  %s3620_s2 = inlined_call_operand.vmem [shape: f32[1,128], index: 2, kind: input, shape index: {}]   ;;  %s3621_s3 = inlined_call_operand.vmem [shape: bf16[512,128], index: 3, kind: input, shape index: {}]   ;;  %s3622_s4 = inlined_call_operand.vmem [shape: bf16[512,128], index: 4, kind: output, shape index: {}]  }
   0x1   :  { %s3179_s17 = smov 0  }
   0x2 LB: > { %s33_s18 = sadd.s32 1, %s3144_s16  ;;  %p2273_p0 = scmp.ge.s32.totalorder %s3148_s17, 1  ;;  %s3148_s17 = sphi %s3179_s17, %s14_s17   ;;  %s3144_s16 = sphi %s3177_s16, %s3624_s16   ;;  %s3140_s15 = sphi %s3175_s15, %s3623_s15  }
   0x3   : > { %p35_p1 = scmp.ge.s32.totalorder %s33_s18, 2  ;;  %p232_p2 = scmp.lt.s32.totalorder %s3148_s17, 3 }
   0x5   : > { %s3626_s18 = smov (%p35_p1, %s33_s18), 0  ;;  %p233_p3 = pnand %p2273_p0, %p232_p2 }
   0x6   : > { %v2978_v0 = vld [vmem:[%s3619_s1 + $0x40] sm:$0xff] (!%p233_p3)   ;;  %s2274_s21 = sshll.u32 (!%p233_p3), %s3140_s15, 5  ;;  %v2980_v2 = vld [vmem:[%s3619_s1 + $0x48] sm:$0xff] (!%p233_p3)   ;;  %v2982_v4 = vld [vmem:[%s3619_s1 + $0x50] sm:$0xff] (!%p233_p3)   ;;  %vm1180_vm0 = vcmask (!%p233_p3), 523264  }
   0x7   : > { %236 = sbr.rel (%p233_p3) target bundleno = 421 (0x1a5), region = 36  ;;  %v2979_v1 = vld [vmem:[%s3619_s1] sm:$0xff] (!%p233_p3)   ;;  %2653 = vmatprep.subr.bf16.mxu0 (!%p233_p3), %v2978_v0  ;;  %2937 = vmatprep.subr.bf16.mxu1 (!%p233_p3), %v2978_v0  ;;  %p287_p4 = scmp.lt.s32.totalorder (!%p233_p3), %s2274_s21, 63  ;;  %v2981_v3 = vld [vmem:[%s3619_s1 + $0x8] sm:$0xff] (!%p233_p3)   ;;  %v2983_v5 = vld [vmem:[%s3619_s1 + $0x10] sm:$0xff] (!%p233_p3)  }
   0x8   : > { %2654 = vmatpush3.bf16.msra.mxu0 (!%p233_p3), %v2979_v1  ;;  %2945 = vmatpush3.bf16.msra.mxu1 (!%p233_p3), %v2979_v1  ;;  %v2984_v6 = vld [vmem:[%s3619_s1 + $0x58] sm:$0xff] (!%p233_p3)   ;;  %v2986_v8 = vld [vmem:[%s3619_s1 + $0x60] sm:$0xff] (!%p233_p3)   ;;  %v2988_v10 = vld [vmem:[%s3619_s1 + $0x68] sm:$0xff] (!%p233_p3)  }
   0x9   : > { %2655 = vmatprep.subr.bf16.mxu0 (!%p233_p3), %v2980_v2  ;;  %2938 = vmatprep.subr.bf16.mxu1 (!%p233_p3), %v2980_v2  ;;  %v2985_v7 = vld [vmem:[%s3619_s1 + $0x18] sm:$0xff] (!%p233_p3)   ;;  %v2987_v9 = vld [vmem:[%s3619_s1 + $0x20] sm:$0xff] (!%p233_p3)   ;;  %v2989_v13 = vld [vmem:[%s3619_s1 + $0x28] sm:$0xff] (!%p233_p3)  }
   0xa   : > { %v2990_v14 = vld [vmem:[%s3619_s1 + $0x70] sm:$0xff] (!%p233_p3)   ;;  %v2992_v16 = vld [vmem:[%s3619_s1 + $0x78] sm:$0xff] (!%p233_p3)   ;;  %v3000_v18 = vld [vmem:[%s3619_s1 + $0xc0] sm:$0xff] (!%p233_p3)  }
   0xb   : > { %v2991_v15 = vld [vmem:[%s3619_s1 + $0x30] sm:$0xff] (!%p233_p3)   ;;  %v2993_v17 = vld [vmem:[%s3619_s1 + $0x38] sm:$0xff] (!%p233_p3)   ;;  %v3003_v19 = vld [vmem:[%s3619_s1 + $0x100] sm:$0xff] (!%p233_p3)  }
   0xc   : > { %2656 = vmatpush3.bf16.msra.mxu0 (!%p233_p3), %v2981_v3  ;;  %2946 = vmatpush3.bf16.msra.mxu1 (!%p233_p3), %v2981_v3  ;;  %v3001_v22 = vld [vmem:[%s3619_s1 + $0x80] sm:$0xff] (!%p233_p3)   ;;  %v3002_v23 = vld [vmem:[%s3619_s1 + $0xc8] sm:$0xff] (!%p233_p3)   ;;  %v3011_v28 = vld [vmem:[%s3619_s1 + $0xd0] sm:$0xff] (!%p233_p3)  }
   0xd   : > { %2657 = vmatprep.subr.bf16.mxu0 (!%p233_p3), %v2982_v4  ;;  %2939 = vmatprep.subr.bf16.mxu1 (!%p233_p3), %v2982_v4  ;;  %v3004_v26 = vld [vmem:[%s3619_s1 + $0x88] sm:$0xff] (!%p233_p3)   ;;  %v3012_v30 = vld [vmem:[%s3619_s1 + $0x90] sm:$0xff] (!%p233_p3)   ;;  %v3013_v31 = vld [vmem:[%s3619_s1 + $0xd8] sm:$0xff] (!%p233_p3)  }
   0xe   : > { %s3628_s21 = smov (!%p287_p4, %s2274_s21), 63  ;;  %v3014_v34 = vld [vmem:[%s3619_s1 + $0x98] sm:$0xff]   ;;  %v3034_v35 = vld [vmem:[%s3619_s1 + $0x108] sm:$0xff]   ;;  %v3021_v37 = vld [vmem:[%s3619_s1 + $0xe0] sm:$0xff]  }
   0xf   : > { %s2953_s8 = smul.u32 20, %s3628_s21  ;;  %v3022_v39 = vld [vmem:[%s3619_s1 + $0xa0] sm:$0xff]   ;;  %v3023_v40 = vld [vmem:[%s3619_s1 + $0xe8] sm:$0xff]   ;;  %v3031_v46 = vld [vmem:[%s3619_s1 + $0xf0] sm:$0xff]  }
  0x10   : > { %2658 = vmatpush3.bf16.msra.mxu0 %v2983_v5  ;;  %2947 = vmatpush3.bf16.msra.mxu1 %v2983_v5  ;;  %v3024_v43 = vld [vmem:[%s3619_s1 + $0xa8] sm:$0xff]   ;;  %v3054_v47 = vld [vmem:[%s3619_s1 + $0x110] sm:$0xff]   ;;  %v3033_v49 = vld [vmem:[%s3619_s1 + $0xf8] sm:$0xff]  }
  0x11   : > { %2659 = vmatprep.subr.bf16.mxu0 %v2984_v6  ;;  %2940 = vmatprep.subr.bf16.mxu1 %v2984_v6  ;;  %s3226_s15 = scalar_lea.vmem %s3618_s0, %s2953_s8  ;;  %v3032_v48 = vld [vmem:[%s3619_s1 + $0xb0] sm:$0xff]   ;;  %v3035_v52 = vld [vmem:[%s3619_s1 + $0xb8] sm:$0xff]  }
  0x12   : > { %v2996_v11 = vld [vmem:[%s3226_s15 + $0x4] ss:$20 sps:$4 sm:$0xff]   ;;  %v2994_v20 = vld [vmem:[%s3226_s15] ss:$20 sps:$4 sm:$0xff]   ;;  %v3009_v27 = vld [vmem:[%s3226_s15 + $0x28] ss:$20 sps:$4 sm:$0xff]  }
  0x13   : > { %v2999_v12 = vld [vmem:[%s3226_s15 + $0x1e4] ss:$20 sps:$4 sm:$0xff]   ;;  %1261 = vmatprep.mubr.bf16.mxu0 %v2996_v11  ;;  %v2997_v21 = vld [vmem:[%s3226_s15 + $0x1e0] ss:$20 sps:$4 sm:$0xff]   ;;  %v3010_v29 = vld [vmem:[%s3226_s15 + $0x208] ss:$20 sps:$4 sm:$0xff]  }
  0x14   : > { %2660 = vmatpush3.bf16.msra.mxu0 %v2985_v7  ;;  %2948 = vmatpush3.bf16.msra.mxu1 %v2985_v7  ;;  %v3005_v24 = vld [vmem:[%s3226_s15 + $0x2c] ss:$20 sps:$4 sm:$0xff]   ;;  %v3015_v32 = vld [vmem:[%s3226_s15 + $0x54] ss:$20 sps:$4 sm:$0xff]   ;;  %v3019_v36 = vld [vmem:[%s3226_s15 + $0x50] ss:$20 sps:$4 sm:$0xff]  }
  0x15   : > { %2661 = vmatprep.subr.bf16.mxu0 %v2986_v8  ;;  %2941 = vmatprep.subr.bf16.mxu1 %v2986_v8  ;;  %v3007_v25 = vld [vmem:[%s3226_s15 + $0x20c] ss:$20 sps:$4 sm:$0xff]   ;;  %v3017_v33 = vld [vmem:[%s3226_s15 + $0x234] ss:$20 sps:$4 sm:$0xff]   ;;  %v3020_v38 = vld [vmem:[%s3226_s15 + $0x230] ss:$20 sps:$4 sm:$0xff]  }
  0x16   : > { %1357 = vmatprep.mubr.bf16.mxu1 %v2999_v12  ;;  %v3025_v41 = vld [vmem:[%s3226_s15 + $0x7c] ss:$20 sps:$4 sm:$0xff]   ;;  %v3029_v44 = vld [vmem:[%s3226_s15 + $0x78] ss:$20 sps:$4 sm:$0xff]   ;;  %v3041_v54 = vld [vmem:[%s3226_s15 + $0xa0] ss:$20 sps:$4 sm:$0xff]  }
  0x17   : > { %v3027_v42 = vld [vmem:[%s3226_s15 + $0x25c] ss:$20 sps:$4 sm:$0xff]   ;;  %v3030_v45 = vld [vmem:[%s3226_s15 + $0x258] ss:$20 sps:$4 sm:$0xff]   ;;  %v3044_v57 = vld [vmem:[%s3226_s15 + $0x34] ss:$20 sps:$4 sm:$0xff]  }
  0x18   : > { %2662 = vmatpush3.bf16.msra.mxu0 %v2987_v9  ;;  %2949 = vmatpush3.bf16.msra.mxu1 %v2987_v9  ;;  %v3036_v50 = vld [vmem:[%s3226_s15 + $0xa4] ss:$20 sps:$4 sm:$0xff]   ;;  %v3040_v51 = vld [vmem:[%s3226_s15 + $0xc] ss:$20 sps:$4 sm:$0xff]   ;;  %v3038_v53 = vld [vmem:[%s3226_s15 + $0x8] ss:$20 sps:$4 sm:$0xff]  }
  0x19   : > { %2663 = vmatprep.subr.bf16.mxu0 %v2988_v10  ;;  %2942 = vmatprep.subr.bf16.mxu1 %v2988_v10  ;;  %v3042_v55 = vld [vmem:[%s3226_s15 + $0xcc] ss:$20 sps:$4 sm:$0xff]   ;;  %v3073_v56 = vld [vmem:[%s3619_s1 + $0x118] sm:$0xff]   ;;  %v3047_v59 = vld [vmem:[%s3226_s15 + $0x30] ss:$20 sps:$4 sm:$0xff]  }
  0x1a   : > { %v3046_v58 = vld [vmem:[%s3226_s15 + $0xc8] ss:$20 sps:$4 sm:$0xff]   ;;  %v3052_v62 = vld [vmem:[%s3226_s15 + $0xf0] ss:$20 sps:$4 sm:$0xff]   ;;  %v3053_v63 = vld [vmem:[%s3226_s15 + $0x58] ss:$20 sps:$4 sm:$0xff]  }
  0x1b   : > { %v3048_v60 = vld [vmem:[%s3226_s15 + $0xf4] ss:$20 sps:$4 sm:$0xff]   ;;  %v3050_v61 = vld [vmem:[%s3226_s15 + $0x5c] ss:$20 sps:$4 sm:$0xff]   ;;  %v3057_v1 = vld [vmem:[%s3226_s15 + $0x84] ss:$20 sps:$4 sm:$0xff]  }
  0x1c   : > { %2664 = vmatpush3.bf16.msra.mxu0 %v2989_v13  ;;  %2950 = vmatpush3.bf16.msra.mxu1 %v2989_v13  ;;  %v3055_v0 = vld [vmem:[%s3226_s15 + $0x11c] ss:$20 sps:$4 sm:$0xff]   ;;  %v3059_v2 = vld [vmem:[%s3226_s15 + $0x118] ss:$20 sps:$4 sm:$0xff]   ;;  %v3060_v3 = vld [vmem:[%s3226_s15 + $0x80] ss:$20 sps:$4 sm:$0xff]  }
  0x1d   : > { %2665 = vmatprep.subr.bf16.mxu0 %v2990_v14  ;;  %2943 = vmatprep.subr.bf16.mxu1 %v2990_v14  ;;  %v3061_v4 = vld [vmem:[%s3226_s15 + $0x144] ss:$20 sps:$4 sm:$0xff]   ;;  %v3063_v5 = vld [vmem:[%s3226_s15 + $0xac] ss:$20 sps:$4 sm:$0xff]   ;;  %v3066_v7 = vld [vmem:[%s3226_s15 + $0xa8] ss:$20 sps:$4 sm:$0xff]  }
  0x1e   : > { %v3065_v6 = vld [vmem:[%s3226_s15 + $0x140] ss:$20 sps:$4 sm:$0xff]   ;;  %v3071_v10 = vld [vmem:[%s3226_s15 + $0x168] ss:$20 sps:$4 sm:$0xff]   ;;  %v3072_v11 = vld [vmem:[%s3226_s15 + $0xd0] ss:$20 sps:$4 sm:$0xff]  }
  0x1f   : > { %v3067_v8 = vld [vmem:[%s3226_s15 + $0x16c] ss:$20 sps:$4 sm:$0xff]   ;;  %v3069_v9 = vld [vmem:[%s3226_s15 + $0xd4] ss:$20 sps:$4 sm:$0xff]   ;;  %v3076_v13 = vld [vmem:[%s3226_s15 + $0xfc] ss:$20 sps:$4 sm:$0xff]  }
  0x20   : > { %2666 = vmatpush3.bf16.msra.mxu0 %v2991_v15  ;;  %2951 = vmatpush3.bf16.msra.mxu1 %v2991_v15  ;;  %v3074_v12 = vld [vmem:[%s3226_s15 + $0x194] ss:$20 sps:$4 sm:$0xff]   ;;  %v3078_v14 = vld [vmem:[%s3226_s15 + $0x190] ss:$20 sps:$4 sm:$0xff]   ;;  %v3079_v15 = vld [vmem:[%s3226_s15 + $0xf8] ss:$20 sps:$4 sm:$0xff]  }
  0x21   : > { %2667 = vmatprep.subr.bf16.mxu0 %v2992_v16  ;;  %2944 = vmatprep.subr.bf16.mxu1 %v2992_v16  ;;  %v3080_v16 = vld [vmem:[%s3226_s15 + $0x1bc] ss:$20 sps:$4 sm:$0xff]  }
  0x24   : > { %2668 = vmatpush3.bf16.msra.mxu0 %v2993_v17  ;;  %2952 = vmatpush3.bf16.msra.mxu1 %v2993_v17  ;;  %v3082_v17 = vld [vmem:[%s3226_s15 + $0x124] ss:$20 sps:$4 sm:$0xff]  }
  0x25   : > { %2765 = vmatprep.subr.bf16.mxu1 %v3000_v18  ;;  %2897 = vmatprep.subr.bf16.mxu0 %v3003_v19  ;;  %v3084_v18 = vld [vmem:[%s3226_s15 + $0x1b8] ss:$20 sps:$4 sm:$0xff]  }
  0x27   : > { %1262 = vmatmul.mubr.bf16.vlgmr.msra.gmra.mrb[0].mxu0 %v2994_v20  ;;  %1358 = vmatmul.mubr.bf16.vlgmr.msra.gmra.mrb[0].mxu1 %v2997_v21  ;;  %v3086_v20 = vld [vmem:[%s3226_s15 + $0x14c] ss:$20 sps:$4 sm:$0xff]   ;;  %v3088_v21 = vld [vmem:[%s3226_s15 + $0x10] ss:$20 sps:$4 sm:$0xff]  }
  0x28   : > { %2766 = vmatpush3.bf16.msra.mxu1 %v3001_v22  ;;  %2898 = vmatpush3.bf16.msra.mxu0 %v3003_v19  ;;  %v3085_v19 = vld [vmem:[%s3226_s15 + $0x120] ss:$20 sps:$4 sm:$0xff]   ;;  %v3089_v22 = vld [vmem:[%s3226_s15 + $0x148] ss:$20 sps:$4 sm:$0xff]  }
  0x29   : > { %2767 = vmatprep.subr.bf16.mxu1 %v3002_v23  ;;  %1269 = vmatprep.mubr.bf16.mxu0 %v3005_v24  ;;  %v3090_v23 = vld [vmem:[%s3226_s15 + $0x38] ss:$20 sps:$4 sm:$0xff]   ;;  %v3091_v24 = vld [vmem:[%s3226_s15 + $0x174] ss:$20 sps:$4 sm:$0xff]  }
  0x2a   : > { %1365 = vmatprep.mubr.bf16.mxu1 %v3007_v25  ;;  %2899 = vmatprep.subr.bf16.mxu0 %v3034_v35  ;;  %v3093_v25 = vld [vmem:[%s3226_s15 + $0x60] ss:$20 sps:$4 sm:$0xff]  }
  0x2c   : > { %2768 = vmatpush3.bf16.msra.mxu1 %v3004_v26  ;;  %2900 = vmatpush3.bf16.msra.mxu0 %v3034_v35  ;;  %v3094_v26 = vld [vmem:[%s3226_s15 + $0x170] ss:$20 sps:$4 sm:$0xff]   ;;  %v3105_v35 = vld [vmem:[%s3226_s15 + $0x128] ss:$20 sps:$4 sm:$0xff]  }
  0x2d   : > { %2769 = vmatprep.subr.bf16.mxu1 %v3011_v28  ;;  %2901 = vmatprep.subr.bf16.mxu0 %v3054_v47  ;;  %v3096_v28 = vld [vmem:[%s3226_s15 + $0x19c] ss:$20 sps:$4 sm:$0xff]  }
  0x2f   : > { %1270 = vmatmul.mubr.bf16.gmra.mrb[4].mxu0 %v3009_v27  ;;  %1366 = vmatmul.mubr.bf16.gmra.mrb[4].mxu1 %v3010_v29  ;;  %v3095_v27 = vld [vmem:[%s3226_s15 + $0x88] ss:$20 sps:$4 sm:$0xff]   ;;  %v3098_v29 = vld [vmem:[%s3226_s15 + $0xb0] ss:$20 sps:$4 sm:$0xff]  }
  0x30   : > { %2770 = vmatpush3.bf16.msra.mxu1 %v3012_v30  ;;  %1277 = vmatprep.mubr.bf16.mxu0 %v3015_v32  ;;  %v3099_v30 = vld [vmem:[%s3226_s15 + $0x198] ss:$20 sps:$4 sm:$0xff]  }
  0x31   : > { %2771 = vmatprep.subr.bf16.mxu1 %v3013_v31  ;;  %1373 = vmatprep.mubr.bf16.mxu1 %v3017_v33  ;;  %v3100_v31 = vld [vmem:[%s3226_s15 + $0xd8] ss:$20 sps:$4 sm:$0xff]   ;;  %v3103_v33 = vld [vmem:[%s3226_s15 + $0x100] ss:$20 sps:$4 sm:$0xff]  }
  0x32   : > { %2902 = vmatpush3.bf16.msra.mxu0 %v3054_v47  ;;  %v3101_v32 = vld [vmem:[%s3226_s15 + $0x1c4] ss:$20 sps:$4 sm:$0xff]  }
  0x33   : > { %2903 = vmatprep.subr.bf16.mxu0 %v3073_v56  ;;  %v3120_v47 = vld [vmem:[%s3226_s15 + $0x218] ss:$20 sps:$4 sm:$0xff]  }
  0x34   : > { %2772 = vmatpush3.bf16.msra.mxu1 %v3014_v34  ;;  %v3104_v34 = vld [vmem:[%s3226_s15 + $0x1c0] ss:$20 sps:$4 sm:$0xff]  }
  0x35   : > { %2773 = vmatprep.subr.bf16.mxu1 %v3021_v37  ;;  %v3108_v37 = vld [vmem:[%s3226_s15 + $0x150] ss:$20 sps:$4 sm:$0xff]  }
  0x36   : > { %2904 = vmatpush3.bf16.msra.mxu0 %v3073_v56 }
  0x37   : > { %1278 = vmatmul.mubr.bf16.gmra.mrb[8].mxu0 %v3019_v36  ;;  %1374 = vmatmul.mubr.bf16.gmra.mrb[8].mxu1 %v3020_v38  ;;  %v3106_v36 = vld [vmem:[%s3226_s15 + $0x1ec] ss:$20 sps:$4 sm:$0xff]   ;;  %v3109_v38 = vld [vmem:[%s3226_s15 + $0x1e8] ss:$20 sps:$4 sm:$0xff]  }
  0x38   : > { %2774 = vmatpush3.bf16.msra.mxu1 %v3022_v39  ;;  %1285 = vmatprep.mubr.bf16.mxu0 %v3025_v41  ;;  %v3110_v39 = vld [vmem:[%s3226_s15 + $0x178] ss:$20 sps:$4 sm:$0xff]   ;;  %v3113_v41 = vld [vmem:[%s3226_s15 + $0x1a0] ss:$20 sps:$4 sm:$0xff]  }
  0x39   : > { %2775 = vmatprep.subr.bf16.mxu1 %v3023_v40  ;;  %1381 = vmatprep.mubr.bf16.mxu1 %v3027_v42  ;;  %v3111_v40 = vld [vmem:[%s3226_s15 + $0x214] ss:$20 sps:$4 sm:$0xff]   ;;  %v3114_v42 = vld [vmem:[%s3226_s15 + $0x210] ss:$20 sps:$4 sm:$0xff]  }
  0x3c   : > { %2776 = vmatpush3.bf16.msra.mxu1 %v3024_v43  ;;  %v3115_v43 = vld [vmem:[%s3226_s15 + $0x1c8] ss:$20 sps:$4 sm:$0xff]  }
  0x3d   : > { %2777 = vmatprep.subr.bf16.mxu1 %v3031_v46  ;;  %v3119_v46 = vld [vmem:[%s3226_s15 + $0x238] ss:$20 sps:$4 sm:$0xff]  }
  0x3f   : > { %1286 = vmatmul.mubr.bf16.gmra.mrb[12].mxu0 %v3029_v44  ;;  %1382 = vmatmul.mubr.bf16.gmra.mrb[12].mxu1 %v3030_v45  ;;  %v3116_v44 = vld [vmem:[%s3226_s15 + $0x23c] ss:$20 sps:$4 sm:$0xff]  }
  0x40   : > { %2778 = vmatpush3.bf16.msra.mxu1 %v3032_v48  ;;  %1293 = vmatprep.mubr.bf16.mxu0 %v3036_v50  ;;  %v3118_v45 = vld [vmem:[%s3226_s15 + $0x1f0] ss:$20 sps:$4 sm:$0xff]   ;;  %v3124_v50 = vld [vmem:[%s3226_s15 + $0x260] ss:$20 sps:$4 sm:$0xff]  }
  0x41   : > { %2779 = vmatprep.subr.bf16.mxu1 %v3033_v49  ;;  %1422 = vmatprep.mubr.bf16.mxu1 %v3040_v51  ;;  %v3121_v48 = vld [vmem:[%s3226_s15 + $0x264] ss:$20 sps:$4 sm:$0xff]   ;;  %v3123_v49 = vld [vmem:[%s3226_s15 + $0x240] ss:$20 sps:$4 sm:$0xff]   ;;  %v3125_v51 = vld [vmem:[%s3226_s15 + $0x268] ss:$20 sps:$4 sm:$0xff]  }
  0x42   : > { %s2277_s15 = sshll.u32 %s3628_s21, 2 }
  0x43   : > { %s3471_s8 = scalar_lea.vmem %s3621_s3, %s2277_s15  ;;  %s3509_s13 = scalar_lea.vmem %s3622_s4, %s2277_s15 }
  0x44   : > { %2780 = vmatpush3.bf16.msra.mxu1 %v3035_v52 }
  0x47   : > { %1294 = vmatmul.mubr.bf16.gmra.mrb[16].mxu0 %v3041_v54  ;;  %1423 = vmatmul.mubr.bf16.vlgmr.msra.gmra.mrb[16].mxu1 %v3038_v53 }
  0x48   : > { %1301 = vmatprep.mubr.bf16.mxu0 %v3042_v55  ;;  %1430 = vmatprep.mubr.bf16.mxu1 %v3044_v57 }
  0x4f   : > { %1302 = vmatmul.mubr.bf16.gmra.mrb[20].mxu0 %v3046_v58  ;;  %1431 = vmatmul.mubr.bf16.gmra.mrb[20].mxu1 %v3047_v59 }
  0x50   : > { %1309 = vmatprep.mubr.bf16.mxu0 %v3048_v60  ;;  %1438 = vmatprep.mubr.bf16.mxu1 %v3050_v61 }
  0x57   : > { %1310 = vmatmul.mubr.bf16.gmra.mrb[24].mxu0 %v3052_v62  ;;  %1439 = vmatmul.mubr.bf16.gmra.mrb[24].mxu1 %v3053_v63 }
  0x58   : > { %1317 = vmatprep.mubr.bf16.mxu0 %v3055_v0  ;;  %1446 = vmatprep.mubr.bf16.mxu1 %v3057_v1 }
  0x5f   : > { %1318 = vmatmul.mubr.bf16.gmra.mrb[28].mxu0 %v3059_v2  ;;  %1447 = vmatmul.mubr.bf16.gmra.mrb[28].mxu1 %v3060_v3 }
  0x60   : > { %1325 = vmatprep.mubr.bf16.mxu0 %v3061_v4  ;;  %1454 = vmatprep.mubr.bf16.mxu1 %v3063_v5 }
  0x67   : > { %1326 = vmatmul.mubr.bf16.gmra.mrb[32].mxu0 %v3065_v6  ;;  %1455 = vmatmul.mubr.bf16.gmra.mrb[32].mxu1 %v3066_v7 }
  0x68   : > { %1333 = vmatprep.mubr.bf16.mxu0 %v3067_v8  ;;  %1462 = vmatprep.mubr.bf16.mxu1 %v3069_v9 }
  0x6f   : > { %1334 = vmatmul.mubr.bf16.gmra.mrb[36].mxu0 %v3071_v10  ;;  %1463 = vmatmul.mubr.bf16.gmra.mrb[36].mxu1 %v3072_v11 }
  0x70   : > { %1341 = vmatprep.mubr.bf16.mxu0 %v3074_v12  ;;  %1470 = vmatprep.mubr.bf16.mxu1 %v3076_v13 }
  0x77   : > { %1342 = vmatmul.mubr.bf16.gmra.mrb[40].mxu0 %v3078_v14  ;;  %1471 = vmatmul.mubr.bf16.gmra.mrb[40].mxu1 %v3079_v15 }
  0x78   : > { %1349 = vmatprep.mubr.bf16.mxu0 %v3080_v16  ;;  %1478 = vmatprep.mubr.bf16.mxu1 %v3082_v17 }
  0x7f   : > { %1350 = vmatmul.mubr.bf16.gmra.mrb[44].mxu0 %v3084_v18  ;;  %1479 = vmatmul.mubr.bf16.gmra.mrb[44].mxu1 %v3085_v19 }
  0x80   : > { %1486 = vmatprep.mubr.bf16.mxu1 %v3086_v20  ;;  %2905 = vmatprep.mubr.msk.bf16.mxu0 %vm1180_vm0, %v3088_v21 }
  0x87   : > { %1487 = vmatmul.mubr.bf16.gmra.mrb[48].mxu1 %v3089_v22  ;;  %2906 = vmatmul.mubr.msk.bf16.vlgmr.msra.gmra.mrb[48].mxu0 %vm1180_vm0, %v3090_v23 }
  0x88   : > { %1494 = vmatprep.mubr.bf16.mxu1 %v3091_v24  ;;  %2909 = vmatprep.mubr.msk.bf16.mxu0 %vm1180_vm0, %v3093_v25 }
  0x8f   : > { %1495 = vmatmul.mubr.bf16.gmra.mrb[52].mxu1 %v3094_v26  ;;  %2910 = vmatmul.mubr.msk.bf16.gmra.mrb[52].mxu0 %vm1180_vm0, %v3095_v27 }
  0x90   : > { %1502 = vmatprep.mubr.bf16.mxu1 %v3096_v28  ;;  %2913 = vmatprep.mubr.msk.bf16.mxu0 %vm1180_vm0, %v3098_v29 }
  0x97   : > { %1503 = vmatmul.mubr.bf16.gmra.mrb[56].mxu1 %v3099_v30  ;;  %2914 = vmatmul.mubr.msk.bf16.gmra.mrb[56].mxu0 %vm1180_vm0, %v3100_v31 }
  0x98   : > { %1510 = vmatprep.mubr.bf16.mxu1 %v3101_v32  ;;  %2917 = vmatprep.mubr.msk.bf16.mxu0 %vm1180_vm0, %v3103_v33 }
  0x9f   : > { %1511 = vmatmul.mubr.bf16.gmra.mrb[60].mxu1 %v3104_v34  ;;  %2918 = vmatmul.mubr.msk.bf16.gmra.mrb[60].mxu0 %vm1180_vm0, %v3105_v35 }
  0xa0   : > { %1518 = vmatprep.mubr.bf16.mxu1 %v3106_v36  ;;  %2921 = vmatprep.mubr.msk.bf16.mxu0 %vm1180_vm0, %v3108_v37 }
  0xa7   : > { %1519 = vmatmul.mubr.bf16.gmra.mrb[64].mxu1 %v3109_v38  ;;  %2922 = vmatmul.mubr.msk.bf16.gmra.mrb[64].mxu0 %vm1180_vm0, %v3110_v39 }
  0xa8   : > { %1526 = vmatprep.mubr.bf16.mxu1 %v3111_v40  ;;  %2925 = vmatprep.mubr.msk.bf16.mxu0 %vm1180_vm0, %v3113_v41 }
  0xaf   : > { %1527 = vmatmul.mubr.bf16.gmra.mrb[68].mxu1 %v3114_v42  ;;  %2926 = vmatmul.mubr.msk.bf16.gmra.mrb[68].mxu0 %vm1180_vm0, %v3115_v43 }
  0xb0   : > { %1534 = vmatprep.mubr.bf16.mxu1 %v3116_v44  ;;  %2929 = vmatprep.mubr.msk.bf16.mxu0 %vm1180_vm0, %v3118_v45 }
  0xb7   : > { %1535 = vmatmul.mubr.bf16.gmra.mrb[72].mxu1 %v3119_v46  ;;  %2930 = vmatmul.mubr.msk.bf16.gmra.mrb[72].mxu0 %vm1180_vm0, %v3120_v47 }
  0xb8   : > { %1542 = vmatprep.mubr.bf16.mxu1 %v3121_v48  ;;  %2933 = vmatprep.mubr.msk.bf16.mxu0 %vm1180_vm0, %v3123_v49 }
  0xbf   : > { %1543 = vmatmul.mubr.bf16.gmra.mrb[76].mxu1 %v3124_v50  ;;  %2934 = vmatmul.mubr.msk.bf16.gmra.mrb[76].mxu0 %vm1180_vm0, %v3125_v51 }
  0xfa   : > { %v2741_v52 = vpop.f32.mrb[0].mxu1  ;;  %v2669_v53 = vpop.f32.mrb[0].mxu0 }
  0xfb   : > { %v2742_v54 = vpop.f32.mrb[1].mxu1  ;;  %v2670_v55 = vpop.f32.mrb[1].mxu0 }
  0xfc   : > { %v3405_v56 = vadd.f32 %v2742_v54, %v2741_v52  ;;  %v2744_v57 = vpop.f32.mrb[2].mxu1  ;;  %v2671_v58 = vadd.f32 %v2670_v55, %v2669_v53  ;;  %v2672_v59 = vpop.f32.mrb[2].mxu0 }
  0xfd   : > { %v2745_v60 = vpop.f32.mrb[3].mxu1  ;;  %v2673_v61 = vpop.f32.mrb[3].mxu0 }
  0xfe   : > { %v3407_v62 = vadd.f32 %v2745_v60, %v2744_v57  ;;  %v2674_v63 = vadd.f32 %v2673_v61, %v2672_v59 }
 0x102   : > { %v2747_v0 = vpop.f32.mrb[4].mxu1  ;;  %v2675_v1 = vpop.f32.mrb[4].mxu0 }
 0x103   : > { %v2748_v2 = vpop.f32.mrb[5].mxu1  ;;  %v2676_v3 = vpop.f32.mrb[5].mxu0 }
 0x104   : > { %v3409_v4 = vadd.f32 %v2748_v2, %v2747_v0  ;;  %v2750_v5 = vpop.f32.mrb[6].mxu1  ;;  %v2677_v6 = vadd.f32 %v2676_v3, %v2675_v1  ;;  %v2678_v7 = vpop.f32.mrb[6].mxu0 }
 0x105   : > { %v2751_v8 = vpop.f32.mrb[7].mxu1  ;;  %v2679_v9 = vpop.f32.mrb[7].mxu0 }
 0x106   : > { %v3411_v10 = vadd.f32 %v2751_v8, %v2750_v5  ;;  %v2680_v11 = vadd.f32 %v2679_v9, %v2678_v7 }
 0x10a   : > { %v2753_v12 = vpop.f32.mrb[8].mxu1  ;;  %v2681_v13 = vpop.f32.mrb[8].mxu0 }
 0x10b   : > { %v2754_v14 = vpop.f32.mrb[9].mxu1  ;;  %v2682_v15 = vpop.f32.mrb[9].mxu0 }
 0x10c   : > { %v3413_v16 = vadd.f32 %v2754_v14, %v2753_v12  ;;  %v2756_v17 = vpop.f32.mrb[10].mxu1  ;;  %v2683_v18 = vadd.f32 %v2682_v15, %v2681_v13  ;;  %v2684_v19 = vpop.f32.mrb[10].mxu0 }
 0x10d   : > { %v2757_v20 = vpop.f32.mrb[11].mxu1  ;;  %v2685_v21 = vpop.f32.mrb[11].mxu0 }
 0x10e   : > { %v3415_v22 = vadd.f32 %v2757_v20, %v2756_v17  ;;  %v2686_v23 = vadd.f32 %v2685_v21, %v2684_v19 }
 0x112   : > { %v2759_v24 = vpop.f32.mrb[12].mxu1  ;;  %v2687_v25 = vpop.f32.mrb[12].mxu0 }
 0x113   : > { %v2760_v26 = vpop.f32.mrb[13].mxu1  ;;  %v2688_v27 = vpop.f32.mrb[13].mxu0 }
 0x114   : > { %v3417_v28 = vadd.f32 %v2760_v26, %v2759_v24  ;;  %v2762_v29 = vpop.f32.mrb[14].mxu1  ;;  %v2689_v30 = vadd.f32 %v2688_v27, %v2687_v25  ;;  %v2690_v31 = vpop.f32.mrb[14].mxu0 }
 0x115   : > { %v2763_v32 = vpop.f32.mrb[15].mxu1  ;;  %v2691_v33 = vpop.f32.mrb[15].mxu0 }
 0x116   : > { %v3419_v34 = vadd.f32 %v2763_v32, %v2762_v29  ;;  %v2692_v35 = vadd.f32 %v2691_v33, %v2690_v31 }
 0x11a   : > { %v2781_v36 = vpop.f32.mrb[16].mxu1  ;;  %v2693_v37 = vpop.f32.mrb[16].mxu0 }
 0x11b   : > { %v2782_v38 = vpop.f32.mrb[17].mxu1  ;;  %v2694_v39 = vpop.f32.mrb[17].mxu0 }
 0x11c   : > { %v2783_v40 = vadd.f32 %v2782_v38, %v2781_v36  ;;  %v2784_v41 = vpop.f32.mrb[18].mxu1  ;;  %v2695_v42 = vadd.f32 %v2694_v39, %v2693_v37  ;;  %v2696_v43 = vpop.f32.mrb[18].mxu0 }
 0x11d   : > { %v2785_v44 = vpop.f32.mrb[19].mxu1  ;;  %v2697_v45 = vpop.f32.mrb[19].mxu0 }
 0x11e   : > { %v2786_v46 = vadd.f32 %v2785_v44, %v2784_v41  ;;  %v2698_v47 = vadd.f32 %v2697_v45, %v2696_v43  ;;  %v3421_v48 = vadd.f32 %v2783_v40, %v2671_v58 }
 0x120   : > { %v3423_v49 = vadd.f32 %v2786_v46, %v2674_v63 }
 0x122   : > { %v2787_v50 = vpop.f32.mrb[20].mxu1  ;;  %v2699_v51 = vpop.f32.mrb[20].mxu0 }
 0x123   : > { %v2788_v52 = vpop.f32.mrb[21].mxu1  ;;  %v2700_v53 = vpop.f32.mrb[21].mxu0 }
 0x124   : > { %v2789_v54 = vadd.f32 %v2788_v52, %v2787_v50  ;;  %v2790_v55 = vpop.f32.mrb[22].mxu1  ;;  %v2701_v57 = vadd.f32 %v2700_v53, %v2699_v51  ;;  %v2702_v59 = vpop.f32.mrb[22].mxu0 }
 0x125   : > { %v2791_v60 = vpop.f32.mrb[23].mxu1  ;;  %v2703_v61 = vpop.f32.mrb[23].mxu0 }
 0x126   : > { %v2792_v0 = vadd.f32 %v2791_v60, %v2790_v55  ;;  %v2704_v1 = vadd.f32 %v2703_v61, %v2702_v59  ;;  %v3425_v2 = vadd.f32 %v2789_v54, %v2677_v6 }
 0x128   : > { %v3427_v3 = vadd.f32 %v2792_v0, %v2680_v11 }
 0x12a   : > { %v2793_v58 = vpop.f32.mrb[24].mxu1  ;;  %v2705_v5 = vpop.f32.mrb[24].mxu0 }
 0x12b   : > { %v2794_v63 = vpop.f32.mrb[25].mxu1  ;;  %v2706_v7 = vpop.f32.mrb[25].mxu0 }
 0x12c   : > { %v2795_v8 = vadd.f32 %v2794_v63, %v2793_v58  ;;  %v2796_v9 = vpop.f32.mrb[26].mxu1  ;;  %v2707_v12 = vadd.f32 %v2706_v7, %v2705_v5  ;;  %v2708_v13 = vpop.f32.mrb[26].mxu0 }
 0x12d   : > { %v2797_v14 = vpop.f32.mrb[27].mxu1  ;;  %v2709_v15 = vpop.f32.mrb[27].mxu0 }
 0x12e   : > { %v2798_v17 = vadd.f32 %v2797_v14, %v2796_v9  ;;  %v2710_v19 = vadd.f32 %v2709_v15, %v2708_v13  ;;  %v3429_v20 = vadd.f32 %v2795_v8, %v2683_v18 }
 0x130   : > { %v3431_v21 = vadd.f32 %v2798_v17, %v2686_v23 }
 0x132   : > { %v2799_v6 = vpop.f32.mrb[28].mxu1  ;;  %v2711_v24 = vpop.f32.mrb[28].mxu0 }
 0x133   : > { %v2800_v11 = vpop.f32.mrb[29].mxu1  ;;  %v2712_v25 = vpop.f32.mrb[29].mxu0 }
 0x134   : > { %v2801_v26 = vadd.f32 %v2800_v11, %v2799_v6  ;;  %v2802_v27 = vpop.f32.mrb[30].mxu1  ;;  %v3433_v29 = vadd.f32 %v2712_v25, %v2711_v24  ;;  %v2714_v31 = vpop.f32.mrb[30].mxu0 }
 0x135   : > { %v2803_v32 = vpop.f32.mrb[31].mxu1  ;;  %v2715_v33 = vpop.f32.mrb[31].mxu0 }
 0x136   : > { %v2804_v36 = vadd.f32 %v2803_v32, %v2802_v27  ;;  %v2716_v37 = vadd.f32 %v2715_v33, %v2714_v31  ;;  %v3435_v38 = vadd.f32 %v2801_v26, %v2689_v30 }
 0x138   : > { %v3437_v39 = vadd.f32 %v2804_v36, %v2692_v35 }
 0x13a   : > { %v2805_v18 = vpop.f32.mrb[32].mxu1  ;;  %v2717_v23 = vpop.f32.mrb[32].mxu0 }
 0x13b   : > { %v2806_v40 = vpop.f32.mrb[33].mxu1  ;;  %v2718_v41 = vpop.f32.mrb[33].mxu0 }
 0x13c   : > { %v2807_v43 = vadd.f32 %v2806_v40, %v2805_v18  ;;  %v2808_v44 = vpop.f32.mrb[34].mxu1  ;;  %v3439_v45 = vadd.f32 %v2718_v41, %v2717_v23  ;;  %v2720_v46 = vpop.f32.mrb[34].mxu0 }
 0x13d   : > { %v2809_v50 = vpop.f32.mrb[35].mxu1  ;;  %v2721_v51 = vpop.f32.mrb[35].mxu0 }
 0x13e   : > { %v2810_v52 = vadd.f32 %v2809_v50, %v2808_v44  ;;  %v3441_v53 = vadd.f32 %v2721_v51, %v2720_v46  ;;  %v3443_v54 = vadd.f32 %v2807_v43, %v2695_v42 }
 0x140   : > { %v3445_v30 = vadd.f32 %v2810_v52, %v2698_v47  ;;  %v2623_v52 = vld [vmem:[%s3471_s8 + $0x8] sm:$0xff]  }
 0x142   : > { %v2811_v35 = vpop.f32.mrb[36].mxu1  ;;  %v2723_v55 = vpop.f32.mrb[36].mxu0 }
 0x143   : > { %v2812_v59 = vpop.f32.mrb[37].mxu1  ;;  %v2724_v60 = vpop.f32.mrb[37].mxu0 }
 0x144   : > { %v2813_v61 = vadd.f32 %v2812_v59, %v2811_v35  ;;  %v2814_v0 = vpop.f32.mrb[38].mxu1  ;;  %v3447_v58 = vadd.f32 %v2724_v60, %v2723_v55  ;;  %v2726_v5 = vpop.f32.mrb[38].mxu0  ;;  %v2480_v55 = vld [vmem:[%s3471_s8] sm:$0xff]  }
 0x145   : > { %v2815_v63 = vpop.f32.mrb[39].mxu1  ;;  %v2727_v7 = vpop.f32.mrb[39].mxu0 }
 0x146   : > { %v2816_v8 = vadd.f32 %v2815_v63, %v2814_v0  ;;  %v3449_v9 = vadd.f32 %v2727_v7, %v2726_v5  ;;  %v3451_v13 = vadd.f32 %v2813_v61, %v2701_v57  ;;  %v3485_v61 = vld [vmem:[%s3620_s2] ss:$0 sm:$0xff]  ;;  %v2485_v5 = vunpack.c.l.bf16 %v2623_v52 }
 0x148   : > { %v3453_v42 = vadd.f32 %v2816_v8, %v2704_v1 }
 0x14a   : > { %v2817_v47 = vpop.f32.mrb[40].mxu1  ;;  %v2729_v14 = vpop.f32.mrb[40].mxu0 }
 0x14b   : > { %v2818_v15 = vpop.f32.mrb[41].mxu1  ;;  %v2730_v17 = vpop.f32.mrb[41].mxu0 }
 0x14c   : > { %v2819_v6 = vadd.f32 %v2818_v15, %v2817_v47  ;;  %v2820_v24 = vpop.f32.mrb[42].mxu1  ;;  %v3455_v11 = vadd.f32 %v2730_v17, %v2729_v14  ;;  %v2732_v25 = vpop.f32.mrb[42].mxu0  ;;  %v2481_v47 = vunpack.c.l.bf16 %v2480_v55 }
 0x14d   : > { %v2821_v26 = vpop.f32.mrb[43].mxu1  ;;  %v2733_v27 = vpop.f32.mrb[43].mxu0 }
 0x14e   : > { %v2822_v31 = vadd.f32 %v2821_v26, %v2820_v24  ;;  %v3457_v32 = vadd.f32 %v2733_v27, %v2732_v25  ;;  %v3459_v57 = vadd.f32 %v2819_v6, %v2707_v12  ;;  %v2486_v6 = vunpack.c.h.bf16 %v2623_v52 }
 0x14f   : > { %v2482_v26 = vunpack.c.h.bf16 %v2480_v55 }
 0x150   : > { %v3461_v1 = vadd.f32 %v2822_v31, %v2710_v19 }
 0x152   : > { %v2823_v33 = vpop.f32.mrb[44].mxu1  ;;  %v2735_v36 = vpop.f32.mrb[44].mxu0 }
 0x153   : > { %v2824_v18 = vpop.f32.mrb[45].mxu1  ;;  %v2736_v23 = vpop.f32.mrb[45].mxu0 }
 0x154   : > { %v2825_v40 = vadd.f32 %v2824_v18, %v2823_v33  ;;  %v2826_v41 = vpop.f32.mrb[46].mxu1  ;;  %v3464_v43 = vadd.f32 %v2736_v23, %v2735_v36  ;;  %v2738_v44 = vpop.f32.mrb[46].mxu0  ;;  %v2625_v18 = vld [vmem:[%s3471_s8 + $0x18] sm:$0xff]   ;;  %v2624_v23 = vld [vmem:[%s3471_s8 + $0x10] sm:$0xff]  }
 0x155   : > { %v2827_v46 = vpop.f32.mrb[47].mxu1  ;;  %v2739_v50 = vpop.f32.mrb[47].mxu0  ;;  %v2489_v52 = vunpack.c.l.bf16 %v2624_v23 }
 0x156   : > { %v2828_v12 = vadd.f32 %v2827_v46, %v2826_v41  ;;  %v3473_v19 = vadd.f32 %v2739_v50, %v2738_v44  ;;  %v3476_v51 = vadd.f32 %v2825_v40, %v3433_v29 }
 0x158   : > { %v3479_v35 = vadd.f32 %v2828_v12, %v2716_v37 }
 0x15a   : > { %v2829_v59 = vpop.f32.mrb[48].mxu1  ;;  %v2907_v60 = vpop.f32.mrb[48].mxu0 }
 0x15b   : > { %v1594_v0 = vadd.f32 %v2907_v60, %v3425_v2  ;;  %v2830_v63 = vpop.f32.mrb[49].mxu1  ;;  %v1585_v7 = vpop.f32.mrb[49].mxu0 }
 0x15c   : > { %v2831_v8 = vadd.f32 %v2830_v63, %v2829_v59  ;;  %v1586_v29 = vadd.f32 %v1585_v7, %v3421_v48  ;;  %v2832_v37 = vpop.f32.mrb[50].mxu1  ;;  %v2908_v14 = vpop.f32.mrb[50].mxu0 }
 0x15d   : > { %v1820_v15 = vadd.f32 %v3485_v61, %v1594_v0  ;;  %v1597_v17 = vadd.f32 %v2908_v14, %v3427_v3  ;;  %v2833_v24 = vpop.f32.mrb[51].mxu1  ;;  %v1588_v25 = vpop.f32.mrb[51].mxu0 }
 0x15e   : > { %v1818_v2 = vadd.f32 %v3485_v61, %v1586_v29  ;;  %v2834_v27 = vadd.f32 %v2833_v24, %v2832_v37  ;;  %v1589_v31 = vadd.f32 %v1588_v25, %v3423_v49  ;;  %v3494_v48 = vadd.f32 %v2831_v8, %v3439_v45 }
 0x15f   : > { %v1916_v33 = vadd.f32 %v2485_v5, %v1820_v15  ;;  %v1821_v36 = vadd.f32 %v3485_v61, %v1597_v17  ;;  %v2493_v49 = vunpack.c.l.bf16 %v2625_v18  ;;  %v2494_v5 = vunpack.c.h.bf16 %v2625_v18 }
 0x160   : > { %v1914_v40 = vadd.f32 %v2481_v47, %v1818_v2  ;;  %v1819_v3 = vadd.f32 %v3485_v61, %v1589_v31  ;;  %v3501_v41 = vadd.f32 %v2834_v27, %v3441_v53  ;;  %v2627_v31 = vld [vmem:[%s3471_s8 + $0x28] sm:$0xff]  }
 0x161   : > { %v1917_v44 = vadd.f32 %v2486_v6, %v1821_v36  ;;  %v1948_v45 = vmax.f32 %v1916_v33, 0.0  ;;  %v2490_v6 = vunpack.c.h.bf16 %v2624_v23  ;;  %v2626_v33 = vld [vmem:[%s3471_s8 + $0x20] sm:$0xff]  }
 0x162   : > { %v1915_v46 = vadd.f32 %v2482_v26, %v1819_v3  ;;  %v2835_v50 = vpop.f32.mrb[52].mxu1  ;;  %v2911_v12 = vpop.f32.mrb[52].mxu0  ;;  %v1946_v63 = vmax.f32 %v1914_v40, 0.0 }
 0x163   : > { %v1949_v55 = vmax.f32 %v1917_v44, 0.0  ;;  %v1610_v59 = vadd.f32 %v2911_v12, %v3435_v38  ;;  %v2836_v60 = vpop.f32.mrb[53].mxu1  ;;  %v1601_v0 = vpop.f32.mrb[53].mxu0 }
 0x164   : > { %v1947_v53 = vmax.f32 %v1915_v46, 0.0  ;;  %v2837_v7 = vadd.f32 %v2836_v60, %v2835_v50  ;;  %v1602_v8 = vadd.f32 %v1601_v0, %v3429_v20  ;;  %v2838_v29 = vpop.f32.mrb[54].mxu1  ;;  %v2912_v47 = vpop.f32.mrb[54].mxu0  ;;  %v2501_v46 = vunpack.c.l.bf16 %v2627_v31 }
 0x165   : > { %v2551_v38 = vpack.c.bf16 %v1949_v55, %v1948_v45  ;;  %v1824_v37 = vadd.f32 %v3485_v61, %v1610_v59  ;;  %v1613_v14 = vadd.f32 %v2912_v47, %v3437_v39  ;;  %v2839_v15 = vpop.f32.mrb[55].mxu1  ;;  %v1604_v17 = vpop.f32.mrb[55].mxu0  ;;  %v2497_v50 = vunpack.c.l.bf16 %v2626_v33 }
 0x166   : > { %v2546_v24 = vpack.c.bf16 %v1947_v53, %v1946_v63  ;;  %v1822_v25 = vadd.f32 %v3485_v61, %v1602_v8  ;;  %v2840_v26 = vadd.f32 %v2839_v15, %v2838_v29  ;;  %v1605_v2 = vadd.f32 %v1604_v17, %v3431_v21 }
 0x167   : > { %2638 = vst [vmem:[%s3509_s13 + $0x8] sm:$0xff] %v2551_v38   ;;  %v1920_v20 = vadd.f32 %v2493_v49, %v1824_v37  ;;  %v1825_v27 = vadd.f32 %v3485_v61, %v1613_v14  ;;  %v3521_v36 = vadd.f32 %v2837_v7, %v3447_v58  ;;  %v2502_v59 = vunpack.c.h.bf16 %v2627_v31 }
 0x168   : > { %2547 = vst [vmem:[%s3509_s13] sm:$0xff] %v2546_v24   ;;  %v1918_v39 = vadd.f32 %v2489_v52, %v1822_v25  ;;  %v1823_v18 = vadd.f32 %v3485_v61, %v1605_v2  ;;  %v3526_v23 = vadd.f32 %v2840_v26, %v3449_v9  ;;  %v2498_v47 = vunpack.c.h.bf16 %v2626_v33  ;;  %v2628_v24 = vld [vmem:[%s3471_s8 + $0x30] sm:$0xff]  }
 0x169   : > { %v1921_v40 = vadd.f32 %v2494_v5, %v1825_v27  ;;  %v1952_v12 = vmax.f32 %v1920_v20, 0.0 }
 0x16a   : > { %v1919_v3 = vadd.f32 %v2490_v6, %v1823_v18  ;;  %v2841_v44 = vpop.f32.mrb[56].mxu1  ;;  %v2915_v21 = vpop.f32.mrb[56].mxu0  ;;  %v1950_v60 = vmax.f32 %v1918_v39, 0.0  ;;  %v2629_v6 = vld [vmem:[%s3471_s8 + $0x38] sm:$0xff]   ;;  %v2505_v39 = vunpack.c.l.bf16 %v2628_v24 }
 0x16b   : > { %v1953_v49 = vmax.f32 %v1921_v40, 0.0  ;;  %v1626_v45 = vadd.f32 %v2915_v21, %v3451_v13  ;;  %v2842_v55 = vpop.f32.mrb[57].mxu1  ;;  %v1617_v58 = vpop.f32.mrb[57].mxu0  ;;  %v2509_v33 = vunpack.c.l.bf16 %v2629_v6  ;;  %v2510_v21 = vunpack.c.h.bf16 %v2629_v6 }
 0x16c   : > { %v1951_v52 = vmax.f32 %v1919_v3, 0.0  ;;  %v2843_v0 = vadd.f32 %v2842_v55, %v2841_v44  ;;  %v1618_v9 = vadd.f32 %v1617_v58, %v3443_v54  ;;  %v2844_v5 = vpop.f32.mrb[58].mxu1  ;;  %v2916_v63 = vpop.f32.mrb[58].mxu0 }
 0x16d   : > { %v2561_v53 = vpack.c.bf16 %v1953_v49, %v1952_v12  ;;  %v1828_v7 = vadd.f32 %v3485_v61, %v1626_v45  ;;  %v1629_v8 = vadd.f32 %v2916_v63, %v3453_v42  ;;  %v2845_v13 = vpop.f32.mrb[59].mxu1  ;;  %v1620_v29 = vpop.f32.mrb[59].mxu0 }
 0x16e   : > { %v2556_v38 = vpack.c.bf16 %v1951_v52, %v1950_v60  ;;  %v1826_v37 = vadd.f32 %v3485_v61, %v1618_v9  ;;  %v2846_v14 = vadd.f32 %v2845_v13, %v2844_v5  ;;  %v1621_v15 = vadd.f32 %v1620_v29, %v3445_v30 }
 0x16f   : > { %2640 = vst [vmem:[%s3509_s13 + $0x18] sm:$0xff] %v2561_v53   ;;  %v1924_v54 = vadd.f32 %v2501_v46, %v1828_v7  ;;  %v1829_v17 = vadd.f32 %v3485_v61, %v1629_v8  ;;  %v3539_v25 = vadd.f32 %v2843_v0, %v3455_v11  ;;  %v2506_v52 = vunpack.c.h.bf16 %v2628_v24  ;;  %v2631_v7 = vld [vmem:[%s3471_s8 + $0x48] sm:$0xff]   ;;  %v2630_v8 = vld [vmem:[%s3471_s8 + $0x40] sm:$0xff]  }
 0x170   : > { %2639 = vst [vmem:[%s3509_s13 + $0x10] sm:$0xff] %v2556_v38   ;;  %v1922_v42 = vadd.f32 %v2497_v50, %v1826_v37  ;;  %v1827_v26 = vadd.f32 %v3485_v61, %v1621_v15  ;;  %v3544_v2 = vadd.f32 %v2846_v14, %v3457_v32 }
 0x171   : > { %v1925_v20 = vadd.f32 %v2502_v59, %v1829_v17  ;;  %v1956_v18 = vmax.f32 %v1924_v54, 0.0  ;;  %v2517_v54 = vunpack.c.l.bf16 %v2631_v7 }
 0x172   : > { %v1923_v27 = vadd.f32 %v2498_v47, %v1827_v26  ;;  %v2847_v31 = vpop.f32.mrb[60].mxu1  ;;  %v2919_v30 = vpop.f32.mrb[60].mxu0  ;;  %v1954_v46 = vmax.f32 %v1922_v42, 0.0 }
 0x173   : > { %v1957_v40 = vmax.f32 %v1925_v20, 0.0  ;;  %v1642_v3 = vadd.f32 %v2919_v30, %v3476_v51  ;;  %v2848_v44 = vpop.f32.mrb[61].mxu1  ;;  %v1633_v11 = vpop.f32.mrb[61].mxu0  ;;  %v2518_v20 = vunpack.c.h.bf16 %v2631_v7 }
 0x174   : > { %v1955_v50 = vmax.f32 %v1923_v27, 0.0  ;;  %v2849_v12 = vadd.f32 %v2848_v44, %v2847_v31  ;;  %v1634_v32 = vadd.f32 %v1633_v11, %v3459_v57  ;;  %v2850_v49 = vpop.f32.mrb[62].mxu1  ;;  %v2920_v45 = vpop.f32.mrb[62].mxu0  ;;  %v2514_v44 = vunpack.c.h.bf16 %v2630_v8 }
 0x175   : > { %v2571_v55 = vpack.c.bf16 %v1957_v40, %v1956_v18  ;;  %v1832_v58 = vadd.f32 %v3485_v61, %v1642_v3  ;;  %v1645_v59 = vadd.f32 %v2920_v45, %v3479_v35  ;;  %v2851_v51 = vpop.f32.mrb[63].mxu1  ;;  %v1636_v60 = vpop.f32.mrb[63].mxu0 }
 0x176   : > { %v2566_v0 = vpack.c.bf16 %v1955_v50, %v1954_v46  ;;  %v1830_v9 = vadd.f32 %v3485_v61, %v1634_v32  ;;  %v2852_v5 = vadd.f32 %v2851_v51, %v2850_v49  ;;  %v1637_v63 = vadd.f32 %v1636_v60, %v3461_v1  ;;  %v2633_v32 = vld [vmem:[%s3471_s8 + $0x58] sm:$0xff]   ;;  %v2632_v49 = vld [vmem:[%s3471_s8 + $0x50] sm:$0xff]  }
 0x177   : > { %2642 = vst [vmem:[%s3509_s13 + $0x28] sm:$0xff] %v2571_v55   ;;  %v1928_v57 = vadd.f32 %v2509_v33, %v1832_v58  ;;  %v1833_v53 = vadd.f32 %v3485_v61, %v1645_v59  ;;  %v1513_v13 = vadd.f32 %v2849_v12, %v3464_v43  ;;  %v2513_v1 = vunpack.c.l.bf16 %v2630_v8 }
 0x178   : > { %2641 = vst [vmem:[%s3509_s13 + $0x20] sm:$0xff] %v2566_v0   ;;  %v1926_v29 = vadd.f32 %v2505_v39, %v1830_v9  ;;  %v1831_v35 = vadd.f32 %v3485_v61, %v1637_v63  ;;  %v1516_v47 = vadd.f32 %v2852_v5, %v3473_v19  ;;  %v2521_v0 = vunpack.c.l.bf16 %v2632_v49 }
 0x179   : > { %v1929_v38 = vadd.f32 %v2510_v21, %v1833_v53  ;;  %v1960_v17 = vmax.f32 %v1928_v57, 0.0  ;;  %v2526_v7 = vunpack.c.h.bf16 %v2633_v32 }
 0x17a   : > { %v1927_v37 = vadd.f32 %v2506_v52, %v1831_v35  ;;  %v2853_v14 = vpop.f32.mrb[64].mxu1  ;;  %v2923_v15 = vpop.f32.mrb[64].mxu0  ;;  %v1958_v43 = vmax.f32 %v1926_v29, 0.0 }
 0x17b   : > { %v1961_v6 = vmax.f32 %v1929_v38, 0.0  ;;  %v1658_v24 = vadd.f32 %v2923_v15, %v3521_v36  ;;  %v2854_v42 = vpop.f32.mrb[65].mxu1  ;;  %v1649_v26 = vpop.f32.mrb[65].mxu0 }
 0x17c   : > { %v1959_v27 = vmax.f32 %v1927_v37, 0.0  ;;  %v2855_v31 = vadd.f32 %v2854_v42, %v2853_v14  ;;  %v1650_v30 = vadd.f32 %v1649_v26, %v3494_v48  ;;  %v2856_v19 = vpop.f32.mrb[66].mxu1  ;;  %v2924_v33 = vpop.f32.mrb[66].mxu0 }
 0x17d   : > { %v2581_v39 = vpack.c.bf16 %v1961_v6, %v1960_v17  ;;  %v1836_v18 = vadd.f32 %v3485_v61, %v1658_v24  ;;  %v1661_v40 = vadd.f32 %v2924_v33, %v3526_v23  ;;  %v2857_v36 = vpop.f32.mrb[67].mxu1  ;;  %v1652_v3 = vpop.f32.mrb[67].mxu0 }
 0x17e   : > { %v2576_v11 = vpack.c.bf16 %v1959_v27, %v1958_v43  ;;  %v1834_v21 = vadd.f32 %v3485_v61, %v1650_v30  ;;  %v2858_v46 = vadd.f32 %v2857_v36, %v2856_v19  ;;  %v1653_v50 = vadd.f32 %v1652_v3, %v3501_v41  ;;  %v2635_v43 = vld [vmem:[%s3471_s8 + $0x68] sm:$0xff]   ;;  %v2634_v27 = vld [vmem:[%s3471_s8 + $0x60] sm:$0xff]  }
 0x17f   : > { %2644 = vst [vmem:[%s3509_s13 + $0x38] sm:$0xff] %v2581_v39   ;;  %v1932_v48 = vadd.f32 %v2517_v54, %v1836_v18  ;;  %v1837_v12 = vadd.f32 %v3485_v61, %v1661_v40  ;;  %v1521_v45 = vadd.f32 %v2855_v31, %v3405_v56  ;;  %v2525_v41 = vunpack.c.l.bf16 %v2633_v32 }
 0x180   : > { %2643 = vst [vmem:[%s3509_s13 + $0x30] sm:$0xff] %v2576_v11   ;;  %v1930_v55 = vadd.f32 %v2513_v1, %v1834_v21  ;;  %v1835_v23 = vadd.f32 %v3485_v61, %v1653_v50  ;;  %v3574_v58 = vadd.f32 %v2858_v46, %v3407_v62  ;;  %v2522_v1 = vunpack.c.h.bf16 %v2632_v49 }
 0x181   : > { %v1933_v59 = vadd.f32 %v2518_v20, %v1837_v12  ;;  %v1964_v9 = vmax.f32 %v1932_v48, 0.0  ;;  %v2533_v40 = vunpack.c.l.bf16 %v2635_v43 }
 0x182   : > { %v1931_v51 = vadd.f32 %v2514_v44, %v1835_v23  ;;  %v2859_v60 = vpop.f32.mrb[68].mxu1  ;;  %v2927_v52 = vpop.f32.mrb[68].mxu0  ;;  %v1962_v56 = vmax.f32 %v1930_v55, 0.0 }
 0x183   : > { %v1965_v5 = vmax.f32 %v1933_v59, 0.0  ;;  %v1674_v63 = vadd.f32 %v2927_v52, %v1513_v13  ;;  %v2860_v57 = vpop.f32.mrb[69].mxu1  ;;  %v1665_v53 = vpop.f32.mrb[69].mxu0 }
 0x184   : > { %v1963_v8 = vmax.f32 %v1931_v51, 0.0  ;;  %v2861_v29 = vadd.f32 %v2860_v57, %v2859_v60  ;;  %v1666_v35 = vadd.f32 %v1665_v53, %v3539_v25  ;;  %v2862_v62 = vpop.f32.mrb[70].mxu1  ;;  %v2928_v38 = vpop.f32.mrb[70].mxu0  ;;  %v2530_v60 = vunpack.c.h.bf16 %v2634_v27 }
 0x185   : > { %v2591_v37 = vpack.c.bf16 %v1965_v5, %v1964_v9  ;;  %v1840_v14 = vadd.f32 %v3485_v61, %v1674_v63  ;;  %v1677_v15 = vadd.f32 %v2928_v38, %v1516_v47  ;;  %v2863_v54 = vpop.f32.mrb[71].mxu1  ;;  %v1668_v13 = vpop.f32.mrb[71].mxu0 }
 0x186   : > { %v2586_v17 = vpack.c.bf16 %v1963_v8, %v1962_v56  ;;  %v1838_v6 = vadd.f32 %v3485_v61, %v1666_v35  ;;  %v2864_v24 = vadd.f32 %v2863_v54, %v2862_v62  ;;  %v1669_v42 = vadd.f32 %v1668_v13, %v3544_v2  ;;  %v2636_v62 = vld [vmem:[%s3471_s8 + $0x70] sm:$0xff]  }
 0x187   : > { %2646 = vst [vmem:[%s3509_s13 + $0x48] sm:$0xff] %v2591_v37   ;;  %v1936_v25 = vadd.f32 %v2525_v41, %v1840_v14  ;;  %v1841_v26 = vadd.f32 %v3485_v61, %v1677_v15  ;;  %v1529_v20 = vadd.f32 %v2861_v29, %v3409_v4  ;;  %v2529_v2 = vunpack.c.l.bf16 %v2634_v27 }
 0x188   : > { %2645 = vst [vmem:[%s3509_s13 + $0x40] sm:$0xff] %v2586_v17   ;;  %v1934_v31 = vadd.f32 %v2521_v0, %v1838_v6  ;;  %v1839_v47 = vadd.f32 %v3485_v61, %v1669_v42  ;;  %v1532_v30 = vadd.f32 %v2864_v24, %v3411_v10  ;;  %v2534_v4 = vunpack.c.h.bf16 %v2635_v43 }
 0x189   : > { %v1937_v19 = vadd.f32 %v2526_v7, %v1841_v26  ;;  %v1968_v36 = vmax.f32 %v1936_v25, 0.0  ;;  %v2537_v24 = vunpack.c.l.bf16 %v2636_v62 }
 0x18a   : > { %v1935_v33 = vadd.f32 %v2522_v1, %v1839_v47  ;;  %v2865_v39 = vpop.f32.mrb[72].mxu1  ;;  %v2931_v18 = vpop.f32.mrb[72].mxu0  ;;  %v1966_v46 = vmax.f32 %v1934_v31, 0.0  ;;  %v2538_v47 = vunpack.c.h.bf16 %v2636_v62 }
 0x18b   : > { %v1969_v3 = vmax.f32 %v1937_v19, 0.0  ;;  %v1690_v44 = vadd.f32 %v2931_v18, %v1529_v20  ;;  %v2866_v11 = vpop.f32.mrb[73].mxu1  ;;  %v1681_v21 = vpop.f32.mrb[73].mxu0 }
 0x18c   : > { %v1967_v50 = vmax.f32 %v1935_v33, 0.0  ;;  %v2867_v48 = vadd.f32 %v2866_v11, %v2865_v39  ;;  %v1682_v12 = vadd.f32 %v1681_v21, %v1521_v45  ;;  %v2868_v32 = vpop.f32.mrb[74].mxu1  ;;  %v2932_v10 = vpop.f32.mrb[74].mxu0 }
 0x18d   : > { %v2601_v49 = vpack.c.bf16 %v1969_v3, %v1968_v36  ;;  %v1844_v55 = vadd.f32 %v3485_v61, %v1690_v44  ;;  %v1693_v23 = vadd.f32 %v2932_v10, %v1532_v30  ;;  %v2869_v59 = vpop.f32.mrb[75].mxu1  ;;  %v1684_v51 = vpop.f32.mrb[75].mxu0 }
 0x18e   : > { %v2596_v52 = vpack.c.bf16 %v1967_v50, %v1966_v46  ;;  %v1842_v41 = vadd.f32 %v3485_v61, %v1682_v12  ;;  %v2870_v0 = vadd.f32 %v2869_v59, %v2868_v32  ;;  %v1685_v9 = vadd.f32 %v1684_v51, %v3574_v58 }
 0x18f   : > { %2648 = vst [vmem:[%s3509_s13 + $0x58] sm:$0xff] %v2601_v49   ;;  %v1940_v5 = vadd.f32 %v2533_v40, %v1844_v55  ;;  %v1845_v45 = vadd.f32 %v3485_v61, %v1693_v23  ;;  %v1537_v63 = vadd.f32 %v2867_v48, %v3413_v16 }
 0x190   : > { %2647 = vst [vmem:[%s3509_s13 + $0x50] sm:$0xff] %v2596_v52   ;;  %v1938_v57 = vadd.f32 %v2529_v2, %v1842_v41  ;;  %v1843_v53 = vadd.f32 %v3485_v61, %v1685_v9  ;;  %v1540_v7 = vadd.f32 %v2870_v0, %v3415_v22  ;;  %v2637_v22 = vld [vmem:[%s3471_s8 + $0x78] sm:$0xff]  }
 0x191   : > { %v1941_v56 = vadd.f32 %v2534_v4, %v1845_v45  ;;  %v1972_v38 = vmax.f32 %v1940_v5, 0.0  ;;  %v2541_v19 = vunpack.c.l.bf16 %v2637_v22 }
 0x192   : > { %v1939_v8 = vadd.f32 %v2530_v60, %v1843_v53  ;;  %v2871_v29 = vpop.f32.mrb[76].mxu1  ;;  %v2935_v35 = vpop.f32.mrb[76].mxu0  ;;  %v1970_v15 = vmax.f32 %v1938_v57, 0.0 }
 0x193   : > { %v1973_v58 = vmax.f32 %v1941_v56, 0.0  ;;  %v2872_v37 = vpop.f32.mrb[77].mxu1  ;;  %v1697_v14 = vpop.f32.mrb[77].mxu0 }
 0x194   : > { %v1971_v54 = vmax.f32 %v1939_v8, 0.0  ;;  %v2873_v16 = vadd.f32 %v2872_v37, %v2871_v29  ;;  %v1698_v13 = vadd.f32 %v1697_v14, %v1537_v63  ;;  %v2874_v1 = vpop.f32.mrb[78].mxu1  ;;  %v2936_v17 = vpop.f32.mrb[78].mxu0 }
 0x195   : > { %v2611_v6 = vpack.c.bf16 %v1973_v58, %v1972_v38  ;;  %v2875_v42 = vpop.f32.mrb[79].mxu1  ;;  %v1700_v25 = vpop.f32.mrb[79].mxu0 }
 0x196   : > { %v2606_v26 = vpack.c.bf16 %v1971_v54, %v1970_v15  ;;  %v1545_v20 = vadd.f32 %v2873_v16, %v3417_v28  ;;  %v1846_v43 = vadd.f32 %v3485_v61, %v1698_v13  ;;  %v2876_v27 = vadd.f32 %v2875_v42, %v2874_v1 }
 0x197   : > { %2650 = vst [vmem:[%s3509_s13 + $0x68] sm:$0xff] %v2611_v6   ;;  %v1701_v31 = vadd.f32 %v1700_v25, %v1540_v7  ;;  %v2542_v28 = vunpack.c.h.bf16 %v2637_v22 }
 0x198   : > { %2649 = vst [vmem:[%s3509_s13 + $0x60] sm:$0xff] %v2606_v26   ;;  %v1706_v30 = vadd.f32 %v2935_v35, %v1545_v20  ;;  %v1548_v33 = vadd.f32 %v2876_v27, %v3419_v34  ;;  %v1942_v39 = vadd.f32 %v2537_v24, %v1846_v43 }
 0x199   : > { %v1847_v18 = vadd.f32 %v3485_v61, %v1701_v31 }
 0x19a   : > { %v1848_v40 = vadd.f32 %v3485_v61, %v1706_v30  ;;  %v1709_v2 = vadd.f32 %v2936_v17, %v1548_v33  ;;  %v1974_v11 = vmax.f32 %v1942_v39, 0.0 }
 0x19b   : > { %v1943_v36 = vadd.f32 %v2538_v47, %v1847_v18 }
 0x19c   : > { %v1944_v3 = vadd.f32 %v2541_v19, %v1848_v40  ;;  %v1849_v44 = vadd.f32 %v3485_v61, %v1709_v2 }
 0x19d   : > { %v1975_v21 = vmax.f32 %v1943_v36, 0.0 }
 0x19e   : > { %v1945_v4 = vadd.f32 %v2542_v28, %v1849_v44  ;;  %v1976_v50 = vmax.f32 %v1944_v3, 0.0 }
 0x19f   : > { %v2616_v46 = vpack.c.bf16 %v1975_v21, %v1974_v11 }
 0x1a0   : > { %v1977_v48 = vmax.f32 %v1945_v4, 0.0 }
 0x1a1   : > { %2651 = vst [vmem:[%s3509_s13 + $0x70] sm:$0xff] %v2616_v46  }
 0x1a2   : > { %v2621_v34 = vpack.c.bf16 %v1977_v48, %v1976_v50 }
 0x1a4   : > { %2652 = vst [vmem:[%s3509_s13 + $0x78] sm:$0xff] %v2621_v34  }
 0x1a5 PF: > { %s14_s17 = sadd.s32 1, %s3148_s17   ;;  %s3623_s15 = smov %s3144_s16 }
 0x1a6   : > { %p11_p5 = scmp.ge.s32.totalorder %s14_s17, 4   ;;  %s3624_s16 = smov %s3626_s18 }
 0x1a8   :  { %13 = sbr.rel (!%p11_p5) target bundleno = 2 (0x2), region = 83 }

// kernel: forward.27
= control target key start
LH: loop header
LB: loop body
LE: loop exit
PB: predicated region body
PF: predicated region fallthrough
CT: control target
= control target key end

     0   :  { %vm587_vm0 = vcmask 523264   ;;  %s1839_s1 = inlined_call_operand.vmem [shape: bf16[576,128], index: 1, kind: input, shape index: {}]   ;;  %s1840_s0 = inlined_call_operand.vmem [shape: bf16[128,576], index: 0, kind: input, shape index: {}]   ;;  %s1841_s2 = inlined_call_operand.vmem [shape: f32[1,128], index: 2, kind: input, shape index: {}]   ;;  %s1842_s3 = inlined_call_operand.vmem [shape: bf16[128,128], index: 3, kind: output, shape index: {}]  }
   0x1   :  { %v1413_v0 = vld [vmem:[%s1839_s1 + $0x40] sm:$0xff]   ;;  %v1417_v4 = vld [vmem:[%s1839_s1 + $0x48] sm:$0xff]   ;;  %v1421_v8 = vld [vmem:[%s1839_s1 + $0x50] sm:$0xff]  }
   0x2   :  { %v1414_v1 = vld [vmem:[%s1839_s1 + $0xc0] sm:$0xff]   ;;  %1241 = vmatprep.subr.bf16.mxu0 %v1413_v0  ;;  %v1418_v5 = vld [vmem:[%s1839_s1 + $0xc8] sm:$0xff]   ;;  %v1422_v9 = vld [vmem:[%s1839_s1 + $0xd0] sm:$0xff]  }
   0x3   :  { %v1415_v2 = vld [vmem:[%s1839_s1] sm:$0xff]   ;;  %1305 = vmatprep.subr.bf16.mxu1 %v1414_v1  ;;  %v1419_v6 = vld [vmem:[%s1839_s1 + $0x8] sm:$0xff]   ;;  %v1423_v10 = vld [vmem:[%s1839_s1 + $0x10] sm:$0xff]  }
   0x4   :  { %v1416_v3 = vld [vmem:[%s1839_s1 + $0x80] sm:$0xff]   ;;  %1242 = vmatpush3.bf16.msra.mxu0 %v1415_v2  ;;  %v1420_v7 = vld [vmem:[%s1839_s1 + $0x88] sm:$0xff]   ;;  %v1424_v11 = vld [vmem:[%s1839_s1 + $0x90] sm:$0xff]  }
   0x5   :  { %1306 = vmatpush3.bf16.msra.mxu1 %v1416_v3  ;;  %1243 = vmatprep.subr.bf16.mxu0 %v1417_v4  ;;  %v1425_v12 = vld [vmem:[%s1839_s1 + $0x58] sm:$0xff]   ;;  %v1429_v16 = vld [vmem:[%s1839_s1 + $0x60] sm:$0xff]   ;;  %v1433_v20 = vld [vmem:[%s1839_s1 + $0x68] sm:$0xff]  }
   0x6   :  { %1307 = vmatprep.subr.bf16.mxu1 %v1418_v5  ;;  %v1426_v13 = vld [vmem:[%s1839_s1 + $0xd8] sm:$0xff]   ;;  %v1430_v17 = vld [vmem:[%s1839_s1 + $0xe0] sm:$0xff]   ;;  %v1434_v21 = vld [vmem:[%s1839_s1 + $0xe8] sm:$0xff]  }
   0x7   :  { %v1427_v14 = vld [vmem:[%s1839_s1 + $0x18] sm:$0xff]   ;;  %v1431_v18 = vld [vmem:[%s1839_s1 + $0x20] sm:$0xff]   ;;  %v1435_v22 = vld [vmem:[%s1839_s1 + $0x28] sm:$0xff]  }
   0x8   :  { %1244 = vmatpush3.bf16.msra.mxu0 %v1419_v6  ;;  %v1428_v15 = vld [vmem:[%s1839_s1 + $0x98] sm:$0xff]   ;;  %v1432_v19 = vld [vmem:[%s1839_s1 + $0xa0] sm:$0xff]   ;;  %v1436_v23 = vld [vmem:[%s1839_s1 + $0xa8] sm:$0xff]  }
   0x9   :  { %1308 = vmatpush3.bf16.msra.mxu1 %v1420_v7  ;;  %1245 = vmatprep.subr.bf16.mxu0 %v1421_v8  ;;  %v1437_v24 = vld [vmem:[%s1839_s1 + $0x70] sm:$0xff]   ;;  %v1441_v28 = vld [vmem:[%s1839_s1 + $0x78] sm:$0xff]   ;;  %v1450_v35 = vld [vmem:[%s1840_s0 + $0xc] ss:$20 sps:$4 sm:$0xff]  }
   0xa   :  { %1309 = vmatprep.subr.bf16.mxu1 %v1422_v9  ;;  %v1438_v25 = vld [vmem:[%s1839_s1 + $0xf0] sm:$0xff]   ;;  %v1442_v29 = vld [vmem:[%s1839_s1 + $0xf8] sm:$0xff]   ;;  %v1451_v36 = vld [vmem:[%s1839_s1 + $0x100] sm:$0xff]   ;;  %741 = vmatprep.mubr.bf16.mxu1 %v1450_v35 }
   0xb   :  { %v1439_v26 = vld [vmem:[%s1839_s1 + $0x30] sm:$0xff]   ;;  %v1443_v30 = vld [vmem:[%s1839_s1 + $0x38] sm:$0xff]   ;;  %v1452_v37 = vld [vmem:[%s1840_s0 + $0x2c] ss:$20 sps:$4 sm:$0xff]  }
   0xc   :  { %1246 = vmatpush3.bf16.msra.mxu0 %v1423_v10  ;;  %v1440_v27 = vld [vmem:[%s1839_s1 + $0xb0] sm:$0xff]   ;;  %v1444_v31 = vld [vmem:[%s1839_s1 + $0xb8] sm:$0xff]   ;;  %v1464_v42 = vld [vmem:[%s1839_s1 + $0x108] sm:$0xff]  }
   0xd   :  { %1310 = vmatpush3.bf16.msra.mxu1 %v1424_v11  ;;  %1247 = vmatprep.subr.bf16.mxu0 %v1425_v12  ;;  %v1445_v32 = vld [vmem:[%s1840_s0] ss:$20 sps:$4 sm:$0xff]   ;;  %v1447_v33 = vld [vmem:[%s1840_s0 + $0x4] ss:$20 sps:$4 sm:$0xff]   ;;  %v1448_v34 = vld [vmem:[%s1840_s0 + $0x8] ss:$20 sps:$4 sm:$0xff]  }
   0xe   :  { %1311 = vmatprep.subr.bf16.mxu1 %v1426_v13  ;;  %644 = vmatprep.mubr.bf16.mxu0 %v1447_v33  ;;  %v1454_v38 = vld [vmem:[%s1840_s0 + $0x34] ss:$20 sps:$4 sm:$0xff]   ;;  %v1457_v40 = vld [vmem:[%s1840_s0 + $0x30] ss:$20 sps:$4 sm:$0xff]   ;;  %v1463_v45 = vld [vmem:[%s1840_s0 + $0x58] ss:$20 sps:$4 sm:$0xff]  }
   0xf   :  { %v1456_v39 = vld [vmem:[%s1840_s0 + $0x28] ss:$20 sps:$4 sm:$0xff]   ;;  %v1462_v44 = vld [vmem:[%s1840_s0 + $0x50] ss:$20 sps:$4 sm:$0xff]   ;;  %v1469_v50 = vld [vmem:[%s1840_s0 + $0x78] ss:$20 sps:$4 sm:$0xff]  }
  0x10   :  { %1248 = vmatpush3.bf16.msra.mxu0 %v1427_v14  ;;  %v1458_v41 = vld [vmem:[%s1840_s0 + $0x54] ss:$20 sps:$4 sm:$0xff]   ;;  %v1460_v43 = vld [vmem:[%s1840_s0 + $0x5c] ss:$20 sps:$4 sm:$0xff]   ;;  %v1467_v48 = vld [vmem:[%s1840_s0 + $0x84] ss:$20 sps:$4 sm:$0xff]  }
  0x11   :  { %1312 = vmatpush3.bf16.msra.mxu1 %v1428_v15  ;;  %1249 = vmatprep.subr.bf16.mxu0 %v1429_v16  ;;  %v1477_v46 = vld [vmem:[%s1839_s1 + $0x110] sm:$0xff]   ;;  %v1490_v49 = vld [vmem:[%s1839_s1 + $0x118] sm:$0xff]   ;;  %v1473_v53 = vld [vmem:[%s1840_s0 + $0xac] ss:$20 sps:$4 sm:$0xff]  }
  0x12   :  { %1313 = vmatprep.subr.bf16.mxu1 %v1430_v17  ;;  %v1465_v47 = vld [vmem:[%s1840_s0 + $0x7c] ss:$20 sps:$4 sm:$0xff]   ;;  %v1470_v51 = vld [vmem:[%s1840_s0 + $0x80] ss:$20 sps:$4 sm:$0xff]   ;;  %v1471_v52 = vld [vmem:[%s1840_s0 + $0xa4] ss:$20 sps:$4 sm:$0xff]  }
  0x13   :  { %v1475_v54 = vld [vmem:[%s1840_s0 + $0xa0] ss:$20 sps:$4 sm:$0xff]   ;;  %v1476_v55 = vld [vmem:[%s1840_s0 + $0xa8] ss:$20 sps:$4 sm:$0xff]   ;;  %v1483_v59 = vld [vmem:[%s1840_s0 + $0xd0] ss:$20 sps:$4 sm:$0xff]  }
  0x14   :  { %1250 = vmatpush3.bf16.msra.mxu0 %v1431_v18  ;;  %v1478_v56 = vld [vmem:[%s1840_s0 + $0xcc] ss:$20 sps:$4 sm:$0xff]   ;;  %v1480_v57 = vld [vmem:[%s1840_s0 + $0xd4] ss:$20 sps:$4 sm:$0xff]   ;;  %v1486_v61 = vld [vmem:[%s1840_s0 + $0xfc] ss:$20 sps:$4 sm:$0xff]  }
  0x15   :  { %1314 = vmatpush3.bf16.msra.mxu1 %v1432_v19  ;;  %1251 = vmatprep.subr.bf16.mxu0 %v1433_v20  ;;  %v1482_v58 = vld [vmem:[%s1840_s0 + $0xc8] ss:$20 sps:$4 sm:$0xff]   ;;  %v1488_v62 = vld [vmem:[%s1840_s0 + $0xf0] ss:$20 sps:$4 sm:$0xff]   ;;  %v1489_v63 = vld [vmem:[%s1840_s0 + $0xf8] ss:$20 sps:$4 sm:$0xff]  }
  0x16   :  { %1315 = vmatprep.subr.bf16.mxu1 %v1434_v21  ;;  %v1484_v60 = vld [vmem:[%s1840_s0 + $0xf4] ss:$20 sps:$4 sm:$0xff]   ;;  %v1491_v0 = vld [vmem:[%s1840_s0 + $0x11c] ss:$20 sps:$4 sm:$0xff]   ;;  %v1493_v1 = vld [vmem:[%s1840_s0 + $0x124] ss:$20 sps:$4 sm:$0xff]  }
  0x17   :  { %v1495_v2 = vld [vmem:[%s1840_s0 + $0x118] ss:$20 sps:$4 sm:$0xff]   ;;  %v1496_v3 = vld [vmem:[%s1840_s0 + $0x120] ss:$20 sps:$4 sm:$0xff]   ;;  %v1497_v4 = vld [vmem:[%s1840_s0 + $0x10] ss:$20 sps:$4 sm:$0xff]  }
  0x18   :  { %1252 = vmatpush3.bf16.msra.mxu0 %v1435_v22  ;;  %v1498_v5 = vld [vmem:[%s1840_s0 + $0xb0] ss:$20 sps:$4 sm:$0xff]   ;;  %v1499_v6 = vld [vmem:[%s1840_s0 + $0x38] ss:$20 sps:$4 sm:$0xff]   ;;  %v1501_v8 = vld [vmem:[%s1840_s0 + $0x60] ss:$20 sps:$4 sm:$0xff]  }
  0x19   :  { %1316 = vmatpush3.bf16.msra.mxu1 %v1436_v23  ;;  %1253 = vmatprep.subr.bf16.mxu0 %v1437_v24  ;;  %v1500_v7 = vld [vmem:[%s1840_s0 + $0xd8] ss:$20 sps:$4 sm:$0xff]   ;;  %v1502_v9 = vld [vmem:[%s1840_s0 + $0x100] ss:$20 sps:$4 sm:$0xff]   ;;  %v1503_v10 = vld [vmem:[%s1840_s0 + $0x88] ss:$20 sps:$4 sm:$0xff]  }
  0x1a   :  { %1317 = vmatprep.subr.bf16.mxu1 %v1438_v25  ;;  %v1504_v11 = vld [vmem:[%s1840_s0 + $0x128] ss:$20 sps:$4 sm:$0xff]  }
  0x1c   :  { %1254 = vmatpush3.bf16.msra.mxu0 %v1439_v26 }
  0x1d   :  { %1318 = vmatpush3.bf16.msra.mxu1 %v1440_v27  ;;  %1255 = vmatprep.subr.bf16.mxu0 %v1441_v28 }
  0x1e   :  { %1319 = vmatprep.subr.bf16.mxu1 %v1442_v29 }
  0x20   :  { %1256 = vmatpush3.bf16.msra.mxu0 %v1443_v30 }
  0x21   :  { %1320 = vmatpush3.bf16.msra.mxu1 %v1444_v31  ;;  %1381 = vmatprep.subr.bf16.mxu0 %v1451_v36 }
  0x22   :  { %1405 = vmatprep.subr.bf16.mxu1 %v1451_v36 }
  0x23   :  { %645 = vmatmul.mubr.bf16.vlgmr.msra.gmra.mrb[0].mxu0 %v1445_v32 }
  0x24   :  { %742 = vmatmul.mubr.bf16.vlgmr.msra.gmra.mrb[0].mxu1 %v1448_v34  ;;  %1382 = vmatpush3.bf16.msra.mxu0 %v1451_v36 }
  0x25   :  { %1409 = vmatpush3.bf16.msra.mxu1 %v1451_v36  ;;  %652 = vmatprep.mubr.bf16.mxu0 %v1452_v37 }
  0x26   :  { %749 = vmatprep.mubr.bf16.mxu1 %v1454_v38  ;;  %1383 = vmatprep.subr.bf16.mxu0 %v1464_v42 }
  0x27   :  { %1406 = vmatprep.subr.bf16.mxu1 %v1464_v42 }
  0x28   :  { %1384 = vmatpush3.bf16.msra.mxu0 %v1464_v42 }
  0x29   :  { %1410 = vmatpush3.bf16.msra.mxu1 %v1464_v42  ;;  %1385 = vmatprep.subr.bf16.mxu0 %v1477_v46 }
  0x2a   :  { %1407 = vmatprep.subr.bf16.mxu1 %v1477_v46 }
  0x2b   :  { %653 = vmatmul.mubr.bf16.gmra.mrb[4].mxu0 %v1456_v39 }
  0x2c   :  { %750 = vmatmul.mubr.bf16.gmra.mrb[4].mxu1 %v1457_v40  ;;  %660 = vmatprep.mubr.bf16.mxu0 %v1458_v41 }
  0x2d   :  { %757 = vmatprep.mubr.bf16.mxu1 %v1460_v43  ;;  %1386 = vmatpush3.bf16.msra.mxu0 %v1477_v46 }
  0x2e   :  { %1411 = vmatpush3.bf16.msra.mxu1 %v1477_v46  ;;  %1387 = vmatprep.subr.bf16.mxu0 %v1490_v49 }
  0x2f   :  { %1408 = vmatprep.subr.bf16.mxu1 %v1490_v49 }
  0x31   :  { %1388 = vmatpush3.bf16.msra.mxu0 %v1490_v49 }
  0x32   :  { %1412 = vmatpush3.bf16.msra.mxu1 %v1490_v49 }
  0x33   :  { %661 = vmatmul.mubr.bf16.gmra.mrb[8].mxu0 %v1462_v44 }
  0x34   :  { %758 = vmatmul.mubr.bf16.gmra.mrb[8].mxu1 %v1463_v45  ;;  %668 = vmatprep.mubr.bf16.mxu0 %v1465_v47 }
  0x35   :  { %765 = vmatprep.mubr.bf16.mxu1 %v1467_v48 }
  0x3b   :  { %669 = vmatmul.mubr.bf16.gmra.mrb[12].mxu0 %v1469_v50 }
  0x3c   :  { %766 = vmatmul.mubr.bf16.gmra.mrb[12].mxu1 %v1470_v51  ;;  %676 = vmatprep.mubr.bf16.mxu0 %v1471_v52 }
  0x3d   :  { %773 = vmatprep.mubr.bf16.mxu1 %v1473_v53 }
  0x43   :  { %677 = vmatmul.mubr.bf16.gmra.mrb[16].mxu0 %v1475_v54 }
  0x44   :  { %774 = vmatmul.mubr.bf16.gmra.mrb[16].mxu1 %v1476_v55  ;;  %684 = vmatprep.mubr.bf16.mxu0 %v1478_v56 }
  0x45   :  { %781 = vmatprep.mubr.bf16.mxu1 %v1480_v57 }
  0x4b   :  { %685 = vmatmul.mubr.bf16.gmra.mrb[20].mxu0 %v1482_v58 }
  0x4c   :  { %782 = vmatmul.mubr.bf16.gmra.mrb[20].mxu1 %v1483_v59  ;;  %692 = vmatprep.mubr.bf16.mxu0 %v1484_v60 }
  0x4d   :  { %789 = vmatprep.mubr.bf16.mxu1 %v1486_v61 }
  0x53   :  { %693 = vmatmul.mubr.bf16.gmra.mrb[24].mxu0 %v1488_v62 }
  0x54   :  { %790 = vmatmul.mubr.bf16.gmra.mrb[24].mxu1 %v1489_v63  ;;  %700 = vmatprep.mubr.bf16.mxu0 %v1491_v0 }
  0x55   :  { %797 = vmatprep.mubr.bf16.mxu1 %v1493_v1 }
  0x5b   :  { %701 = vmatmul.mubr.bf16.gmra.mrb[28].mxu0 %v1495_v2 }
  0x5c   :  { %798 = vmatmul.mubr.bf16.gmra.mrb[28].mxu1 %v1496_v3  ;;  %1389 = vmatprep.mubr.msk.bf16.mxu0 %vm587_vm0, %v1497_v4 }
  0x5d   :  { %1397 = vmatprep.mubr.msk.bf16.mxu1 %vm587_vm0, %v1498_v5 }
  0x63   :  { %1390 = vmatmul.mubr.msk.bf16.vlgmr.msra.gmra.mrb[32].mxu0 %vm587_vm0, %v1499_v6 }
  0x64   :  { %1398 = vmatmul.mubr.msk.bf16.vlgmr.msra.gmra.mrb[32].mxu1 %vm587_vm0, %v1500_v7  ;;  %1393 = vmatprep.mubr.msk.bf16.mxu0 %vm587_vm0, %v1501_v8 }
  0x65   :  { %1401 = vmatprep.mubr.msk.bf16.mxu1 %vm587_vm0, %v1502_v9 }
  0x6b   :  { %1394 = vmatmul.mubr.msk.bf16.gmra.mrb[36].mxu0 %vm587_vm0, %v1503_v10 }
  0x6c   :  { %1402 = vmatmul.mubr.msk.bf16.gmra.mrb[36].mxu1 %vm587_vm0, %v1504_v11 }
  0xf6   :  { %v1257_v12 = vpop.f32.mrb[0].mxu0 }
  0xf7   :  { %v1321_v13 = vpop.f32.mrb[0].mxu1  ;;  %v1258_v14 = vpop.f32.mrb[1].mxu0 }
  0xf8   :  { %v1259_v15 = vadd.f32 %v1258_v14, %v1257_v12  ;;  %v1322_v16 = vpop.f32.mrb[1].mxu1  ;;  %v1260_v17 = vpop.f32.mrb[2].mxu0 }
  0xf9   :  { %v1323_v18 = vadd.f32 %v1322_v16, %v1321_v13  ;;  %v1324_v19 = vpop.f32.mrb[2].mxu1  ;;  %v1261_v20 = vpop.f32.mrb[3].mxu0 }
  0xfa   :  { %v1262_v21 = vadd.f32 %v1261_v20, %v1260_v17  ;;  %v1325_v22 = vpop.f32.mrb[3].mxu1 }
  0xfb   :  { %v1326_v23 = vadd.f32 %v1325_v22, %v1324_v19  ;;  %v1761_v24 = vadd.f32 %v1323_v18, %v1259_v15 }
  0xfd   :  { %v1763_v25 = vadd.f32 %v1326_v23, %v1262_v21 }
  0xfe   :  { %v1263_v26 = vpop.f32.mrb[4].mxu0 }
  0xff   :  { %v1327_v27 = vpop.f32.mrb[4].mxu1  ;;  %v1264_v28 = vpop.f32.mrb[5].mxu0 }
 0x100   :  { %v1265_v29 = vadd.f32 %v1264_v28, %v1263_v26  ;;  %v1328_v30 = vpop.f32.mrb[5].mxu1  ;;  %v1266_v31 = vpop.f32.mrb[6].mxu0 }
 0x101   :  { %v1329_v32 = vadd.f32 %v1328_v30, %v1327_v27  ;;  %v1330_v33 = vpop.f32.mrb[6].mxu1  ;;  %v1267_v34 = vpop.f32.mrb[7].mxu0 }
 0x102   :  { %v1268_v35 = vadd.f32 %v1267_v34, %v1266_v31  ;;  %v1331_v36 = vpop.f32.mrb[7].mxu1 }
 0x103   :  { %v1332_v37 = vadd.f32 %v1331_v36, %v1330_v33  ;;  %v1765_v38 = vadd.f32 %v1329_v32, %v1265_v29 }
 0x105   :  { %v1767_v39 = vadd.f32 %v1332_v37, %v1268_v35 }
 0x106   :  { %v1269_v40 = vpop.f32.mrb[8].mxu0 }
 0x107   :  { %v1333_v41 = vpop.f32.mrb[8].mxu1  ;;  %v1270_v42 = vpop.f32.mrb[9].mxu0 }
 0x108   :  { %v1271_v43 = vadd.f32 %v1270_v42, %v1269_v40  ;;  %v1334_v44 = vpop.f32.mrb[9].mxu1  ;;  %v1272_v45 = vpop.f32.mrb[10].mxu0 }
 0x109   :  { %v1335_v46 = vadd.f32 %v1334_v44, %v1333_v41  ;;  %v1336_v47 = vpop.f32.mrb[10].mxu1  ;;  %v1273_v48 = vpop.f32.mrb[11].mxu0 }
 0x10a   :  { %v1274_v49 = vadd.f32 %v1273_v48, %v1272_v45  ;;  %v1337_v50 = vpop.f32.mrb[11].mxu1 }
 0x10b   :  { %v1338_v51 = vadd.f32 %v1337_v50, %v1336_v47  ;;  %v1769_v52 = vadd.f32 %v1335_v46, %v1271_v43 }
 0x10d   :  { %v1771_v53 = vadd.f32 %v1338_v51, %v1274_v49 }
 0x10e   :  { %v1275_v54 = vpop.f32.mrb[12].mxu0 }
 0x10f   :  { %v1339_v55 = vpop.f32.mrb[12].mxu1  ;;  %v1276_v56 = vpop.f32.mrb[13].mxu0 }
 0x110   :  { %v1277_v57 = vadd.f32 %v1276_v56, %v1275_v54  ;;  %v1340_v58 = vpop.f32.mrb[13].mxu1  ;;  %v1278_v59 = vpop.f32.mrb[14].mxu0 }
 0x111   :  { %v1341_v60 = vadd.f32 %v1340_v58, %v1339_v55  ;;  %v1342_v61 = vpop.f32.mrb[14].mxu1  ;;  %v1279_v62 = vpop.f32.mrb[15].mxu0 }
 0x112   :  { %v1280_v63 = vadd.f32 %v1279_v62, %v1278_v59  ;;  %v1343_v0 = vpop.f32.mrb[15].mxu1 }
 0x113   :  { %v1344_v1 = vadd.f32 %v1343_v0, %v1342_v61  ;;  %v1773_v2 = vadd.f32 %v1341_v60, %v1277_v57 }
 0x115   :  { %v1775_v3 = vadd.f32 %v1344_v1, %v1280_v63 }
 0x116   :  { %v1281_v4 = vpop.f32.mrb[16].mxu0 }
 0x117   :  { %v1345_v5 = vpop.f32.mrb[16].mxu1  ;;  %v1282_v6 = vpop.f32.mrb[17].mxu0 }
 0x118   :  { %v1283_v7 = vadd.f32 %v1282_v6, %v1281_v4  ;;  %v1346_v8 = vpop.f32.mrb[17].mxu1  ;;  %v1284_v9 = vpop.f32.mrb[18].mxu0 }
 0x119   :  { %v1347_v10 = vadd.f32 %v1346_v8, %v1345_v5  ;;  %v1348_v11 = vpop.f32.mrb[18].mxu1  ;;  %v1285_v12 = vpop.f32.mrb[19].mxu0  ;;  %v1786_v5 = vld [vmem:[%s1841_s2] ss:$0 sm:$0xff] }
 0x11a   :  { %v1286_v13 = vadd.f32 %v1285_v12, %v1284_v9  ;;  %v1349_v14 = vpop.f32.mrb[19].mxu1 }
 0x11b   :  { %v1350_v15 = vadd.f32 %v1349_v14, %v1348_v11  ;;  %v776_v16 = vadd.f32 %v1347_v10, %v1283_v7 }
 0x11d   :  { %v1777_v17 = vadd.f32 %v1350_v15, %v1286_v13 }
 0x11e   :  { %v1287_v18 = vpop.f32.mrb[20].mxu0 }
 0x11f   :  { %v1351_v19 = vpop.f32.mrb[20].mxu1  ;;  %v1288_v20 = vpop.f32.mrb[21].mxu0 }
 0x120   :  { %v1289_v21 = vadd.f32 %v1288_v20, %v1287_v18  ;;  %v1352_v22 = vpop.f32.mrb[21].mxu1  ;;  %v1290_v23 = vpop.f32.mrb[22].mxu0 }
 0x121   :  { %v1353_v26 = vadd.f32 %v1352_v22, %v1351_v19  ;;  %v1354_v27 = vpop.f32.mrb[22].mxu1  ;;  %v1291_v28 = vpop.f32.mrb[23].mxu0 }
 0x122   :  { %v1292_v29 = vadd.f32 %v1291_v28, %v1290_v23  ;;  %v1355_v30 = vpop.f32.mrb[23].mxu1 }
 0x123   :  { %v1356_v31 = vadd.f32 %v1355_v30, %v1354_v27  ;;  %v784_v32 = vadd.f32 %v1353_v26, %v1289_v21 }
 0x125   :  { %v787_v33 = vadd.f32 %v1356_v31, %v1292_v29 }
 0x126   :  { %v1293_v34 = vpop.f32.mrb[24].mxu0 }
 0x127   :  { %v1357_v35 = vpop.f32.mrb[24].mxu1  ;;  %v1294_v36 = vpop.f32.mrb[25].mxu0 }
 0x128   :  { %v1295_v37 = vadd.f32 %v1294_v36, %v1293_v34  ;;  %v1358_v40 = vpop.f32.mrb[25].mxu1  ;;  %v1296_v41 = vpop.f32.mrb[26].mxu0 }
 0x129   :  { %v1359_v42 = vadd.f32 %v1358_v40, %v1357_v35  ;;  %v1360_v43 = vpop.f32.mrb[26].mxu1  ;;  %v1297_v44 = vpop.f32.mrb[27].mxu0 }
 0x12a   :  { %v1298_v45 = vadd.f32 %v1297_v44, %v1296_v41  ;;  %v1361_v46 = vpop.f32.mrb[27].mxu1 }
 0x12b   :  { %v1362_v47 = vadd.f32 %v1361_v46, %v1360_v43  ;;  %v1779_v48 = vadd.f32 %v1359_v42, %v1295_v37 }
 0x12d   :  { %v1781_v49 = vadd.f32 %v1362_v47, %v1298_v45 }
 0x12e   :  { %v1299_v50 = vpop.f32.mrb[28].mxu0 }
 0x12f   :  { %v1363_v51 = vpop.f32.mrb[28].mxu1  ;;  %v1300_v54 = vpop.f32.mrb[29].mxu0 }
 0x130   :  { %v1301_v55 = vadd.f32 %v1300_v54, %v1299_v50  ;;  %v1364_v56 = vpop.f32.mrb[29].mxu1  ;;  %v1302_v57 = vpop.f32.mrb[30].mxu0 }
 0x131   :  { %v1365_v58 = vadd.f32 %v1364_v56, %v1363_v51  ;;  %v1366_v59 = vpop.f32.mrb[30].mxu1  ;;  %v1303_v60 = vpop.f32.mrb[31].mxu0 }
 0x132   :  { %v1304_v61 = vadd.f32 %v1303_v60, %v1302_v57  ;;  %v1367_v62 = vpop.f32.mrb[31].mxu1 }
 0x133   :  { %v1368_v63 = vadd.f32 %v1367_v62, %v1366_v59  ;;  %v800_v0 = vadd.f32 %v1365_v58, %v1301_v55 }
 0x135   :  { %v803_v1 = vadd.f32 %v1368_v63, %v1304_v61 }
 0x136   :  { %v1391_v4 = vpop.f32.mrb[32].mxu0 }
 0x137   :  { %v849_v6 = vadd.f32 %v1391_v4, %v1765_v38  ;;  %v1399_v7 = vpop.f32.mrb[32].mxu1  ;;  %v840_v8 = vpop.f32.mrb[33].mxu0 }
 0x138   :  { %v881_v9 = vadd.f32 %v1399_v7, %v784_v32  ;;  %v841_v10 = vadd.f32 %v840_v8, %v1761_v24  ;;  %v872_v11 = vpop.f32.mrb[33].mxu1  ;;  %v1392_v12 = vpop.f32.mrb[34].mxu0 }
 0x139   :  { %v963_v13 = vadd.f32 %v1786_v5, %v849_v6  ;;  %v873_v14 = vadd.f32 %v872_v11, %v776_v16  ;;  %v852_v15 = vadd.f32 %v1392_v12, %v1767_v39  ;;  %v1400_v18 = vpop.f32.mrb[34].mxu1  ;;  %v843_v19 = vpop.f32.mrb[35].mxu0 }
 0x13a   :  { %v971_v20 = vadd.f32 %v1786_v5, %v881_v9  ;;  %v961_v21 = vadd.f32 %v1786_v5, %v841_v10  ;;  %v884_v22 = vadd.f32 %v1400_v18, %v787_v33  ;;  %v844_v38 = vadd.f32 %v843_v19, %v1763_v25  ;;  %v875_v23 = vpop.f32.mrb[35].mxu1 }
 0x13b   :  { %v969_v26 = vadd.f32 %v1786_v5, %v873_v14  ;;  %v964_v24 = vadd.f32 %v1786_v5, %v852_v15  ;;  %v876_v27 = vadd.f32 %v875_v23, %v1777_v17  ;;  %v979_v28 = vmax.f32 %v963_v13, 0.0 }
 0x13c   :  { %v972_v16 = vadd.f32 %v1786_v5, %v884_v22  ;;  %v962_v39 = vadd.f32 %v1786_v5, %v844_v38  ;;  %v987_v31 = vmax.f32 %v971_v20, 0.0  ;;  %v977_v32 = vmax.f32 %v961_v21, 0.0 }
 0x13d   :  { %v980_v29 = vmax.f32 %v964_v24, 0.0  ;;  %v970_v30 = vadd.f32 %v1786_v5, %v876_v27  ;;  %v985_v35 = vmax.f32 %v969_v26, 0.0 }
 0x13e   :  { %v988_v33 = vmax.f32 %v972_v16, 0.0  ;;  %v978_v34 = vmax.f32 %v962_v39, 0.0  ;;  %v1395_v25 = vpop.f32.mrb[36].mxu0 }
 0x13f   :  { %v1202_v36 = vpack.c.bf16 %v980_v29, %v979_v28  ;;  %v986_v37 = vmax.f32 %v970_v30, 0.0  ;;  %v865_v40 = vadd.f32 %v1395_v25, %v1773_v2  ;;  %v1403_v41 = vpop.f32.mrb[36].mxu1  ;;  %v856_v17 = vpop.f32.mrb[37].mxu0 }
 0x140   :  { %v1222_v42 = vpack.c.bf16 %v988_v33, %v987_v31  ;;  %v1197_v43 = vpack.c.bf16 %v978_v34, %v977_v32  ;;  %v897_v44 = vadd.f32 %v1403_v41, %v800_v0  ;;  %v857_v45 = vadd.f32 %v856_v17, %v1769_v52  ;;  %v888_v46 = vpop.f32.mrb[37].mxu1  ;;  %v1396_v47 = vpop.f32.mrb[38].mxu0 }
 0x141   :  { %1234 = vst [vmem:[%s1842_s3 + $0x8] sm:$0xff] %v1202_v36   ;;  %v1217_v50 = vpack.c.bf16 %v986_v37, %v985_v35  ;;  %v967_v51 = vadd.f32 %v1786_v5, %v865_v40  ;;  %v889_v54 = vadd.f32 %v888_v46, %v1779_v48  ;;  %v868_v2 = vadd.f32 %v1396_v47, %v1775_v3  ;;  %v1404_v55 = vpop.f32.mrb[38].mxu1  ;;  %v859_v56 = vpop.f32.mrb[39].mxu0 }
 0x142   :  { %1238 = vst [vmem:[%s1842_s3 + $0x28] sm:$0xff] %v1222_v42   ;;  %1198 = vst [vmem:[%s1842_s3] sm:$0xff] %v1197_v43   ;;  %v975_v52 = vadd.f32 %v1786_v5, %v897_v44  ;;  %v965_v57 = vadd.f32 %v1786_v5, %v857_v45  ;;  %v900_v58 = vadd.f32 %v1404_v55, %v803_v1  ;;  %v891_v48 = vpop.f32.mrb[39].mxu1 }
 0x143   :  { %v860_v59 = vadd.f32 %v859_v56, %v1771_v53  ;;  %1237 = vst [vmem:[%s1842_s3 + $0x20] sm:$0xff] %v1217_v50   ;;  %v973_v3 = vadd.f32 %v1786_v5, %v889_v54  ;;  %v968_v60 = vadd.f32 %v1786_v5, %v868_v2  ;;  %v892_v61 = vadd.f32 %v891_v48, %v1781_v49 }
 0x144   :  { %v976_v62 = vadd.f32 %v1786_v5, %v900_v58  ;;  %v983_v0 = vmax.f32 %v967_v51, 0.0  ;;  %v991_v53 = vmax.f32 %v975_v52, 0.0  ;;  %v981_v6 = vmax.f32 %v965_v57, 0.0 }
 0x145   :  { %v966_v63 = vadd.f32 %v1786_v5, %v860_v59  ;;  %v984_v4 = vmax.f32 %v968_v60, 0.0  ;;  %v974_v1 = vadd.f32 %v1786_v5, %v892_v61  ;;  %v989_v9 = vmax.f32 %v973_v3, 0.0 }
 0x146   :  { %v992_v7 = vmax.f32 %v976_v62, 0.0 }
 0x147   :  { %v982_v8 = vmax.f32 %v966_v63, 0.0  ;;  %v1212_v10 = vpack.c.bf16 %v984_v4, %v983_v0  ;;  %v990_v11 = vmax.f32 %v974_v1, 0.0 }
 0x148   :  { %v1232_v12 = vpack.c.bf16 %v992_v7, %v991_v53 }
 0x149   :  { %v1207_v13 = vpack.c.bf16 %v982_v8, %v981_v6  ;;  %1236 = vst [vmem:[%s1842_s3 + $0x18] sm:$0xff] %v1212_v10   ;;  %v1227_v49 = vpack.c.bf16 %v990_v11, %v989_v9 }
 0x14a   :  { %1240 = vst [vmem:[%s1842_s3 + $0x38] sm:$0xff] %v1232_v12  }
 0x14b   :  { %1235 = vst [vmem:[%s1842_s3 + $0x10] sm:$0xff] %v1207_v13   ;;  %1239 = vst [vmem:[%s1842_s3 + $0x30] sm:$0xff] %v1227_v49  }

// kernel: forward.29
= control target key start
LH: loop header
LB: loop body
LE: loop exit
PB: predicated region body
PF: predicated region fallthrough
CT: control target
= control target key end

     0   :  { %s1361_s15 = smov 0   ;;  %s1363_s16 = smov 0   ;;  %s1535_s0 = inlined_call_operand.vmem [shape: bf16[128,1152], index: 0, kind: input, shape index: {}]   ;;  %s1536_s1 = inlined_call_operand.vmem [shape: bf16[1152,128], index: 1, kind: input, shape index: {}]   ;;  %s1537_s2 = inlined_call_operand.vmem [shape: f32[1,128], index: 2, kind: input, shape index: {}]   ;;  %s1538_s3 = inlined_call_operand.vmem [shape: bf16[128,128], index: 3, kind: input, shape index: {}]   ;;  %s1539_s4 = inlined_call_operand.vmem [shape: bf16[128,128], index: 4, kind: output, shape index: {}]  }
   0x1   :  { %s1365_s17 = smov 0   ;;  %s1367_s18 = smov 0  }
   0x2   :  { %s1369_s19 = smov 0  }
   0x3 LB: > { %s26_s20 = sadd.s32 1, %s1329_s18  ;;  %p49_p1 = scmp.ne.s32.totalorder %s1321_s16, %s1317_s15  ;;  %s1333_s19 = sphi %s1369_s19, %s14_s19   ;;  %s1329_s18 = sphi %s1367_s18, %s1543_s18   ;;  %s1325_s17 = sphi %s1365_s17, %s1542_s17   ;;  %s1321_s16 = sphi %s1363_s16, %s1541_s16   ;;  %s1317_s15 = sphi %s1361_s15, %s1540_s15  }
   0x4   : > { %p27_p0 = scmp.ge.s32.totalorder %s26_s20, 9  ;;  %p50_p2 = scmp.eq.s32.totalorder %s1333_s19, 0 }
   0x5   : > { %s42_s22 = sadd.s32 1, %s1321_s16  ;;  %p1026_p5 = scmp.ge.s32.totalorder %s1333_s19, 9 }
   0x6   : > { %s1545_s20 = smov (%p27_p0, %s26_s20), 0  ;;  %p51_p3 = por %p50_p2, %p49_p1 }
   0x7   : > { %s38_s21 = ssub.s32 %s1329_s18, %s1545_s20  ;;  %203 = sbr.rel (%p1026_p5) target bundleno = 28 (0x1c), region = 24 }
   0x8   : > { %p40_p4 = scmp.eq.s32.totalorder %s38_s21, 0 }
   0xa   : > { %s1396_s23 = scalar_select %p40_p4, %s1321_s16, %s42_s22  }
   0xe   : > { %206 = sbr.rel (!%p51_p3) target bundleno = 28 (0x1c), region = 28  ;;  %s208_s24 = sand.u32 (%p51_p3), 1, %s1321_s16  }
   0xf   : > { %s1028_s25 = sshll.u32 (%p51_p3), %s1329_s18, 2  ;;  %s1027_s26 = sshll.u32 (%p51_p3), %s208_s24, 6 }
  0x10   : > { %s1404_s29 = scalar_lea.vmem (%p51_p3), %s1535_s0, %s1028_s25  ;;  %s210_s30 = scalar_lea.vmem (%p51_p3), [#allocation3], %s1027_s26 }
  0x11   : > { %v231_v0 = vld [vmem:[%s1404_s29] sm:$0xf] (%p51_p3)  ;;  %v233_v1 = vld [vmem:[%s1404_s29 + $0x24] sm:$0xf] (%p51_p3)  ;;  %v235_v2 = vld [vmem:[%s1404_s29 + $0x48] sm:$0xf] (%p51_p3) }
  0x12   : > { %232 = vst [vmem:[%s210_s30] sm:$0xf] (%p51_p3), %v231_v0  ;;  %234 = vst [vmem:[%s210_s30 + $0x4] sm:$0xf] (%p51_p3), %v233_v1  ;;  %v237_v3 = vld [vmem:[%s1404_s29 + $0x6c] sm:$0xf] (%p51_p3) }
  0x13   : > { %v239_v4 = vld [vmem:[%s1404_s29 + $0x90] sm:$0xf] (%p51_p3)  ;;  %236 = vst [vmem:[%s210_s30 + $0x8] sm:$0xf] (%p51_p3), %v235_v2  ;;  %238 = vst [vmem:[%s210_s30 + $0xc] sm:$0xf] (%p51_p3), %v237_v3 }
  0x14   : > { %240 = vst [vmem:[%s210_s30 + $0x10] sm:$0xf] (%p51_p3), %v239_v4  ;;  %v241_v5 = vld [vmem:[%s1404_s29 + $0xb4] sm:$0xf] (%p51_p3)  ;;  %v243_v6 = vld [vmem:[%s1404_s29 + $0xd8] sm:$0xf] (%p51_p3) }
  0x15   : > { %v245_v7 = vld [vmem:[%s1404_s29 + $0xfc] sm:$0xf]  ;;  %242 = vst [vmem:[%s210_s30 + $0x14] sm:$0xf] %v241_v5  ;;  %244 = vst [vmem:[%s210_s30 + $0x18] sm:$0xf] %v243_v6 }
  0x16   : > { %246 = vst [vmem:[%s210_s30 + $0x1c] sm:$0xf] %v245_v7  ;;  %v247_v8 = vld [vmem:[%s1404_s29 + $0x120] sm:$0xf]  ;;  %v249_v9 = vld [vmem:[%s1404_s29 + $0x144] sm:$0xf] }
  0x17   : > { %v251_v10 = vld [vmem:[%s1404_s29 + $0x168] sm:$0xf]  ;;  %248 = vst [vmem:[%s210_s30 + $0x20] sm:$0xf] %v247_v8  ;;  %250 = vst [vmem:[%s210_s30 + $0x24] sm:$0xf] %v249_v9 }
  0x18   : > { %252 = vst [vmem:[%s210_s30 + $0x28] sm:$0xf] %v251_v10  ;;  %v253_v11 = vld [vmem:[%s1404_s29 + $0x18c] sm:$0xf]  ;;  %v255_v12 = vld [vmem:[%s1404_s29 + $0x1b0] sm:$0xf] }
  0x19   : > { %v257_v13 = vld [vmem:[%s1404_s29 + $0x1d4] sm:$0xf]  ;;  %254 = vst [vmem:[%s210_s30 + $0x2c] sm:$0xf] %v253_v11  ;;  %256 = vst [vmem:[%s210_s30 + $0x30] sm:$0xf] %v255_v12 }
  0x1a   : > { %258 = vst [vmem:[%s210_s30 + $0x34] sm:$0xf] %v257_v13  ;;  %v259_v14 = vld [vmem:[%s1404_s29 + $0x1f8] sm:$0xf]  ;;  %v261_v15 = vld [vmem:[%s1404_s29 + $0x21c] sm:$0xf] }
  0x1b   : > { %260 = vst [vmem:[%s210_s30 + $0x38] sm:$0xf] %v259_v14  ;;  %262 = vst [vmem:[%s210_s30 + $0x3c] sm:$0xf] %v261_v15 }
  0x1c PF: > { %p1029_p6 = scmp.ge.s32.totalorder %s1333_s19, 1  ;;  %p328_p7 = scmp.lt.s32.totalorder %s1333_s19, 10 }
  0x1e   : > { %p329_p8 = pnand %p1029_p6, %p328_p7 }
  0x1f   : > { %s335_s5 = sand.u32 (!%p329_p8), 1, %s1317_s15   ;;  %s1031_s6 = sshll.u32 (!%p329_p8), %s1325_s17, 4 }
  0x20   : > { %332 = sbr.rel (%p329_p8) target bundleno = 328 (0x148), region = 73  ;;  %s1030_s7 = sshll.u32 (!%p329_p8), %s335_s5, 6 }
  0x21   : > { %p384_p9 = scmp.lt.s32.totalorder (!%p329_p8), %s1031_s6, 143  ;;  %s1431_s12 = scalar_lea.vmem (!%p329_p8), [#allocation3], %s1030_s7 }
  0x22   : > { %p1033_p10 = scmp.ne.s32.totalorder (!%p329_p8), %s1325_s17, 0 }
  0x27   : > { %s1547_s6 = smov (!%p384_p9, %s1031_s6), 143  ;;  %417 = sbr.rel (%p1033_p10) target bundleno = 49 (0x31), region = 81 }
  0x28   : > { %s1032_s8 = sshll.u32 %s1547_s6, 2  ;;  %v1335_v16 = vmov (!%p1033_p10), 0.0  }
  0x29   : > { %s1429_s11 = scalar_lea.vmem %s1536_s1, %s1032_s8  ;;  %418 = vst [vmem:[#allocation2] sm:$0xff] (!%p1033_p10), %v1335_v16  ;;  %419 = vst [vmem:[#allocation2 + $0x8] sm:$0xff] (!%p1033_p10), %v1335_v16 }
  0x2a   : > { %420 = vst [vmem:[#allocation2 + $0x10] sm:$0xff] (!%p1033_p10), %v1335_v16  ;;  %421 = vst [vmem:[#allocation2 + $0x18] sm:$0xff] (!%p1033_p10), %v1335_v16 }
  0x2b   : > { %422 = vst [vmem:[#allocation2 + $0x20] sm:$0xff] (!%p1033_p10), %v1335_v16  ;;  %423 = vst [vmem:[#allocation2 + $0x28] sm:$0xff] (!%p1033_p10), %v1335_v16 }
  0x2c   : > { %424 = vst [vmem:[#allocation2 + $0x30] sm:$0xff] (!%p1033_p10), %v1335_v16  ;;  %425 = vst [vmem:[#allocation2 + $0x38] sm:$0xff] (!%p1033_p10), %v1335_v16 }
  0x2d   : > { %426 = vst [vmem:[#allocation2 + $0x40] sm:$0xff] (!%p1033_p10), %v1335_v16  ;;  %427 = vst [vmem:[#allocation2 + $0x48] sm:$0xff] (!%p1033_p10), %v1335_v16 }
  0x2e   : > { %428 = vst [vmem:[#allocation2 + $0x50] sm:$0xff] %v1335_v16  ;;  %429 = vst [vmem:[#allocation2 + $0x58] sm:$0xff] %v1335_v16 }
  0x2f   : > { %430 = vst [vmem:[#allocation2 + $0x60] sm:$0xff] %v1335_v16  ;;  %431 = vst [vmem:[#allocation2 + $0x68] sm:$0xff] %v1335_v16 }
  0x30   : > { %432 = vst [vmem:[#allocation2 + $0x70] sm:$0xff] %v1335_v16  ;;  %433 = vst [vmem:[#allocation2 + $0x78] sm:$0xff] %v1335_v16 }
  0x31 PF: > { %v1279_v17 = vld [vmem:[%s1429_s11] sm:$0xff]   ;;  %v1280_v18 = vld [vmem:[%s1429_s11 + $0x8] sm:$0xff]   ;;  %v1281_v19 = vld [vmem:[%s1429_s11 + $0x10] sm:$0xff]   ;;  %p1050_p11 = scmp.ne.s32.totalorder %s1325_s17, 8 }
  0x32   : > { %1190 = vmatprep.subr.bf16.mxu0 %v1279_v17  ;;  %1222 = vmatprep.subr.bf16.mxu1 %v1279_v17  ;;  %v1282_v20 = vld [vmem:[%s1429_s11 + $0x18] sm:$0xff]   ;;  %v1287_v21 = vld [vmem:[%s1431_s12] sm:$0xff]   ;;  %v1284_v24 = vld [vmem:[%s1429_s11 + $0x28] sm:$0xff]  }
  0x33   : > { %1191 = vmatpush3.bf16.msra.mxu0 %v1279_v17  ;;  %1230 = vmatpush3.bf16.msra.mxu1 %v1279_v17  ;;  %v1288_v22 = vld [vmem:[%s1431_s12 + $0x20] sm:$0xff]   ;;  %v1285_v25 = vld [vmem:[%s1429_s11 + $0x30] sm:$0xff]   ;;  %v1286_v26 = vld [vmem:[%s1429_s11 + $0x38] sm:$0xff]  }
  0x34   : > { %1192 = vmatprep.subr.bf16.mxu0 %v1280_v18  ;;  %1223 = vmatprep.subr.bf16.mxu1 %v1280_v18  ;;  %v1283_v23 = vld [vmem:[%s1429_s11 + $0x20] sm:$0xff]   ;;  %v1289_v27 = vld [vmem:[%s1431_s12 + $0x8] sm:$0xff]   ;;  %v1291_v29 = vld [vmem:[%s1431_s12 + $0x10] sm:$0xff]  }
  0x35   : > { %1206 = vmatprep.mubr.bf16.mxu0 %v1287_v21  ;;  %1214 = vmatprep.mubr.bf16.mxu1 %v1288_v22  ;;  %v1290_v28 = vld [vmem:[%s1431_s12 + $0x28] sm:$0xff]   ;;  %v1292_v30 = vld [vmem:[%s1431_s12 + $0x30] sm:$0xff]   ;;  %v1293_v31 = vld [vmem:[%s1431_s12 + $0x18] sm:$0xff]  }
  0x36   : > { %v1294_v32 = vld [vmem:[%s1431_s12 + $0x38] sm:$0xff]   ;;  %v436_v33 = vld [vmem:[#allocation2 + $0x10] sm:$0xff]  ;;  %v434_v35 = vld [vmem:[#allocation2] sm:$0xff] }
  0x37   : > { %1193 = vmatpush3.bf16.msra.mxu0 %v1280_v18  ;;  %1231 = vmatpush3.bf16.msra.mxu1 %v1280_v18  ;;  %v444_v34 = vld [vmem:[#allocation2 + $0x50] sm:$0xff]  ;;  %v442_v36 = vld [vmem:[#allocation2 + $0x40] sm:$0xff]  ;;  %v437_v39 = vld [vmem:[#allocation2 + $0x18] sm:$0xff] }
  0x38   : > { %1194 = vmatprep.subr.bf16.mxu0 %v1281_v19  ;;  %1224 = vmatprep.subr.bf16.mxu1 %v1281_v19  ;;  %v445_v40 = vld [vmem:[#allocation2 + $0x58] sm:$0xff]  ;;  %v435_v45 = vld [vmem:[#allocation2 + $0x8] sm:$0xff]  ;;  %v440_v57 = vld [vmem:[#allocation2 + $0x30] sm:$0xff] }
  0x39   : > { %v443_v46 = vld [vmem:[#allocation2 + $0x48] sm:$0xff]  ;;  %v448_v58 = vld [vmem:[#allocation2 + $0x70] sm:$0xff]  ;;  %v438_v59 = vld [vmem:[#allocation2 + $0x20] sm:$0xff] }
  0x3a   : > { %v446_v60 = vld [vmem:[#allocation2 + $0x60] sm:$0xff]  ;;  %v441_v63 = vld [vmem:[#allocation2 + $0x38] sm:$0xff]  ;;  %v439_v5 = vld [vmem:[#allocation2 + $0x28] sm:$0xff] }
  0x3b   : > { %1195 = vmatpush3.bf16.msra.mxu0 %v1281_v19  ;;  %1232 = vmatpush3.bf16.msra.mxu1 %v1281_v19  ;;  %v449_v0 = vld [vmem:[#allocation2 + $0x78] sm:$0xff]  ;;  %v447_v6 = vld [vmem:[#allocation2 + $0x68] sm:$0xff]  ;;  %v1454_v19 = vld [vmem:[%s1537_s2] ss:$0 sm:$0xff] (!%p1050_p11) }
  0x3c   : > { %1196 = vmatprep.subr.bf16.mxu0 %v1282_v20  ;;  %1225 = vmatprep.subr.bf16.mxu1 %v1282_v20  ;;  %v1089_v22 = vld [vmem:[%s1538_s3] sm:$0xff] (!%p1050_p11)  }
  0x3f   : > { %1197 = vmatpush3.bf16.msra.mxu0 %v1282_v20  ;;  %1233 = vmatpush3.bf16.msra.mxu1 %v1282_v20 }
  0x40   : > { %1198 = vmatprep.subr.bf16.mxu0 %v1283_v23  ;;  %1226 = vmatprep.subr.bf16.mxu1 %v1283_v23 }
  0x43   : > { %1199 = vmatpush3.bf16.msra.mxu0 %v1283_v23  ;;  %1234 = vmatpush3.bf16.msra.mxu1 %v1283_v23 }
  0x44   : > { %1200 = vmatprep.subr.bf16.mxu0 %v1284_v24  ;;  %1227 = vmatprep.subr.bf16.mxu1 %v1284_v24 }
  0x47   : > { %1201 = vmatpush3.bf16.msra.mxu0 %v1284_v24  ;;  %1235 = vmatpush3.bf16.msra.mxu1 %v1284_v24 }
  0x48   : > { %1202 = vmatprep.subr.bf16.mxu0 %v1285_v25  ;;  %1228 = vmatprep.subr.bf16.mxu1 %v1285_v25 }
  0x4b   : > { %1203 = vmatpush3.bf16.msra.mxu0 %v1285_v25  ;;  %1236 = vmatpush3.bf16.msra.mxu1 %v1285_v25  ;;  %v1090_v25 = vunpack.c.l.bf16 (!%p1050_p11), %v1089_v22 }
  0x4c   : > { %1204 = vmatprep.subr.bf16.mxu0 %v1286_v26  ;;  %1229 = vmatprep.subr.bf16.mxu1 %v1286_v26 }
  0x4f   : > { %1205 = vmatpush3.bf16.msra.mxu0 %v1286_v26  ;;  %1237 = vmatpush3.bf16.msra.mxu1 %v1286_v26  ;;  %v1091_v26 = vunpack.c.h.bf16 (!%p1050_p11), %v1089_v22 }
  0x52   : > { %1207 = vmatmul.mubr.bf16.vlgmr.msra.gmra.mrb[0].mxu0 %v1289_v27  ;;  %1215 = vmatmul.mubr.bf16.vlgmr.msra.gmra.mrb[0].mxu1 %v1290_v28 }
  0x53   : > { %1210 = vmatprep.mubr.bf16.mxu0 %v1291_v29  ;;  %1218 = vmatprep.mubr.bf16.mxu1 %v1292_v30  ;;  %v1160_v29 = vld [vmem:[%s1538_s3 + $0x8] sm:$0xff] (!%p1050_p11)  }
  0x5a   : > { %1211 = vmatmul.mubr.bf16.gmra.mrb[4].mxu0 %v1293_v31  ;;  %1219 = vmatmul.mubr.bf16.gmra.mrb[4].mxu1 %v1294_v32  ;;  %v1094_v32 = vunpack.c.l.bf16 (!%p1050_p11), %v1160_v29 }
 0x125   : > { %v1208_v37 = vpop.f32.mrb[0].mxu0  ;;  %v1216_v38 = vpop.f32.mrb[0].mxu1 }
 0x126   : > { %v677_v41 = vadd.f32 %v1208_v37, %v436_v33  ;;  %v685_v42 = vadd.f32 %v1216_v38, %v444_v34  ;;  %v612_v43 = vpop.f32.mrb[1].mxu0  ;;  %v644_v44 = vpop.f32.mrb[1].mxu1  ;;  %v1095_v33 = vunpack.c.h.bf16 (!%p1050_p11), %v1160_v29 }
 0x127   : > { %v675_v47 = vadd.f32 %v612_v43, %v434_v35  ;;  %v683_v48 = vadd.f32 %v644_v44, %v442_v36  ;;  %v1209_v49 = vpop.f32.mrb[2].mxu0  ;;  %v1217_v50 = vpop.f32.mrb[2].mxu1  ;;  %v1161_v36 = vld [vmem:[%s1538_s3 + $0x10] sm:$0xff] (!%p1050_p11)   ;;  %v1162_v43 = vld [vmem:[%s1538_s3 + $0x18] sm:$0xff] (!%p1050_p11)  }
 0x128   : > { %693 = vst [vmem:[#allocation2 + $0x10] sm:$0xff] %v677_v41  ;;  %701 = vst [vmem:[#allocation2 + $0x50] sm:$0xff] %v685_v42  ;;  %v678_v51 = vadd.f32 %v1209_v49, %v437_v39  ;;  %v686_v52 = vadd.f32 %v1217_v50, %v445_v40  ;;  %v615_v53 = vpop.f32.mrb[3].mxu0  ;;  %v647_v54 = vpop.f32.mrb[3].mxu1  ;;  %v1098_v41 = vunpack.c.l.bf16 (!%p1050_p11), %v1161_v36  ;;  %v1099_v42 = vunpack.c.h.bf16 (!%p1050_p11), %v1161_v36 }
 0x129   : > { %691 = vst [vmem:[#allocation2] sm:$0xff] %v675_v47  ;;  %699 = vst [vmem:[#allocation2 + $0x40] sm:$0xff] %v683_v48  ;;  %v676_v55 = vadd.f32 %v615_v53, %v435_v45  ;;  %v684_v56 = vadd.f32 %v647_v54, %v443_v46 }
 0x12a   : > { %694 = vst [vmem:[#allocation2 + $0x18] sm:$0xff] %v678_v51  ;;  %702 = vst [vmem:[#allocation2 + $0x58] sm:$0xff] %v686_v52 }
 0x12b   : > { %692 = vst [vmem:[#allocation2 + $0x8] sm:$0xff] %v676_v55  ;;  %700 = vst [vmem:[#allocation2 + $0x48] sm:$0xff] %v684_v56  ;;  %v1102_v56 = vunpack.c.l.bf16 (!%p1050_p11), %v1162_v43 }
 0x12d   : > { %v1212_v61 = vpop.f32.mrb[4].mxu0  ;;  %v1220_v62 = vpop.f32.mrb[4].mxu1  ;;  %710 = sbr.rel (%p1050_p11) target bundleno = 328 (0x148), region = 85 }
 0x12e   : > { %v681_v1 = vadd.f32 %v1212_v61, %v440_v57  ;;  %v689_v2 = vadd.f32 %v1220_v62, %v448_v58  ;;  %v628_v3 = vpop.f32.mrb[5].mxu0  ;;  %v660_v4 = vpop.f32.mrb[5].mxu1  ;;  %v1103_v57 = vunpack.c.h.bf16 (!%p1050_p11), %v1162_v43  ;;  %v1163_v58 = vld [vmem:[%s1538_s3 + $0x20] sm:$0xff] (!%p1050_p11)  }
 0x12f   : > { %v679_v7 = vadd.f32 %v628_v3, %v438_v59  ;;  %v687_v8 = vadd.f32 %v660_v4, %v446_v60  ;;  %v1213_v9 = vpop.f32.mrb[6].mxu0  ;;  %v1221_v10 = vpop.f32.mrb[6].mxu1  ;;  %v713_v23 = vld [vmem:[#allocation2 + $0x10] sm:$0xff] (!%p1050_p11) }
 0x130   : > { %697 = vst [vmem:[#allocation2 + $0x30] sm:$0xff] %v681_v1  ;;  %705 = vst [vmem:[#allocation2 + $0x70] sm:$0xff] %v689_v2  ;;  %v682_v11 = vadd.f32 %v1213_v9, %v441_v63  ;;  %v690_v12 = vadd.f32 %v1221_v10, %v449_v0  ;;  %v631_v13 = vpop.f32.mrb[7].mxu0  ;;  %v663_v14 = vpop.f32.mrb[7].mxu1  ;;  %v711_v17 = vld [vmem:[#allocation2] sm:$0xff] (!%p1050_p11)  ;;  %v736_v27 = vadd.f32 (!%p1050_p11), %v1454_v19, %v713_v23  ;;  %v721_v59 = vld [vmem:[#allocation2 + $0x50] sm:$0xff] (!%p1050_p11)  ;;  %v1107_v9 = vunpack.c.h.bf16 (!%p1050_p11), %v1163_v58 }
 0x131   : > { %695 = vst [vmem:[#allocation2 + $0x20] sm:$0xff] %v679_v7  ;;  %703 = vst [vmem:[#allocation2 + $0x60] sm:$0xff] %v687_v8  ;;  %v680_v15 = vadd.f32 %v631_v13, %v439_v5  ;;  %v688_v16 = vadd.f32 %v663_v14, %v447_v6  ;;  %v734_v20 = vadd.f32 (!%p1050_p11), %v1454_v19, %v711_v17  ;;  %v714_v24 = vld [vmem:[#allocation2 + $0x18] sm:$0xff] (!%p1050_p11)  ;;  %v719_v48 = vld [vmem:[#allocation2 + $0x40] sm:$0xff] (!%p1050_p11)  ;;  %v1106_v8 = vunpack.c.l.bf16 (!%p1050_p11), %v1163_v58 }
 0x132   : > { %698 = vst [vmem:[#allocation2 + $0x38] sm:$0xff] %v682_v11  ;;  %706 = vst [vmem:[#allocation2 + $0x78] sm:$0xff] %v690_v12  ;;  %v712_v18 = vld [vmem:[#allocation2 + $0x8] sm:$0xff] (!%p1050_p11)  ;;  %v737_v28 = vadd.f32 (!%p1050_p11), %v1454_v19, %v714_v24  ;;  %v784_v44 = vadd.f32 (!%p1050_p11), %v1094_v32, %v736_v27  ;;  %v742_v63 = vadd.f32 (!%p1050_p11), %v1454_v19, %v719_v48  ;;  %v722_v0 = vld [vmem:[#allocation2 + $0x58] sm:$0xff] (!%p1050_p11) }
 0x133   : > { %696 = vst [vmem:[#allocation2 + $0x28] sm:$0xff] %v680_v15  ;;  %704 = vst [vmem:[#allocation2 + $0x68] sm:$0xff] %v688_v16  ;;  %v735_v21 = vadd.f32 (!%p1050_p11), %v1454_v19, %v712_v18  ;;  %v782_v39 = vadd.f32 (!%p1050_p11), %v1090_v25, %v734_v20  ;;  %v720_v53 = vld [vmem:[#allocation2 + $0x48] sm:$0xff] (!%p1050_p11)  ;;  %v744_v10 = vadd.f32 (!%p1050_p11), %v1454_v19, %v721_v59  ;;  %v1165_v12 = vld [vmem:[%s1538_s3 + $0x30] sm:$0xff] (!%p1050_p11)  }
 0x134   : > { %v785_v45 = vadd.f32 %v1095_v33, %v737_v28  ;;  %v800_v54 = vmax.f32 %v784_v44, 0.0  ;;  %v1164_v1 = vld [vmem:[%s1538_s3 + $0x28] sm:$0xff]   ;;  %v743_v5 = vadd.f32 %v1454_v19, %v720_v53  ;;  %v745_v15 = vadd.f32 %v1454_v19, %v722_v0  ;;  %v1166_v28 = vld [vmem:[%s1538_s3 + $0x38] sm:$0xff]  }
 0x135   : > { %v783_v40 = vadd.f32 %v1091_v26, %v735_v21  ;;  %v798_v49 = vmax.f32 %v782_v39, 0.0  ;;  %v1110_v16 = vunpack.c.l.bf16 %v1164_v1  ;;  %v790_v17 = vadd.f32 %v1106_v8, %v742_v63 }
 0x136   : > { %v801_v55 = vmax.f32 %v785_v45, 0.0  ;;  %v791_v18 = vadd.f32 %v1107_v9, %v743_v5  ;;  %v1111_v20 = vunpack.c.h.bf16 %v1164_v1  ;;  %v1114_v27 = vunpack.c.l.bf16 %v1165_v12 }
 0x137   : > { %v717_v37 = vld [vmem:[#allocation2 + $0x30] sm:$0xff]  ;;  %v799_v50 = vmax.f32 %v783_v40, 0.0  ;;  %v792_v25 = vadd.f32 %v1110_v16, %v744_v10  ;;  %v806_v29 = vmax.f32 %v790_v17, 0.0  ;;  %v1115_v32 = vunpack.c.h.bf16 %v1165_v12 }
 0x138   : > { %v715_v30 = vld [vmem:[#allocation2 + $0x20] sm:$0xff]  ;;  %v740_v46 = vadd.f32 %v1454_v19, %v717_v37  ;;  %v1128_v2 = vpack.c.bf16 %v801_v55, %v800_v54  ;;  %v725_v22 = vld [vmem:[#allocation2 + $0x70] sm:$0xff]  ;;  %v1118_v40 = vunpack.c.l.bf16 %v1166_v28 }
 0x139   : > { %v738_v34 = vadd.f32 %v1454_v19, %v715_v30  ;;  %v718_v38 = vld [vmem:[#allocation2 + $0x38] sm:$0xff]  ;;  %v1123_v60 = vpack.c.bf16 %v799_v50, %v798_v49  ;;  %v723_v6 = vld [vmem:[#allocation2 + $0x60] sm:$0xff]  ;;  %v807_v30 = vmax.f32 %v791_v18, 0.0  ;;  %v808_v33 = vmax.f32 %v792_v25, 0.0 }
 0x13a   : > { %v716_v31 = vld [vmem:[#allocation2 + $0x28] sm:$0xff]  ;;  %v741_v47 = vadd.f32 %v1454_v19, %v718_v38  ;;  %v788_v3 = vadd.f32 %v1102_v56, %v740_v46  ;;  %1167 = vst [vmem:[%s1539_s4 + $0x8] sm:$0xff] %v1128_v2   ;;  %v746_v21 = vadd.f32 %v1454_v19, %v723_v6  ;;  %v726_v23 = vld [vmem:[#allocation2 + $0x78] sm:$0xff] }
 0x13b   : > { %v739_v35 = vadd.f32 %v1454_v19, %v716_v31  ;;  %v786_v51 = vadd.f32 %v1098_v41, %v738_v34  ;;  %1124 = vst [vmem:[%s1539_s4] sm:$0xff] %v1123_v60   ;;  %v724_v11 = vld [vmem:[#allocation2 + $0x68] sm:$0xff]  ;;  %v793_v31 = vadd.f32 %v1111_v20, %v745_v15  ;;  %v749_v36 = vadd.f32 %v1454_v19, %v726_v23 }
 0x13c   : > { %v789_v4 = vadd.f32 %v1103_v57, %v741_v47  ;;  %v804_v13 = vmax.f32 %v788_v3, 0.0  ;;  %v747_v26 = vadd.f32 %v1454_v19, %v724_v11  ;;  %v794_v34 = vadd.f32 %v1114_v27, %v746_v21 }
 0x13d   : > { %v787_v52 = vadd.f32 %v1099_v42, %v739_v35  ;;  %v802_v61 = vmax.f32 %v786_v51, 0.0  ;;  %v748_v35 = vadd.f32 %v1454_v19, %v725_v22  ;;  %v1143_v37 = vpack.c.bf16 %v807_v30, %v806_v29 }
 0x13e   : > { %v805_v14 = vmax.f32 %v789_v4, 0.0  ;;  %v809_v38 = vmax.f32 %v793_v31, 0.0  ;;  %v795_v39 = vadd.f32 %v1115_v32, %v747_v26  ;;  %v810_v41 = vmax.f32 %v794_v34, 0.0 }
 0x13f   : > { %v803_v62 = vmax.f32 %v787_v52, 0.0  ;;  %v1119_v42 = vunpack.c.h.bf16 %v1166_v28  ;;  %1170 = vst [vmem:[%s1539_s4 + $0x20] sm:$0xff] %v1143_v37   ;;  %v796_v45 = vadd.f32 %v1118_v40, %v748_v35 }
 0x140   : > { %v1138_v24 = vpack.c.bf16 %v805_v14, %v804_v13  ;;  %v1148_v43 = vpack.c.bf16 %v809_v38, %v808_v33  ;;  %v811_v44 = vmax.f32 %v795_v39, 0.0 }
 0x141   : > { %v1133_v7 = vpack.c.bf16 %v803_v62, %v802_v61  ;;  %v797_v46 = vadd.f32 %v1119_v42, %v749_v36  ;;  %v812_v19 = vmax.f32 %v796_v45, 0.0 }
 0x142   : > { %1169 = vst [vmem:[%s1539_s4 + $0x18] sm:$0xff] %v1138_v24   ;;  %1171 = vst [vmem:[%s1539_s4 + $0x28] sm:$0xff] %v1148_v43   ;;  %v1153_v47 = vpack.c.bf16 %v811_v44, %v810_v41 }
 0x143   : > { %1168 = vst [vmem:[%s1539_s4 + $0x10] sm:$0xff] %v1133_v7   ;;  %v813_v48 = vmax.f32 %v797_v46, 0.0 }
 0x144   : > { %1172 = vst [vmem:[%s1539_s4 + $0x30] sm:$0xff] %v1153_v47  }
 0x145   : > { %v1158_v49 = vpack.c.bf16 %v813_v48, %v812_v19 }
 0x147   : > { %1173 = vst [vmem:[%s1539_s4 + $0x38] sm:$0xff] %v1158_v49  }
 0x148 PF: > { %s14_s19 = sadd.s32 1, %s1333_s19   ;;  %s1540_s15 = smov %s1321_s16 }
 0x149   : > { %p11_p12 = scmp.ge.s32.totalorder %s14_s19, 11   ;;  %s1541_s16 = smov %s1396_s23 }
 0x14a   : > { %s1542_s17 = smov %s1329_s18  ;;  %s1543_s18 = smov %s1545_s20 }
 0x14b   :  { %13 = sbr.rel (!%p11_p12) target bundleno = 3 (0x3), region = 129 }

// kernel: forward.30
= control target key start
LH: loop header
LB: loop body
LE: loop exit
PB: predicated region body
PF: predicated region fallthrough
CT: control target
= control target key end

     0   :  { %s1190_s12 = smov 0   ;;  %s1192_s13 = smov 0   ;;  %s1322_s0 = inlined_call_operand.vmem [shape: bf16[128,1152], index: 0, kind: input, shape index: {}]   ;;  %s1323_s1 = inlined_call_operand.vmem [shape: bf16[1152,128], index: 1, kind: input, shape index: {}]   ;;  %s1324_s2 = inlined_call_operand.vmem [shape: f32[1,128], index: 2, kind: input, shape index: {}]   ;;  %s1325_s3 = inlined_call_operand.vmem [shape: bf16[128,128], index: 3, kind: output, shape index: {}]  }
   0x1   :  { %s1194_s14 = smov 0   ;;  %s1196_s15 = smov 0  }
   0x2   :  { %s1198_s16 = smov 0  }
   0x3 LB: > { %s25_s17 = sadd.s32 1, %s1163_s15  ;;  %p48_p1 = scmp.ne.s32.totalorder %s1155_s13, %s1151_s12  ;;  %s1167_s16 = sphi %s1198_s16, %s13_s16   ;;  %s1163_s15 = sphi %s1196_s15, %s1329_s15   ;;  %s1159_s14 = sphi %s1194_s14, %s1328_s14   ;;  %s1155_s13 = sphi %s1192_s13, %s1327_s13   ;;  %s1151_s12 = sphi %s1190_s12, %s1326_s12  }
   0x4   : > { %p26_p0 = scmp.ge.s32.totalorder %s25_s17, 9  ;;  %p49_p2 = scmp.eq.s32.totalorder %s1167_s16, 0 }
   0x5   : > { %s41_s19 = sadd.s32 1, %s1155_s13  ;;  %p899_p5 = scmp.ge.s32.totalorder %s1167_s16, 9 }
   0x6   : > { %s1331_s17 = smov (%p26_p0, %s25_s17), 0  ;;  %p50_p3 = por %p49_p2, %p48_p1 }
   0x7   : > { %s37_s18 = ssub.s32 %s1163_s15, %s1331_s17  ;;  %162 = sbr.rel (%p899_p5) target bundleno = 28 (0x1c), region = 20 }
   0x8   : > { %p39_p4 = scmp.eq.s32.totalorder %s37_s18, 0 }
   0xa   : > { %s1225_s20 = scalar_select %p39_p4, %s1155_s13, %s41_s19  }
   0xe   : > { %165 = sbr.rel (!%p50_p3) target bundleno = 28 (0x1c), region = 24  ;;  %s167_s21 = sand.u32 (%p50_p3), 1, %s1155_s13  }
   0xf   : > { %s901_s22 = sshll.u32 (%p50_p3), %s1163_s15, 2  ;;  %s900_s23 = sshll.u32 (%p50_p3), %s167_s21, 6 }
  0x10   : > { %s1233_s26 = scalar_lea.vmem (%p50_p3), %s1322_s0, %s901_s22  ;;  %s169_s27 = scalar_lea.vmem (%p50_p3), [#allocation3], %s900_s23 }
  0x11   : > { %v190_v0 = vld [vmem:[%s1233_s26] sm:$0xf] (%p50_p3)  ;;  %v192_v1 = vld [vmem:[%s1233_s26 + $0x24] sm:$0xf] (%p50_p3)  ;;  %v194_v2 = vld [vmem:[%s1233_s26 + $0x48] sm:$0xf] (%p50_p3) }
  0x12   : > { %191 = vst [vmem:[%s169_s27] sm:$0xf] (%p50_p3), %v190_v0  ;;  %193 = vst [vmem:[%s169_s27 + $0x4] sm:$0xf] (%p50_p3), %v192_v1  ;;  %v196_v3 = vld [vmem:[%s1233_s26 + $0x6c] sm:$0xf] (%p50_p3) }
  0x13   : > { %v198_v4 = vld [vmem:[%s1233_s26 + $0x90] sm:$0xf] (%p50_p3)  ;;  %195 = vst [vmem:[%s169_s27 + $0x8] sm:$0xf] (%p50_p3), %v194_v2  ;;  %197 = vst [vmem:[%s169_s27 + $0xc] sm:$0xf] (%p50_p3), %v196_v3 }
  0x14   : > { %199 = vst [vmem:[%s169_s27 + $0x10] sm:$0xf] (%p50_p3), %v198_v4  ;;  %v200_v5 = vld [vmem:[%s1233_s26 + $0xb4] sm:$0xf] (%p50_p3)  ;;  %v202_v6 = vld [vmem:[%s1233_s26 + $0xd8] sm:$0xf] (%p50_p3) }
  0x15   : > { %v204_v7 = vld [vmem:[%s1233_s26 + $0xfc] sm:$0xf]  ;;  %201 = vst [vmem:[%s169_s27 + $0x14] sm:$0xf] %v200_v5  ;;  %203 = vst [vmem:[%s169_s27 + $0x18] sm:$0xf] %v202_v6 }
  0x16   : > { %205 = vst [vmem:[%s169_s27 + $0x1c] sm:$0xf] %v204_v7  ;;  %v206_v8 = vld [vmem:[%s1233_s26 + $0x120] sm:$0xf]  ;;  %v208_v9 = vld [vmem:[%s1233_s26 + $0x144] sm:$0xf] }
  0x17   : > { %v210_v10 = vld [vmem:[%s1233_s26 + $0x168] sm:$0xf]  ;;  %207 = vst [vmem:[%s169_s27 + $0x20] sm:$0xf] %v206_v8  ;;  %209 = vst [vmem:[%s169_s27 + $0x24] sm:$0xf] %v208_v9 }
  0x18   : > { %211 = vst [vmem:[%s169_s27 + $0x28] sm:$0xf] %v210_v10  ;;  %v212_v11 = vld [vmem:[%s1233_s26 + $0x18c] sm:$0xf]  ;;  %v214_v12 = vld [vmem:[%s1233_s26 + $0x1b0] sm:$0xf] }
  0x19   : > { %v216_v13 = vld [vmem:[%s1233_s26 + $0x1d4] sm:$0xf]  ;;  %213 = vst [vmem:[%s169_s27 + $0x2c] sm:$0xf] %v212_v11  ;;  %215 = vst [vmem:[%s169_s27 + $0x30] sm:$0xf] %v214_v12 }
  0x1a   : > { %217 = vst [vmem:[%s169_s27 + $0x34] sm:$0xf] %v216_v13  ;;  %v218_v14 = vld [vmem:[%s1233_s26 + $0x1f8] sm:$0xf]  ;;  %v220_v15 = vld [vmem:[%s1233_s26 + $0x21c] sm:$0xf] }
  0x1b   : > { %219 = vst [vmem:[%s169_s27 + $0x38] sm:$0xf] %v218_v14  ;;  %221 = vst [vmem:[%s169_s27 + $0x3c] sm:$0xf] %v220_v15 }
  0x1c PF: > { %p902_p6 = scmp.ge.s32.totalorder %s1167_s16, 1  ;;  %p287_p7 = scmp.lt.s32.totalorder %s1167_s16, 10 }
  0x1e   : > { %p288_p8 = pnand %p902_p6, %p287_p7 }
  0x1f   : > { %s294_s28 = sand.u32 (!%p288_p8), 1, %s1151_s12   ;;  %s904_s29 = sshll.u32 (!%p288_p8), %s1159_s14, 4 }
  0x20   : > { %291 = sbr.rel (%p288_p8) target bundleno = 323 (0x143), region = 69  ;;  %s903_s30 = sshll.u32 (!%p288_p8), %s294_s28, 6 }
  0x21   : > { %p333_p9 = scmp.lt.s32.totalorder (!%p288_p8), %s904_s29, 143  ;;  %s1260_s8 = scalar_lea.vmem (!%p288_p8), [#allocation3], %s903_s30 }
  0x22   : > { %p906_p10 = scmp.ne.s32.totalorder (!%p288_p8), %s1159_s14, 0 }
  0x27   : > { %s1333_s29 = smov (!%p333_p9, %s904_s29), 143  ;;  %357 = sbr.rel (%p906_p10) target bundleno = 49 (0x31), region = 77 }
  0x28   : > { %s905_s4 = sshll.u32 %s1333_s29, 2  ;;  %v1169_v16 = vmov (!%p906_p10), 0.0  }
  0x29   : > { %s1258_s7 = scalar_lea.vmem %s1323_s1, %s905_s4  ;;  %358 = vst [vmem:[#allocation2] sm:$0xff] (!%p906_p10), %v1169_v16  ;;  %359 = vst [vmem:[#allocation2 + $0x8] sm:$0xff] (!%p906_p10), %v1169_v16 }
  0x2a   : > { %360 = vst [vmem:[#allocation2 + $0x10] sm:$0xff] (!%p906_p10), %v1169_v16  ;;  %361 = vst [vmem:[#allocation2 + $0x18] sm:$0xff] (!%p906_p10), %v1169_v16 }
  0x2b   : > { %362 = vst [vmem:[#allocation2 + $0x20] sm:$0xff] (!%p906_p10), %v1169_v16  ;;  %363 = vst [vmem:[#allocation2 + $0x28] sm:$0xff] (!%p906_p10), %v1169_v16 }
  0x2c   : > { %364 = vst [vmem:[#allocation2 + $0x30] sm:$0xff] (!%p906_p10), %v1169_v16  ;;  %365 = vst [vmem:[#allocation2 + $0x38] sm:$0xff] (!%p906_p10), %v1169_v16 }
  0x2d   : > { %366 = vst [vmem:[#allocation2 + $0x40] sm:$0xff] (!%p906_p10), %v1169_v16  ;;  %367 = vst [vmem:[#allocation2 + $0x48] sm:$0xff] (!%p906_p10), %v1169_v16 }
  0x2e   : > { %368 = vst [vmem:[#allocation2 + $0x50] sm:$0xff] %v1169_v16  ;;  %369 = vst [vmem:[#allocation2 + $0x58] sm:$0xff] %v1169_v16 }
  0x2f   : > { %370 = vst [vmem:[#allocation2 + $0x60] sm:$0xff] %v1169_v16  ;;  %371 = vst [vmem:[#allocation2 + $0x68] sm:$0xff] %v1169_v16 }
  0x30   : > { %372 = vst [vmem:[#allocation2 + $0x70] sm:$0xff] %v1169_v16  ;;  %373 = vst [vmem:[#allocation2 + $0x78] sm:$0xff] %v1169_v16 }
  0x31 PF: > { %v1113_v17 = vld [vmem:[%s1258_s7] sm:$0xff]   ;;  %v1114_v18 = vld [vmem:[%s1258_s7 + $0x8] sm:$0xff]   ;;  %v1115_v19 = vld [vmem:[%s1258_s7 + $0x10] sm:$0xff]   ;;  %p923_p11 = scmp.ne.s32.totalorder %s1159_s14, 8 }
  0x32   : > { %1024 = vmatprep.subr.bf16.mxu0 %v1113_v17  ;;  %1056 = vmatprep.subr.bf16.mxu1 %v1113_v17  ;;  %v1116_v20 = vld [vmem:[%s1258_s7 + $0x18] sm:$0xff]   ;;  %v1121_v21 = vld [vmem:[%s1260_s8] sm:$0xff]   ;;  %v1118_v24 = vld [vmem:[%s1258_s7 + $0x28] sm:$0xff]  }
  0x33   : > { %1025 = vmatpush3.bf16.msra.mxu0 %v1113_v17  ;;  %1064 = vmatpush3.bf16.msra.mxu1 %v1113_v17  ;;  %v1122_v22 = vld [vmem:[%s1260_s8 + $0x20] sm:$0xff]   ;;  %v1119_v25 = vld [vmem:[%s1258_s7 + $0x30] sm:$0xff]   ;;  %v1120_v26 = vld [vmem:[%s1258_s7 + $0x38] sm:$0xff]  }
  0x34   : > { %1026 = vmatprep.subr.bf16.mxu0 %v1114_v18  ;;  %1057 = vmatprep.subr.bf16.mxu1 %v1114_v18  ;;  %v1117_v23 = vld [vmem:[%s1258_s7 + $0x20] sm:$0xff]   ;;  %v1123_v27 = vld [vmem:[%s1260_s8 + $0x8] sm:$0xff]   ;;  %v1125_v29 = vld [vmem:[%s1260_s8 + $0x10] sm:$0xff]  }
  0x35   : > { %1040 = vmatprep.mubr.bf16.mxu0 %v1121_v21  ;;  %1048 = vmatprep.mubr.bf16.mxu1 %v1122_v22  ;;  %v1124_v28 = vld [vmem:[%s1260_s8 + $0x28] sm:$0xff]   ;;  %v1126_v30 = vld [vmem:[%s1260_s8 + $0x30] sm:$0xff]   ;;  %v1127_v31 = vld [vmem:[%s1260_s8 + $0x18] sm:$0xff]  }
  0x36   : > { %v1128_v32 = vld [vmem:[%s1260_s8 + $0x38] sm:$0xff]   ;;  %v376_v33 = vld [vmem:[#allocation2 + $0x10] sm:$0xff]  ;;  %v374_v35 = vld [vmem:[#allocation2] sm:$0xff] }
  0x37   : > { %1027 = vmatpush3.bf16.msra.mxu0 %v1114_v18  ;;  %1065 = vmatpush3.bf16.msra.mxu1 %v1114_v18  ;;  %v384_v34 = vld [vmem:[#allocation2 + $0x50] sm:$0xff]  ;;  %v382_v36 = vld [vmem:[#allocation2 + $0x40] sm:$0xff]  ;;  %v377_v39 = vld [vmem:[#allocation2 + $0x18] sm:$0xff] }
  0x38   : > { %1028 = vmatprep.subr.bf16.mxu0 %v1115_v19  ;;  %1058 = vmatprep.subr.bf16.mxu1 %v1115_v19  ;;  %v385_v40 = vld [vmem:[#allocation2 + $0x58] sm:$0xff]  ;;  %v375_v45 = vld [vmem:[#allocation2 + $0x8] sm:$0xff]  ;;  %v380_v57 = vld [vmem:[#allocation2 + $0x30] sm:$0xff] }
  0x39   : > { %v383_v46 = vld [vmem:[#allocation2 + $0x48] sm:$0xff]  ;;  %v388_v58 = vld [vmem:[#allocation2 + $0x70] sm:$0xff]  ;;  %v378_v59 = vld [vmem:[#allocation2 + $0x20] sm:$0xff] }
  0x3a   : > { %v386_v60 = vld [vmem:[#allocation2 + $0x60] sm:$0xff]  ;;  %v381_v63 = vld [vmem:[#allocation2 + $0x38] sm:$0xff]  ;;  %v379_v5 = vld [vmem:[#allocation2 + $0x28] sm:$0xff] }
  0x3b   : > { %1029 = vmatpush3.bf16.msra.mxu0 %v1115_v19  ;;  %1066 = vmatpush3.bf16.msra.mxu1 %v1115_v19  ;;  %v389_v0 = vld [vmem:[#allocation2 + $0x78] sm:$0xff]  ;;  %v387_v6 = vld [vmem:[#allocation2 + $0x68] sm:$0xff]  ;;  %v924_v19 = vld [vmem:[%s1324_s2] ss:$0 sm:$0xff] (!%p923_p11) }
  0x3c   : > { %1030 = vmatprep.subr.bf16.mxu0 %v1116_v20  ;;  %1059 = vmatprep.subr.bf16.mxu1 %v1116_v20 }
  0x3f   : > { %1031 = vmatpush3.bf16.msra.mxu0 %v1116_v20  ;;  %1067 = vmatpush3.bf16.msra.mxu1 %v1116_v20 }
  0x40   : > { %1032 = vmatprep.subr.bf16.mxu0 %v1117_v23  ;;  %1060 = vmatprep.subr.bf16.mxu1 %v1117_v23 }
  0x43   : > { %1033 = vmatpush3.bf16.msra.mxu0 %v1117_v23  ;;  %1068 = vmatpush3.bf16.msra.mxu1 %v1117_v23 }
  0x44   : > { %1034 = vmatprep.subr.bf16.mxu0 %v1118_v24  ;;  %1061 = vmatprep.subr.bf16.mxu1 %v1118_v24 }
  0x47   : > { %1035 = vmatpush3.bf16.msra.mxu0 %v1118_v24  ;;  %1069 = vmatpush3.bf16.msra.mxu1 %v1118_v24 }
  0x48   : > { %1036 = vmatprep.subr.bf16.mxu0 %v1119_v25  ;;  %1062 = vmatprep.subr.bf16.mxu1 %v1119_v25 }
  0x4b   : > { %1037 = vmatpush3.bf16.msra.mxu0 %v1119_v25  ;;  %1070 = vmatpush3.bf16.msra.mxu1 %v1119_v25 }
  0x4c   : > { %1038 = vmatprep.subr.bf16.mxu0 %v1120_v26  ;;  %1063 = vmatprep.subr.bf16.mxu1 %v1120_v26 }
  0x4f   : > { %1039 = vmatpush3.bf16.msra.mxu0 %v1120_v26  ;;  %1071 = vmatpush3.bf16.msra.mxu1 %v1120_v26 }
  0x52   : > { %1041 = vmatmul.mubr.bf16.vlgmr.msra.gmra.mrb[0].mxu0 %v1123_v27  ;;  %1049 = vmatmul.mubr.bf16.vlgmr.msra.gmra.mrb[0].mxu1 %v1124_v28 }
  0x53   : > { %1044 = vmatprep.mubr.bf16.mxu0 %v1125_v29  ;;  %1052 = vmatprep.mubr.bf16.mxu1 %v1126_v30 }
  0x5a   : > { %1045 = vmatmul.mubr.bf16.gmra.mrb[4].mxu0 %v1127_v31  ;;  %1053 = vmatmul.mubr.bf16.gmra.mrb[4].mxu1 %v1128_v32 }
 0x125   : > { %v1042_v37 = vpop.f32.mrb[0].mxu0  ;;  %v1050_v38 = vpop.f32.mrb[0].mxu1 }
 0x126   : > { %v617_v41 = vadd.f32 %v1042_v37, %v376_v33  ;;  %v625_v42 = vadd.f32 %v1050_v38, %v384_v34  ;;  %v552_v43 = vpop.f32.mrb[1].mxu0  ;;  %v584_v44 = vpop.f32.mrb[1].mxu1 }
 0x127   : > { %v615_v47 = vadd.f32 %v552_v43, %v374_v35  ;;  %v623_v48 = vadd.f32 %v584_v44, %v382_v36  ;;  %v1043_v49 = vpop.f32.mrb[2].mxu0  ;;  %v1051_v50 = vpop.f32.mrb[2].mxu1 }
 0x128   : > { %633 = vst [vmem:[#allocation2 + $0x10] sm:$0xff] %v617_v41  ;;  %641 = vst [vmem:[#allocation2 + $0x50] sm:$0xff] %v625_v42  ;;  %v618_v51 = vadd.f32 %v1043_v49, %v377_v39  ;;  %v626_v52 = vadd.f32 %v1051_v50, %v385_v40  ;;  %v555_v53 = vpop.f32.mrb[3].mxu0  ;;  %v587_v54 = vpop.f32.mrb[3].mxu1 }
 0x129   : > { %631 = vst [vmem:[#allocation2] sm:$0xff] %v615_v47  ;;  %639 = vst [vmem:[#allocation2 + $0x40] sm:$0xff] %v623_v48  ;;  %v616_v55 = vadd.f32 %v555_v53, %v375_v45  ;;  %v624_v56 = vadd.f32 %v587_v54, %v383_v46 }
 0x12a   : > { %634 = vst [vmem:[#allocation2 + $0x18] sm:$0xff] %v618_v51  ;;  %642 = vst [vmem:[#allocation2 + $0x58] sm:$0xff] %v626_v52 }
 0x12b   : > { %632 = vst [vmem:[#allocation2 + $0x8] sm:$0xff] %v616_v55  ;;  %640 = vst [vmem:[#allocation2 + $0x48] sm:$0xff] %v624_v56 }
 0x12d   : > { %v1046_v61 = vpop.f32.mrb[4].mxu0  ;;  %v1054_v62 = vpop.f32.mrb[4].mxu1  ;;  %650 = sbr.rel (%p923_p11) target bundleno = 323 (0x143), region = 81 }
 0x12e   : > { %v621_v1 = vadd.f32 %v1046_v61, %v380_v57  ;;  %v629_v2 = vadd.f32 %v1054_v62, %v388_v58  ;;  %v568_v3 = vpop.f32.mrb[5].mxu0  ;;  %v600_v4 = vpop.f32.mrb[5].mxu1 }
 0x12f   : > { %v619_v7 = vadd.f32 %v568_v3, %v378_v59  ;;  %v627_v8 = vadd.f32 %v600_v4, %v386_v60  ;;  %v1047_v9 = vpop.f32.mrb[6].mxu0  ;;  %v1055_v10 = vpop.f32.mrb[6].mxu1  ;;  %v653_v22 = vld [vmem:[#allocation2 + $0x10] sm:$0xff] (!%p923_p11) }
 0x130   : > { %637 = vst [vmem:[#allocation2 + $0x30] sm:$0xff] %v621_v1  ;;  %645 = vst [vmem:[#allocation2 + $0x70] sm:$0xff] %v629_v2  ;;  %v622_v11 = vadd.f32 %v1047_v9, %v381_v63  ;;  %v630_v12 = vadd.f32 %v1055_v10, %v389_v0  ;;  %v571_v13 = vpop.f32.mrb[7].mxu0  ;;  %v603_v14 = vpop.f32.mrb[7].mxu1  ;;  %v651_v17 = vld [vmem:[#allocation2] sm:$0xff] (!%p923_p11)  ;;  %v676_v25 = vadd.f32 (!%p923_p11), %v924_v19, %v653_v22  ;;  %v661_v37 = vld [vmem:[#allocation2 + $0x50] sm:$0xff] (!%p923_p11) }
 0x131   : > { %635 = vst [vmem:[#allocation2 + $0x20] sm:$0xff] %v619_v7  ;;  %643 = vst [vmem:[#allocation2 + $0x60] sm:$0xff] %v627_v8  ;;  %v620_v15 = vadd.f32 %v571_v13, %v379_v5  ;;  %v628_v16 = vadd.f32 %v603_v14, %v387_v6  ;;  %v674_v20 = vadd.f32 (!%p923_p11), %v924_v19, %v651_v17  ;;  %v654_v23 = vld [vmem:[#allocation2 + $0x18] sm:$0xff] (!%p923_p11)  ;;  %v659_v35 = vld [vmem:[#allocation2 + $0x40] sm:$0xff] (!%p923_p11) }
 0x132   : > { %638 = vst [vmem:[#allocation2 + $0x38] sm:$0xff] %v622_v11  ;;  %646 = vst [vmem:[#allocation2 + $0x78] sm:$0xff] %v630_v12  ;;  %v652_v18 = vld [vmem:[#allocation2 + $0x8] sm:$0xff] (!%p923_p11)  ;;  %v677_v26 = vadd.f32 (!%p923_p11), %v924_v19, %v654_v23  ;;  %v692_v38 = vmax.f32 (!%p923_p11), %v676_v25, 0.0  ;;  %v662_v42 = vld [vmem:[#allocation2 + $0x58] sm:$0xff] (!%p923_p11)  ;;  %v682_v47 = vadd.f32 (!%p923_p11), %v924_v19, %v659_v35  ;;  %v684_v52 = vadd.f32 (!%p923_p11), %v924_v19, %v661_v37 }
 0x133   : > { %636 = vst [vmem:[#allocation2 + $0x28] sm:$0xff] %v620_v15  ;;  %644 = vst [vmem:[#allocation2 + $0x68] sm:$0xff] %v628_v16  ;;  %v675_v21 = vadd.f32 (!%p923_p11), %v924_v19, %v652_v18  ;;  %v690_v31 = vmax.f32 (!%p923_p11), %v674_v20, 0.0  ;;  %v660_v36 = vld [vmem:[#allocation2 + $0x48] sm:$0xff] (!%p923_p11)  ;;  %v685_v57 = vadd.f32 (!%p923_p11), %v924_v19, %v662_v42 }
 0x134   : > { %v693_v39 = vmax.f32 %v677_v26, 0.0  ;;  %v683_v51 = vadd.f32 %v924_v19, %v660_v36  ;;  %v698_v56 = vmax.f32 %v682_v47, 0.0  ;;  %v700_v61 = vmax.f32 %v684_v52, 0.0 }
 0x135   : > { %v691_v32 = vmax.f32 %v675_v21, 0.0  ;;  %v701_v63 = vmax.f32 %v685_v57, 0.0 }
 0x136   : > { %v969_v49 = vpack.c.bf16 %v693_v39, %v692_v38  ;;  %v699_v60 = vmax.f32 %v683_v51, 0.0 }
 0x137   : > { %v657_v29 = vld [vmem:[#allocation2 + $0x30] sm:$0xff]  ;;  %v964_v44 = vpack.c.bf16 %v691_v32, %v690_v31  ;;  %v989_v5 = vpack.c.bf16 %v701_v63, %v700_v61 }
 0x138   : > { %v655_v24 = vld [vmem:[#allocation2 + $0x20] sm:$0xff]  ;;  %v680_v34 = vadd.f32 %v924_v19, %v657_v29  ;;  %v665_v53 = vld [vmem:[#allocation2 + $0x70] sm:$0xff]  ;;  %1001 = vst [vmem:[%s1325_s3 + $0x8] sm:$0xff] %v969_v49   ;;  %v984_v3 = vpack.c.bf16 %v699_v60, %v698_v56 }
 0x139   : > { %v678_v28 = vadd.f32 %v924_v19, %v655_v24  ;;  %v658_v30 = vld [vmem:[#allocation2 + $0x38] sm:$0xff]  ;;  %v663_v43 = vld [vmem:[#allocation2 + $0x60] sm:$0xff]  ;;  %965 = vst [vmem:[%s1325_s3] sm:$0xff] %v964_v44   ;;  %v688_v1 = vadd.f32 %v924_v19, %v665_v53  ;;  %1005 = vst [vmem:[%s1325_s3 + $0x28] sm:$0xff] %v989_v5  }
 0x13a   : > { %v656_v27 = vld [vmem:[#allocation2 + $0x28] sm:$0xff]  ;;  %v681_v41 = vadd.f32 %v924_v19, %v658_v30  ;;  %v696_v46 = vmax.f32 %v680_v34, 0.0  ;;  %v666_v54 = vld [vmem:[#allocation2 + $0x78] sm:$0xff]  ;;  %v686_v58 = vadd.f32 %v924_v19, %v663_v43  ;;  %1004 = vst [vmem:[%s1325_s3 + $0x20] sm:$0xff] %v984_v3  }
 0x13b   : > { %v679_v33 = vadd.f32 %v924_v19, %v656_v27  ;;  %v694_v40 = vmax.f32 %v678_v28, 0.0  ;;  %v664_v48 = vld [vmem:[#allocation2 + $0x68] sm:$0xff]  ;;  %v689_v2 = vadd.f32 %v924_v19, %v666_v54  ;;  %v704_v6 = vmax.f32 %v688_v1, 0.0 }
 0x13c   : > { %v697_v50 = vmax.f32 %v681_v41, 0.0  ;;  %v687_v62 = vadd.f32 %v924_v19, %v664_v48  ;;  %v702_v0 = vmax.f32 %v686_v58, 0.0 }
 0x13d   : > { %v695_v45 = vmax.f32 %v679_v33, 0.0  ;;  %v705_v7 = vmax.f32 %v689_v2, 0.0 }
 0x13e   : > { %v979_v59 = vpack.c.bf16 %v697_v50, %v696_v46  ;;  %v703_v4 = vmax.f32 %v687_v62, 0.0 }
 0x13f   : > { %v974_v55 = vpack.c.bf16 %v695_v45, %v694_v40  ;;  %v999_v9 = vpack.c.bf16 %v705_v7, %v704_v6 }
 0x140   : > { %1003 = vst [vmem:[%s1325_s3 + $0x18] sm:$0xff] %v979_v59   ;;  %v994_v8 = vpack.c.bf16 %v703_v4, %v702_v0 }
 0x141   : > { %1002 = vst [vmem:[%s1325_s3 + $0x10] sm:$0xff] %v974_v55   ;;  %1007 = vst [vmem:[%s1325_s3 + $0x38] sm:$0xff] %v999_v9  }
 0x142   : > { %1006 = vst [vmem:[%s1325_s3 + $0x30] sm:$0xff] %v994_v8  }
 0x143 PF: > { %s13_s16 = sadd.s32 1, %s1167_s16   ;;  %s1326_s12 = smov %s1155_s13 }
 0x144   : > { %p10_p12 = scmp.ge.s32.totalorder %s13_s16, 11   ;;  %s1327_s13 = smov %s1225_s20 }
 0x145   : > { %s1328_s14 = smov %s1163_s15  ;;  %s1329_s15 = smov %s1331_s17 }
 0x146   :  { %12 = sbr.rel (!%p10_p12) target bundleno = 3 (0x3), region = 122 }

// kernel: forward.33
= control target key start
LH: loop header
LB: loop body
LE: loop exit
PB: predicated region body
PF: predicated region fallthrough
CT: control target
= control target key end

     0   :  { %v348_v1 = vmov 0   ;;  %v229_v19 = vlaneseq  ;;  %s438_s1 = inlined_call_operand.vmem [shape: bf16[128,256], index: 1, kind: input, shape index: {}]   ;;  %s439_s0 = inlined_call_operand.vmem [shape: bf16[32,128], index: 0, kind: input, shape index: {}]   ;;  %s440_s2 = inlined_call_operand.vmem [shape: f32[1,256], index: 2, kind: input, shape index: {}]   ;;  %s441_s3 = inlined_call_operand.vmem [shape: bf16[32,256], index: 3, kind: output, shape index: {}]  }
   0x1   :  { %v322_v0 = vld [vmem:[%s438_s1 + $0x4] ss:$8 sps:$4 sm:$0xff]   ;;  %179 = vmatprep.mubr.bf16.mxu0 %v348_v1  ;;  %189 = vmatprep.mubr.bf16.mxu1 %v348_v1  ;;  %v324_v2 = vld [vmem:[%s438_s1] ss:$8 sps:$4 sm:$0xff]   ;;  %v325_v3 = vld [vmem:[%s438_s1 + $0x14] ss:$8 sps:$4 sm:$0xff]  }
   0x2   :  { %147 = vmatprep.subr.bf16.mxu0 %v322_v0  ;;  %305 = vmatprep.subr.bf16.mxu1 %v322_v0  ;;  %v327_v4 = vld [vmem:[%s438_s1 + $0x10] ss:$8 sps:$4 sm:$0xff]   ;;  %v328_v5 = vld [vmem:[%s438_s1 + $0x24] ss:$8 sps:$4 sm:$0xff]   ;;  %v330_v6 = vld [vmem:[%s438_s1 + $0x20] ss:$8 sps:$4 sm:$0xff]  }
   0x3   :  { %148 = vmatpush1.bf16.msra.mxu0 %v324_v2  ;;  %313 = vmatpush1.bf16.msra.mxu1 %v324_v2  ;;  %v331_v7 = vld [vmem:[%s438_s1 + $0x34] ss:$8 sps:$4 sm:$0xff]   ;;  %v333_v8 = vld [vmem:[%s438_s1 + $0x30] ss:$8 sps:$4 sm:$0xff]   ;;  %v334_v9 = vld [vmem:[%s438_s1 + $0x44] ss:$8 sps:$4 sm:$0xff]  }
   0x4   :  { %149 = vmatprep.subr.bf16.mxu0 %v325_v3  ;;  %306 = vmatprep.subr.bf16.mxu1 %v325_v3  ;;  %v336_v10 = vld [vmem:[%s438_s1 + $0x40] ss:$8 sps:$4 sm:$0xff]   ;;  %v337_v11 = vld [vmem:[%s438_s1 + $0x54] ss:$8 sps:$4 sm:$0xff]   ;;  %v339_v12 = vld [vmem:[%s438_s1 + $0x50] ss:$8 sps:$4 sm:$0xff]  }
   0x5   :  { %v340_v13 = vld [vmem:[%s438_s1 + $0x64] ss:$8 sps:$4 sm:$0xff]   ;;  %v342_v14 = vld [vmem:[%s438_s1 + $0x60] ss:$8 sps:$4 sm:$0xff]   ;;  %v343_v15 = vld [vmem:[%s438_s1 + $0x74] ss:$8 sps:$4 sm:$0xff]  }
   0x6   :  { %v345_v16 = vld [vmem:[%s438_s1 + $0x70] ss:$8 sps:$4 sm:$0xff]   ;;  %v346_v17 = vld [vmem:[%s439_s0] sm:$0xff]   ;;  %v347_v18 = vld [vmem:[%s439_s0 + $0x8] sm:$0xff]   ;;  %v230_v20 = vshrl.u32 %v229_v19, 7 }
   0x7   :  { %150 = vmatpush1.bf16.msra.mxu0 %v327_v4  ;;  %314 = vmatpush1.bf16.msra.mxu1 %v327_v4  ;;  %v227_v22 = vld [vmem:[%s440_s2] sm:$0x3] }
   0x8   :  { %151 = vmatprep.subr.bf16.mxu0 %v328_v5  ;;  %307 = vmatprep.subr.bf16.mxu1 %v328_v5  ;;  %v231_v21 = vsub.s32 0, %v230_v20  ;;  %v235_v23 = vsub.s32 1, %v230_v20 }
   0xa   :  { %v232_v24 = vrot.slane %v227_v22, %v231_v21  ;;  %v236_v25 = vrot.slane %v227_v22, %v235_v23 }
   0xb   :  { %152 = vmatpush1.bf16.msra.mxu0 %v330_v6  ;;  %315 = vmatpush1.bf16.msra.mxu1 %v330_v6 }
   0xc   :  { %153 = vmatprep.subr.bf16.mxu0 %v331_v7  ;;  %308 = vmatprep.subr.bf16.mxu1 %v331_v7 }
   0xf   :  { %154 = vmatpush1.bf16.msra.mxu0 %v333_v8  ;;  %316 = vmatpush1.bf16.msra.mxu1 %v333_v8 }
  0x10   :  { %155 = vmatprep.subr.bf16.mxu0 %v334_v9  ;;  %309 = vmatprep.subr.bf16.mxu1 %v334_v9 }
  0x13   :  { %156 = vmatpush1.bf16.msra.mxu0 %v336_v10  ;;  %317 = vmatpush1.bf16.msra.mxu1 %v336_v10 }
  0x14   :  { %157 = vmatprep.subr.bf16.mxu0 %v337_v11  ;;  %310 = vmatprep.subr.bf16.mxu1 %v337_v11 }
  0x17   :  { %158 = vmatpush1.bf16.msra.mxu0 %v339_v12  ;;  %318 = vmatpush1.bf16.msra.mxu1 %v339_v12 }
  0x18   :  { %159 = vmatprep.subr.bf16.mxu0 %v340_v13  ;;  %311 = vmatprep.subr.bf16.mxu1 %v340_v13 }
  0x1b   :  { %160 = vmatpush1.bf16.msra.mxu0 %v342_v14  ;;  %319 = vmatpush1.bf16.msra.mxu1 %v342_v14 }
  0x1c   :  { %161 = vmatprep.subr.bf16.mxu0 %v343_v15  ;;  %312 = vmatprep.subr.bf16.mxu1 %v343_v15 }
  0x1f   :  { %162 = vmatpush1.bf16.msra.mxu0 %v345_v16  ;;  %320 = vmatpush1.bf16.msra.mxu1 %v345_v16 }
  0x22   :  { %180 = vmatmul.mubr.bf16.vlgmr.msra.gmra.mrb[0].mxu0 %v346_v17  ;;  %190 = vmatmul.mubr.bf16.vlgmr.msra.gmra.mrb[0].mxu1 %v347_v18 }
  0xf5   :  { %v181_v26 = vpop.f32.mrb[0].mxu0  ;;  %v191_v27 = vpop.f32.mrb[0].mxu1 }
  0xf6   :  { %v239_v28 = vadd.f32 %v232_v24, %v181_v26  ;;  %v243_v29 = vadd.f32 %v232_v24, %v191_v27  ;;  %v183_v30 = vpop.f32.mrb[1].mxu0  ;;  %v193_v31 = vpop.f32.mrb[1].mxu1 }
  0xf7   :  { %v240_v32 = vadd.f32 %v236_v25, %v183_v30  ;;  %v244_v33 = vadd.f32 %v236_v25, %v193_v31  ;;  %v185_v34 = vpop.f32.mrb[2].mxu0  ;;  %v195_v35 = vpop.f32.mrb[2].mxu1 }
  0xf8   :  { %v241_v36 = vadd.f32 %v232_v24, %v185_v34  ;;  %v245_v37 = vadd.f32 %v232_v24, %v195_v35  ;;  %v187_v38 = vpop.f32.mrb[3].mxu0  ;;  %v197_v39 = vpop.f32.mrb[3].mxu1 }
  0xf9   :  { %v301_v40 = vpack.c.bf16 %v240_v32, %v239_v28  ;;  %v303_v41 = vpack.c.bf16 %v244_v33, %v243_v29  ;;  %v242_v42 = vadd.f32 %v236_v25, %v187_v38  ;;  %v246_v43 = vadd.f32 %v236_v25, %v197_v39 }
  0xfb   :  { %271 = vst [vmem:[%s441_s3] sm:$0xff] %v301_v40  ;;  %273 = vst [vmem:[%s441_s3 + $0x10] sm:$0xff] %v303_v41  ;;  %v302_v44 = vpack.c.bf16 %v242_v42, %v241_v36  ;;  %v304_v45 = vpack.c.bf16 %v246_v43, %v245_v37 }
  0xfd   :  { %272 = vst [vmem:[%s441_s3 + $0x8] sm:$0xff] %v302_v44  ;;  %274 = vst [vmem:[%s441_s3 + $0x18] sm:$0xff] %v304_v45 }

// kernel: forward.32
= control target key start
LH: loop header
LB: loop body
LE: loop exit
PB: predicated region body
PF: predicated region fallthrough
CT: control target
= control target key end

     0   :  { %s905_s12 = smov 0   ;;  %s907_s13 = smov 0   ;;  %s1012_s0 = inlined_call_operand.vmem [shape: bf16[32,1152], index: 0, kind: input, shape index: {}]   ;;  %s1013_s1 = inlined_call_operand.vmem [shape: bf16[1152,256], index: 1, kind: input, shape index: {}]   ;;  %s1014_s2 = inlined_call_operand.vmem [shape: f32[1,256], index: 2, kind: input, shape index: {}]   ;;  %s1015_s3 = inlined_call_operand.vmem [shape: bf16[32,256], index: 3, kind: output, shape index: {}]  }
   0x1   :  { %s909_s14 = smov 0   ;;  %s911_s15 = smov 0  }
   0x2   :  { %s913_s16 = smov 0  }
   0x3 LB: > { %s25_s17 = sadd.s32 1, %s877_s15  ;;  %p48_p1 = scmp.ne.s32.totalorder %s869_s13, %s865_s12  ;;  %s881_s16 = sphi %s913_s16, %s13_s16   ;;  %s877_s15 = sphi %s911_s15, %s1019_s15   ;;  %s873_s14 = sphi %s909_s14, %s1018_s14   ;;  %s869_s13 = sphi %s907_s13, %s1017_s13   ;;  %s865_s12 = sphi %s905_s12, %s1016_s12  }
   0x4   : > { %p26_p0 = scmp.ge.s32.totalorder %s25_s17, 9  ;;  %p49_p2 = scmp.eq.s32.totalorder %s881_s16, 0 }
   0x5   : > { %s41_s19 = sadd.s32 1, %s869_s13  ;;  %p718_p5 = scmp.ge.s32.totalorder %s881_s16, 9 }
   0x6   : > { %s1021_s17 = smov (%p26_p0, %s25_s17), 0  ;;  %p50_p3 = por %p49_p2, %p48_p1 }
   0x7   : > { %s37_s18 = ssub.s32 %s877_s15, %s1021_s17  ;;  %164 = sbr.rel (%p718_p5) target bundleno = 21 (0x15), region = 20 }
   0x8   : > { %p39_p4 = scmp.eq.s32.totalorder %s37_s18, 0 }
   0xa   : > { %s940_s20 = scalar_select %p39_p4, %s869_s13, %s41_s19  }
   0xe   : > { %167 = sbr.rel (!%p50_p3) target bundleno = 21 (0x15), region = 24  ;;  %s169_s21 = sand.u32 (%p50_p3), 1, %s869_s13  }
   0xf   : > { %s720_s22 = sshll.u32 (%p50_p3), %s877_s15, 2  ;;  %s719_s23 = sshll.u32 (%p50_p3), %s169_s21, 4 }
  0x10   : > { %s176_s26 = scalar_lea.vmem (%p50_p3), %s1012_s0, %s720_s22  ;;  %s171_s27 = scalar_lea.vmem (%p50_p3), [#allocation3], %s719_s23 }
  0x11   : > { %v192_v0 = vld [vmem:[%s176_s26] sm:$0xf] (%p50_p3)  ;;  %v194_v1 = vld [vmem:[%s176_s26 + $0x24] sm:$0xf] (%p50_p3)  ;;  %v196_v2 = vld [vmem:[%s176_s26 + $0x48] sm:$0xf] (%p50_p3) }
  0x12   : > { %193 = vst [vmem:[%s171_s27] sm:$0xf] (%p50_p3), %v192_v0  ;;  %195 = vst [vmem:[%s171_s27 + $0x4] sm:$0xf] (%p50_p3), %v194_v1  ;;  %v198_v3 = vld [vmem:[%s176_s26 + $0x6c] sm:$0xf] (%p50_p3) }
  0x13   : > { %197 = vst [vmem:[%s171_s27 + $0x8] sm:$0xf] (%p50_p3), %v196_v2  ;;  %199 = vst [vmem:[%s171_s27 + $0xc] sm:$0xf] (%p50_p3), %v198_v3 }
  0x15 PF: > { %p721_p6 = scmp.ge.s32.totalorder %s881_s16, 1  ;;  %p244_p7 = scmp.lt.s32.totalorder %s881_s16, 10 }
  0x17   : > { %p245_p8 = pnand %p721_p6, %p244_p7 }
  0x18   : > { %s251_s28 = sand.u32 (!%p245_p8), 1, %s865_s12   ;;  %s723_s29 = sshll.u32 (!%p245_p8), %s873_s14, 4 }
  0x19   : > { %248 = sbr.rel (%p245_p8) target bundleno = 306 (0x132), region = 69  ;;  %s952_s30 = sshll.u32 (!%p245_p8), %s251_s28, 4 }
  0x1a   : > { %p296_p9 = scmp.lt.s32.totalorder (!%p245_p8), %s723_s29, 143  ;;  %s253_s8 = scalar_lea.vmem (!%p245_p8), [#allocation3], %s952_s30 }
  0x1b   : > { %p726_p10 = scmp.ne.s32.totalorder (!%p245_p8), %s873_s14, 0 }
  0x20   : > { %s1023_s29 = smov (!%p296_p9, %s723_s29), 143  ;;  %327 = sbr.rel (%p726_p10) target bundleno = 39 (0x27), region = 77 }
  0x21   : > { %s754_s4 = sshll.u32 %s1023_s29, 3  ;;  %v883_v4 = vmov (!%p726_p10), 0.0  }
  0x22   : > { %s957_s7 = scalar_lea.vmem %s1013_s1, %s754_s4  ;;  %328 = vst [vmem:[#allocation2] sm:$0xff] (!%p726_p10), %v883_v4  ;;  %329 = vst [vmem:[#allocation2 + $0x8] sm:$0xff] (!%p726_p10), %v883_v4 }
  0x23   : > { %330 = vst [vmem:[#allocation2 + $0x10] sm:$0xff] (!%p726_p10), %v883_v4  ;;  %331 = vst [vmem:[#allocation2 + $0x18] sm:$0xff] (!%p726_p10), %v883_v4 }
  0x24   : > { %332 = vst [vmem:[#allocation2 + $0x20] sm:$0xff] (!%p726_p10), %v883_v4  ;;  %333 = vst [vmem:[#allocation2 + $0x28] sm:$0xff] (!%p726_p10), %v883_v4 }
  0x25   : > { %334 = vst [vmem:[#allocation2 + $0x30] sm:$0xff] (!%p726_p10), %v883_v4  ;;  %335 = vst [vmem:[#allocation2 + $0x38] sm:$0xff] (!%p726_p10), %v883_v4 }
  0x27 PF: > { %v817_v5 = vld [vmem:[%s957_s7 + $0x4] ss:$8 sps:$4 sm:$0xff]   ;;  %v819_v6 = vld [vmem:[%s957_s7] ss:$8 sps:$4 sm:$0xff]   ;;  %v884_v7 = vmov 0   ;;  %p745_p11 = scmp.ne.s32.totalorder %s873_s14, 8 }
  0x28   : > { %488 = vmatprep.mubr.bf16.mxu0 %v884_v7  ;;  %498 = vmatprep.mubr.bf16.mxu1 %v884_v7  ;;  %v820_v8 = vld [vmem:[%s957_s7 + $0x14] ss:$8 sps:$4 sm:$0xff]   ;;  %v822_v9 = vld [vmem:[%s957_s7 + $0x10] ss:$8 sps:$4 sm:$0xff]   ;;  %v823_v10 = vld [vmem:[%s957_s7 + $0x24] ss:$8 sps:$4 sm:$0xff]   ;;  %v539_v48 = vlaneseq (!%p745_p11) }
  0x29   : > { %456 = vmatprep.subr.bf16.mxu0 %v817_v5  ;;  %759 = vmatprep.subr.bf16.mxu1 %v817_v5  ;;  %v825_v11 = vld [vmem:[%s957_s7 + $0x20] ss:$8 sps:$4 sm:$0xff]   ;;  %v826_v12 = vld [vmem:[%s957_s7 + $0x34] ss:$8 sps:$4 sm:$0xff]   ;;  %v828_v13 = vld [vmem:[%s957_s7 + $0x30] ss:$8 sps:$4 sm:$0xff]  }
  0x2a   : > { %457 = vmatpush1.bf16.msra.mxu0 %v819_v6  ;;  %767 = vmatpush1.bf16.msra.mxu1 %v819_v6  ;;  %v829_v14 = vld [vmem:[%s957_s7 + $0x44] ss:$8 sps:$4 sm:$0xff]   ;;  %v831_v15 = vld [vmem:[%s957_s7 + $0x40] ss:$8 sps:$4 sm:$0xff]   ;;  %v832_v16 = vld [vmem:[%s957_s7 + $0x54] ss:$8 sps:$4 sm:$0xff]  }
  0x2b   : > { %458 = vmatprep.subr.bf16.mxu0 %v820_v8  ;;  %760 = vmatprep.subr.bf16.mxu1 %v820_v8  ;;  %v834_v17 = vld [vmem:[%s957_s7 + $0x50] ss:$8 sps:$4 sm:$0xff]   ;;  %v835_v18 = vld [vmem:[%s957_s7 + $0x64] ss:$8 sps:$4 sm:$0xff]   ;;  %v837_v19 = vld [vmem:[%s957_s7 + $0x60] ss:$8 sps:$4 sm:$0xff]  }
  0x2c   : > { %v838_v20 = vld [vmem:[%s957_s7 + $0x74] ss:$8 sps:$4 sm:$0xff]   ;;  %v840_v21 = vld [vmem:[%s957_s7 + $0x70] ss:$8 sps:$4 sm:$0xff]   ;;  %v336_v24 = vld [vmem:[#allocation2] sm:$0xff]  ;;  %v540_v49 = vshrl.u32 (!%p745_p11), %v539_v48, 7 }
  0x2d   : > { %v841_v22 = vld [vmem:[%s253_s8] sm:$0xff]   ;;  %v842_v23 = vld [vmem:[%s253_s8 + $0x8] sm:$0xff]  }
  0x2e   : > { %459 = vmatpush1.bf16.msra.mxu0 %v822_v9  ;;  %768 = vmatpush1.bf16.msra.mxu1 %v822_v9  ;;  %v340_v25 = vld [vmem:[#allocation2 + $0x20] sm:$0xff]  ;;  %v337_v26 = vld [vmem:[#allocation2 + $0x8] sm:$0xff]  ;;  %v338_v30 = vld [vmem:[#allocation2 + $0x10] sm:$0xff]  ;;  %v541_v53 = vsub.s32 (!%p745_p11), 0, %v540_v49  ;;  %v545_v54 = vsub.s32 (!%p745_p11), 1, %v540_v49 }
  0x2f   : > { %460 = vmatprep.subr.bf16.mxu0 %v823_v10  ;;  %761 = vmatprep.subr.bf16.mxu1 %v823_v10  ;;  %v341_v27 = vld [vmem:[#allocation2 + $0x28] sm:$0xff]  ;;  %v342_v31 = vld [vmem:[#allocation2 + $0x30] sm:$0xff]  ;;  %v339_v36 = vld [vmem:[#allocation2 + $0x18] sm:$0xff] }
  0x30   : > { %v343_v37 = vld [vmem:[#allocation2 + $0x38] sm:$0xff]  ;;  %v537_v50 = vld [vmem:[%s1014_s2] sm:$0x3] (!%p745_p11) }
  0x31   : > { %v542_v58 = vrot.slane (!%p745_p11), %v537_v50, %v541_v53  ;;  %v546_v59 = vrot.slane (!%p745_p11), %v537_v50, %v545_v54 }
  0x32   : > { %461 = vmatpush1.bf16.msra.mxu0 %v825_v11  ;;  %769 = vmatpush1.bf16.msra.mxu1 %v825_v11 }
  0x33   : > { %462 = vmatprep.subr.bf16.mxu0 %v826_v12  ;;  %762 = vmatprep.subr.bf16.mxu1 %v826_v12 }
  0x36   : > { %463 = vmatpush1.bf16.msra.mxu0 %v828_v13  ;;  %770 = vmatpush1.bf16.msra.mxu1 %v828_v13 }
  0x37   : > { %464 = vmatprep.subr.bf16.mxu0 %v829_v14  ;;  %763 = vmatprep.subr.bf16.mxu1 %v829_v14 }
  0x3a   : > { %465 = vmatpush1.bf16.msra.mxu0 %v831_v15  ;;  %771 = vmatpush1.bf16.msra.mxu1 %v831_v15 }
  0x3b   : > { %466 = vmatprep.subr.bf16.mxu0 %v832_v16  ;;  %764 = vmatprep.subr.bf16.mxu1 %v832_v16 }
  0x3e   : > { %467 = vmatpush1.bf16.msra.mxu0 %v834_v17  ;;  %772 = vmatpush1.bf16.msra.mxu1 %v834_v17 }
  0x3f   : > { %468 = vmatprep.subr.bf16.mxu0 %v835_v18  ;;  %765 = vmatprep.subr.bf16.mxu1 %v835_v18 }
  0x42   : > { %469 = vmatpush1.bf16.msra.mxu0 %v837_v19  ;;  %773 = vmatpush1.bf16.msra.mxu1 %v837_v19 }
  0x43   : > { %470 = vmatprep.subr.bf16.mxu0 %v838_v20  ;;  %766 = vmatprep.subr.bf16.mxu1 %v838_v20 }
  0x46   : > { %471 = vmatpush1.bf16.msra.mxu0 %v840_v21  ;;  %774 = vmatpush1.bf16.msra.mxu1 %v840_v21 }
  0x49   : > { %489 = vmatmul.mubr.bf16.vlgmr.msra.gmra.mrb[0].mxu0 %v841_v22  ;;  %499 = vmatmul.mubr.bf16.vlgmr.msra.gmra.mrb[0].mxu1 %v842_v23 }
 0x11c   : > { %v490_v28 = vpop.f32.mrb[0].mxu0  ;;  %v500_v29 = vpop.f32.mrb[0].mxu1  ;;  %528 = sbr.rel (%p745_p11) target bundleno = 306 (0x132), region = 81 }
 0x11d   : > { %v509_v32 = vadd.f32 %v490_v28, %v336_v24  ;;  %v513_v33 = vadd.f32 %v500_v29, %v340_v25  ;;  %v492_v34 = vpop.f32.mrb[1].mxu0  ;;  %v502_v35 = vpop.f32.mrb[1].mxu1 }
 0x11e   : > { %v510_v38 = vadd.f32 %v492_v34, %v337_v26  ;;  %v514_v39 = vadd.f32 %v502_v35, %v341_v27  ;;  %v494_v40 = vpop.f32.mrb[2].mxu0  ;;  %v504_v41 = vpop.f32.mrb[2].mxu1 }
 0x11f   : > { %517 = vst [vmem:[#allocation2] sm:$0xff] %v509_v32  ;;  %521 = vst [vmem:[#allocation2 + $0x20] sm:$0xff] %v513_v33  ;;  %v511_v42 = vadd.f32 %v494_v40, %v338_v30  ;;  %v515_v43 = vadd.f32 %v504_v41, %v342_v31  ;;  %v496_v44 = vpop.f32.mrb[3].mxu0  ;;  %v506_v45 = vpop.f32.mrb[3].mxu1 }
 0x120   : > { %518 = vst [vmem:[#allocation2 + $0x8] sm:$0xff] %v510_v38  ;;  %522 = vst [vmem:[#allocation2 + $0x28] sm:$0xff] %v514_v39  ;;  %v512_v46 = vadd.f32 %v496_v44, %v339_v36  ;;  %v516_v47 = vadd.f32 %v506_v45, %v343_v37 }
 0x121   : > { %519 = vst [vmem:[#allocation2 + $0x10] sm:$0xff] %v511_v42  ;;  %523 = vst [vmem:[#allocation2 + $0x30] sm:$0xff] %v515_v43 }
 0x122   : > { %520 = vst [vmem:[#allocation2 + $0x18] sm:$0xff] %v512_v46  ;;  %524 = vst [vmem:[#allocation2 + $0x38] sm:$0xff] %v516_v47 }
 0x126   : > { %v529_v51 = vld [vmem:[#allocation2] sm:$0xff] }
 0x127   : > { %v530_v52 = vld [vmem:[#allocation2 + $0x8] sm:$0xff]  ;;  %v533_v57 = vld [vmem:[#allocation2 + $0x20] sm:$0xff]  ;;  %v549_v63 = vadd.f32 %v542_v58, %v529_v51 }
 0x128   : > { %v531_v55 = vld [vmem:[#allocation2 + $0x10] sm:$0xff]  ;;  %v534_v60 = vld [vmem:[#allocation2 + $0x28] sm:$0xff]  ;;  %v550_v0 = vadd.f32 %v546_v59, %v530_v52  ;;  %v553_v3 = vadd.f32 %v542_v58, %v533_v57 }
 0x129   : > { %v532_v56 = vld [vmem:[#allocation2 + $0x18] sm:$0xff]  ;;  %v535_v61 = vld [vmem:[#allocation2 + $0x30] sm:$0xff]  ;;  %v551_v1 = vadd.f32 %v542_v58, %v531_v55  ;;  %v554_v4 = vadd.f32 %v546_v59, %v534_v60  ;;  %v557_v7 = vmax.f32 %v549_v63, 0.0 }
 0x12a   : > { %v536_v62 = vld [vmem:[#allocation2 + $0x38] sm:$0xff]  ;;  %v552_v2 = vadd.f32 %v546_v59, %v532_v56  ;;  %v555_v5 = vadd.f32 %v542_v58, %v535_v61  ;;  %v558_v8 = vmax.f32 %v550_v0, 0.0  ;;  %v561_v11 = vmax.f32 %v553_v3, 0.0 }
 0x12b   : > { %v556_v6 = vadd.f32 %v546_v59, %v536_v62  ;;  %v559_v9 = vmax.f32 %v551_v1, 0.0  ;;  %v562_v12 = vmax.f32 %v554_v4, 0.0 }
 0x12c   : > { %v560_v10 = vmax.f32 %v552_v2, 0.0  ;;  %v563_v13 = vmax.f32 %v555_v5, 0.0  ;;  %v755_v15 = vpack.c.bf16 %v558_v8, %v557_v7 }
 0x12d   : > { %v564_v14 = vmax.f32 %v556_v6, 0.0  ;;  %v757_v17 = vpack.c.bf16 %v562_v12, %v561_v11 }
 0x12e   : > { %v756_v16 = vpack.c.bf16 %v560_v10, %v559_v9  ;;  %589 = vst [vmem:[%s1015_s3] sm:$0xff] %v755_v15 }
 0x12f   : > { %v758_v18 = vpack.c.bf16 %v564_v14, %v563_v13  ;;  %591 = vst [vmem:[%s1015_s3 + $0x10] sm:$0xff] %v757_v17 }
 0x130   : > { %590 = vst [vmem:[%s1015_s3 + $0x8] sm:$0xff] %v756_v16 }
 0x131   : > { %592 = vst [vmem:[%s1015_s3 + $0x18] sm:$0xff] %v758_v18 }
 0x132 PF: > { %s13_s16 = sadd.s32 1, %s881_s16   ;;  %s1016_s12 = smov %s869_s13 }
 0x133   : > { %p10_p12 = scmp.ge.s32.totalorder %s13_s16, 11   ;;  %s1017_s13 = smov %s940_s20 }
 0x134   : > { %s1018_s14 = smov %s877_s15  ;;  %s1019_s15 = smov %s1021_s17 }
 0x135   :  { %12 = sbr.rel (!%p10_p12) target bundleno = 3 (0x3), region = 122 }

// kernel: forward.34
= control target key start
LH: loop header
LB: loop body
LE: loop exit
PB: predicated region body
PF: predicated region fallthrough
CT: control target
= control target key end

     0   :  { %s1181_s15 = smov 0   ;;  %s1183_s16 = smov 0   ;;  %s1315_s0 = inlined_call_operand.vmem [shape: bf16[32,2304], index: 0, kind: input, shape index: {}]   ;;  %s1316_s1 = inlined_call_operand.vmem [shape: bf16[2304,256], index: 1, kind: input, shape index: {}]   ;;  %s1317_s2 = inlined_call_operand.vmem [shape: f32[1,256], index: 2, kind: input, shape index: {}]   ;;  %s1318_s3 = inlined_call_operand.vmem [shape: bf16[32,256], index: 3, kind: input, shape index: {}]   ;;  %s1319_s4 = inlined_call_operand.vmem [shape: bf16[32,256], index: 4, kind: output, shape index: {}]  }
   0x1   :  { %s1185_s17 = smov 0   ;;  %s1187_s18 = smov 0  }
   0x2   :  { %s1189_s19 = smov 0  }
   0x3 LB: > { %s26_s20 = sadd.s32 1, %s1149_s18  ;;  %p49_p1 = scmp.ne.s32.totalorder %s1141_s16, %s1137_s15  ;;  %s1153_s19 = sphi %s1189_s19, %s14_s19   ;;  %s1149_s18 = sphi %s1187_s18, %s1323_s18   ;;  %s1145_s17 = sphi %s1185_s17, %s1322_s17   ;;  %s1141_s16 = sphi %s1183_s16, %s1321_s16   ;;  %s1137_s15 = sphi %s1181_s15, %s1320_s15  }
   0x4   : > { %p27_p0 = scmp.ge.s32.totalorder %s26_s20, 9  ;;  %p50_p2 = scmp.eq.s32.totalorder %s1153_s19, 0 }
   0x5   : > { %s42_s22 = sadd.s32 1, %s1141_s16  ;;  %p927_p5 = scmp.ge.s32.totalorder %s1153_s19, 9 }
   0x6   : > { %s1325_s20 = smov (%p27_p0, %s26_s20), 0  ;;  %p51_p3 = por %p50_p2, %p49_p1 }
   0x7   : > { %s38_s21 = ssub.s32 %s1149_s18, %s1325_s20  ;;  %208 = sbr.rel (%p927_p5) target bundleno = 21 (0x15), region = 24 }
   0x8   : > { %p40_p4 = scmp.eq.s32.totalorder %s38_s21, 0 }
   0xa   : > { %s1216_s23 = scalar_select %p40_p4, %s1141_s16, %s42_s22  }
   0xe   : > { %211 = sbr.rel (!%p51_p3) target bundleno = 21 (0x15), region = 28  ;;  %s213_s24 = sand.u32 (%p51_p3), 1, %s1141_s16  }
   0xf   : > { %s982_s25 = sshll.u32 (%p51_p3), %s1149_s18, 3  ;;  %s928_s26 = sshll.u32 (%p51_p3), %s213_s24, 5 }
  0x10   : > { %s221_s29 = scalar_lea.vmem (%p51_p3), %s1315_s0, %s982_s25  ;;  %s215_s30 = scalar_lea.vmem (%p51_p3), [#allocation3], %s928_s26 }
  0x11   : > { %v255_v0 = vld [vmem:[%s221_s29] sm:$0xff] (%p51_p3)  ;;  %v257_v1 = vld [vmem:[%s221_s29 + $0x48] sm:$0xff] (%p51_p3)  ;;  %v259_v2 = vld [vmem:[%s221_s29 + $0x90] sm:$0xff] (%p51_p3) }
  0x12   : > { %256 = vst [vmem:[%s215_s30] sm:$0xff] (%p51_p3), %v255_v0  ;;  %258 = vst [vmem:[%s215_s30 + $0x8] sm:$0xff] (%p51_p3), %v257_v1  ;;  %v261_v3 = vld [vmem:[%s221_s29 + $0xd8] sm:$0xff] (%p51_p3) }
  0x13   : > { %260 = vst [vmem:[%s215_s30 + $0x10] sm:$0xff] (%p51_p3), %v259_v2  ;;  %262 = vst [vmem:[%s215_s30 + $0x18] sm:$0xff] (%p51_p3), %v261_v3 }
  0x15 PF: > { %p931_p6 = scmp.ge.s32.totalorder %s1153_s19, 1  ;;  %p282_p7 = scmp.lt.s32.totalorder %s1153_s19, 10 }
  0x17   : > { %p283_p8 = pnand %p931_p6, %p282_p7 }
  0x18   : > { %s289_s5 = sand.u32 (!%p283_p8), 1, %s1137_s15   ;;  %s933_s6 = sshll.u32 (!%p283_p8), %s1145_s17, 5 }
  0x19   : > { %286 = sbr.rel (%p283_p8) target bundleno = 339 (0x153), region = 70  ;;  %s932_s7 = sshll.u32 (!%p283_p8), %s289_s5, 5 }
  0x1a   : > { %p347_p9 = scmp.lt.s32.totalorder (!%p283_p8), %s933_s6, 287  ;;  %s1233_s12 = scalar_lea.vmem (!%p283_p8), [#allocation3], %s932_s7 }
  0x1b   : > { %p936_p10 = scmp.ne.s32.totalorder (!%p283_p8), %s1145_s17, 0 }
  0x20   : > { %s1327_s6 = smov (!%p347_p9, %s933_s6), 287  ;;  %389 = sbr.rel (%p936_p10) target bundleno = 39 (0x27), region = 78 }
  0x21   : > { %s983_s8 = sshll.u32 %s1327_s6, 3  ;;  %v1155_v4 = vmov (!%p936_p10), 0.0  }
  0x22   : > { %s1231_s11 = scalar_lea.vmem %s1316_s1, %s983_s8  ;;  %390 = vst [vmem:[#allocation2] sm:$0xff] (!%p936_p10), %v1155_v4  ;;  %391 = vst [vmem:[#allocation2 + $0x8] sm:$0xff] (!%p936_p10), %v1155_v4 }
  0x23   : > { %392 = vst [vmem:[#allocation2 + $0x10] sm:$0xff] (!%p936_p10), %v1155_v4  ;;  %393 = vst [vmem:[#allocation2 + $0x18] sm:$0xff] (!%p936_p10), %v1155_v4 }
  0x24   : > { %394 = vst [vmem:[#allocation2 + $0x20] sm:$0xff] (!%p936_p10), %v1155_v4  ;;  %395 = vst [vmem:[#allocation2 + $0x28] sm:$0xff] (!%p936_p10), %v1155_v4 }
  0x25   : > { %396 = vst [vmem:[#allocation2 + $0x30] sm:$0xff] (!%p936_p10), %v1155_v4  ;;  %397 = vst [vmem:[#allocation2 + $0x38] sm:$0xff] (!%p936_p10), %v1155_v4 }
  0x27 PF: > { %v1061_v5 = vld [vmem:[%s1231_s11 + $0x4] ss:$8 sps:$4 sm:$0xff]   ;;  %v1063_v6 = vld [vmem:[%s1231_s11] ss:$8 sps:$4 sm:$0xff]   ;;  %v1064_v7 = vld [vmem:[%s1231_s11 + $0x14] ss:$8 sps:$4 sm:$0xff]  }
  0x28   : > { %622 = vmatprep.subr.bf16.mxu0 %v1061_v5  ;;  %988 = vmatprep.subr.bf16.mxu1 %v1061_v5  ;;  %v1066_v8 = vld [vmem:[%s1231_s11 + $0x10] ss:$8 sps:$4 sm:$0xff]   ;;  %v1067_v9 = vld [vmem:[%s1231_s11 + $0x24] ss:$8 sps:$4 sm:$0xff]   ;;  %v1069_v10 = vld [vmem:[%s1231_s11 + $0x20] ss:$8 sps:$4 sm:$0xff]  }
  0x29   : > { %623 = vmatpush1.bf16.msra.mxu0 %v1063_v6  ;;  %1004 = vmatpush1.bf16.msra.mxu1 %v1063_v6  ;;  %v1070_v11 = vld [vmem:[%s1231_s11 + $0x34] ss:$8 sps:$4 sm:$0xff]   ;;  %v1072_v12 = vld [vmem:[%s1231_s11 + $0x30] ss:$8 sps:$4 sm:$0xff]   ;;  %v1073_v13 = vld [vmem:[%s1231_s11 + $0x44] ss:$8 sps:$4 sm:$0xff]  }
  0x2a   : > { %624 = vmatprep.subr.bf16.mxu0 %v1064_v7  ;;  %989 = vmatprep.subr.bf16.mxu1 %v1064_v7  ;;  %v1075_v14 = vld [vmem:[%s1231_s11 + $0x40] ss:$8 sps:$4 sm:$0xff]   ;;  %v1076_v15 = vld [vmem:[%s1231_s11 + $0x54] ss:$8 sps:$4 sm:$0xff]   ;;  %v1078_v16 = vld [vmem:[%s1231_s11 + $0x50] ss:$8 sps:$4 sm:$0xff]  }
  0x2b   : > { %v1079_v17 = vld [vmem:[%s1231_s11 + $0x64] ss:$8 sps:$4 sm:$0xff]   ;;  %v1081_v19 = vld [vmem:[%s1231_s11 + $0x60] ss:$8 sps:$4 sm:$0xff]   ;;  %v1114_v20 = vld [vmem:[%s1233_s12 + $0x14] ss:$8 sps:$4 sm:$0xff]  }
  0x2c   : > { %v1111_v18 = vld [vmem:[%s1233_s12 + $0x4] ss:$8 sps:$4 sm:$0xff]   ;;  %v1082_v21 = vld [vmem:[%s1231_s11 + $0x74] ss:$8 sps:$4 sm:$0xff]   ;;  %664 = vmatprep.mubr.bf16.mxu1 %v1114_v20  ;;  %v1084_v22 = vld [vmem:[%s1231_s11 + $0x70] ss:$8 sps:$4 sm:$0xff]  }
  0x2d   : > { %625 = vmatpush1.bf16.msra.mxu0 %v1066_v8  ;;  %1005 = vmatpush1.bf16.msra.mxu1 %v1066_v8  ;;  %v1085_v23 = vld [vmem:[%s1231_s11 + $0x84] ss:$8 sps:$4 sm:$0xff]   ;;  %v1087_v24 = vld [vmem:[%s1231_s11 + $0x80] ss:$8 sps:$4 sm:$0xff]   ;;  %v1088_v25 = vld [vmem:[%s1231_s11 + $0x94] ss:$8 sps:$4 sm:$0xff]  }
  0x2e   : > { %626 = vmatprep.subr.bf16.mxu0 %v1067_v9  ;;  %990 = vmatprep.subr.bf16.mxu1 %v1067_v9  ;;  %v1090_v26 = vld [vmem:[%s1231_s11 + $0x90] ss:$8 sps:$4 sm:$0xff]   ;;  %v1091_v27 = vld [vmem:[%s1231_s11 + $0xa4] ss:$8 sps:$4 sm:$0xff]   ;;  %v1093_v28 = vld [vmem:[%s1231_s11 + $0xa0] ss:$8 sps:$4 sm:$0xff]  }
  0x2f   : > { %654 = vmatprep.mubr.bf16.mxu0 %v1111_v18  ;;  %v1094_v29 = vld [vmem:[%s1231_s11 + $0xb4] ss:$8 sps:$4 sm:$0xff]   ;;  %v1096_v30 = vld [vmem:[%s1231_s11 + $0xb0] ss:$8 sps:$4 sm:$0xff]   ;;  %v1097_v31 = vld [vmem:[%s1231_s11 + $0xc4] ss:$8 sps:$4 sm:$0xff]  }
  0x30   : > { %v1099_v32 = vld [vmem:[%s1231_s11 + $0xc0] ss:$8 sps:$4 sm:$0xff]   ;;  %v1100_v33 = vld [vmem:[%s1231_s11 + $0xd4] ss:$8 sps:$4 sm:$0xff]   ;;  %v1102_v34 = vld [vmem:[%s1231_s11 + $0xd0] ss:$8 sps:$4 sm:$0xff]  }
  0x31   : > { %627 = vmatpush1.bf16.msra.mxu0 %v1069_v10  ;;  %1006 = vmatpush1.bf16.msra.mxu1 %v1069_v10  ;;  %v1103_v35 = vld [vmem:[%s1231_s11 + $0xe4] ss:$8 sps:$4 sm:$0xff]   ;;  %v1105_v36 = vld [vmem:[%s1231_s11 + $0xe0] ss:$8 sps:$4 sm:$0xff]   ;;  %v1106_v37 = vld [vmem:[%s1231_s11 + $0xf4] ss:$8 sps:$4 sm:$0xff]  }
  0x32   : > { %628 = vmatprep.subr.bf16.mxu0 %v1070_v11  ;;  %991 = vmatprep.subr.bf16.mxu1 %v1070_v11  ;;  %v1108_v38 = vld [vmem:[%s1231_s11 + $0xf0] ss:$8 sps:$4 sm:$0xff]   ;;  %v1109_v39 = vld [vmem:[%s1233_s12] ss:$8 sps:$4 sm:$0xff]   ;;  %p973_p11 = scmp.ne.s32.totalorder %s1145_s17, 8 }
  0x33   : > { %v1112_v40 = vld [vmem:[%s1233_s12 + $0x10] ss:$8 sps:$4 sm:$0xff]   ;;  %v398_v41 = vld [vmem:[#allocation2] sm:$0xff]  ;;  %v399_v43 = vld [vmem:[#allocation2 + $0x8] sm:$0xff]  ;;  %v705_v1 = vlaneseq (!%p973_p11) }
  0x34   : > { %v402_v42 = vld [vmem:[#allocation2 + $0x20] sm:$0xff]  ;;  %v403_v44 = vld [vmem:[#allocation2 + $0x28] sm:$0xff]  ;;  %v400_v47 = vld [vmem:[#allocation2 + $0x10] sm:$0xff] }
  0x35   : > { %629 = vmatpush1.bf16.msra.mxu0 %v1072_v12  ;;  %1007 = vmatpush1.bf16.msra.mxu1 %v1072_v12  ;;  %v404_v48 = vld [vmem:[#allocation2 + $0x30] sm:$0xff]  ;;  %v401_v53 = vld [vmem:[#allocation2 + $0x18] sm:$0xff]  ;;  %v706_v2 = vshrl.u32 (!%p973_p11), %v705_v1, 7  ;;  %v723_v3 = vld [vmem:[%s1318_s3] sm:$0xff] (!%p973_p11) }
  0x36   : > { %630 = vmatprep.subr.bf16.mxu0 %v1073_v13  ;;  %992 = vmatprep.subr.bf16.mxu1 %v1073_v13  ;;  %v405_v54 = vld [vmem:[#allocation2 + $0x38] sm:$0xff]  ;;  %v703_v5 = vld [vmem:[%s1317_s2] sm:$0x3] (!%p973_p11)  ;;  %v724_v6 = vld [vmem:[%s1318_s3 + $0x8] sm:$0xff] (!%p973_p11)  ;;  %v727_v12 = vunpack.c.l.bf16 (!%p973_p11), %v723_v3  ;;  %v728_v13 = vunpack.c.h.bf16 (!%p973_p11), %v723_v3 }
  0x37   : > { %v707_v8 = vsub.s32 (!%p973_p11), 0, %v706_v2  ;;  %v711_v9 = vsub.s32 (!%p973_p11), 1, %v706_v2  ;;  %v725_v10 = vld [vmem:[%s1318_s3 + $0x10] sm:$0xff] (!%p973_p11)  ;;  %v726_v11 = vld [vmem:[%s1318_s3 + $0x18] sm:$0xff] (!%p973_p11)  ;;  %v730_v20 = vunpack.c.h.bf16 (!%p973_p11), %v724_v6 }
  0x39   : > { %631 = vmatpush1.bf16.msra.mxu0 %v1075_v14  ;;  %1008 = vmatpush1.bf16.msra.mxu1 %v1075_v14  ;;  %v712_v18 = vrot.slane (!%p973_p11), %v703_v5, %v711_v9 }
  0x3a   : > { %632 = vmatprep.subr.bf16.mxu0 %v1076_v15  ;;  %993 = vmatprep.subr.bf16.mxu1 %v1076_v15 }
  0x3d   : > { %633 = vmatpush1.bf16.msra.mxu0 %v1078_v16  ;;  %1009 = vmatpush1.bf16.msra.mxu1 %v1078_v16 }
  0x3e   : > { %634 = vmatprep.subr.bf16.mxu0 %v1079_v17  ;;  %994 = vmatprep.subr.bf16.mxu1 %v1079_v17  ;;  %v708_v17 = vrot.slane (!%p973_p11), %v703_v5, %v707_v8 }
  0x41   : > { %635 = vmatpush1.bf16.msra.mxu0 %v1081_v19  ;;  %1010 = vmatpush1.bf16.msra.mxu1 %v1081_v19  ;;  %v729_v19 = vunpack.c.l.bf16 (!%p973_p11), %v724_v6 }
  0x42   : > { %636 = vmatprep.subr.bf16.mxu0 %v1082_v21  ;;  %995 = vmatprep.subr.bf16.mxu1 %v1082_v21 }
  0x45   : > { %637 = vmatpush1.bf16.msra.mxu0 %v1084_v22  ;;  %1011 = vmatpush1.bf16.msra.mxu1 %v1084_v22 }
  0x46   : > { %638 = vmatprep.subr.bf16.mxu0 %v1085_v23  ;;  %996 = vmatprep.subr.bf16.mxu1 %v1085_v23 }
  0x49   : > { %639 = vmatpush1.bf16.msra.mxu0 %v1087_v24  ;;  %1012 = vmatpush1.bf16.msra.mxu1 %v1087_v24  ;;  %v731_v24 = vunpack.c.l.bf16 (!%p973_p11), %v725_v10 }
  0x4a   : > { %640 = vmatprep.subr.bf16.mxu0 %v1088_v25  ;;  %997 = vmatprep.subr.bf16.mxu1 %v1088_v25  ;;  %v732_v25 = vunpack.c.h.bf16 (!%p973_p11), %v725_v10 }
  0x4d   : > { %641 = vmatpush1.bf16.msra.mxu0 %v1090_v26  ;;  %1013 = vmatpush1.bf16.msra.mxu1 %v1090_v26  ;;  %v733_v26 = vunpack.c.l.bf16 (!%p973_p11), %v726_v11 }
  0x4e   : > { %642 = vmatprep.subr.bf16.mxu0 %v1091_v27  ;;  %998 = vmatprep.subr.bf16.mxu1 %v1091_v27  ;;  %v734_v27 = vunpack.c.h.bf16 (!%p973_p11), %v726_v11 }
  0x51   : > { %643 = vmatpush1.bf16.msra.mxu0 %v1093_v28  ;;  %1014 = vmatpush1.bf16.msra.mxu1 %v1093_v28 }
  0x52   : > { %644 = vmatprep.subr.bf16.mxu0 %v1094_v29  ;;  %999 = vmatprep.subr.bf16.mxu1 %v1094_v29 }
  0x55   : > { %645 = vmatpush1.bf16.msra.mxu0 %v1096_v30  ;;  %1015 = vmatpush1.bf16.msra.mxu1 %v1096_v30 }
  0x56   : > { %646 = vmatprep.subr.bf16.mxu0 %v1097_v31  ;;  %1000 = vmatprep.subr.bf16.mxu1 %v1097_v31 }
  0x59   : > { %647 = vmatpush1.bf16.msra.mxu0 %v1099_v32  ;;  %1016 = vmatpush1.bf16.msra.mxu1 %v1099_v32 }
  0x5a   : > { %648 = vmatprep.subr.bf16.mxu0 %v1100_v33  ;;  %1001 = vmatprep.subr.bf16.mxu1 %v1100_v33 }
  0x5d   : > { %649 = vmatpush1.bf16.msra.mxu0 %v1102_v34  ;;  %1017 = vmatpush1.bf16.msra.mxu1 %v1102_v34 }
  0x5e   : > { %650 = vmatprep.subr.bf16.mxu0 %v1103_v35  ;;  %1002 = vmatprep.subr.bf16.mxu1 %v1103_v35 }
  0x61   : > { %651 = vmatpush1.bf16.msra.mxu0 %v1105_v36  ;;  %1018 = vmatpush1.bf16.msra.mxu1 %v1105_v36 }
  0x62   : > { %652 = vmatprep.subr.bf16.mxu0 %v1106_v37  ;;  %1003 = vmatprep.subr.bf16.mxu1 %v1106_v37 }
  0x65   : > { %653 = vmatpush1.bf16.msra.mxu0 %v1108_v38  ;;  %1019 = vmatpush1.bf16.msra.mxu1 %v1108_v38 }
  0x68   : > { %655 = vmatmul.mubr.bf16.vlgmr.msra.gmra.mrb[0].mxu0 %v1109_v39  ;;  %665 = vmatmul.mubr.bf16.vlgmr.msra.gmra.mrb[0].mxu1 %v1112_v40 }
 0x13b   : > { %v656_v45 = vpop.f32.mrb[0].mxu0  ;;  %v666_v46 = vpop.f32.mrb[0].mxu1  ;;  %694 = sbr.rel (%p973_p11) target bundleno = 339 (0x153), region = 82 }
 0x13c   : > { %v675_v49 = vadd.f32 %v656_v45, %v398_v41  ;;  %v679_v50 = vadd.f32 %v666_v46, %v402_v42  ;;  %v658_v51 = vpop.f32.mrb[1].mxu0  ;;  %v668_v52 = vpop.f32.mrb[1].mxu1 }
 0x13d   : > { %v676_v55 = vadd.f32 %v658_v51, %v399_v43  ;;  %v680_v56 = vadd.f32 %v668_v52, %v403_v44  ;;  %v660_v57 = vpop.f32.mrb[2].mxu0  ;;  %v670_v58 = vpop.f32.mrb[2].mxu1 }
 0x13e   : > { %683 = vst [vmem:[#allocation2] sm:$0xff] %v675_v49  ;;  %687 = vst [vmem:[#allocation2 + $0x20] sm:$0xff] %v679_v50  ;;  %v677_v59 = vadd.f32 %v660_v57, %v400_v47  ;;  %v681_v60 = vadd.f32 %v670_v58, %v404_v48  ;;  %v662_v61 = vpop.f32.mrb[3].mxu0  ;;  %v672_v62 = vpop.f32.mrb[3].mxu1 }
 0x13f   : > { %684 = vst [vmem:[#allocation2 + $0x8] sm:$0xff] %v676_v55  ;;  %688 = vst [vmem:[#allocation2 + $0x28] sm:$0xff] %v680_v56  ;;  %v678_v63 = vadd.f32 %v662_v61, %v401_v53  ;;  %v682_v0 = vadd.f32 %v672_v62, %v405_v54 }
 0x140   : > { %685 = vst [vmem:[#allocation2 + $0x10] sm:$0xff] %v677_v59  ;;  %689 = vst [vmem:[#allocation2 + $0x30] sm:$0xff] %v681_v60 }
 0x141   : > { %686 = vst [vmem:[#allocation2 + $0x18] sm:$0xff] %v678_v63  ;;  %690 = vst [vmem:[#allocation2 + $0x38] sm:$0xff] %v682_v0 }
 0x145   : > { %v695_v4 = vld [vmem:[#allocation2] sm:$0xff] }
 0x146   : > { %v696_v7 = vld [vmem:[#allocation2 + $0x8] sm:$0xff]  ;;  %v699_v16 = vld [vmem:[#allocation2 + $0x20] sm:$0xff]  ;;  %v715_v28 = vadd.f32 %v708_v17, %v695_v4 }
 0x147   : > { %v697_v14 = vld [vmem:[#allocation2 + $0x10] sm:$0xff]  ;;  %v700_v21 = vld [vmem:[#allocation2 + $0x28] sm:$0xff]  ;;  %v716_v29 = vadd.f32 %v712_v18, %v696_v7  ;;  %v719_v32 = vadd.f32 %v708_v17, %v699_v16 }
 0x148   : > { %v698_v15 = vld [vmem:[#allocation2 + $0x18] sm:$0xff]  ;;  %v701_v22 = vld [vmem:[#allocation2 + $0x30] sm:$0xff]  ;;  %v717_v30 = vadd.f32 %v708_v17, %v697_v14  ;;  %v720_v33 = vadd.f32 %v712_v18, %v700_v21  ;;  %v735_v36 = vadd.f32 %v727_v12, %v715_v28 }
 0x149   : > { %v702_v23 = vld [vmem:[#allocation2 + $0x38] sm:$0xff]  ;;  %v718_v31 = vadd.f32 %v712_v18, %v698_v15  ;;  %v721_v34 = vadd.f32 %v708_v17, %v701_v22  ;;  %v736_v37 = vadd.f32 %v728_v13, %v716_v29  ;;  %v739_v40 = vadd.f32 %v731_v24, %v719_v32 }
 0x14a   : > { %v722_v35 = vadd.f32 %v712_v18, %v702_v23  ;;  %v737_v38 = vadd.f32 %v729_v19, %v717_v30  ;;  %v740_v41 = vadd.f32 %v732_v25, %v720_v33  ;;  %v743_v44 = vmax.f32 %v735_v36, 0.0 }
 0x14b   : > { %v738_v39 = vadd.f32 %v730_v20, %v718_v31  ;;  %v741_v42 = vadd.f32 %v733_v26, %v721_v34  ;;  %v744_v45 = vmax.f32 %v736_v37, 0.0  ;;  %v747_v48 = vmax.f32 %v739_v40, 0.0 }
 0x14c   : > { %v742_v43 = vadd.f32 %v734_v27, %v722_v35  ;;  %v745_v46 = vmax.f32 %v737_v38, 0.0  ;;  %v748_v49 = vmax.f32 %v740_v41, 0.0 }
 0x14d   : > { %v746_v47 = vmax.f32 %v738_v39, 0.0  ;;  %v749_v50 = vmax.f32 %v741_v42, 0.0  ;;  %v984_v52 = vpack.c.bf16 %v744_v45, %v743_v44 }
 0x14e   : > { %v750_v51 = vmax.f32 %v742_v43, 0.0  ;;  %v986_v54 = vpack.c.bf16 %v748_v49, %v747_v48 }
 0x14f   : > { %v985_v53 = vpack.c.bf16 %v746_v47, %v745_v46  ;;  %775 = vst [vmem:[%s1319_s4] sm:$0xff] %v984_v52 }
 0x150   : > { %v987_v55 = vpack.c.bf16 %v750_v51, %v749_v50  ;;  %777 = vst [vmem:[%s1319_s4 + $0x10] sm:$0xff] %v986_v54 }
 0x151   : > { %776 = vst [vmem:[%s1319_s4 + $0x8] sm:$0xff] %v985_v53 }
 0x152   : > { %778 = vst [vmem:[%s1319_s4 + $0x18] sm:$0xff] %v987_v55 }
 0x153 PF: > { %s14_s19 = sadd.s32 1, %s1153_s19   ;;  %s1320_s15 = smov %s1141_s16 }
 0x154   : > { %p11_p12 = scmp.ge.s32.totalorder %s14_s19, 11   ;;  %s1321_s16 = smov %s1216_s23 }
 0x155   : > { %s1322_s17 = smov %s1149_s18  ;;  %s1323_s18 = smov %s1325_s20 }
 0x156   :  { %13 = sbr.rel (!%p11_p12) target bundleno = 3 (0x3), region = 126 }

// kernel: forward.35
= control target key start
LH: loop header
LB: loop body
LE: loop exit
PB: predicated region body
PF: predicated region fallthrough
CT: control target
= control target key end

     0   :  { %s1066_s12 = smov 0   ;;  %s1068_s13 = smov 0   ;;  %s1188_s0 = inlined_call_operand.vmem [shape: bf16[32,2304], index: 0, kind: input, shape index: {}]   ;;  %s1189_s1 = inlined_call_operand.vmem [shape: bf16[2304,256], index: 1, kind: input, shape index: {}]   ;;  %s1190_s2 = inlined_call_operand.vmem [shape: f32[1,256], index: 2, kind: input, shape index: {}]   ;;  %s1191_s3 = inlined_call_operand.vmem [shape: bf16[32,256], index: 3, kind: output, shape index: {}]  }
   0x1   :  { %s1070_s14 = smov 0   ;;  %s1072_s15 = smov 0  }
   0x2   :  { %s1074_s16 = smov 0  }
   0x3 LB: > { %s25_s17 = sadd.s32 1, %s1039_s15  ;;  %p48_p1 = scmp.ne.s32.totalorder %s1031_s13, %s1027_s12  ;;  %s1043_s16 = sphi %s1074_s16, %s13_s16   ;;  %s1039_s15 = sphi %s1072_s15, %s1195_s15   ;;  %s1035_s14 = sphi %s1070_s14, %s1194_s14   ;;  %s1031_s13 = sphi %s1068_s13, %s1193_s13   ;;  %s1027_s12 = sphi %s1066_s12, %s1192_s12  }
   0x4   : > { %p26_p0 = scmp.ge.s32.totalorder %s25_s17, 9  ;;  %p49_p2 = scmp.eq.s32.totalorder %s1043_s16, 0 }
   0x5   : > { %s41_s19 = sadd.s32 1, %s1031_s13  ;;  %p817_p5 = scmp.ge.s32.totalorder %s1043_s16, 9 }
   0x6   : > { %s1197_s17 = smov (%p26_p0, %s25_s17), 0  ;;  %p50_p3 = por %p49_p2, %p48_p1 }
   0x7   : > { %s37_s18 = ssub.s32 %s1039_s15, %s1197_s17  ;;  %164 = sbr.rel (%p817_p5) target bundleno = 21 (0x15), region = 20 }
   0x8   : > { %p39_p4 = scmp.eq.s32.totalorder %s37_s18, 0 }
   0xa   : > { %s1101_s20 = scalar_select %p39_p4, %s1031_s13, %s41_s19  }
   0xe   : > { %167 = sbr.rel (!%p50_p3) target bundleno = 21 (0x15), region = 24  ;;  %s169_s21 = sand.u32 (%p50_p3), 1, %s1031_s13  }
   0xf   : > { %s872_s22 = sshll.u32 (%p50_p3), %s1039_s15, 3  ;;  %s818_s23 = sshll.u32 (%p50_p3), %s169_s21, 5 }
  0x10   : > { %s177_s26 = scalar_lea.vmem (%p50_p3), %s1188_s0, %s872_s22  ;;  %s171_s27 = scalar_lea.vmem (%p50_p3), [#allocation3], %s818_s23 }
  0x11   : > { %v211_v0 = vld [vmem:[%s177_s26] sm:$0xff] (%p50_p3)  ;;  %v213_v1 = vld [vmem:[%s177_s26 + $0x48] sm:$0xff] (%p50_p3)  ;;  %v215_v2 = vld [vmem:[%s177_s26 + $0x90] sm:$0xff] (%p50_p3) }
  0x12   : > { %212 = vst [vmem:[%s171_s27] sm:$0xff] (%p50_p3), %v211_v0  ;;  %214 = vst [vmem:[%s171_s27 + $0x8] sm:$0xff] (%p50_p3), %v213_v1  ;;  %v217_v3 = vld [vmem:[%s177_s26 + $0xd8] sm:$0xff] (%p50_p3) }
  0x13   : > { %216 = vst [vmem:[%s171_s27 + $0x10] sm:$0xff] (%p50_p3), %v215_v2  ;;  %218 = vst [vmem:[%s171_s27 + $0x18] sm:$0xff] (%p50_p3), %v217_v3 }
  0x15 PF: > { %p821_p6 = scmp.ge.s32.totalorder %s1043_s16, 1  ;;  %p238_p7 = scmp.lt.s32.totalorder %s1043_s16, 10 }
  0x17   : > { %p239_p8 = pnand %p821_p6, %p238_p7 }
  0x18   : > { %s245_s28 = sand.u32 (!%p239_p8), 1, %s1027_s12   ;;  %s823_s29 = sshll.u32 (!%p239_p8), %s1035_s14, 5 }
  0x19   : > { %242 = sbr.rel (%p239_p8) target bundleno = 337 (0x151), region = 66  ;;  %s822_s30 = sshll.u32 (!%p239_p8), %s245_s28, 5 }
  0x1a   : > { %p291_p9 = scmp.lt.s32.totalorder (!%p239_p8), %s823_s29, 287  ;;  %s1118_s8 = scalar_lea.vmem (!%p239_p8), [#allocation3], %s822_s30 }
  0x1b   : > { %p826_p10 = scmp.ne.s32.totalorder (!%p239_p8), %s1035_s14, 0 }
  0x20   : > { %s1199_s29 = smov (!%p291_p9, %s823_s29), 287  ;;  %321 = sbr.rel (%p826_p10) target bundleno = 39 (0x27), region = 74 }
  0x21   : > { %s873_s4 = sshll.u32 %s1199_s29, 3  ;;  %v1045_v4 = vmov (!%p826_p10), 0.0  }
  0x22   : > { %s1116_s7 = scalar_lea.vmem %s1189_s1, %s873_s4  ;;  %322 = vst [vmem:[#allocation2] sm:$0xff] (!%p826_p10), %v1045_v4  ;;  %323 = vst [vmem:[#allocation2 + $0x8] sm:$0xff] (!%p826_p10), %v1045_v4 }
  0x23   : > { %324 = vst [vmem:[#allocation2 + $0x10] sm:$0xff] (!%p826_p10), %v1045_v4  ;;  %325 = vst [vmem:[#allocation2 + $0x18] sm:$0xff] (!%p826_p10), %v1045_v4 }
  0x24   : > { %326 = vst [vmem:[#allocation2 + $0x20] sm:$0xff] (!%p826_p10), %v1045_v4  ;;  %327 = vst [vmem:[#allocation2 + $0x28] sm:$0xff] (!%p826_p10), %v1045_v4 }
  0x25   : > { %328 = vst [vmem:[#allocation2 + $0x30] sm:$0xff] (!%p826_p10), %v1045_v4  ;;  %329 = vst [vmem:[#allocation2 + $0x38] sm:$0xff] (!%p826_p10), %v1045_v4 }
  0x27 PF: > { %v951_v5 = vld [vmem:[%s1116_s7 + $0x4] ss:$8 sps:$4 sm:$0xff]   ;;  %v953_v6 = vld [vmem:[%s1116_s7] ss:$8 sps:$4 sm:$0xff]   ;;  %v954_v7 = vld [vmem:[%s1116_s7 + $0x14] ss:$8 sps:$4 sm:$0xff]  }
  0x28   : > { %554 = vmatprep.subr.bf16.mxu0 %v951_v5  ;;  %878 = vmatprep.subr.bf16.mxu1 %v951_v5  ;;  %v956_v8 = vld [vmem:[%s1116_s7 + $0x10] ss:$8 sps:$4 sm:$0xff]   ;;  %v957_v9 = vld [vmem:[%s1116_s7 + $0x24] ss:$8 sps:$4 sm:$0xff]   ;;  %v959_v10 = vld [vmem:[%s1116_s7 + $0x20] ss:$8 sps:$4 sm:$0xff]  }
  0x29   : > { %555 = vmatpush1.bf16.msra.mxu0 %v953_v6  ;;  %894 = vmatpush1.bf16.msra.mxu1 %v953_v6  ;;  %v960_v11 = vld [vmem:[%s1116_s7 + $0x34] ss:$8 sps:$4 sm:$0xff]   ;;  %v962_v12 = vld [vmem:[%s1116_s7 + $0x30] ss:$8 sps:$4 sm:$0xff]   ;;  %v963_v13 = vld [vmem:[%s1116_s7 + $0x44] ss:$8 sps:$4 sm:$0xff]  }
  0x2a   : > { %556 = vmatprep.subr.bf16.mxu0 %v954_v7  ;;  %879 = vmatprep.subr.bf16.mxu1 %v954_v7  ;;  %v965_v14 = vld [vmem:[%s1116_s7 + $0x40] ss:$8 sps:$4 sm:$0xff]   ;;  %v966_v15 = vld [vmem:[%s1116_s7 + $0x54] ss:$8 sps:$4 sm:$0xff]   ;;  %v968_v16 = vld [vmem:[%s1116_s7 + $0x50] ss:$8 sps:$4 sm:$0xff]  }
  0x2b   : > { %v969_v17 = vld [vmem:[%s1116_s7 + $0x64] ss:$8 sps:$4 sm:$0xff]   ;;  %v971_v19 = vld [vmem:[%s1116_s7 + $0x60] ss:$8 sps:$4 sm:$0xff]   ;;  %v1004_v20 = vld [vmem:[%s1118_s8 + $0x14] ss:$8 sps:$4 sm:$0xff]  }
  0x2c   : > { %v1001_v18 = vld [vmem:[%s1118_s8 + $0x4] ss:$8 sps:$4 sm:$0xff]   ;;  %v972_v21 = vld [vmem:[%s1116_s7 + $0x74] ss:$8 sps:$4 sm:$0xff]   ;;  %596 = vmatprep.mubr.bf16.mxu1 %v1004_v20  ;;  %v974_v22 = vld [vmem:[%s1116_s7 + $0x70] ss:$8 sps:$4 sm:$0xff]  }
  0x2d   : > { %557 = vmatpush1.bf16.msra.mxu0 %v956_v8  ;;  %895 = vmatpush1.bf16.msra.mxu1 %v956_v8  ;;  %v975_v23 = vld [vmem:[%s1116_s7 + $0x84] ss:$8 sps:$4 sm:$0xff]   ;;  %v977_v24 = vld [vmem:[%s1116_s7 + $0x80] ss:$8 sps:$4 sm:$0xff]   ;;  %v978_v25 = vld [vmem:[%s1116_s7 + $0x94] ss:$8 sps:$4 sm:$0xff]  }
  0x2e   : > { %558 = vmatprep.subr.bf16.mxu0 %v957_v9  ;;  %880 = vmatprep.subr.bf16.mxu1 %v957_v9  ;;  %v980_v26 = vld [vmem:[%s1116_s7 + $0x90] ss:$8 sps:$4 sm:$0xff]   ;;  %v981_v27 = vld [vmem:[%s1116_s7 + $0xa4] ss:$8 sps:$4 sm:$0xff]   ;;  %v983_v28 = vld [vmem:[%s1116_s7 + $0xa0] ss:$8 sps:$4 sm:$0xff]  }
  0x2f   : > { %586 = vmatprep.mubr.bf16.mxu0 %v1001_v18  ;;  %v984_v29 = vld [vmem:[%s1116_s7 + $0xb4] ss:$8 sps:$4 sm:$0xff]   ;;  %v986_v30 = vld [vmem:[%s1116_s7 + $0xb0] ss:$8 sps:$4 sm:$0xff]   ;;  %v987_v31 = vld [vmem:[%s1116_s7 + $0xc4] ss:$8 sps:$4 sm:$0xff]  }
  0x30   : > { %v989_v32 = vld [vmem:[%s1116_s7 + $0xc0] ss:$8 sps:$4 sm:$0xff]   ;;  %v990_v33 = vld [vmem:[%s1116_s7 + $0xd4] ss:$8 sps:$4 sm:$0xff]   ;;  %v992_v34 = vld [vmem:[%s1116_s7 + $0xd0] ss:$8 sps:$4 sm:$0xff]  }
  0x31   : > { %559 = vmatpush1.bf16.msra.mxu0 %v959_v10  ;;  %896 = vmatpush1.bf16.msra.mxu1 %v959_v10  ;;  %v993_v35 = vld [vmem:[%s1116_s7 + $0xe4] ss:$8 sps:$4 sm:$0xff]   ;;  %v995_v36 = vld [vmem:[%s1116_s7 + $0xe0] ss:$8 sps:$4 sm:$0xff]   ;;  %v996_v37 = vld [vmem:[%s1116_s7 + $0xf4] ss:$8 sps:$4 sm:$0xff]  }
  0x32   : > { %560 = vmatprep.subr.bf16.mxu0 %v960_v11  ;;  %881 = vmatprep.subr.bf16.mxu1 %v960_v11  ;;  %v998_v38 = vld [vmem:[%s1116_s7 + $0xf0] ss:$8 sps:$4 sm:$0xff]   ;;  %v999_v39 = vld [vmem:[%s1118_s8] ss:$8 sps:$4 sm:$0xff]   ;;  %p863_p11 = scmp.ne.s32.totalorder %s1035_s14, 8 }
  0x33   : > { %v1002_v40 = vld [vmem:[%s1118_s8 + $0x10] ss:$8 sps:$4 sm:$0xff]   ;;  %v330_v41 = vld [vmem:[#allocation2] sm:$0xff]  ;;  %v331_v43 = vld [vmem:[#allocation2 + $0x8] sm:$0xff]  ;;  %v637_v1 = vlaneseq (!%p863_p11) }
  0x34   : > { %v334_v42 = vld [vmem:[#allocation2 + $0x20] sm:$0xff]  ;;  %v335_v44 = vld [vmem:[#allocation2 + $0x28] sm:$0xff]  ;;  %v332_v47 = vld [vmem:[#allocation2 + $0x10] sm:$0xff] }
  0x35   : > { %561 = vmatpush1.bf16.msra.mxu0 %v962_v12  ;;  %897 = vmatpush1.bf16.msra.mxu1 %v962_v12  ;;  %v336_v48 = vld [vmem:[#allocation2 + $0x30] sm:$0xff]  ;;  %v333_v53 = vld [vmem:[#allocation2 + $0x18] sm:$0xff]  ;;  %v638_v2 = vshrl.u32 (!%p863_p11), %v637_v1, 7  ;;  %v635_v3 = vld [vmem:[%s1190_s2] sm:$0x3] (!%p863_p11) }
  0x36   : > { %562 = vmatprep.subr.bf16.mxu0 %v963_v13  ;;  %882 = vmatprep.subr.bf16.mxu1 %v963_v13  ;;  %v337_v54 = vld [vmem:[#allocation2 + $0x38] sm:$0xff] }
  0x37   : > { %v639_v6 = vsub.s32 (!%p863_p11), 0, %v638_v2  ;;  %v643_v7 = vsub.s32 (!%p863_p11), 1, %v638_v2 }
  0x39   : > { %563 = vmatpush1.bf16.msra.mxu0 %v965_v14  ;;  %898 = vmatpush1.bf16.msra.mxu1 %v965_v14  ;;  %v640_v11 = vrot.slane (!%p863_p11), %v635_v3, %v639_v6  ;;  %v644_v12 = vrot.slane (!%p863_p11), %v635_v3, %v643_v7 }
  0x3a   : > { %564 = vmatprep.subr.bf16.mxu0 %v966_v15  ;;  %883 = vmatprep.subr.bf16.mxu1 %v966_v15 }
  0x3d   : > { %565 = vmatpush1.bf16.msra.mxu0 %v968_v16  ;;  %899 = vmatpush1.bf16.msra.mxu1 %v968_v16 }
  0x3e   : > { %566 = vmatprep.subr.bf16.mxu0 %v969_v17  ;;  %884 = vmatprep.subr.bf16.mxu1 %v969_v17 }
  0x41   : > { %567 = vmatpush1.bf16.msra.mxu0 %v971_v19  ;;  %900 = vmatpush1.bf16.msra.mxu1 %v971_v19 }
  0x42   : > { %568 = vmatprep.subr.bf16.mxu0 %v972_v21  ;;  %885 = vmatprep.subr.bf16.mxu1 %v972_v21 }
  0x45   : > { %569 = vmatpush1.bf16.msra.mxu0 %v974_v22  ;;  %901 = vmatpush1.bf16.msra.mxu1 %v974_v22 }
  0x46   : > { %570 = vmatprep.subr.bf16.mxu0 %v975_v23  ;;  %886 = vmatprep.subr.bf16.mxu1 %v975_v23 }
  0x49   : > { %571 = vmatpush1.bf16.msra.mxu0 %v977_v24  ;;  %902 = vmatpush1.bf16.msra.mxu1 %v977_v24 }
  0x4a   : > { %572 = vmatprep.subr.bf16.mxu0 %v978_v25  ;;  %887 = vmatprep.subr.bf16.mxu1 %v978_v25 }
  0x4d   : > { %573 = vmatpush1.bf16.msra.mxu0 %v980_v26  ;;  %903 = vmatpush1.bf16.msra.mxu1 %v980_v26 }
  0x4e   : > { %574 = vmatprep.subr.bf16.mxu0 %v981_v27  ;;  %888 = vmatprep.subr.bf16.mxu1 %v981_v27 }
  0x51   : > { %575 = vmatpush1.bf16.msra.mxu0 %v983_v28  ;;  %904 = vmatpush1.bf16.msra.mxu1 %v983_v28 }
  0x52   : > { %576 = vmatprep.subr.bf16.mxu0 %v984_v29  ;;  %889 = vmatprep.subr.bf16.mxu1 %v984_v29 }
  0x55   : > { %577 = vmatpush1.bf16.msra.mxu0 %v986_v30  ;;  %905 = vmatpush1.bf16.msra.mxu1 %v986_v30 }
  0x56   : > { %578 = vmatprep.subr.bf16.mxu0 %v987_v31  ;;  %890 = vmatprep.subr.bf16.mxu1 %v987_v31 }
  0x59   : > { %579 = vmatpush1.bf16.msra.mxu0 %v989_v32  ;;  %906 = vmatpush1.bf16.msra.mxu1 %v989_v32 }
  0x5a   : > { %580 = vmatprep.subr.bf16.mxu0 %v990_v33  ;;  %891 = vmatprep.subr.bf16.mxu1 %v990_v33 }
  0x5d   : > { %581 = vmatpush1.bf16.msra.mxu0 %v992_v34  ;;  %907 = vmatpush1.bf16.msra.mxu1 %v992_v34 }
  0x5e   : > { %582 = vmatprep.subr.bf16.mxu0 %v993_v35  ;;  %892 = vmatprep.subr.bf16.mxu1 %v993_v35 }
  0x61   : > { %583 = vmatpush1.bf16.msra.mxu0 %v995_v36  ;;  %908 = vmatpush1.bf16.msra.mxu1 %v995_v36 }
  0x62   : > { %584 = vmatprep.subr.bf16.mxu0 %v996_v37  ;;  %893 = vmatprep.subr.bf16.mxu1 %v996_v37 }
  0x65   : > { %585 = vmatpush1.bf16.msra.mxu0 %v998_v38  ;;  %909 = vmatpush1.bf16.msra.mxu1 %v998_v38 }
  0x68   : > { %587 = vmatmul.mubr.bf16.vlgmr.msra.gmra.mrb[0].mxu0 %v999_v39  ;;  %597 = vmatmul.mubr.bf16.vlgmr.msra.gmra.mrb[0].mxu1 %v1002_v40 }
 0x13b   : > { %v588_v45 = vpop.f32.mrb[0].mxu0  ;;  %v598_v46 = vpop.f32.mrb[0].mxu1  ;;  %626 = sbr.rel (%p863_p11) target bundleno = 337 (0x151), region = 78 }
 0x13c   : > { %v607_v49 = vadd.f32 %v588_v45, %v330_v41  ;;  %v611_v50 = vadd.f32 %v598_v46, %v334_v42  ;;  %v590_v51 = vpop.f32.mrb[1].mxu0  ;;  %v600_v52 = vpop.f32.mrb[1].mxu1 }
 0x13d   : > { %v608_v55 = vadd.f32 %v590_v51, %v331_v43  ;;  %v612_v56 = vadd.f32 %v600_v52, %v335_v44  ;;  %v592_v57 = vpop.f32.mrb[2].mxu0  ;;  %v602_v58 = vpop.f32.mrb[2].mxu1 }
 0x13e   : > { %615 = vst [vmem:[#allocation2] sm:$0xff] %v607_v49  ;;  %619 = vst [vmem:[#allocation2 + $0x20] sm:$0xff] %v611_v50  ;;  %v609_v59 = vadd.f32 %v592_v57, %v332_v47  ;;  %v613_v60 = vadd.f32 %v602_v58, %v336_v48  ;;  %v594_v61 = vpop.f32.mrb[3].mxu0  ;;  %v604_v62 = vpop.f32.mrb[3].mxu1 }
 0x13f   : > { %616 = vst [vmem:[#allocation2 + $0x8] sm:$0xff] %v608_v55  ;;  %620 = vst [vmem:[#allocation2 + $0x28] sm:$0xff] %v612_v56  ;;  %v610_v63 = vadd.f32 %v594_v61, %v333_v53  ;;  %v614_v0 = vadd.f32 %v604_v62, %v337_v54 }
 0x140   : > { %617 = vst [vmem:[#allocation2 + $0x10] sm:$0xff] %v609_v59  ;;  %621 = vst [vmem:[#allocation2 + $0x30] sm:$0xff] %v613_v60 }
 0x141   : > { %618 = vst [vmem:[#allocation2 + $0x18] sm:$0xff] %v610_v63  ;;  %622 = vst [vmem:[#allocation2 + $0x38] sm:$0xff] %v614_v0 }
 0x145   : > { %v627_v4 = vld [vmem:[#allocation2] sm:$0xff] }
 0x146   : > { %v628_v5 = vld [vmem:[#allocation2 + $0x8] sm:$0xff]  ;;  %v631_v10 = vld [vmem:[#allocation2 + $0x20] sm:$0xff]  ;;  %v647_v16 = vadd.f32 %v640_v11, %v627_v4 }
 0x147   : > { %v629_v8 = vld [vmem:[#allocation2 + $0x10] sm:$0xff]  ;;  %v632_v13 = vld [vmem:[#allocation2 + $0x28] sm:$0xff]  ;;  %v648_v17 = vadd.f32 %v644_v12, %v628_v5  ;;  %v651_v20 = vadd.f32 %v640_v11, %v631_v10 }
 0x148   : > { %v630_v9 = vld [vmem:[#allocation2 + $0x18] sm:$0xff]  ;;  %v633_v14 = vld [vmem:[#allocation2 + $0x30] sm:$0xff]  ;;  %v649_v18 = vadd.f32 %v640_v11, %v629_v8  ;;  %v652_v21 = vadd.f32 %v644_v12, %v632_v13  ;;  %v655_v24 = vmax.f32 %v647_v16, 0.0 }
 0x149   : > { %v634_v15 = vld [vmem:[#allocation2 + $0x38] sm:$0xff]  ;;  %v650_v19 = vadd.f32 %v644_v12, %v630_v9  ;;  %v653_v22 = vadd.f32 %v640_v11, %v633_v14  ;;  %v656_v25 = vmax.f32 %v648_v17, 0.0  ;;  %v659_v28 = vmax.f32 %v651_v20, 0.0 }
 0x14a   : > { %v654_v23 = vadd.f32 %v644_v12, %v634_v15  ;;  %v657_v26 = vmax.f32 %v649_v18, 0.0  ;;  %v660_v29 = vmax.f32 %v652_v21, 0.0 }
 0x14b   : > { %v658_v27 = vmax.f32 %v650_v19, 0.0  ;;  %v661_v30 = vmax.f32 %v653_v22, 0.0  ;;  %v874_v32 = vpack.c.bf16 %v656_v25, %v655_v24 }
 0x14c   : > { %v662_v31 = vmax.f32 %v654_v23, 0.0  ;;  %v876_v34 = vpack.c.bf16 %v660_v29, %v659_v28 }
 0x14d   : > { %v875_v33 = vpack.c.bf16 %v658_v27, %v657_v26  ;;  %687 = vst [vmem:[%s1191_s3] sm:$0xff] %v874_v32 }
 0x14e   : > { %v877_v35 = vpack.c.bf16 %v662_v31, %v661_v30  ;;  %689 = vst [vmem:[%s1191_s3 + $0x10] sm:$0xff] %v876_v34 }
 0x14f   : > { %688 = vst [vmem:[%s1191_s3 + $0x8] sm:$0xff] %v875_v33 }
 0x150   : > { %690 = vst [vmem:[%s1191_s3 + $0x18] sm:$0xff] %v877_v35 }
 0x151 PF: > { %s13_s16 = sadd.s32 1, %s1043_s16   ;;  %s1192_s12 = smov %s1031_s13 }
 0x152   : > { %p10_p12 = scmp.ge.s32.totalorder %s13_s16, 11   ;;  %s1193_s13 = smov %s1101_s20 }
 0x153   : > { %s1194_s14 = smov %s1039_s15  ;;  %s1195_s15 = smov %s1197_s17 }
 0x154   :  { %12 = sbr.rel (!%p10_p12) target bundleno = 3 (0x3), region = 119 }

// kernel: forward.38
= control target key start
LH: loop header
LB: loop body
LE: loop exit
PB: predicated region body
PF: predicated region fallthrough
CT: control target
= control target key end

     0   :  { %s1011_s1 = inlined_call_operand.vmem [shape: bf16[256,512], index: 1, kind: input, shape index: {}]   ;;  %s1012_s0 = inlined_call_operand.vmem [shape: bf16[16,256], index: 0, kind: input, shape index: {}]   ;;  %s1013_s2 = inlined_call_operand.vmem [shape: f32[1,512], index: 2, kind: input, shape index: {}]   ;;  %s1014_s3 = inlined_call_operand.vmem [shape: bf16[16,512], index: 3, kind: output, shape index: {}]  }
   0x1   :  { %v679_v0 = vld [vmem:[%s1011_s1 + $0x4] ss:$16 sps:$4 sm:$0xff]   ;;  %v681_v1 = vld [vmem:[%s1011_s1 + $0xc] ss:$16 sps:$4 sm:$0xff]   ;;  %v683_v2 = vld [vmem:[%s1011_s1] ss:$16 sps:$4 sm:$0xff]  }
   0x2   :  { %430 = vmatprep.subr.bf16.mxu0 %v679_v0  ;;  %v684_v3 = vld [vmem:[%s1011_s1 + $0x8] ss:$16 sps:$4 sm:$0xff]   ;;  %473 = vmatprep.subr.bf16.mxu1 %v681_v1  ;;  %v685_v4 = vld [vmem:[%s1011_s1 + $0x24] ss:$16 sps:$4 sm:$0xff]   ;;  %v687_v5 = vld [vmem:[%s1011_s1 + $0x2c] ss:$16 sps:$4 sm:$0xff]  }
   0x3   :  { %431 = vmatpush1.bf16.msra.mxu0 %v683_v2  ;;  %474 = vmatpush1.bf16.msra.mxu1 %v684_v3  ;;  %v689_v6 = vld [vmem:[%s1011_s1 + $0x20] ss:$16 sps:$4 sm:$0xff]   ;;  %v690_v7 = vld [vmem:[%s1011_s1 + $0x28] ss:$16 sps:$4 sm:$0xff]   ;;  %v691_v8 = vld [vmem:[%s1011_s1 + $0x44] ss:$16 sps:$4 sm:$0xff]   ;;  %v545_v2 = vlaneseq }
   0x4   :  { %432 = vmatprep.subr.bf16.mxu0 %v685_v4  ;;  %475 = vmatprep.subr.bf16.mxu1 %v687_v5  ;;  %v693_v9 = vld [vmem:[%s1011_s1 + $0x4c] ss:$16 sps:$4 sm:$0xff]   ;;  %v695_v10 = vld [vmem:[%s1011_s1 + $0x40] ss:$16 sps:$4 sm:$0xff]   ;;  %v696_v11 = vld [vmem:[%s1011_s1 + $0x48] ss:$16 sps:$4 sm:$0xff]  }
   0x5   :  { %v697_v12 = vld [vmem:[%s1011_s1 + $0x64] ss:$16 sps:$4 sm:$0xff]   ;;  %v699_v13 = vld [vmem:[%s1011_s1 + $0x6c] ss:$16 sps:$4 sm:$0xff]   ;;  %v701_v14 = vld [vmem:[%s1011_s1 + $0x60] ss:$16 sps:$4 sm:$0xff]  }
   0x6   :  { %v702_v15 = vld [vmem:[%s1011_s1 + $0x68] ss:$16 sps:$4 sm:$0xff]   ;;  %v703_v16 = vld [vmem:[%s1011_s1 + $0x84] ss:$16 sps:$4 sm:$0xff]   ;;  %v705_v17 = vld [vmem:[%s1011_s1 + $0x8c] ss:$16 sps:$4 sm:$0xff]  }
   0x7   :  { %433 = vmatpush1.bf16.msra.mxu0 %v689_v6  ;;  %476 = vmatpush1.bf16.msra.mxu1 %v690_v7  ;;  %v707_v18 = vld [vmem:[%s1011_s1 + $0x80] ss:$16 sps:$4 sm:$0xff]   ;;  %v708_v19 = vld [vmem:[%s1011_s1 + $0x88] ss:$16 sps:$4 sm:$0xff]   ;;  %v709_v20 = vld [vmem:[%s1011_s1 + $0xa4] ss:$16 sps:$4 sm:$0xff]  }
   0x8   :  { %434 = vmatprep.subr.bf16.mxu0 %v691_v8  ;;  %477 = vmatprep.subr.bf16.mxu1 %v693_v9  ;;  %v711_v21 = vld [vmem:[%s1011_s1 + $0xac] ss:$16 sps:$4 sm:$0xff]   ;;  %v713_v22 = vld [vmem:[%s1011_s1 + $0xa0] ss:$16 sps:$4 sm:$0xff]   ;;  %v714_v23 = vld [vmem:[%s1011_s1 + $0xa8] ss:$16 sps:$4 sm:$0xff]  }
   0x9   :  { %v715_v24 = vld [vmem:[%s1011_s1 + $0xc4] ss:$16 sps:$4 sm:$0xff]   ;;  %v717_v25 = vld [vmem:[%s1011_s1 + $0xcc] ss:$16 sps:$4 sm:$0xff]   ;;  %v719_v26 = vld [vmem:[%s1011_s1 + $0xc0] ss:$16 sps:$4 sm:$0xff]  }
   0xa   :  { %v720_v27 = vld [vmem:[%s1011_s1 + $0xc8] ss:$16 sps:$4 sm:$0xff]   ;;  %v721_v28 = vld [vmem:[%s1011_s1 + $0xe4] ss:$16 sps:$4 sm:$0xff]   ;;  %v723_v29 = vld [vmem:[%s1011_s1 + $0xec] ss:$16 sps:$4 sm:$0xff]  }
   0xb   :  { %435 = vmatpush1.bf16.msra.mxu0 %v695_v10  ;;  %478 = vmatpush1.bf16.msra.mxu1 %v696_v11  ;;  %v725_v30 = vld [vmem:[%s1011_s1 + $0xe0] ss:$16 sps:$4 sm:$0xff]   ;;  %v726_v31 = vld [vmem:[%s1011_s1 + $0xe8] ss:$16 sps:$4 sm:$0xff]   ;;  %v727_v32 = vld [vmem:[%s1011_s1 + $0x104] ss:$16 sps:$4 sm:$0xff]  }
   0xc   :  { %436 = vmatprep.subr.bf16.mxu0 %v697_v12  ;;  %479 = vmatprep.subr.bf16.mxu1 %v699_v13  ;;  %v729_v33 = vld [vmem:[%s1011_s1 + $0x10c] ss:$16 sps:$4 sm:$0xff]   ;;  %v731_v34 = vld [vmem:[%s1011_s1 + $0x100] ss:$16 sps:$4 sm:$0xff]   ;;  %v732_v35 = vld [vmem:[%s1011_s1 + $0x108] ss:$16 sps:$4 sm:$0xff]  }
   0xd   :  { %v733_v36 = vld [vmem:[%s1011_s1 + $0x124] ss:$16 sps:$4 sm:$0xff]   ;;  %v735_v37 = vld [vmem:[%s1011_s1 + $0x12c] ss:$16 sps:$4 sm:$0xff]   ;;  %v737_v38 = vld [vmem:[%s1011_s1 + $0x120] ss:$16 sps:$4 sm:$0xff]  }
   0xe   :  { %v738_v39 = vld [vmem:[%s1011_s1 + $0x128] ss:$16 sps:$4 sm:$0xff]   ;;  %v739_v40 = vld [vmem:[%s1011_s1 + $0x144] ss:$16 sps:$4 sm:$0xff]   ;;  %v741_v41 = vld [vmem:[%s1011_s1 + $0x14c] ss:$16 sps:$4 sm:$0xff]  }
   0xf   :  { %437 = vmatpush1.bf16.msra.mxu0 %v701_v14  ;;  %480 = vmatpush1.bf16.msra.mxu1 %v702_v15  ;;  %v743_v42 = vld [vmem:[%s1011_s1 + $0x140] ss:$16 sps:$4 sm:$0xff]   ;;  %v744_v43 = vld [vmem:[%s1011_s1 + $0x148] ss:$16 sps:$4 sm:$0xff]   ;;  %v745_v44 = vld [vmem:[%s1011_s1 + $0x164] ss:$16 sps:$4 sm:$0xff]  }
  0x10   :  { %438 = vmatprep.subr.bf16.mxu0 %v703_v16  ;;  %481 = vmatprep.subr.bf16.mxu1 %v705_v17  ;;  %v747_v45 = vld [vmem:[%s1011_s1 + $0x16c] ss:$16 sps:$4 sm:$0xff]   ;;  %v749_v47 = vld [vmem:[%s1011_s1 + $0x160] ss:$16 sps:$4 sm:$0xff]   ;;  %v750_v48 = vld [vmem:[%s1011_s1 + $0x168] ss:$16 sps:$4 sm:$0xff]  }
  0x11   :  { %v777_v46 = vld [vmem:[%s1012_s0 + $0x4] ss:$8 sps:$4 sm:$0xff]   ;;  %v755_v51 = vld [vmem:[%s1011_s1 + $0x180] ss:$16 sps:$4 sm:$0xff]   ;;  %v756_v52 = vld [vmem:[%s1011_s1 + $0x188] ss:$16 sps:$4 sm:$0xff]  }
  0x12   :  { %v751_v49 = vld [vmem:[%s1011_s1 + $0x184] ss:$16 sps:$4 sm:$0xff]   ;;  %v753_v50 = vld [vmem:[%s1011_s1 + $0x18c] ss:$16 sps:$4 sm:$0xff]   ;;  %462 = vmatprep.mubr.bf16.mxu0 %v777_v46  ;;  %505 = vmatprep.mubr.bf16.mxu1 %v777_v46  ;;  %v761_v55 = vld [vmem:[%s1011_s1 + $0x1a0] ss:$16 sps:$4 sm:$0xff]  }
  0x13   :  { %439 = vmatpush1.bf16.msra.mxu0 %v707_v18  ;;  %482 = vmatpush1.bf16.msra.mxu1 %v708_v19  ;;  %v757_v53 = vld [vmem:[%s1011_s1 + $0x1a4] ss:$16 sps:$4 sm:$0xff]   ;;  %v759_v54 = vld [vmem:[%s1011_s1 + $0x1ac] ss:$16 sps:$4 sm:$0xff]   ;;  %v762_v56 = vld [vmem:[%s1011_s1 + $0x1a8] ss:$16 sps:$4 sm:$0xff]  }
  0x14   :  { %440 = vmatprep.subr.bf16.mxu0 %v709_v20  ;;  %483 = vmatprep.subr.bf16.mxu1 %v711_v21  ;;  %v763_v57 = vld [vmem:[%s1011_s1 + $0x1c4] ss:$16 sps:$4 sm:$0xff]   ;;  %v765_v58 = vld [vmem:[%s1011_s1 + $0x1cc] ss:$16 sps:$4 sm:$0xff]   ;;  %v767_v59 = vld [vmem:[%s1011_s1 + $0x1c0] ss:$16 sps:$4 sm:$0xff]  }
  0x15   :  { %v768_v60 = vld [vmem:[%s1011_s1 + $0x1c8] ss:$16 sps:$4 sm:$0xff]   ;;  %v769_v61 = vld [vmem:[%s1011_s1 + $0x1e4] ss:$16 sps:$4 sm:$0xff]   ;;  %v771_v62 = vld [vmem:[%s1011_s1 + $0x1ec] ss:$16 sps:$4 sm:$0xff]  }
  0x16   :  { %v773_v63 = vld [vmem:[%s1011_s1 + $0x1e0] ss:$16 sps:$4 sm:$0xff]   ;;  %v774_v0 = vld [vmem:[%s1011_s1 + $0x1e8] ss:$16 sps:$4 sm:$0xff]   ;;  %v546_v3 = vshrl.u32 %v545_v2, 7 }
  0x17   :  { %441 = vmatpush1.bf16.msra.mxu0 %v713_v22  ;;  %484 = vmatpush1.bf16.msra.mxu1 %v714_v23  ;;  %v775_v1 = vld [vmem:[%s1012_s0] ss:$8 sps:$4 sm:$0xff]  }
  0x18   :  { %442 = vmatprep.subr.bf16.mxu0 %v715_v24  ;;  %485 = vmatprep.subr.bf16.mxu1 %v717_v25  ;;  %v547_v4 = vsub.s32 0, %v546_v3  ;;  %v555_v5 = vsub.s32 2, %v546_v3  ;;  %v543_v6 = vld [vmem:[%s1013_s2] sm:$0xf]  ;;  %v551_v7 = vsub.s32 1, %v546_v3  ;;  %v559_v8 = vsub.s32 3, %v546_v3 }
  0x1a   :  { %v548_v9 = vrot.slane %v543_v6, %v547_v4  ;;  %v556_v10 = vrot.slane %v543_v6, %v555_v5  ;;  %v552_v11 = vrot.slane %v543_v6, %v551_v7  ;;  %v560_v12 = vrot.slane %v543_v6, %v559_v8 }
  0x1b   :  { %443 = vmatpush1.bf16.msra.mxu0 %v719_v26  ;;  %486 = vmatpush1.bf16.msra.mxu1 %v720_v27 }
  0x1c   :  { %444 = vmatprep.subr.bf16.mxu0 %v721_v28  ;;  %487 = vmatprep.subr.bf16.mxu1 %v723_v29 }
  0x1f   :  { %445 = vmatpush1.bf16.msra.mxu0 %v725_v30  ;;  %488 = vmatpush1.bf16.msra.mxu1 %v726_v31 }
  0x20   :  { %446 = vmatprep.subr.bf16.mxu0 %v727_v32  ;;  %489 = vmatprep.subr.bf16.mxu1 %v729_v33 }
  0x23   :  { %447 = vmatpush1.bf16.msra.mxu0 %v731_v34  ;;  %490 = vmatpush1.bf16.msra.mxu1 %v732_v35 }
  0x24   :  { %448 = vmatprep.subr.bf16.mxu0 %v733_v36  ;;  %491 = vmatprep.subr.bf16.mxu1 %v735_v37 }
  0x27   :  { %449 = vmatpush1.bf16.msra.mxu0 %v737_v38  ;;  %492 = vmatpush1.bf16.msra.mxu1 %v738_v39 }
  0x28   :  { %450 = vmatprep.subr.bf16.mxu0 %v739_v40  ;;  %493 = vmatprep.subr.bf16.mxu1 %v741_v41 }
  0x2b   :  { %451 = vmatpush1.bf16.msra.mxu0 %v743_v42  ;;  %494 = vmatpush1.bf16.msra.mxu1 %v744_v43 }
  0x2c   :  { %452 = vmatprep.subr.bf16.mxu0 %v745_v44  ;;  %495 = vmatprep.subr.bf16.mxu1 %v747_v45 }
  0x2f   :  { %453 = vmatpush1.bf16.msra.mxu0 %v749_v47  ;;  %496 = vmatpush1.bf16.msra.mxu1 %v750_v48 }
  0x30   :  { %454 = vmatprep.subr.bf16.mxu0 %v751_v49  ;;  %497 = vmatprep.subr.bf16.mxu1 %v753_v50 }
  0x33   :  { %455 = vmatpush1.bf16.msra.mxu0 %v755_v51  ;;  %498 = vmatpush1.bf16.msra.mxu1 %v756_v52 }
  0x34   :  { %456 = vmatprep.subr.bf16.mxu0 %v757_v53  ;;  %499 = vmatprep.subr.bf16.mxu1 %v759_v54 }
  0x37   :  { %457 = vmatpush1.bf16.msra.mxu0 %v761_v55  ;;  %500 = vmatpush1.bf16.msra.mxu1 %v762_v56 }
  0x38   :  { %458 = vmatprep.subr.bf16.mxu0 %v763_v57  ;;  %501 = vmatprep.subr.bf16.mxu1 %v765_v58 }
  0x3b   :  { %459 = vmatpush1.bf16.msra.mxu0 %v767_v59  ;;  %502 = vmatpush1.bf16.msra.mxu1 %v768_v60 }
  0x3c   :  { %460 = vmatprep.subr.bf16.mxu0 %v769_v61  ;;  %503 = vmatprep.subr.bf16.mxu1 %v771_v62 }
  0x3f   :  { %461 = vmatpush1.bf16.msra.mxu0 %v773_v63  ;;  %504 = vmatpush1.bf16.msra.mxu1 %v774_v0 }
  0x42   :  { %463 = vmatmul.mubr.bf16.vlgmr.msra.gmra.mrb[0].mxu0 %v775_v1  ;;  %506 = vmatmul.mubr.bf16.vlgmr.msra.gmra.mrb[0].mxu1 %v775_v1 }
 0x115   :  { %v464_v13 = vpop.f32.mrb[0].mxu0  ;;  %v507_v14 = vpop.f32.mrb[0].mxu1 }
 0x116   :  { %v565_v15 = vadd.f32 %v548_v9, %v464_v13  ;;  %v567_v16 = vadd.f32 %v556_v10, %v507_v14  ;;  %v466_v17 = vpop.f32.mrb[1].mxu0  ;;  %v509_v18 = vpop.f32.mrb[1].mxu1 }
 0x117   :  { %v566_v19 = vadd.f32 %v552_v11, %v466_v17  ;;  %v568_v20 = vadd.f32 %v560_v12, %v509_v18  ;;  %v468_v21 = vpop.f32.mrb[2].mxu0  ;;  %v511_v22 = vpop.f32.mrb[2].mxu1 }
 0x118   :  { %v569_v23 = vadd.f32 %v548_v9, %v468_v21  ;;  %v571_v24 = vadd.f32 %v556_v10, %v511_v22  ;;  %v470_v25 = vpop.f32.mrb[3].mxu0  ;;  %v513_v26 = vpop.f32.mrb[3].mxu1 }
 0x119   :  { %v675_v27 = vpack.c.bf16 %v566_v19, %v565_v15  ;;  %v676_v28 = vpack.c.bf16 %v568_v20, %v567_v16  ;;  %v570_v29 = vadd.f32 %v552_v11, %v470_v25  ;;  %v572_v30 = vadd.f32 %v560_v12, %v513_v26 }
 0x11b   :  { %597 = vst [vmem:[%s1014_s3] sm:$0xff] %v675_v27  ;;  %598 = vst [vmem:[%s1014_s3 + $0x8] sm:$0xff] %v676_v28  ;;  %v677_v31 = vpack.c.bf16 %v570_v29, %v569_v23  ;;  %v678_v32 = vpack.c.bf16 %v572_v30, %v571_v24 }
 0x11d   :  { %599 = vst [vmem:[%s1014_s3 + $0x10] sm:$0xff] %v677_v31  ;;  %600 = vst [vmem:[%s1014_s3 + $0x18] sm:$0xff] %v678_v32 }

// kernel: forward.37
= control target key start
LH: loop header
LB: loop body
LE: loop exit
PB: predicated region body
PF: predicated region fallthrough
CT: control target
= control target key end

     0   :  { %s1324_s12 = smov 0   ;;  %s1326_s13 = smov 0   ;;  %s1479_s0 = inlined_call_operand.vmem [shape: bf16[16,2304], index: 0, kind: input, shape index: {}]   ;;  %s1480_s1 = inlined_call_operand.vmem [shape: bf16[2304,512], index: 1, kind: input, shape index: {}]   ;;  %s1481_s2 = inlined_call_operand.vmem [shape: f32[1,512], index: 2, kind: input, shape index: {}]   ;;  %s1482_s3 = inlined_call_operand.vmem [shape: bf16[16,512], index: 3, kind: output, shape index: {}]  }
   0x1   :  { %s1328_s14 = smov 0   ;;  %s1330_s15 = smov 0  }
   0x2   :  { %s1332_s16 = smov 0  }
   0x3 LB: > { %s25_s17 = sadd.s32 1, %s1297_s15  ;;  %p48_p1 = scmp.ne.s32.totalorder %s1289_s13, %s1285_s12  ;;  %s1301_s16 = sphi %s1332_s16, %s13_s16   ;;  %s1297_s15 = sphi %s1330_s15, %s1486_s15   ;;  %s1293_s14 = sphi %s1328_s14, %s1485_s14   ;;  %s1289_s13 = sphi %s1326_s13, %s1484_s13   ;;  %s1285_s12 = sphi %s1324_s12, %s1483_s12  }
   0x4   : > { %p26_p0 = scmp.ge.s32.totalorder %s25_s17, 9  ;;  %p49_p2 = scmp.eq.s32.totalorder %s1301_s16, 0 }
   0x5   : > { %s41_s19 = sadd.s32 1, %s1289_s13  ;;  %p1032_p5 = scmp.ge.s32.totalorder %s1301_s16, 9 }
   0x6   : > { %s1488_s17 = smov (%p26_p0, %s25_s17), 0  ;;  %p50_p3 = por %p49_p2, %p48_p1 }
   0x7   : > { %s37_s18 = ssub.s32 %s1297_s15, %s1488_s17  ;;  %164 = sbr.rel (%p1032_p5) target bundleno = 21 (0x15), region = 20 }
   0x8   : > { %p39_p4 = scmp.eq.s32.totalorder %s37_s18, 0 }
   0xa   : > { %s1359_s20 = scalar_select %p39_p4, %s1289_s13, %s41_s19  }
   0xe   : > { %167 = sbr.rel (!%p50_p3) target bundleno = 21 (0x15), region = 24  ;;  %s169_s21 = sand.u32 (%p50_p3), 1, %s1289_s13  }
   0xf   : > { %s1117_s22 = sshll.u32 (%p50_p3), %s1297_s15, 3  ;;  %s1033_s23 = sshll.u32 (%p50_p3), %s169_s21, 4 }
  0x10   : > { %s177_s26 = scalar_lea.vmem (%p50_p3), %s1479_s0, %s1117_s22  ;;  %s171_s27 = scalar_lea.vmem (%p50_p3), [#allocation3], %s1033_s23 }
  0x11   : > { %v207_v0 = vld [vmem:[%s177_s26] sm:$0xff] (%p50_p3)  ;;  %v209_v1 = vld [vmem:[%s177_s26 + $0x48] sm:$0xff] (%p50_p3) }
  0x12   : > { %208 = vst [vmem:[%s171_s27] sm:$0xff] (%p50_p3), %v207_v0  ;;  %210 = vst [vmem:[%s171_s27 + $0x8] sm:$0xff] (%p50_p3), %v209_v1 }
  0x15 PF: > { %p1036_p6 = scmp.ge.s32.totalorder %s1301_s16, 1  ;;  %p230_p7 = scmp.lt.s32.totalorder %s1301_s16, 10 }
  0x17   : > { %p231_p8 = pnand %p1036_p6, %p230_p7 }
  0x18   : > { %s237_s28 = sand.u32 (!%p231_p8), 1, %s1285_s12   ;;  %s1038_s29 = sshll.u32 (!%p231_p8), %s1293_s14, 5 }
  0x19   : > { %234 = sbr.rel (%p231_p8) target bundleno = 336 (0x150), region = 66  ;;  %s1371_s30 = sshll.u32 (!%p231_p8), %s237_s28, 4 }
  0x1a   : > { %p283_p9 = scmp.lt.s32.totalorder (!%p231_p8), %s1038_s29, 287  ;;  %s239_s8 = scalar_lea.vmem (!%p231_p8), [#allocation3], %s1371_s30 }
  0x1b   : > { %p1041_p10 = scmp.ne.s32.totalorder (!%p231_p8), %s1293_s14, 0 }
  0x20   : > { %s1490_s29 = smov (!%p283_p9, %s1038_s29), 287  ;;  %313 = sbr.rel (%p1041_p10) target bundleno = 39 (0x27), region = 74 }
  0x21   : > { %s1118_s4 = sshll.u32 %s1490_s29, 4  ;;  %v1303_v2 = vmov (!%p1041_p10), 0.0  }
  0x22   : > { %s1376_s7 = scalar_lea.vmem %s1480_s1, %s1118_s4  ;;  %314 = vst [vmem:[#allocation2] sm:$0xff] (!%p1041_p10), %v1303_v2  ;;  %315 = vst [vmem:[#allocation2 + $0x8] sm:$0xff] (!%p1041_p10), %v1303_v2 }
  0x23   : > { %316 = vst [vmem:[#allocation2 + $0x10] sm:$0xff] (!%p1041_p10), %v1303_v2  ;;  %317 = vst [vmem:[#allocation2 + $0x18] sm:$0xff] (!%p1041_p10), %v1303_v2 }
  0x24   : > { %318 = vst [vmem:[#allocation2 + $0x20] sm:$0xff] (!%p1041_p10), %v1303_v2  ;;  %319 = vst [vmem:[#allocation2 + $0x28] sm:$0xff] (!%p1041_p10), %v1303_v2 }
  0x25   : > { %320 = vst [vmem:[#allocation2 + $0x30] sm:$0xff] (!%p1041_p10), %v1303_v2  ;;  %321 = vst [vmem:[#allocation2 + $0x38] sm:$0xff] (!%p1041_p10), %v1303_v2 }
  0x27 PF: > { %v1164_v3 = vld [vmem:[%s1376_s7 + $0x4] ss:$16 sps:$4 sm:$0xff]   ;;  %v1166_v4 = vld [vmem:[%s1376_s7 + $0xc] ss:$16 sps:$4 sm:$0xff]   ;;  %v1168_v5 = vld [vmem:[%s1376_s7] ss:$16 sps:$4 sm:$0xff]  }
  0x28   : > { %726 = vmatprep.subr.bf16.mxu0 %v1164_v3  ;;  %v1169_v6 = vld [vmem:[%s1376_s7 + $0x8] ss:$16 sps:$4 sm:$0xff]   ;;  %769 = vmatprep.subr.bf16.mxu1 %v1166_v4  ;;  %v1170_v7 = vld [vmem:[%s1376_s7 + $0x24] ss:$16 sps:$4 sm:$0xff]   ;;  %v1172_v8 = vld [vmem:[%s1376_s7 + $0x2c] ss:$16 sps:$4 sm:$0xff]  }
  0x29   : > { %727 = vmatpush1.bf16.msra.mxu0 %v1168_v5  ;;  %770 = vmatpush1.bf16.msra.mxu1 %v1169_v6  ;;  %v1174_v9 = vld [vmem:[%s1376_s7 + $0x20] ss:$16 sps:$4 sm:$0xff]   ;;  %v1175_v10 = vld [vmem:[%s1376_s7 + $0x28] ss:$16 sps:$4 sm:$0xff]   ;;  %v1176_v11 = vld [vmem:[%s1376_s7 + $0x44] ss:$16 sps:$4 sm:$0xff]  }
  0x2a   : > { %728 = vmatprep.subr.bf16.mxu0 %v1170_v7  ;;  %771 = vmatprep.subr.bf16.mxu1 %v1172_v8  ;;  %v1178_v12 = vld [vmem:[%s1376_s7 + $0x4c] ss:$16 sps:$4 sm:$0xff]   ;;  %v1180_v13 = vld [vmem:[%s1376_s7 + $0x40] ss:$16 sps:$4 sm:$0xff]   ;;  %v1181_v14 = vld [vmem:[%s1376_s7 + $0x48] ss:$16 sps:$4 sm:$0xff]  }
  0x2b   : > { %v1182_v15 = vld [vmem:[%s1376_s7 + $0x64] ss:$16 sps:$4 sm:$0xff]   ;;  %v1184_v16 = vld [vmem:[%s1376_s7 + $0x6c] ss:$16 sps:$4 sm:$0xff]   ;;  %v1186_v17 = vld [vmem:[%s1376_s7 + $0x60] ss:$16 sps:$4 sm:$0xff]  }
  0x2c   : > { %v1187_v18 = vld [vmem:[%s1376_s7 + $0x68] ss:$16 sps:$4 sm:$0xff]   ;;  %v1188_v19 = vld [vmem:[%s1376_s7 + $0x84] ss:$16 sps:$4 sm:$0xff]   ;;  %v1190_v20 = vld [vmem:[%s1376_s7 + $0x8c] ss:$16 sps:$4 sm:$0xff]  }
  0x2d   : > { %729 = vmatpush1.bf16.msra.mxu0 %v1174_v9  ;;  %772 = vmatpush1.bf16.msra.mxu1 %v1175_v10  ;;  %v1192_v21 = vld [vmem:[%s1376_s7 + $0x80] ss:$16 sps:$4 sm:$0xff]   ;;  %v1193_v22 = vld [vmem:[%s1376_s7 + $0x88] ss:$16 sps:$4 sm:$0xff]   ;;  %v1194_v23 = vld [vmem:[%s1376_s7 + $0xa4] ss:$16 sps:$4 sm:$0xff]  }
  0x2e   : > { %730 = vmatprep.subr.bf16.mxu0 %v1176_v11  ;;  %773 = vmatprep.subr.bf16.mxu1 %v1178_v12  ;;  %v1196_v24 = vld [vmem:[%s1376_s7 + $0xac] ss:$16 sps:$4 sm:$0xff]   ;;  %v1198_v25 = vld [vmem:[%s1376_s7 + $0xa0] ss:$16 sps:$4 sm:$0xff]   ;;  %v1199_v26 = vld [vmem:[%s1376_s7 + $0xa8] ss:$16 sps:$4 sm:$0xff]  }
  0x2f   : > { %v1200_v27 = vld [vmem:[%s1376_s7 + $0xc4] ss:$16 sps:$4 sm:$0xff]   ;;  %v1202_v28 = vld [vmem:[%s1376_s7 + $0xcc] ss:$16 sps:$4 sm:$0xff]   ;;  %v1204_v29 = vld [vmem:[%s1376_s7 + $0xc0] ss:$16 sps:$4 sm:$0xff]  }
  0x30   : > { %v1205_v30 = vld [vmem:[%s1376_s7 + $0xc8] ss:$16 sps:$4 sm:$0xff]   ;;  %v1206_v31 = vld [vmem:[%s1376_s7 + $0xe4] ss:$16 sps:$4 sm:$0xff]   ;;  %v1208_v32 = vld [vmem:[%s1376_s7 + $0xec] ss:$16 sps:$4 sm:$0xff]  }
  0x31   : > { %731 = vmatpush1.bf16.msra.mxu0 %v1180_v13  ;;  %774 = vmatpush1.bf16.msra.mxu1 %v1181_v14  ;;  %v1210_v33 = vld [vmem:[%s1376_s7 + $0xe0] ss:$16 sps:$4 sm:$0xff]   ;;  %v1211_v34 = vld [vmem:[%s1376_s7 + $0xe8] ss:$16 sps:$4 sm:$0xff]   ;;  %v1212_v35 = vld [vmem:[%s1376_s7 + $0x104] ss:$16 sps:$4 sm:$0xff]  }
  0x32   : > { %732 = vmatprep.subr.bf16.mxu0 %v1182_v15  ;;  %775 = vmatprep.subr.bf16.mxu1 %v1184_v16  ;;  %v1214_v36 = vld [vmem:[%s1376_s7 + $0x10c] ss:$16 sps:$4 sm:$0xff]   ;;  %v1216_v37 = vld [vmem:[%s1376_s7 + $0x100] ss:$16 sps:$4 sm:$0xff]   ;;  %v1217_v38 = vld [vmem:[%s1376_s7 + $0x108] ss:$16 sps:$4 sm:$0xff]  }
  0x33   : > { %v1218_v39 = vld [vmem:[%s1376_s7 + $0x124] ss:$16 sps:$4 sm:$0xff]   ;;  %v1220_v40 = vld [vmem:[%s1376_s7 + $0x12c] ss:$16 sps:$4 sm:$0xff]   ;;  %v1222_v41 = vld [vmem:[%s1376_s7 + $0x120] ss:$16 sps:$4 sm:$0xff]  }
  0x34   : > { %v1223_v42 = vld [vmem:[%s1376_s7 + $0x128] ss:$16 sps:$4 sm:$0xff]   ;;  %v1224_v43 = vld [vmem:[%s1376_s7 + $0x144] ss:$16 sps:$4 sm:$0xff]   ;;  %v1226_v44 = vld [vmem:[%s1376_s7 + $0x14c] ss:$16 sps:$4 sm:$0xff]  }
  0x35   : > { %733 = vmatpush1.bf16.msra.mxu0 %v1186_v17  ;;  %776 = vmatpush1.bf16.msra.mxu1 %v1187_v18  ;;  %v1228_v45 = vld [vmem:[%s1376_s7 + $0x140] ss:$16 sps:$4 sm:$0xff]   ;;  %v1229_v46 = vld [vmem:[%s1376_s7 + $0x148] ss:$16 sps:$4 sm:$0xff]   ;;  %v1230_v47 = vld [vmem:[%s1376_s7 + $0x164] ss:$16 sps:$4 sm:$0xff]  }
  0x36   : > { %734 = vmatprep.subr.bf16.mxu0 %v1188_v19  ;;  %777 = vmatprep.subr.bf16.mxu1 %v1190_v20  ;;  %v1232_v48 = vld [vmem:[%s1376_s7 + $0x16c] ss:$16 sps:$4 sm:$0xff]   ;;  %v1234_v50 = vld [vmem:[%s1376_s7 + $0x160] ss:$16 sps:$4 sm:$0xff]   ;;  %v1235_v51 = vld [vmem:[%s1376_s7 + $0x168] ss:$16 sps:$4 sm:$0xff]  }
  0x37   : > { %v1262_v49 = vld [vmem:[%s239_s8 + $0x4] ss:$8 sps:$4 sm:$0xff]   ;;  %v1240_v54 = vld [vmem:[%s1376_s7 + $0x180] ss:$16 sps:$4 sm:$0xff]   ;;  %v1241_v55 = vld [vmem:[%s1376_s7 + $0x188] ss:$16 sps:$4 sm:$0xff]  }
  0x38   : > { %v1236_v52 = vld [vmem:[%s1376_s7 + $0x184] ss:$16 sps:$4 sm:$0xff]   ;;  %v1238_v53 = vld [vmem:[%s1376_s7 + $0x18c] ss:$16 sps:$4 sm:$0xff]   ;;  %758 = vmatprep.mubr.bf16.mxu0 %v1262_v49  ;;  %801 = vmatprep.mubr.bf16.mxu1 %v1262_v49  ;;  %v1246_v58 = vld [vmem:[%s1376_s7 + $0x1a0] ss:$16 sps:$4 sm:$0xff]  }
  0x39   : > { %735 = vmatpush1.bf16.msra.mxu0 %v1192_v21  ;;  %778 = vmatpush1.bf16.msra.mxu1 %v1193_v22  ;;  %v1242_v56 = vld [vmem:[%s1376_s7 + $0x1a4] ss:$16 sps:$4 sm:$0xff]   ;;  %v1244_v57 = vld [vmem:[%s1376_s7 + $0x1ac] ss:$16 sps:$4 sm:$0xff]   ;;  %v1247_v59 = vld [vmem:[%s1376_s7 + $0x1a8] ss:$16 sps:$4 sm:$0xff]  }
  0x3a   : > { %736 = vmatprep.subr.bf16.mxu0 %v1194_v23  ;;  %779 = vmatprep.subr.bf16.mxu1 %v1196_v24  ;;  %v1248_v60 = vld [vmem:[%s1376_s7 + $0x1c4] ss:$16 sps:$4 sm:$0xff]   ;;  %v1250_v61 = vld [vmem:[%s1376_s7 + $0x1cc] ss:$16 sps:$4 sm:$0xff]   ;;  %v1252_v62 = vld [vmem:[%s1376_s7 + $0x1c0] ss:$16 sps:$4 sm:$0xff]  }
  0x3b   : > { %v1253_v63 = vld [vmem:[%s1376_s7 + $0x1c8] ss:$16 sps:$4 sm:$0xff]   ;;  %v1254_v0 = vld [vmem:[%s1376_s7 + $0x1e4] ss:$16 sps:$4 sm:$0xff]   ;;  %v1256_v1 = vld [vmem:[%s1376_s7 + $0x1ec] ss:$16 sps:$4 sm:$0xff]  }
  0x3c   : > { %v1258_v2 = vld [vmem:[%s1376_s7 + $0x1e0] ss:$16 sps:$4 sm:$0xff]   ;;  %v1259_v3 = vld [vmem:[%s1376_s7 + $0x1e8] ss:$16 sps:$4 sm:$0xff]   ;;  %p1108_p11 = scmp.ne.s32.totalorder %s1293_s14, 8 }
  0x3d   : > { %737 = vmatpush1.bf16.msra.mxu0 %v1198_v25  ;;  %780 = vmatpush1.bf16.msra.mxu1 %v1199_v26  ;;  %v1260_v4 = vld [vmem:[%s239_s8] ss:$8 sps:$4 sm:$0xff]  }
  0x3e   : > { %738 = vmatprep.subr.bf16.mxu0 %v1200_v27  ;;  %781 = vmatprep.subr.bf16.mxu1 %v1202_v28  ;;  %v322_v5 = vld [vmem:[#allocation2] sm:$0xff]  ;;  %v324_v6 = vld [vmem:[#allocation2 + $0x10] sm:$0xff]  ;;  %v323_v7 = vld [vmem:[#allocation2 + $0x8] sm:$0xff] }
  0x3f   : > { %v325_v8 = vld [vmem:[#allocation2 + $0x18] sm:$0xff]  ;;  %v326_v11 = vld [vmem:[#allocation2 + $0x20] sm:$0xff]  ;;  %v328_v12 = vld [vmem:[#allocation2 + $0x30] sm:$0xff] }
  0x40   : > { %v327_v17 = vld [vmem:[#allocation2 + $0x28] sm:$0xff]  ;;  %v329_v18 = vld [vmem:[#allocation2 + $0x38] sm:$0xff] }
  0x41   : > { %739 = vmatpush1.bf16.msra.mxu0 %v1204_v29  ;;  %782 = vmatpush1.bf16.msra.mxu1 %v1205_v30  ;;  %v842_v29 = vlaneseq (!%p1108_p11) }
  0x42   : > { %740 = vmatprep.subr.bf16.mxu0 %v1206_v31  ;;  %783 = vmatprep.subr.bf16.mxu1 %v1208_v32  ;;  %v840_v31 = vld [vmem:[%s1481_s2] sm:$0xf] (!%p1108_p11) }
  0x43   : > { %v843_v30 = vshrl.u32 (!%p1108_p11), %v842_v29, 7 }
  0x45   : > { %741 = vmatpush1.bf16.msra.mxu0 %v1210_v33  ;;  %784 = vmatpush1.bf16.msra.mxu1 %v1211_v34  ;;  %v844_v34 = vsub.s32 (!%p1108_p11), 0, %v843_v30 }
  0x46   : > { %742 = vmatprep.subr.bf16.mxu0 %v1212_v35  ;;  %785 = vmatprep.subr.bf16.mxu1 %v1214_v36  ;;  %v848_v35 = vsub.s32 (!%p1108_p11), 1, %v843_v30  ;;  %v852_v36 = vsub.s32 (!%p1108_p11), 2, %v843_v30 }
  0x49   : > { %743 = vmatpush1.bf16.msra.mxu0 %v1216_v37  ;;  %786 = vmatpush1.bf16.msra.mxu1 %v1217_v38  ;;  %v856_v37 = vsub.s32 (!%p1108_p11), 3, %v843_v30 }
  0x4a   : > { %744 = vmatprep.subr.bf16.mxu0 %v1218_v39  ;;  %787 = vmatprep.subr.bf16.mxu1 %v1220_v40 }
  0x4d   : > { %745 = vmatpush1.bf16.msra.mxu0 %v1222_v41  ;;  %788 = vmatpush1.bf16.msra.mxu1 %v1223_v42  ;;  %v845_v41 = vrot.slane (!%p1108_p11), %v840_v31, %v844_v34  ;;  %v849_v42 = vrot.slane (!%p1108_p11), %v840_v31, %v848_v35 }
  0x4e   : > { %746 = vmatprep.subr.bf16.mxu0 %v1224_v43  ;;  %789 = vmatprep.subr.bf16.mxu1 %v1226_v44  ;;  %v853_v43 = vrot.slane (!%p1108_p11), %v840_v31, %v852_v36  ;;  %v857_v44 = vrot.slane (!%p1108_p11), %v840_v31, %v856_v37 }
  0x51   : > { %747 = vmatpush1.bf16.msra.mxu0 %v1228_v45  ;;  %790 = vmatpush1.bf16.msra.mxu1 %v1229_v46 }
  0x52   : > { %748 = vmatprep.subr.bf16.mxu0 %v1230_v47  ;;  %791 = vmatprep.subr.bf16.mxu1 %v1232_v48 }
  0x55   : > { %749 = vmatpush1.bf16.msra.mxu0 %v1234_v50  ;;  %792 = vmatpush1.bf16.msra.mxu1 %v1235_v51 }
  0x56   : > { %750 = vmatprep.subr.bf16.mxu0 %v1236_v52  ;;  %793 = vmatprep.subr.bf16.mxu1 %v1238_v53 }
  0x59   : > { %751 = vmatpush1.bf16.msra.mxu0 %v1240_v54  ;;  %794 = vmatpush1.bf16.msra.mxu1 %v1241_v55 }
  0x5a   : > { %752 = vmatprep.subr.bf16.mxu0 %v1242_v56  ;;  %795 = vmatprep.subr.bf16.mxu1 %v1244_v57 }
  0x5d   : > { %753 = vmatpush1.bf16.msra.mxu0 %v1246_v58  ;;  %796 = vmatpush1.bf16.msra.mxu1 %v1247_v59 }
  0x5e   : > { %754 = vmatprep.subr.bf16.mxu0 %v1248_v60  ;;  %797 = vmatprep.subr.bf16.mxu1 %v1250_v61 }
  0x61   : > { %755 = vmatpush1.bf16.msra.mxu0 %v1252_v62  ;;  %798 = vmatpush1.bf16.msra.mxu1 %v1253_v63 }
  0x62   : > { %756 = vmatprep.subr.bf16.mxu0 %v1254_v0  ;;  %799 = vmatprep.subr.bf16.mxu1 %v1256_v1 }
  0x65   : > { %757 = vmatpush1.bf16.msra.mxu0 %v1258_v2  ;;  %800 = vmatpush1.bf16.msra.mxu1 %v1259_v3 }
  0x68   : > { %759 = vmatmul.mubr.bf16.vlgmr.msra.gmra.mrb[0].mxu0 %v1260_v4  ;;  %802 = vmatmul.mubr.bf16.vlgmr.msra.gmra.mrb[0].mxu1 %v1260_v4 }
 0x13b   : > { %v760_v9 = vpop.f32.mrb[0].mxu0  ;;  %v803_v10 = vpop.f32.mrb[0].mxu1  ;;  %831 = sbr.rel (%p1108_p11) target bundleno = 336 (0x150), region = 78 }
 0x13c   : > { %v812_v13 = vadd.f32 %v760_v9, %v322_v5  ;;  %v814_v14 = vadd.f32 %v803_v10, %v324_v6  ;;  %v762_v15 = vpop.f32.mrb[1].mxu0  ;;  %v805_v16 = vpop.f32.mrb[1].mxu1 }
 0x13d   : > { %v813_v19 = vadd.f32 %v762_v15, %v323_v7  ;;  %v815_v20 = vadd.f32 %v805_v16, %v325_v8  ;;  %v764_v21 = vpop.f32.mrb[2].mxu0  ;;  %v807_v22 = vpop.f32.mrb[2].mxu1 }
 0x13e   : > { %820 = vst [vmem:[#allocation2] sm:$0xff] %v812_v13  ;;  %822 = vst [vmem:[#allocation2 + $0x10] sm:$0xff] %v814_v14  ;;  %v816_v23 = vadd.f32 %v764_v21, %v326_v11  ;;  %v818_v24 = vadd.f32 %v807_v22, %v328_v12  ;;  %v766_v25 = vpop.f32.mrb[3].mxu0  ;;  %v809_v26 = vpop.f32.mrb[3].mxu1 }
 0x13f   : > { %821 = vst [vmem:[#allocation2 + $0x8] sm:$0xff] %v813_v19  ;;  %823 = vst [vmem:[#allocation2 + $0x18] sm:$0xff] %v815_v20  ;;  %v817_v27 = vadd.f32 %v766_v25, %v327_v17  ;;  %v819_v28 = vadd.f32 %v809_v26, %v329_v18 }
 0x140   : > { %824 = vst [vmem:[#allocation2 + $0x20] sm:$0xff] %v816_v23  ;;  %826 = vst [vmem:[#allocation2 + $0x30] sm:$0xff] %v818_v24 }
 0x141   : > { %825 = vst [vmem:[#allocation2 + $0x28] sm:$0xff] %v817_v27  ;;  %827 = vst [vmem:[#allocation2 + $0x38] sm:$0xff] %v819_v28 }
 0x145   : > { %v832_v32 = vld [vmem:[#allocation2] sm:$0xff]  ;;  %v834_v38 = vld [vmem:[#allocation2 + $0x10] sm:$0xff] }
 0x146   : > { %v833_v33 = vld [vmem:[#allocation2 + $0x8] sm:$0xff]  ;;  %v835_v39 = vld [vmem:[#allocation2 + $0x18] sm:$0xff]  ;;  %v862_v48 = vadd.f32 %v845_v41, %v832_v32  ;;  %v864_v50 = vadd.f32 %v853_v43, %v834_v38 }
 0x147   : > { %v836_v40 = vld [vmem:[#allocation2 + $0x20] sm:$0xff]  ;;  %v838_v46 = vld [vmem:[#allocation2 + $0x30] sm:$0xff]  ;;  %v863_v49 = vadd.f32 %v849_v42, %v833_v33  ;;  %v865_v51 = vadd.f32 %v857_v44, %v835_v39 }
 0x148   : > { %v837_v45 = vld [vmem:[#allocation2 + $0x28] sm:$0xff]  ;;  %v839_v47 = vld [vmem:[#allocation2 + $0x38] sm:$0xff]  ;;  %v866_v52 = vadd.f32 %v845_v41, %v836_v40  ;;  %v868_v54 = vadd.f32 %v853_v43, %v838_v46  ;;  %v870_v56 = vmax.f32 %v862_v48, 0.0  ;;  %v872_v58 = vmax.f32 %v864_v50, 0.0 }
 0x149   : > { %v867_v53 = vadd.f32 %v849_v42, %v837_v45  ;;  %v869_v55 = vadd.f32 %v857_v44, %v839_v47  ;;  %v871_v57 = vmax.f32 %v863_v49, 0.0  ;;  %v873_v59 = vmax.f32 %v865_v51, 0.0 }
 0x14a   : > { %v874_v60 = vmax.f32 %v866_v52, 0.0  ;;  %v876_v62 = vmax.f32 %v868_v54, 0.0 }
 0x14b   : > { %v875_v61 = vmax.f32 %v867_v53, 0.0  ;;  %v877_v63 = vmax.f32 %v869_v55, 0.0  ;;  %v1119_v0 = vpack.c.bf16 %v871_v57, %v870_v56  ;;  %v1120_v1 = vpack.c.bf16 %v873_v59, %v872_v58 }
 0x14d   : > { %v1121_v2 = vpack.c.bf16 %v875_v61, %v874_v60  ;;  %v1122_v3 = vpack.c.bf16 %v877_v63, %v876_v62  ;;  %902 = vst [vmem:[%s1482_s3] sm:$0xff] %v1119_v0  ;;  %903 = vst [vmem:[%s1482_s3 + $0x8] sm:$0xff] %v1120_v1 }
 0x14f   : > { %904 = vst [vmem:[%s1482_s3 + $0x10] sm:$0xff] %v1121_v2  ;;  %905 = vst [vmem:[%s1482_s3 + $0x18] sm:$0xff] %v1122_v3 }
 0x150 PF: > { %s13_s16 = sadd.s32 1, %s1301_s16   ;;  %s1483_s12 = smov %s1289_s13 }
 0x151   : > { %p10_p12 = scmp.ge.s32.totalorder %s13_s16, 11   ;;  %s1484_s13 = smov %s1359_s20 }
 0x152   : > { %s1485_s14 = smov %s1297_s15  ;;  %s1486_s15 = smov %s1488_s17 }
 0x153   :  { %12 = sbr.rel (!%p10_p12) target bundleno = 3 (0x3), region = 119 }

// kernel: forward.39
= control target key start
LH: loop header
LB: loop body
LE: loop exit
PB: predicated region body
PF: predicated region fallthrough
CT: control target
= control target key end

     0   :  { %s2081_s15 = smov 0   ;;  %s2083_s16 = smov 0   ;;  %s2311_s0 = inlined_call_operand.vmem [shape: bf16[16,4608], index: 0, kind: input, shape index: {}]   ;;  %s2312_s1 = inlined_call_operand.vmem [shape: bf16[4608,512], index: 1, kind: input, shape index: {}]   ;;  %s2313_s2 = inlined_call_operand.vmem [shape: f32[1,512], index: 2, kind: input, shape index: {}]   ;;  %s2314_s3 = inlined_call_operand.vmem [shape: bf16[16,512], index: 3, kind: input, shape index: {}]   ;;  %s2315_s4 = inlined_call_operand.vmem [shape: bf16[16,512], index: 4, kind: output, shape index: {}]  }
   0x1   :  { %s2085_s17 = smov 0   ;;  %s2087_s18 = smov 0  }
   0x2   :  { %s2089_s19 = smov 0  }
   0x3 LB: > { %s26_s20 = sadd.s32 1, %s2049_s18  ;;  %p49_p1 = scmp.ne.s32.totalorder %s2041_s16, %s2037_s15  ;;  %s2053_s19 = sphi %s2089_s19, %s14_s19   ;;  %s2049_s18 = sphi %s2087_s18, %s2319_s18   ;;  %s2045_s17 = sphi %s2085_s17, %s2318_s17   ;;  %s2041_s16 = sphi %s2083_s16, %s2317_s16   ;;  %s2037_s15 = sphi %s2081_s15, %s2316_s15  }
   0x4   : > { %p27_p0 = scmp.ge.s32.totalorder %s26_s20, 9  ;;  %p50_p2 = scmp.eq.s32.totalorder %s2053_s19, 0 }
   0x5   : > { %s42_s22 = sadd.s32 1, %s2041_s16  ;;  %p1611_p5 = scmp.ge.s32.totalorder %s2053_s19, 9 }
   0x6   : > { %s2321_s20 = smov (%p27_p0, %s26_s20), 0  ;;  %p51_p3 = por %p50_p2, %p49_p1 }
   0x7   : > { %s38_s21 = ssub.s32 %s2049_s18, %s2321_s20  ;;  %208 = sbr.rel (%p1611_p5) target bundleno = 21 (0x15), region = 24 }
   0x8   : > { %p40_p4 = scmp.eq.s32.totalorder %s38_s21, 0 }
   0xa   : > { %s2116_s23 = scalar_select %p40_p4, %s2041_s16, %s42_s22  }
   0xe   : > { %211 = sbr.rel (!%p51_p3) target bundleno = 21 (0x15), region = 28  ;;  %s213_s24 = sand.u32 (%p51_p3), 1, %s2041_s16  }
   0xf   : > { %s1762_s25 = sshll.u32 (%p51_p3), %s2049_s18, 4  ;;  %s1612_s26 = sshll.u32 (%p51_p3), %s213_s24, 5 }
  0x10   : > { %s221_s29 = scalar_lea.vmem (%p51_p3), %s2311_s0, %s1762_s25  ;;  %s215_s30 = scalar_lea.vmem (%p51_p3), [#allocation3], %s1612_s26 }
  0x11   : > { %v234_v0 = vld [vmem:[%s221_s29] sm:$0xff] (%p51_p3)  ;;  %v236_v1 = vld [vmem:[%s221_s29 + $0x8] sm:$0xff] (%p51_p3)  ;;  %v238_v2 = vld [vmem:[%s221_s29 + $0x90] sm:$0xff] (%p51_p3) }
  0x12   : > { %235 = vst [vmem:[%s215_s30] sm:$0xff] (%p51_p3), %v234_v0  ;;  %237 = vst [vmem:[%s215_s30 + $0x8] sm:$0xff] (%p51_p3), %v236_v1  ;;  %v240_v3 = vld [vmem:[%s221_s29 + $0x98] sm:$0xff] (%p51_p3) }
  0x13   : > { %239 = vst [vmem:[%s215_s30 + $0x10] sm:$0xff] (%p51_p3), %v238_v2  ;;  %241 = vst [vmem:[%s215_s30 + $0x18] sm:$0xff] (%p51_p3), %v240_v3 }
  0x15 PF: > { %p1615_p6 = scmp.ge.s32.totalorder %s2053_s19, 1  ;;  %p261_p7 = scmp.lt.s32.totalorder %s2053_s19, 10 }
  0x17   : > { %p262_p8 = pnand %p1615_p6, %p261_p7 }
  0x18   : > { %s268_s5 = sand.u32 (!%p262_p8), 1, %s2037_s15   ;;  %s1617_s6 = sshll.u32 (!%p262_p8), %s2045_s17, 6 }
  0x19   : > { %265 = sbr.rel (%p262_p8) target bundleno = 402 (0x192), region = 55  ;;  %s1616_s7 = sshll.u32 (!%p262_p8), %s268_s5, 5 }
  0x1a   : > { %p326_p9 = scmp.lt.s32.totalorder (!%p262_p8), %s1617_s6, 575  ;;  %s2133_s12 = scalar_lea.vmem (!%p262_p8), [#allocation3], %s1616_s7 }
  0x1b   : > { %p1620_p10 = scmp.ne.s32.totalorder (!%p262_p8), %s2045_s17, 0 }
  0x20   : > { %s2323_s6 = smov (!%p326_p9, %s1617_s6), 575  ;;  %368 = sbr.rel (%p1620_p10) target bundleno = 39 (0x27), region = 63 }
  0x21   : > { %s1763_s8 = sshll.u32 %s2323_s6, 4  ;;  %v2055_v4 = vmov (!%p1620_p10), 0.0  }
  0x22   : > { %s2131_s11 = scalar_lea.vmem %s2312_s1, %s1763_s8  ;;  %369 = vst [vmem:[#allocation2] sm:$0xff] (!%p1620_p10), %v2055_v4  ;;  %370 = vst [vmem:[#allocation2 + $0x8] sm:$0xff] (!%p1620_p10), %v2055_v4 }
  0x23   : > { %371 = vst [vmem:[#allocation2 + $0x10] sm:$0xff] (!%p1620_p10), %v2055_v4  ;;  %372 = vst [vmem:[#allocation2 + $0x18] sm:$0xff] (!%p1620_p10), %v2055_v4 }
  0x24   : > { %373 = vst [vmem:[#allocation2 + $0x20] sm:$0xff] (!%p1620_p10), %v2055_v4  ;;  %374 = vst [vmem:[#allocation2 + $0x28] sm:$0xff] (!%p1620_p10), %v2055_v4 }
  0x25   : > { %375 = vst [vmem:[#allocation2 + $0x30] sm:$0xff] (!%p1620_p10), %v2055_v4  ;;  %376 = vst [vmem:[#allocation2 + $0x38] sm:$0xff] (!%p1620_p10), %v2055_v4 }
  0x27 PF: > { %v1817_v5 = vld [vmem:[%s2131_s11 + $0x4] ss:$16 sps:$4 sm:$0xff]   ;;  %v1819_v6 = vld [vmem:[%s2131_s11 + $0xc] ss:$16 sps:$4 sm:$0xff]   ;;  %v1821_v7 = vld [vmem:[%s2131_s11] ss:$16 sps:$4 sm:$0xff]  }
  0x28   : > { %1177 = vmatprep.subr.bf16.mxu0 %v1817_v5  ;;  %v1822_v8 = vld [vmem:[%s2131_s11 + $0x8] ss:$16 sps:$4 sm:$0xff]   ;;  %1263 = vmatprep.subr.bf16.mxu1 %v1819_v6  ;;  %v1823_v9 = vld [vmem:[%s2131_s11 + $0x24] ss:$16 sps:$4 sm:$0xff]   ;;  %v1825_v10 = vld [vmem:[%s2131_s11 + $0x2c] ss:$16 sps:$4 sm:$0xff]  }
  0x29   : > { %1178 = vmatpush1.bf16.msra.mxu0 %v1821_v7  ;;  %1264 = vmatpush1.bf16.msra.mxu1 %v1822_v8  ;;  %v1827_v11 = vld [vmem:[%s2131_s11 + $0x20] ss:$16 sps:$4 sm:$0xff]   ;;  %v1828_v12 = vld [vmem:[%s2131_s11 + $0x28] ss:$16 sps:$4 sm:$0xff]   ;;  %v1829_v13 = vld [vmem:[%s2131_s11 + $0x44] ss:$16 sps:$4 sm:$0xff]  }
  0x2a   : > { %1179 = vmatprep.subr.bf16.mxu0 %v1823_v9  ;;  %1265 = vmatprep.subr.bf16.mxu1 %v1825_v10  ;;  %v1831_v14 = vld [vmem:[%s2131_s11 + $0x4c] ss:$16 sps:$4 sm:$0xff]   ;;  %v1833_v15 = vld [vmem:[%s2131_s11 + $0x40] ss:$16 sps:$4 sm:$0xff]   ;;  %v1834_v16 = vld [vmem:[%s2131_s11 + $0x48] ss:$16 sps:$4 sm:$0xff]  }
  0x2b   : > { %v1835_v17 = vld [vmem:[%s2131_s11 + $0x64] ss:$16 sps:$4 sm:$0xff]   ;;  %v1837_v18 = vld [vmem:[%s2131_s11 + $0x6c] ss:$16 sps:$4 sm:$0xff]   ;;  %v1839_v19 = vld [vmem:[%s2131_s11 + $0x60] ss:$16 sps:$4 sm:$0xff]  }
  0x2c   : > { %v1840_v20 = vld [vmem:[%s2131_s11 + $0x68] ss:$16 sps:$4 sm:$0xff]   ;;  %v1841_v21 = vld [vmem:[%s2131_s11 + $0x84] ss:$16 sps:$4 sm:$0xff]   ;;  %v1843_v22 = vld [vmem:[%s2131_s11 + $0x8c] ss:$16 sps:$4 sm:$0xff]  }
  0x2d   : > { %1180 = vmatpush1.bf16.msra.mxu0 %v1827_v11  ;;  %1266 = vmatpush1.bf16.msra.mxu1 %v1828_v12  ;;  %v1845_v23 = vld [vmem:[%s2131_s11 + $0x80] ss:$16 sps:$4 sm:$0xff]   ;;  %v1846_v24 = vld [vmem:[%s2131_s11 + $0x88] ss:$16 sps:$4 sm:$0xff]   ;;  %v1847_v25 = vld [vmem:[%s2131_s11 + $0xa4] ss:$16 sps:$4 sm:$0xff]  }
  0x2e   : > { %1181 = vmatprep.subr.bf16.mxu0 %v1829_v13  ;;  %1267 = vmatprep.subr.bf16.mxu1 %v1831_v14  ;;  %v1849_v26 = vld [vmem:[%s2131_s11 + $0xac] ss:$16 sps:$4 sm:$0xff]   ;;  %v1851_v27 = vld [vmem:[%s2131_s11 + $0xa0] ss:$16 sps:$4 sm:$0xff]   ;;  %v1852_v28 = vld [vmem:[%s2131_s11 + $0xa8] ss:$16 sps:$4 sm:$0xff]  }
  0x2f   : > { %v1853_v29 = vld [vmem:[%s2131_s11 + $0xc4] ss:$16 sps:$4 sm:$0xff]   ;;  %v1855_v30 = vld [vmem:[%s2131_s11 + $0xcc] ss:$16 sps:$4 sm:$0xff]   ;;  %v1857_v31 = vld [vmem:[%s2131_s11 + $0xc0] ss:$16 sps:$4 sm:$0xff]  }
  0x30   : > { %v1858_v32 = vld [vmem:[%s2131_s11 + $0xc8] ss:$16 sps:$4 sm:$0xff]   ;;  %v1859_v33 = vld [vmem:[%s2131_s11 + $0xe4] ss:$16 sps:$4 sm:$0xff]   ;;  %v1861_v34 = vld [vmem:[%s2131_s11 + $0xec] ss:$16 sps:$4 sm:$0xff]  }
  0x31   : > { %1182 = vmatpush1.bf16.msra.mxu0 %v1833_v15  ;;  %1268 = vmatpush1.bf16.msra.mxu1 %v1834_v16  ;;  %v1863_v35 = vld [vmem:[%s2131_s11 + $0xe0] ss:$16 sps:$4 sm:$0xff]   ;;  %v1864_v36 = vld [vmem:[%s2131_s11 + $0xe8] ss:$16 sps:$4 sm:$0xff]   ;;  %v1865_v37 = vld [vmem:[%s2131_s11 + $0x104] ss:$16 sps:$4 sm:$0xff]  }
  0x32   : > { %1183 = vmatprep.subr.bf16.mxu0 %v1835_v17  ;;  %1269 = vmatprep.subr.bf16.mxu1 %v1837_v18  ;;  %v1867_v38 = vld [vmem:[%s2131_s11 + $0x10c] ss:$16 sps:$4 sm:$0xff]   ;;  %v1869_v39 = vld [vmem:[%s2131_s11 + $0x100] ss:$16 sps:$4 sm:$0xff]   ;;  %v1870_v40 = vld [vmem:[%s2131_s11 + $0x108] ss:$16 sps:$4 sm:$0xff]  }
  0x33   : > { %v1871_v41 = vld [vmem:[%s2131_s11 + $0x124] ss:$16 sps:$4 sm:$0xff]   ;;  %v1873_v42 = vld [vmem:[%s2131_s11 + $0x12c] ss:$16 sps:$4 sm:$0xff]   ;;  %v1875_v43 = vld [vmem:[%s2131_s11 + $0x120] ss:$16 sps:$4 sm:$0xff]  }
  0x34   : > { %v1876_v44 = vld [vmem:[%s2131_s11 + $0x128] ss:$16 sps:$4 sm:$0xff]   ;;  %v1877_v45 = vld [vmem:[%s2131_s11 + $0x144] ss:$16 sps:$4 sm:$0xff]   ;;  %v1879_v46 = vld [vmem:[%s2131_s11 + $0x14c] ss:$16 sps:$4 sm:$0xff]  }
  0x35   : > { %1184 = vmatpush1.bf16.msra.mxu0 %v1839_v19  ;;  %1270 = vmatpush1.bf16.msra.mxu1 %v1840_v20  ;;  %v1881_v47 = vld [vmem:[%s2131_s11 + $0x140] ss:$16 sps:$4 sm:$0xff]   ;;  %v1882_v48 = vld [vmem:[%s2131_s11 + $0x148] ss:$16 sps:$4 sm:$0xff]   ;;  %v1883_v49 = vld [vmem:[%s2131_s11 + $0x164] ss:$16 sps:$4 sm:$0xff]  }
  0x36   : > { %1185 = vmatprep.subr.bf16.mxu0 %v1841_v21  ;;  %1271 = vmatprep.subr.bf16.mxu1 %v1843_v22  ;;  %v1885_v50 = vld [vmem:[%s2131_s11 + $0x16c] ss:$16 sps:$4 sm:$0xff]   ;;  %v1887_v51 = vld [vmem:[%s2131_s11 + $0x160] ss:$16 sps:$4 sm:$0xff]   ;;  %v1888_v52 = vld [vmem:[%s2131_s11 + $0x168] ss:$16 sps:$4 sm:$0xff]  }
  0x37   : > { %v1915_v53 = vld [vmem:[%s2133_s12 + $0x4] ss:$16 sps:$4 sm:$0xff]   ;;  %v1891_v55 = vld [vmem:[%s2131_s11 + $0x18c] ss:$16 sps:$4 sm:$0xff]   ;;  %v1893_v56 = vld [vmem:[%s2131_s11 + $0x180] ss:$16 sps:$4 sm:$0xff]  }
  0x38   : > { %v1889_v54 = vld [vmem:[%s2131_s11 + $0x184] ss:$16 sps:$4 sm:$0xff]   ;;  %1209 = vmatprep.mubr.bf16.mxu0 %v1915_v53  ;;  %1295 = vmatprep.mubr.bf16.mxu1 %v1915_v53  ;;  %v1894_v57 = vld [vmem:[%s2131_s11 + $0x188] ss:$16 sps:$4 sm:$0xff]   ;;  %v1897_v59 = vld [vmem:[%s2131_s11 + $0x1ac] ss:$16 sps:$4 sm:$0xff]  }
  0x39   : > { %1186 = vmatpush1.bf16.msra.mxu0 %v1845_v23  ;;  %1272 = vmatpush1.bf16.msra.mxu1 %v1846_v24  ;;  %v1895_v58 = vld [vmem:[%s2131_s11 + $0x1a4] ss:$16 sps:$4 sm:$0xff]   ;;  %v1899_v60 = vld [vmem:[%s2131_s11 + $0x1a0] ss:$16 sps:$4 sm:$0xff]   ;;  %v1900_v61 = vld [vmem:[%s2131_s11 + $0x1a8] ss:$16 sps:$4 sm:$0xff]  }
  0x3a   : > { %1187 = vmatprep.subr.bf16.mxu0 %v1847_v25  ;;  %1273 = vmatprep.subr.bf16.mxu1 %v1849_v26  ;;  %v1901_v62 = vld [vmem:[%s2131_s11 + $0x1c4] ss:$16 sps:$4 sm:$0xff]   ;;  %v1903_v63 = vld [vmem:[%s2131_s11 + $0x1cc] ss:$16 sps:$4 sm:$0xff]   ;;  %v1905_v0 = vld [vmem:[%s2131_s11 + $0x1c0] ss:$16 sps:$4 sm:$0xff]  }
  0x3b   : > { %v1906_v1 = vld [vmem:[%s2131_s11 + $0x1c8] ss:$16 sps:$4 sm:$0xff]   ;;  %v1907_v2 = vld [vmem:[%s2131_s11 + $0x1e4] ss:$16 sps:$4 sm:$0xff]   ;;  %v1909_v3 = vld [vmem:[%s2131_s11 + $0x1ec] ss:$16 sps:$4 sm:$0xff]  }
  0x3c   : > { %v1911_v4 = vld [vmem:[%s2131_s11 + $0x1e0] ss:$16 sps:$4 sm:$0xff]   ;;  %v1912_v5 = vld [vmem:[%s2131_s11 + $0x1e8] ss:$16 sps:$4 sm:$0xff]   ;;  %v1918_v6 = vld [vmem:[%s2131_s11 + $0x204] ss:$16 sps:$4 sm:$0xff]  }
  0x3d   : > { %1188 = vmatpush1.bf16.msra.mxu0 %v1851_v27  ;;  %1274 = vmatpush1.bf16.msra.mxu1 %v1852_v28  ;;  %v1921_v7 = vld [vmem:[%s2131_s11 + $0x20c] ss:$16 sps:$4 sm:$0xff]   ;;  %v1913_v8 = vld [vmem:[%s2133_s12] ss:$16 sps:$4 sm:$0xff]   ;;  %v1919_v10 = vld [vmem:[%s2131_s11 + $0x208] ss:$16 sps:$4 sm:$0xff]  }
  0x3e   : > { %1189 = vmatprep.subr.bf16.mxu0 %v1853_v29  ;;  %1275 = vmatprep.subr.bf16.mxu1 %v1855_v30  ;;  %v1916_v9 = vld [vmem:[%s2131_s11 + $0x200] ss:$16 sps:$4 sm:$0xff]   ;;  %v1924_v11 = vld [vmem:[%s2131_s11 + $0x224] ss:$16 sps:$4 sm:$0xff]   ;;  %v1927_v12 = vld [vmem:[%s2131_s11 + $0x22c] ss:$16 sps:$4 sm:$0xff]  }
  0x3f   : > { %v1922_v13 = vld [vmem:[%s2131_s11 + $0x220] ss:$16 sps:$4 sm:$0xff]   ;;  %v1925_v14 = vld [vmem:[%s2131_s11 + $0x228] ss:$16 sps:$4 sm:$0xff]   ;;  %v1930_v15 = vld [vmem:[%s2131_s11 + $0x244] ss:$16 sps:$4 sm:$0xff]  }
  0x40   : > { %v1933_v16 = vld [vmem:[%s2131_s11 + $0x24c] ss:$16 sps:$4 sm:$0xff]   ;;  %v1928_v17 = vld [vmem:[%s2131_s11 + $0x240] ss:$16 sps:$4 sm:$0xff]   ;;  %v1931_v18 = vld [vmem:[%s2131_s11 + $0x248] ss:$16 sps:$4 sm:$0xff]  }
  0x41   : > { %1190 = vmatpush1.bf16.msra.mxu0 %v1857_v31  ;;  %1276 = vmatpush1.bf16.msra.mxu1 %v1858_v32  ;;  %v1936_v19 = vld [vmem:[%s2131_s11 + $0x264] ss:$16 sps:$4 sm:$0xff]   ;;  %v1939_v20 = vld [vmem:[%s2131_s11 + $0x26c] ss:$16 sps:$4 sm:$0xff]   ;;  %v1934_v21 = vld [vmem:[%s2131_s11 + $0x260] ss:$16 sps:$4 sm:$0xff]  }
  0x42   : > { %1191 = vmatprep.subr.bf16.mxu0 %v1859_v33  ;;  %1277 = vmatprep.subr.bf16.mxu1 %v1861_v34  ;;  %v1937_v22 = vld [vmem:[%s2131_s11 + $0x268] ss:$16 sps:$4 sm:$0xff]   ;;  %v1942_v23 = vld [vmem:[%s2131_s11 + $0x284] ss:$16 sps:$4 sm:$0xff]   ;;  %v1945_v24 = vld [vmem:[%s2131_s11 + $0x28c] ss:$16 sps:$4 sm:$0xff]  }
  0x43   : > { %v1940_v25 = vld [vmem:[%s2131_s11 + $0x280] ss:$16 sps:$4 sm:$0xff]   ;;  %v1943_v26 = vld [vmem:[%s2131_s11 + $0x288] ss:$16 sps:$4 sm:$0xff]   ;;  %v1948_v27 = vld [vmem:[%s2131_s11 + $0x2a4] ss:$16 sps:$4 sm:$0xff]  }
  0x44   : > { %v1951_v28 = vld [vmem:[%s2131_s11 + $0x2ac] ss:$16 sps:$4 sm:$0xff]   ;;  %v1946_v29 = vld [vmem:[%s2131_s11 + $0x2a0] ss:$16 sps:$4 sm:$0xff]   ;;  %v1949_v30 = vld [vmem:[%s2131_s11 + $0x2a8] ss:$16 sps:$4 sm:$0xff]  }
  0x45   : > { %1192 = vmatpush1.bf16.msra.mxu0 %v1863_v35  ;;  %1278 = vmatpush1.bf16.msra.mxu1 %v1864_v36  ;;  %v1954_v31 = vld [vmem:[%s2131_s11 + $0x2c4] ss:$16 sps:$4 sm:$0xff]   ;;  %v1957_v32 = vld [vmem:[%s2131_s11 + $0x2cc] ss:$16 sps:$4 sm:$0xff]   ;;  %v1952_v34 = vld [vmem:[%s2131_s11 + $0x2c0] ss:$16 sps:$4 sm:$0xff]  }
  0x46   : > { %1193 = vmatprep.subr.bf16.mxu0 %v1865_v37  ;;  %1279 = vmatprep.subr.bf16.mxu1 %v1867_v38  ;;  %v2014_v33 = vld [vmem:[%s2133_s12 + $0xc] ss:$16 sps:$4 sm:$0xff]   ;;  %v1955_v35 = vld [vmem:[%s2131_s11 + $0x2c8] ss:$16 sps:$4 sm:$0xff]   ;;  %v1960_v36 = vld [vmem:[%s2131_s11 + $0x2e4] ss:$16 sps:$4 sm:$0xff]  }
  0x47   : > { %v1963_v37 = vld [vmem:[%s2131_s11 + $0x2ec] ss:$16 sps:$4 sm:$0xff]   ;;  %v1958_v38 = vld [vmem:[%s2131_s11 + $0x2e0] ss:$16 sps:$4 sm:$0xff]   ;;  %p1753_p11 = scmp.ne.s32.totalorder %s2045_s17, 8 }
  0x48   : > { %v1987_v53 = vld [vmem:[%s2131_s11 + $0x36c] ss:$16 sps:$4 sm:$0xff]  }
  0x49   : > { %1194 = vmatpush1.bf16.msra.mxu0 %v1869_v39  ;;  %1280 = vmatpush1.bf16.msra.mxu1 %v1870_v40  ;;  %v1961_v39 = vld [vmem:[%s2131_s11 + $0x2e8] ss:$16 sps:$4 sm:$0xff]   ;;  %v1966_v40 = vld [vmem:[%s2131_s11 + $0x304] ss:$16 sps:$4 sm:$0xff]  }
  0x4a   : > { %1195 = vmatprep.subr.bf16.mxu0 %v1871_v41  ;;  %1281 = vmatprep.subr.bf16.mxu1 %v1873_v42  ;;  %v1969_v41 = vld [vmem:[%s2131_s11 + $0x30c] ss:$16 sps:$4 sm:$0xff]   ;;  %v1964_v42 = vld [vmem:[%s2131_s11 + $0x300] ss:$16 sps:$4 sm:$0xff]  }
  0x4d   : > { %1196 = vmatpush1.bf16.msra.mxu0 %v1875_v43  ;;  %1282 = vmatpush1.bf16.msra.mxu1 %v1876_v44  ;;  %v1967_v43 = vld [vmem:[%s2131_s11 + $0x308] ss:$16 sps:$4 sm:$0xff]   ;;  %v1972_v44 = vld [vmem:[%s2131_s11 + $0x324] ss:$16 sps:$4 sm:$0xff]  }
  0x4e   : > { %1197 = vmatprep.subr.bf16.mxu0 %v1877_v45  ;;  %1283 = vmatprep.subr.bf16.mxu1 %v1879_v46  ;;  %v1975_v45 = vld [vmem:[%s2131_s11 + $0x32c] ss:$16 sps:$4 sm:$0xff]   ;;  %v1970_v46 = vld [vmem:[%s2131_s11 + $0x320] ss:$16 sps:$4 sm:$0xff]  }
  0x51   : > { %1198 = vmatpush1.bf16.msra.mxu0 %v1881_v47  ;;  %1284 = vmatpush1.bf16.msra.mxu1 %v1882_v48  ;;  %v1973_v47 = vld [vmem:[%s2131_s11 + $0x328] ss:$16 sps:$4 sm:$0xff]   ;;  %v1978_v48 = vld [vmem:[%s2131_s11 + $0x344] ss:$16 sps:$4 sm:$0xff]  }
  0x52   : > { %1199 = vmatprep.subr.bf16.mxu0 %v1883_v49  ;;  %1285 = vmatprep.subr.bf16.mxu1 %v1885_v50  ;;  %v1981_v49 = vld [vmem:[%s2131_s11 + $0x34c] ss:$16 sps:$4 sm:$0xff]   ;;  %v1976_v50 = vld [vmem:[%s2131_s11 + $0x340] ss:$16 sps:$4 sm:$0xff]  }
  0x55   : > { %1200 = vmatpush1.bf16.msra.mxu0 %v1887_v51  ;;  %1286 = vmatpush1.bf16.msra.mxu1 %v1888_v52  ;;  %v1979_v51 = vld [vmem:[%s2131_s11 + $0x348] ss:$16 sps:$4 sm:$0xff]   ;;  %v1984_v52 = vld [vmem:[%s2131_s11 + $0x364] ss:$16 sps:$4 sm:$0xff]  }
  0x56   : > { %1201 = vmatprep.subr.bf16.mxu0 %v1889_v54  ;;  %1287 = vmatprep.subr.bf16.mxu1 %v1891_v55  ;;  %v1982_v54 = vld [vmem:[%s2131_s11 + $0x360] ss:$16 sps:$4 sm:$0xff]   ;;  %v1985_v55 = vld [vmem:[%s2131_s11 + $0x368] ss:$16 sps:$4 sm:$0xff]  }
  0x59   : > { %1202 = vmatpush1.bf16.msra.mxu0 %v1893_v56  ;;  %1288 = vmatpush1.bf16.msra.mxu1 %v1894_v57  ;;  %v1990_v56 = vld [vmem:[%s2131_s11 + $0x384] ss:$16 sps:$4 sm:$0xff]   ;;  %v1993_v57 = vld [vmem:[%s2131_s11 + $0x38c] ss:$16 sps:$4 sm:$0xff]  }
  0x5a   : > { %1203 = vmatprep.subr.bf16.mxu0 %v1895_v58  ;;  %1289 = vmatprep.subr.bf16.mxu1 %v1897_v59  ;;  %v1988_v58 = vld [vmem:[%s2131_s11 + $0x380] ss:$16 sps:$4 sm:$0xff]   ;;  %v1991_v59 = vld [vmem:[%s2131_s11 + $0x388] ss:$16 sps:$4 sm:$0xff]  }
  0x5d   : > { %1204 = vmatpush1.bf16.msra.mxu0 %v1899_v60  ;;  %1290 = vmatpush1.bf16.msra.mxu1 %v1900_v61  ;;  %v1996_v60 = vld [vmem:[%s2131_s11 + $0x3a4] ss:$16 sps:$4 sm:$0xff]   ;;  %v1999_v61 = vld [vmem:[%s2131_s11 + $0x3ac] ss:$16 sps:$4 sm:$0xff]  }
  0x5e   : > { %1205 = vmatprep.subr.bf16.mxu0 %v1901_v62  ;;  %1291 = vmatprep.subr.bf16.mxu1 %v1903_v63  ;;  %v1994_v62 = vld [vmem:[%s2131_s11 + $0x3a0] ss:$16 sps:$4 sm:$0xff]   ;;  %v1997_v63 = vld [vmem:[%s2131_s11 + $0x3a8] ss:$16 sps:$4 sm:$0xff]  }
  0x61   : > { %1206 = vmatpush1.bf16.msra.mxu0 %v1905_v0  ;;  %1292 = vmatpush1.bf16.msra.mxu1 %v1906_v1  ;;  %v2002_v0 = vld [vmem:[%s2131_s11 + $0x3c4] ss:$16 sps:$4 sm:$0xff]   ;;  %v2005_v1 = vld [vmem:[%s2131_s11 + $0x3cc] ss:$16 sps:$4 sm:$0xff]  }
  0x62   : > { %1207 = vmatprep.subr.bf16.mxu0 %v1907_v2  ;;  %1293 = vmatprep.subr.bf16.mxu1 %v1909_v3  ;;  %v2000_v2 = vld [vmem:[%s2131_s11 + $0x3c0] ss:$16 sps:$4 sm:$0xff]   ;;  %v2003_v3 = vld [vmem:[%s2131_s11 + $0x3c8] ss:$16 sps:$4 sm:$0xff]  }
  0x65   : > { %1208 = vmatpush1.bf16.msra.mxu0 %v1911_v4  ;;  %1294 = vmatpush1.bf16.msra.mxu1 %v1912_v5  ;;  %v2008_v4 = vld [vmem:[%s2131_s11 + $0x3e4] ss:$16 sps:$4 sm:$0xff]   ;;  %v2011_v5 = vld [vmem:[%s2131_s11 + $0x3ec] ss:$16 sps:$4 sm:$0xff]  }
  0x66   : > { %1220 = vmatprep.subr.bf16.mxu0 %v1918_v6  ;;  %1306 = vmatprep.subr.bf16.mxu1 %v1921_v7  ;;  %v2006_v6 = vld [vmem:[%s2131_s11 + $0x3e0] ss:$16 sps:$4 sm:$0xff]   ;;  %v2009_v7 = vld [vmem:[%s2131_s11 + $0x3e8] ss:$16 sps:$4 sm:$0xff]  }
  0x68   : > { %1210 = vmatmul.mubr.bf16.vlgmr.msra.gmra.mrb[0].mxu0 %v1913_v8  ;;  %1296 = vmatmul.mubr.bf16.vlgmr.msra.gmra.mrb[0].mxu1 %v1913_v8  ;;  %v2012_v8 = vld [vmem:[%s2133_s12 + $0x8] ss:$16 sps:$4 sm:$0xff]  }
  0x69   : > { %1221 = vmatpush1.bf16.msra.mxu0 %v1916_v9  ;;  %1307 = vmatpush1.bf16.msra.mxu1 %v1919_v10  ;;  %v377_v9 = vld [vmem:[#allocation2] sm:$0xff]  ;;  %v379_v10 = vld [vmem:[#allocation2 + $0x10] sm:$0xff] }
  0x6a   : > { %1222 = vmatprep.subr.bf16.mxu0 %v1924_v11  ;;  %1308 = vmatprep.subr.bf16.mxu1 %v1927_v12  ;;  %v378_v11 = vld [vmem:[#allocation2 + $0x8] sm:$0xff]  ;;  %v380_v12 = vld [vmem:[#allocation2 + $0x18] sm:$0xff] }
  0x6b   : > { %1252 = vmatprep.mubr.bf16.mxu0 %v2014_v33  ;;  %1338 = vmatprep.mubr.bf16.mxu1 %v2014_v33  ;;  %v1379_v33 = vlaneseq (!%p1753_p11) }
  0x6d   : > { %1223 = vmatpush1.bf16.msra.mxu0 %v1922_v13  ;;  %1309 = vmatpush1.bf16.msra.mxu1 %v1925_v14 }
  0x6e   : > { %1224 = vmatprep.subr.bf16.mxu0 %v1930_v15  ;;  %1310 = vmatprep.subr.bf16.mxu1 %v1933_v16  ;;  %v381_v15 = vld [vmem:[#allocation2 + $0x20] sm:$0xff]  ;;  %v383_v16 = vld [vmem:[#allocation2 + $0x30] sm:$0xff] }
  0x71   : > { %1225 = vmatpush1.bf16.msra.mxu0 %v1928_v17  ;;  %1311 = vmatpush1.bf16.msra.mxu1 %v1931_v18 }
  0x72   : > { %1226 = vmatprep.subr.bf16.mxu0 %v1936_v19  ;;  %1312 = vmatprep.subr.bf16.mxu1 %v1939_v20 }
  0x75   : > { %1227 = vmatpush1.bf16.msra.mxu0 %v1934_v21  ;;  %1313 = vmatpush1.bf16.msra.mxu1 %v1937_v22  ;;  %v382_v21 = vld [vmem:[#allocation2 + $0x28] sm:$0xff]  ;;  %v384_v22 = vld [vmem:[#allocation2 + $0x38] sm:$0xff] }
  0x76   : > { %1228 = vmatprep.subr.bf16.mxu0 %v1942_v23  ;;  %1314 = vmatprep.subr.bf16.mxu1 %v1945_v24 }
  0x79   : > { %1229 = vmatpush1.bf16.msra.mxu0 %v1940_v25  ;;  %1315 = vmatpush1.bf16.msra.mxu1 %v1943_v26 }
  0x7a   : > { %1230 = vmatprep.subr.bf16.mxu0 %v1948_v27  ;;  %1316 = vmatprep.subr.bf16.mxu1 %v1951_v28 }
  0x7d   : > { %1231 = vmatpush1.bf16.msra.mxu0 %v1946_v29  ;;  %1317 = vmatpush1.bf16.msra.mxu1 %v1949_v30 }
  0x7e   : > { %1232 = vmatprep.subr.bf16.mxu0 %v1954_v31  ;;  %1318 = vmatprep.subr.bf16.mxu1 %v1957_v32 }
  0x81   : > { %1233 = vmatpush1.bf16.msra.mxu0 %v1952_v34  ;;  %1319 = vmatpush1.bf16.msra.mxu1 %v1955_v35  ;;  %v1380_v34 = vshrl.u32 (!%p1753_p11), %v1379_v33, 7  ;;  %v1407_v35 = vld [vmem:[%s2314_s3] sm:$0xff] (!%p1753_p11) }
  0x82   : > { %1234 = vmatprep.subr.bf16.mxu0 %v1960_v36  ;;  %1320 = vmatprep.subr.bf16.mxu1 %v1963_v37  ;;  %v1408_v36 = vld [vmem:[%s2314_s3 + $0x8] sm:$0xff] (!%p1753_p11) }
  0x85   : > { %1235 = vmatpush1.bf16.msra.mxu0 %v1958_v38  ;;  %1321 = vmatpush1.bf16.msra.mxu1 %v1961_v39  ;;  %v1377_v39 = vld [vmem:[%s2313_s2] sm:$0xf] (!%p1753_p11) }
  0x86   : > { %1236 = vmatprep.subr.bf16.mxu0 %v1966_v40  ;;  %1322 = vmatprep.subr.bf16.mxu1 %v1969_v41  ;;  %v1381_v40 = vsub.s32 (!%p1753_p11), 0, %v1380_v34  ;;  %v1385_v41 = vsub.s32 (!%p1753_p11), 1, %v1380_v34 }
  0x89   : > { %1237 = vmatpush1.bf16.msra.mxu0 %v1964_v42  ;;  %1323 = vmatpush1.bf16.msra.mxu1 %v1967_v43  ;;  %v1389_v42 = vsub.s32 (!%p1753_p11), 2, %v1380_v34  ;;  %v1393_v43 = vsub.s32 (!%p1753_p11), 3, %v1380_v34 }
  0x8a   : > { %1238 = vmatprep.subr.bf16.mxu0 %v1972_v44  ;;  %1324 = vmatprep.subr.bf16.mxu1 %v1975_v45  ;;  %v1409_v44 = vld [vmem:[%s2314_s3 + $0x10] sm:$0xff] (!%p1753_p11)  ;;  %v1410_v45 = vld [vmem:[%s2314_s3 + $0x18] sm:$0xff] (!%p1753_p11) }
  0x8d   : > { %1239 = vmatpush1.bf16.msra.mxu0 %v1970_v46  ;;  %1325 = vmatpush1.bf16.msra.mxu1 %v1973_v47  ;;  %v1411_v46 = vunpack.c.l.bf16 (!%p1753_p11), %v1407_v35  ;;  %v1412_v47 = vunpack.c.h.bf16 (!%p1753_p11), %v1407_v35 }
  0x8e   : > { %1240 = vmatprep.subr.bf16.mxu0 %v1978_v48  ;;  %1326 = vmatprep.subr.bf16.mxu1 %v1981_v49 }
  0x91   : > { %1241 = vmatpush1.bf16.msra.mxu0 %v1976_v50  ;;  %1327 = vmatpush1.bf16.msra.mxu1 %v1979_v51  ;;  %v1413_v50 = vunpack.c.l.bf16 (!%p1753_p11), %v1408_v36  ;;  %v1414_v51 = vunpack.c.h.bf16 (!%p1753_p11), %v1408_v36 }
  0x92   : > { %1242 = vmatprep.subr.bf16.mxu0 %v1984_v52  ;;  %1328 = vmatprep.subr.bf16.mxu1 %v1987_v53  ;;  %v1382_v53 = vrot.slane (!%p1753_p11), %v1377_v39, %v1381_v40 }
  0x95   : > { %1243 = vmatpush1.bf16.msra.mxu0 %v1982_v54  ;;  %1329 = vmatpush1.bf16.msra.mxu1 %v1985_v55  ;;  %v1386_v54 = vrot.slane (!%p1753_p11), %v1377_v39, %v1385_v41  ;;  %v1390_v55 = vrot.slane (!%p1753_p11), %v1377_v39, %v1389_v42 }
  0x96   : > { %1244 = vmatprep.subr.bf16.mxu0 %v1990_v56  ;;  %1330 = vmatprep.subr.bf16.mxu1 %v1993_v57  ;;  %v1394_v56 = vrot.slane (!%p1753_p11), %v1377_v39, %v1393_v43 }
  0x99   : > { %1245 = vmatpush1.bf16.msra.mxu0 %v1988_v58  ;;  %1331 = vmatpush1.bf16.msra.mxu1 %v1991_v59 }
  0x9a   : > { %1246 = vmatprep.subr.bf16.mxu0 %v1996_v60  ;;  %1332 = vmatprep.subr.bf16.mxu1 %v1999_v61  ;;  %v1415_v60 = vunpack.c.l.bf16 (!%p1753_p11), %v1409_v44  ;;  %v1416_v61 = vunpack.c.h.bf16 (!%p1753_p11), %v1409_v44 }
  0x9d   : > { %1247 = vmatpush1.bf16.msra.mxu0 %v1994_v62  ;;  %1333 = vmatpush1.bf16.msra.mxu1 %v1997_v63  ;;  %v1417_v62 = vunpack.c.l.bf16 (!%p1753_p11), %v1410_v45  ;;  %v1418_v63 = vunpack.c.h.bf16 (!%p1753_p11), %v1410_v45 }
  0x9e   : > { %1248 = vmatprep.subr.bf16.mxu0 %v2002_v0  ;;  %1334 = vmatprep.subr.bf16.mxu1 %v2005_v1 }
  0xa1   : > { %1249 = vmatpush1.bf16.msra.mxu0 %v2000_v2  ;;  %1335 = vmatpush1.bf16.msra.mxu1 %v2003_v3 }
  0xa2   : > { %1250 = vmatprep.subr.bf16.mxu0 %v2008_v4  ;;  %1336 = vmatprep.subr.bf16.mxu1 %v2011_v5 }
  0xa5   : > { %1251 = vmatpush1.bf16.msra.mxu0 %v2006_v6  ;;  %1337 = vmatpush1.bf16.msra.mxu1 %v2009_v7 }
  0xa8   : > { %1253 = vmatmul.mubr.bf16.vlgmr.msra.gmra.mrb[0].mxu0 %v2012_v8  ;;  %1339 = vmatmul.mubr.bf16.vlgmr.msra.gmra.mrb[0].mxu1 %v2012_v8 }
 0x17b   : > { %v1254_v13 = vpop.f32.mrb[0].mxu0  ;;  %v1340_v14 = vpop.f32.mrb[0].mxu1  ;;  %1368 = sbr.rel (%p1753_p11) target bundleno = 402 (0x192), region = 67 }
 0x17c   : > { %v1349_v17 = vadd.f32 %v1254_v13, %v377_v9  ;;  %v1351_v18 = vadd.f32 %v1340_v14, %v379_v10  ;;  %v1256_v19 = vpop.f32.mrb[1].mxu0  ;;  %v1342_v20 = vpop.f32.mrb[1].mxu1 }
 0x17d   : > { %v1350_v23 = vadd.f32 %v1256_v19, %v378_v11  ;;  %v1352_v24 = vadd.f32 %v1342_v20, %v380_v12  ;;  %v1258_v25 = vpop.f32.mrb[2].mxu0  ;;  %v1344_v26 = vpop.f32.mrb[2].mxu1 }
 0x17e   : > { %1357 = vst [vmem:[#allocation2] sm:$0xff] %v1349_v17  ;;  %1359 = vst [vmem:[#allocation2 + $0x10] sm:$0xff] %v1351_v18  ;;  %v1353_v27 = vadd.f32 %v1258_v25, %v381_v15  ;;  %v1355_v28 = vadd.f32 %v1344_v26, %v383_v16  ;;  %v1260_v29 = vpop.f32.mrb[3].mxu0  ;;  %v1346_v30 = vpop.f32.mrb[3].mxu1 }
 0x17f   : > { %1358 = vst [vmem:[#allocation2 + $0x8] sm:$0xff] %v1350_v23  ;;  %1360 = vst [vmem:[#allocation2 + $0x18] sm:$0xff] %v1352_v24  ;;  %v1354_v31 = vadd.f32 %v1260_v29, %v382_v21  ;;  %v1356_v32 = vadd.f32 %v1346_v30, %v384_v22 }
 0x180   : > { %1361 = vst [vmem:[#allocation2 + $0x20] sm:$0xff] %v1353_v27  ;;  %1363 = vst [vmem:[#allocation2 + $0x30] sm:$0xff] %v1355_v28 }
 0x181   : > { %1362 = vst [vmem:[#allocation2 + $0x28] sm:$0xff] %v1354_v31  ;;  %1364 = vst [vmem:[#allocation2 + $0x38] sm:$0xff] %v1356_v32 }
 0x185   : > { %v1369_v37 = vld [vmem:[#allocation2] sm:$0xff]  ;;  %v1371_v48 = vld [vmem:[#allocation2 + $0x10] sm:$0xff] }
 0x186   : > { %v1370_v38 = vld [vmem:[#allocation2 + $0x8] sm:$0xff]  ;;  %v1372_v49 = vld [vmem:[#allocation2 + $0x18] sm:$0xff]  ;;  %v1399_v0 = vadd.f32 %v1382_v53, %v1369_v37  ;;  %v1401_v2 = vadd.f32 %v1390_v55, %v1371_v48 }
 0x187   : > { %v1373_v52 = vld [vmem:[#allocation2 + $0x20] sm:$0xff]  ;;  %v1375_v58 = vld [vmem:[#allocation2 + $0x30] sm:$0xff]  ;;  %v1400_v1 = vadd.f32 %v1386_v54, %v1370_v38  ;;  %v1402_v3 = vadd.f32 %v1394_v56, %v1372_v49 }
 0x188   : > { %v1374_v57 = vld [vmem:[#allocation2 + $0x28] sm:$0xff]  ;;  %v1376_v59 = vld [vmem:[#allocation2 + $0x38] sm:$0xff]  ;;  %v1403_v4 = vadd.f32 %v1382_v53, %v1373_v52  ;;  %v1405_v6 = vadd.f32 %v1390_v55, %v1375_v58  ;;  %v1419_v8 = vadd.f32 %v1411_v46, %v1399_v0  ;;  %v1421_v10 = vadd.f32 %v1413_v50, %v1401_v2 }
 0x189   : > { %v1404_v5 = vadd.f32 %v1386_v54, %v1374_v57  ;;  %v1406_v7 = vadd.f32 %v1394_v56, %v1376_v59  ;;  %v1420_v9 = vadd.f32 %v1412_v47, %v1400_v1  ;;  %v1422_v11 = vadd.f32 %v1414_v51, %v1402_v3 }
 0x18a   : > { %v1423_v12 = vadd.f32 %v1415_v60, %v1403_v4  ;;  %v1425_v14 = vadd.f32 %v1417_v62, %v1405_v6  ;;  %v1427_v16 = vmax.f32 %v1419_v8, 0.0  ;;  %v1429_v18 = vmax.f32 %v1421_v10, 0.0 }
 0x18b   : > { %v1424_v13 = vadd.f32 %v1416_v61, %v1404_v5  ;;  %v1426_v15 = vadd.f32 %v1418_v63, %v1406_v7  ;;  %v1428_v17 = vmax.f32 %v1420_v9, 0.0  ;;  %v1430_v19 = vmax.f32 %v1422_v11, 0.0 }
 0x18c   : > { %v1431_v20 = vmax.f32 %v1423_v12, 0.0  ;;  %v1433_v22 = vmax.f32 %v1425_v14, 0.0 }
 0x18d   : > { %v1432_v21 = vmax.f32 %v1424_v13, 0.0  ;;  %v1434_v23 = vmax.f32 %v1426_v15, 0.0  ;;  %v1764_v24 = vpack.c.bf16 %v1428_v17, %v1427_v16  ;;  %v1765_v25 = vpack.c.bf16 %v1430_v19, %v1429_v18 }
 0x18f   : > { %v1766_v26 = vpack.c.bf16 %v1432_v21, %v1431_v20  ;;  %v1767_v27 = vpack.c.bf16 %v1434_v23, %v1433_v22  ;;  %1459 = vst [vmem:[%s2315_s4] sm:$0xff] %v1764_v24  ;;  %1460 = vst [vmem:[%s2315_s4 + $0x8] sm:$0xff] %v1765_v25 }
 0x191   : > { %1461 = vst [vmem:[%s2315_s4 + $0x10] sm:$0xff] %v1766_v26  ;;  %1462 = vst [vmem:[%s2315_s4 + $0x18] sm:$0xff] %v1767_v27 }
 0x192 PF: > { %s14_s19 = sadd.s32 1, %s2053_s19   ;;  %s2316_s15 = smov %s2041_s16 }
 0x193   : > { %p11_p12 = scmp.ge.s32.totalorder %s14_s19, 11   ;;  %s2317_s16 = smov %s2116_s23 }
 0x194   : > { %s2318_s17 = smov %s2049_s18  ;;  %s2319_s18 = smov %s2321_s20 }
 0x195   :  { %13 = sbr.rel (!%p11_p12) target bundleno = 3 (0x3), region = 111 }

// kernel: forward.40
= control target key start
LH: loop header
LB: loop body
LE: loop exit
PB: predicated region body
PF: predicated region fallthrough
CT: control target
= control target key end

     0   :  { %s1966_s12 = smov 0   ;;  %s1968_s13 = smov 0   ;;  %s2184_s0 = inlined_call_operand.vmem [shape: bf16[16,4608], index: 0, kind: input, shape index: {}]   ;;  %s2185_s1 = inlined_call_operand.vmem [shape: bf16[4608,512], index: 1, kind: input, shape index: {}]   ;;  %s2186_s2 = inlined_call_operand.vmem [shape: f32[1,512], index: 2, kind: input, shape index: {}]   ;;  %s2187_s3 = inlined_call_operand.vmem [shape: bf16[16,512], index: 3, kind: output, shape index: {}]  }
   0x1   :  { %s1970_s14 = smov 0   ;;  %s1972_s15 = smov 0  }
   0x2   :  { %s1974_s16 = smov 0  }
   0x3 LB: > { %s25_s17 = sadd.s32 1, %s1939_s15  ;;  %p48_p1 = scmp.ne.s32.totalorder %s1931_s13, %s1927_s12  ;;  %s1943_s16 = sphi %s1974_s16, %s13_s16   ;;  %s1939_s15 = sphi %s1972_s15, %s2191_s15   ;;  %s1935_s14 = sphi %s1970_s14, %s2190_s14   ;;  %s1931_s13 = sphi %s1968_s13, %s2189_s13   ;;  %s1927_s12 = sphi %s1966_s12, %s2188_s12  }
   0x4   : > { %p26_p0 = scmp.ge.s32.totalorder %s25_s17, 9  ;;  %p49_p2 = scmp.eq.s32.totalorder %s1943_s16, 0 }
   0x5   : > { %s41_s19 = sadd.s32 1, %s1931_s13  ;;  %p1501_p5 = scmp.ge.s32.totalorder %s1943_s16, 9 }
   0x6   : > { %s2193_s17 = smov (%p26_p0, %s25_s17), 0  ;;  %p50_p3 = por %p49_p2, %p48_p1 }
   0x7   : > { %s37_s18 = ssub.s32 %s1939_s15, %s2193_s17  ;;  %164 = sbr.rel (%p1501_p5) target bundleno = 21 (0x15), region = 20 }
   0x8   : > { %p39_p4 = scmp.eq.s32.totalorder %s37_s18, 0 }
   0xa   : > { %s2001_s20 = scalar_select %p39_p4, %s1931_s13, %s41_s19  }
   0xe   : > { %167 = sbr.rel (!%p50_p3) target bundleno = 21 (0x15), region = 24  ;;  %s169_s21 = sand.u32 (%p50_p3), 1, %s1931_s13  }
   0xf   : > { %s1652_s22 = sshll.u32 (%p50_p3), %s1939_s15, 4  ;;  %s1502_s23 = sshll.u32 (%p50_p3), %s169_s21, 5 }
  0x10   : > { %s177_s26 = scalar_lea.vmem (%p50_p3), %s2184_s0, %s1652_s22  ;;  %s171_s27 = scalar_lea.vmem (%p50_p3), [#allocation3], %s1502_s23 }
  0x11   : > { %v190_v0 = vld [vmem:[%s177_s26] sm:$0xff] (%p50_p3)  ;;  %v192_v1 = vld [vmem:[%s177_s26 + $0x8] sm:$0xff] (%p50_p3)  ;;  %v194_v2 = vld [vmem:[%s177_s26 + $0x90] sm:$0xff] (%p50_p3) }
  0x12   : > { %191 = vst [vmem:[%s171_s27] sm:$0xff] (%p50_p3), %v190_v0  ;;  %193 = vst [vmem:[%s171_s27 + $0x8] sm:$0xff] (%p50_p3), %v192_v1  ;;  %v196_v3 = vld [vmem:[%s177_s26 + $0x98] sm:$0xff] (%p50_p3) }
  0x13   : > { %195 = vst [vmem:[%s171_s27 + $0x10] sm:$0xff] (%p50_p3), %v194_v2  ;;  %197 = vst [vmem:[%s171_s27 + $0x18] sm:$0xff] (%p50_p3), %v196_v3 }
  0x15 PF: > { %p1505_p6 = scmp.ge.s32.totalorder %s1943_s16, 1  ;;  %p217_p7 = scmp.lt.s32.totalorder %s1943_s16, 10 }
  0x17   : > { %p218_p8 = pnand %p1505_p6, %p217_p7 }
  0x18   : > { %s224_s28 = sand.u32 (!%p218_p8), 1, %s1927_s12   ;;  %s1507_s29 = sshll.u32 (!%p218_p8), %s1935_s14, 6 }
  0x19   : > { %221 = sbr.rel (%p218_p8) target bundleno = 400 (0x190), region = 51  ;;  %s1506_s30 = sshll.u32 (!%p218_p8), %s224_s28, 5 }
  0x1a   : > { %p270_p9 = scmp.lt.s32.totalorder (!%p218_p8), %s1507_s29, 575  ;;  %s2018_s8 = scalar_lea.vmem (!%p218_p8), [#allocation3], %s1506_s30 }
  0x1b   : > { %p1510_p10 = scmp.ne.s32.totalorder (!%p218_p8), %s1935_s14, 0 }
  0x20   : > { %s2195_s29 = smov (!%p270_p9, %s1507_s29), 575  ;;  %300 = sbr.rel (%p1510_p10) target bundleno = 39 (0x27), region = 59 }
  0x21   : > { %s1653_s4 = sshll.u32 %s2195_s29, 4  ;;  %v1945_v4 = vmov (!%p1510_p10), 0.0  }
  0x22   : > { %s2016_s7 = scalar_lea.vmem %s2185_s1, %s1653_s4  ;;  %301 = vst [vmem:[#allocation2] sm:$0xff] (!%p1510_p10), %v1945_v4  ;;  %302 = vst [vmem:[#allocation2 + $0x8] sm:$0xff] (!%p1510_p10), %v1945_v4 }
  0x23   : > { %303 = vst [vmem:[#allocation2 + $0x10] sm:$0xff] (!%p1510_p10), %v1945_v4  ;;  %304 = vst [vmem:[#allocation2 + $0x18] sm:$0xff] (!%p1510_p10), %v1945_v4 }
  0x24   : > { %305 = vst [vmem:[#allocation2 + $0x20] sm:$0xff] (!%p1510_p10), %v1945_v4  ;;  %306 = vst [vmem:[#allocation2 + $0x28] sm:$0xff] (!%p1510_p10), %v1945_v4 }
  0x25   : > { %307 = vst [vmem:[#allocation2 + $0x30] sm:$0xff] (!%p1510_p10), %v1945_v4  ;;  %308 = vst [vmem:[#allocation2 + $0x38] sm:$0xff] (!%p1510_p10), %v1945_v4 }
  0x27 PF: > { %v1707_v5 = vld [vmem:[%s2016_s7 + $0x4] ss:$16 sps:$4 sm:$0xff]   ;;  %v1709_v6 = vld [vmem:[%s2016_s7 + $0xc] ss:$16 sps:$4 sm:$0xff]   ;;  %v1711_v7 = vld [vmem:[%s2016_s7] ss:$16 sps:$4 sm:$0xff]  }
  0x28   : > { %1109 = vmatprep.subr.bf16.mxu0 %v1707_v5  ;;  %v1712_v8 = vld [vmem:[%s2016_s7 + $0x8] ss:$16 sps:$4 sm:$0xff]   ;;  %1195 = vmatprep.subr.bf16.mxu1 %v1709_v6  ;;  %v1713_v9 = vld [vmem:[%s2016_s7 + $0x24] ss:$16 sps:$4 sm:$0xff]   ;;  %v1715_v10 = vld [vmem:[%s2016_s7 + $0x2c] ss:$16 sps:$4 sm:$0xff]  }
  0x29   : > { %1110 = vmatpush1.bf16.msra.mxu0 %v1711_v7  ;;  %1196 = vmatpush1.bf16.msra.mxu1 %v1712_v8  ;;  %v1717_v11 = vld [vmem:[%s2016_s7 + $0x20] ss:$16 sps:$4 sm:$0xff]   ;;  %v1718_v12 = vld [vmem:[%s2016_s7 + $0x28] ss:$16 sps:$4 sm:$0xff]   ;;  %v1719_v13 = vld [vmem:[%s2016_s7 + $0x44] ss:$16 sps:$4 sm:$0xff]  }
  0x2a   : > { %1111 = vmatprep.subr.bf16.mxu0 %v1713_v9  ;;  %1197 = vmatprep.subr.bf16.mxu1 %v1715_v10  ;;  %v1721_v14 = vld [vmem:[%s2016_s7 + $0x4c] ss:$16 sps:$4 sm:$0xff]   ;;  %v1723_v15 = vld [vmem:[%s2016_s7 + $0x40] ss:$16 sps:$4 sm:$0xff]   ;;  %v1724_v16 = vld [vmem:[%s2016_s7 + $0x48] ss:$16 sps:$4 sm:$0xff]  }
  0x2b   : > { %v1725_v17 = vld [vmem:[%s2016_s7 + $0x64] ss:$16 sps:$4 sm:$0xff]   ;;  %v1727_v18 = vld [vmem:[%s2016_s7 + $0x6c] ss:$16 sps:$4 sm:$0xff]   ;;  %v1729_v19 = vld [vmem:[%s2016_s7 + $0x60] ss:$16 sps:$4 sm:$0xff]  }
  0x2c   : > { %v1730_v20 = vld [vmem:[%s2016_s7 + $0x68] ss:$16 sps:$4 sm:$0xff]   ;;  %v1731_v21 = vld [vmem:[%s2016_s7 + $0x84] ss:$16 sps:$4 sm:$0xff]   ;;  %v1733_v22 = vld [vmem:[%s2016_s7 + $0x8c] ss:$16 sps:$4 sm:$0xff]  }
  0x2d   : > { %1112 = vmatpush1.bf16.msra.mxu0 %v1717_v11  ;;  %1198 = vmatpush1.bf16.msra.mxu1 %v1718_v12  ;;  %v1735_v23 = vld [vmem:[%s2016_s7 + $0x80] ss:$16 sps:$4 sm:$0xff]   ;;  %v1736_v24 = vld [vmem:[%s2016_s7 + $0x88] ss:$16 sps:$4 sm:$0xff]   ;;  %v1737_v25 = vld [vmem:[%s2016_s7 + $0xa4] ss:$16 sps:$4 sm:$0xff]  }
  0x2e   : > { %1113 = vmatprep.subr.bf16.mxu0 %v1719_v13  ;;  %1199 = vmatprep.subr.bf16.mxu1 %v1721_v14  ;;  %v1739_v26 = vld [vmem:[%s2016_s7 + $0xac] ss:$16 sps:$4 sm:$0xff]   ;;  %v1741_v27 = vld [vmem:[%s2016_s7 + $0xa0] ss:$16 sps:$4 sm:$0xff]   ;;  %v1742_v28 = vld [vmem:[%s2016_s7 + $0xa8] ss:$16 sps:$4 sm:$0xff]  }
  0x2f   : > { %v1743_v29 = vld [vmem:[%s2016_s7 + $0xc4] ss:$16 sps:$4 sm:$0xff]   ;;  %v1745_v30 = vld [vmem:[%s2016_s7 + $0xcc] ss:$16 sps:$4 sm:$0xff]   ;;  %v1747_v31 = vld [vmem:[%s2016_s7 + $0xc0] ss:$16 sps:$4 sm:$0xff]  }
  0x30   : > { %v1748_v32 = vld [vmem:[%s2016_s7 + $0xc8] ss:$16 sps:$4 sm:$0xff]   ;;  %v1749_v33 = vld [vmem:[%s2016_s7 + $0xe4] ss:$16 sps:$4 sm:$0xff]   ;;  %v1751_v34 = vld [vmem:[%s2016_s7 + $0xec] ss:$16 sps:$4 sm:$0xff]  }
  0x31   : > { %1114 = vmatpush1.bf16.msra.mxu0 %v1723_v15  ;;  %1200 = vmatpush1.bf16.msra.mxu1 %v1724_v16  ;;  %v1753_v35 = vld [vmem:[%s2016_s7 + $0xe0] ss:$16 sps:$4 sm:$0xff]   ;;  %v1754_v36 = vld [vmem:[%s2016_s7 + $0xe8] ss:$16 sps:$4 sm:$0xff]   ;;  %v1755_v37 = vld [vmem:[%s2016_s7 + $0x104] ss:$16 sps:$4 sm:$0xff]  }
  0x32   : > { %1115 = vmatprep.subr.bf16.mxu0 %v1725_v17  ;;  %1201 = vmatprep.subr.bf16.mxu1 %v1727_v18  ;;  %v1757_v38 = vld [vmem:[%s2016_s7 + $0x10c] ss:$16 sps:$4 sm:$0xff]   ;;  %v1759_v39 = vld [vmem:[%s2016_s7 + $0x100] ss:$16 sps:$4 sm:$0xff]   ;;  %v1760_v40 = vld [vmem:[%s2016_s7 + $0x108] ss:$16 sps:$4 sm:$0xff]  }
  0x33   : > { %v1761_v41 = vld [vmem:[%s2016_s7 + $0x124] ss:$16 sps:$4 sm:$0xff]   ;;  %v1763_v42 = vld [vmem:[%s2016_s7 + $0x12c] ss:$16 sps:$4 sm:$0xff]   ;;  %v1765_v43 = vld [vmem:[%s2016_s7 + $0x120] ss:$16 sps:$4 sm:$0xff]  }
  0x34   : > { %v1766_v44 = vld [vmem:[%s2016_s7 + $0x128] ss:$16 sps:$4 sm:$0xff]   ;;  %v1767_v45 = vld [vmem:[%s2016_s7 + $0x144] ss:$16 sps:$4 sm:$0xff]   ;;  %v1769_v46 = vld [vmem:[%s2016_s7 + $0x14c] ss:$16 sps:$4 sm:$0xff]  }
  0x35   : > { %1116 = vmatpush1.bf16.msra.mxu0 %v1729_v19  ;;  %1202 = vmatpush1.bf16.msra.mxu1 %v1730_v20  ;;  %v1771_v47 = vld [vmem:[%s2016_s7 + $0x140] ss:$16 sps:$4 sm:$0xff]   ;;  %v1772_v48 = vld [vmem:[%s2016_s7 + $0x148] ss:$16 sps:$4 sm:$0xff]   ;;  %v1773_v49 = vld [vmem:[%s2016_s7 + $0x164] ss:$16 sps:$4 sm:$0xff]  }
  0x36   : > { %1117 = vmatprep.subr.bf16.mxu0 %v1731_v21  ;;  %1203 = vmatprep.subr.bf16.mxu1 %v1733_v22  ;;  %v1775_v50 = vld [vmem:[%s2016_s7 + $0x16c] ss:$16 sps:$4 sm:$0xff]   ;;  %v1777_v51 = vld [vmem:[%s2016_s7 + $0x160] ss:$16 sps:$4 sm:$0xff]   ;;  %v1778_v52 = vld [vmem:[%s2016_s7 + $0x168] ss:$16 sps:$4 sm:$0xff]  }
  0x37   : > { %v1805_v53 = vld [vmem:[%s2018_s8 + $0x4] ss:$16 sps:$4 sm:$0xff]   ;;  %v1781_v55 = vld [vmem:[%s2016_s7 + $0x18c] ss:$16 sps:$4 sm:$0xff]   ;;  %v1783_v56 = vld [vmem:[%s2016_s7 + $0x180] ss:$16 sps:$4 sm:$0xff]  }
  0x38   : > { %v1779_v54 = vld [vmem:[%s2016_s7 + $0x184] ss:$16 sps:$4 sm:$0xff]   ;;  %1141 = vmatprep.mubr.bf16.mxu0 %v1805_v53  ;;  %1227 = vmatprep.mubr.bf16.mxu1 %v1805_v53  ;;  %v1784_v57 = vld [vmem:[%s2016_s7 + $0x188] ss:$16 sps:$4 sm:$0xff]   ;;  %v1787_v59 = vld [vmem:[%s2016_s7 + $0x1ac] ss:$16 sps:$4 sm:$0xff]  }
  0x39   : > { %1118 = vmatpush1.bf16.msra.mxu0 %v1735_v23  ;;  %1204 = vmatpush1.bf16.msra.mxu1 %v1736_v24  ;;  %v1785_v58 = vld [vmem:[%s2016_s7 + $0x1a4] ss:$16 sps:$4 sm:$0xff]   ;;  %v1789_v60 = vld [vmem:[%s2016_s7 + $0x1a0] ss:$16 sps:$4 sm:$0xff]   ;;  %v1790_v61 = vld [vmem:[%s2016_s7 + $0x1a8] ss:$16 sps:$4 sm:$0xff]  }
  0x3a   : > { %1119 = vmatprep.subr.bf16.mxu0 %v1737_v25  ;;  %1205 = vmatprep.subr.bf16.mxu1 %v1739_v26  ;;  %v1791_v62 = vld [vmem:[%s2016_s7 + $0x1c4] ss:$16 sps:$4 sm:$0xff]   ;;  %v1793_v63 = vld [vmem:[%s2016_s7 + $0x1cc] ss:$16 sps:$4 sm:$0xff]   ;;  %v1795_v0 = vld [vmem:[%s2016_s7 + $0x1c0] ss:$16 sps:$4 sm:$0xff]  }
  0x3b   : > { %v1796_v1 = vld [vmem:[%s2016_s7 + $0x1c8] ss:$16 sps:$4 sm:$0xff]   ;;  %v1797_v2 = vld [vmem:[%s2016_s7 + $0x1e4] ss:$16 sps:$4 sm:$0xff]   ;;  %v1799_v3 = vld [vmem:[%s2016_s7 + $0x1ec] ss:$16 sps:$4 sm:$0xff]  }
  0x3c   : > { %v1801_v4 = vld [vmem:[%s2016_s7 + $0x1e0] ss:$16 sps:$4 sm:$0xff]   ;;  %v1802_v5 = vld [vmem:[%s2016_s7 + $0x1e8] ss:$16 sps:$4 sm:$0xff]   ;;  %v1808_v6 = vld [vmem:[%s2016_s7 + $0x204] ss:$16 sps:$4 sm:$0xff]  }
  0x3d   : > { %1120 = vmatpush1.bf16.msra.mxu0 %v1741_v27  ;;  %1206 = vmatpush1.bf16.msra.mxu1 %v1742_v28  ;;  %v1811_v7 = vld [vmem:[%s2016_s7 + $0x20c] ss:$16 sps:$4 sm:$0xff]   ;;  %v1803_v8 = vld [vmem:[%s2018_s8] ss:$16 sps:$4 sm:$0xff]   ;;  %v1809_v10 = vld [vmem:[%s2016_s7 + $0x208] ss:$16 sps:$4 sm:$0xff]  }
  0x3e   : > { %1121 = vmatprep.subr.bf16.mxu0 %v1743_v29  ;;  %1207 = vmatprep.subr.bf16.mxu1 %v1745_v30  ;;  %v1806_v9 = vld [vmem:[%s2016_s7 + $0x200] ss:$16 sps:$4 sm:$0xff]   ;;  %v1814_v11 = vld [vmem:[%s2016_s7 + $0x224] ss:$16 sps:$4 sm:$0xff]   ;;  %v1817_v12 = vld [vmem:[%s2016_s7 + $0x22c] ss:$16 sps:$4 sm:$0xff]  }
  0x3f   : > { %v1812_v13 = vld [vmem:[%s2016_s7 + $0x220] ss:$16 sps:$4 sm:$0xff]   ;;  %v1815_v14 = vld [vmem:[%s2016_s7 + $0x228] ss:$16 sps:$4 sm:$0xff]   ;;  %v1820_v15 = vld [vmem:[%s2016_s7 + $0x244] ss:$16 sps:$4 sm:$0xff]  }
  0x40   : > { %v1823_v16 = vld [vmem:[%s2016_s7 + $0x24c] ss:$16 sps:$4 sm:$0xff]   ;;  %v1818_v17 = vld [vmem:[%s2016_s7 + $0x240] ss:$16 sps:$4 sm:$0xff]   ;;  %v1821_v18 = vld [vmem:[%s2016_s7 + $0x248] ss:$16 sps:$4 sm:$0xff]  }
  0x41   : > { %1122 = vmatpush1.bf16.msra.mxu0 %v1747_v31  ;;  %1208 = vmatpush1.bf16.msra.mxu1 %v1748_v32  ;;  %v1826_v19 = vld [vmem:[%s2016_s7 + $0x264] ss:$16 sps:$4 sm:$0xff]   ;;  %v1829_v20 = vld [vmem:[%s2016_s7 + $0x26c] ss:$16 sps:$4 sm:$0xff]   ;;  %v1824_v21 = vld [vmem:[%s2016_s7 + $0x260] ss:$16 sps:$4 sm:$0xff]  }
  0x42   : > { %1123 = vmatprep.subr.bf16.mxu0 %v1749_v33  ;;  %1209 = vmatprep.subr.bf16.mxu1 %v1751_v34  ;;  %v1827_v22 = vld [vmem:[%s2016_s7 + $0x268] ss:$16 sps:$4 sm:$0xff]   ;;  %v1832_v23 = vld [vmem:[%s2016_s7 + $0x284] ss:$16 sps:$4 sm:$0xff]   ;;  %v1835_v24 = vld [vmem:[%s2016_s7 + $0x28c] ss:$16 sps:$4 sm:$0xff]  }
  0x43   : > { %v1830_v25 = vld [vmem:[%s2016_s7 + $0x280] ss:$16 sps:$4 sm:$0xff]   ;;  %v1833_v26 = vld [vmem:[%s2016_s7 + $0x288] ss:$16 sps:$4 sm:$0xff]   ;;  %v1838_v27 = vld [vmem:[%s2016_s7 + $0x2a4] ss:$16 sps:$4 sm:$0xff]  }
  0x44   : > { %v1841_v28 = vld [vmem:[%s2016_s7 + $0x2ac] ss:$16 sps:$4 sm:$0xff]   ;;  %v1836_v29 = vld [vmem:[%s2016_s7 + $0x2a0] ss:$16 sps:$4 sm:$0xff]   ;;  %v1839_v30 = vld [vmem:[%s2016_s7 + $0x2a8] ss:$16 sps:$4 sm:$0xff]  }
  0x45   : > { %1124 = vmatpush1.bf16.msra.mxu0 %v1753_v35  ;;  %1210 = vmatpush1.bf16.msra.mxu1 %v1754_v36  ;;  %v1844_v31 = vld [vmem:[%s2016_s7 + $0x2c4] ss:$16 sps:$4 sm:$0xff]   ;;  %v1847_v32 = vld [vmem:[%s2016_s7 + $0x2cc] ss:$16 sps:$4 sm:$0xff]   ;;  %v1842_v34 = vld [vmem:[%s2016_s7 + $0x2c0] ss:$16 sps:$4 sm:$0xff]  }
  0x46   : > { %1125 = vmatprep.subr.bf16.mxu0 %v1755_v37  ;;  %1211 = vmatprep.subr.bf16.mxu1 %v1757_v38  ;;  %v1904_v33 = vld [vmem:[%s2018_s8 + $0xc] ss:$16 sps:$4 sm:$0xff]   ;;  %v1845_v35 = vld [vmem:[%s2016_s7 + $0x2c8] ss:$16 sps:$4 sm:$0xff]   ;;  %v1850_v36 = vld [vmem:[%s2016_s7 + $0x2e4] ss:$16 sps:$4 sm:$0xff]  }
  0x47   : > { %v1853_v37 = vld [vmem:[%s2016_s7 + $0x2ec] ss:$16 sps:$4 sm:$0xff]   ;;  %v1848_v38 = vld [vmem:[%s2016_s7 + $0x2e0] ss:$16 sps:$4 sm:$0xff]   ;;  %p1643_p11 = scmp.ne.s32.totalorder %s1935_s14, 8 }
  0x48   : > { %v1877_v53 = vld [vmem:[%s2016_s7 + $0x36c] ss:$16 sps:$4 sm:$0xff]  }
  0x49   : > { %1126 = vmatpush1.bf16.msra.mxu0 %v1759_v39  ;;  %1212 = vmatpush1.bf16.msra.mxu1 %v1760_v40  ;;  %v1851_v39 = vld [vmem:[%s2016_s7 + $0x2e8] ss:$16 sps:$4 sm:$0xff]   ;;  %v1856_v40 = vld [vmem:[%s2016_s7 + $0x304] ss:$16 sps:$4 sm:$0xff]  }
  0x4a   : > { %1127 = vmatprep.subr.bf16.mxu0 %v1761_v41  ;;  %1213 = vmatprep.subr.bf16.mxu1 %v1763_v42  ;;  %v1859_v41 = vld [vmem:[%s2016_s7 + $0x30c] ss:$16 sps:$4 sm:$0xff]   ;;  %v1854_v42 = vld [vmem:[%s2016_s7 + $0x300] ss:$16 sps:$4 sm:$0xff]  }
  0x4d   : > { %1128 = vmatpush1.bf16.msra.mxu0 %v1765_v43  ;;  %1214 = vmatpush1.bf16.msra.mxu1 %v1766_v44  ;;  %v1857_v43 = vld [vmem:[%s2016_s7 + $0x308] ss:$16 sps:$4 sm:$0xff]   ;;  %v1862_v44 = vld [vmem:[%s2016_s7 + $0x324] ss:$16 sps:$4 sm:$0xff]  }
  0x4e   : > { %1129 = vmatprep.subr.bf16.mxu0 %v1767_v45  ;;  %1215 = vmatprep.subr.bf16.mxu1 %v1769_v46  ;;  %v1865_v45 = vld [vmem:[%s2016_s7 + $0x32c] ss:$16 sps:$4 sm:$0xff]   ;;  %v1860_v46 = vld [vmem:[%s2016_s7 + $0x320] ss:$16 sps:$4 sm:$0xff]  }
  0x51   : > { %1130 = vmatpush1.bf16.msra.mxu0 %v1771_v47  ;;  %1216 = vmatpush1.bf16.msra.mxu1 %v1772_v48  ;;  %v1863_v47 = vld [vmem:[%s2016_s7 + $0x328] ss:$16 sps:$4 sm:$0xff]   ;;  %v1868_v48 = vld [vmem:[%s2016_s7 + $0x344] ss:$16 sps:$4 sm:$0xff]  }
  0x52   : > { %1131 = vmatprep.subr.bf16.mxu0 %v1773_v49  ;;  %1217 = vmatprep.subr.bf16.mxu1 %v1775_v50  ;;  %v1871_v49 = vld [vmem:[%s2016_s7 + $0x34c] ss:$16 sps:$4 sm:$0xff]   ;;  %v1866_v50 = vld [vmem:[%s2016_s7 + $0x340] ss:$16 sps:$4 sm:$0xff]  }
  0x55   : > { %1132 = vmatpush1.bf16.msra.mxu0 %v1777_v51  ;;  %1218 = vmatpush1.bf16.msra.mxu1 %v1778_v52  ;;  %v1869_v51 = vld [vmem:[%s2016_s7 + $0x348] ss:$16 sps:$4 sm:$0xff]   ;;  %v1874_v52 = vld [vmem:[%s2016_s7 + $0x364] ss:$16 sps:$4 sm:$0xff]  }
  0x56   : > { %1133 = vmatprep.subr.bf16.mxu0 %v1779_v54  ;;  %1219 = vmatprep.subr.bf16.mxu1 %v1781_v55  ;;  %v1872_v54 = vld [vmem:[%s2016_s7 + $0x360] ss:$16 sps:$4 sm:$0xff]   ;;  %v1875_v55 = vld [vmem:[%s2016_s7 + $0x368] ss:$16 sps:$4 sm:$0xff]  }
  0x59   : > { %1134 = vmatpush1.bf16.msra.mxu0 %v1783_v56  ;;  %1220 = vmatpush1.bf16.msra.mxu1 %v1784_v57  ;;  %v1880_v56 = vld [vmem:[%s2016_s7 + $0x384] ss:$16 sps:$4 sm:$0xff]   ;;  %v1883_v57 = vld [vmem:[%s2016_s7 + $0x38c] ss:$16 sps:$4 sm:$0xff]  }
  0x5a   : > { %1135 = vmatprep.subr.bf16.mxu0 %v1785_v58  ;;  %1221 = vmatprep.subr.bf16.mxu1 %v1787_v59  ;;  %v1878_v58 = vld [vmem:[%s2016_s7 + $0x380] ss:$16 sps:$4 sm:$0xff]   ;;  %v1881_v59 = vld [vmem:[%s2016_s7 + $0x388] ss:$16 sps:$4 sm:$0xff]  }
  0x5d   : > { %1136 = vmatpush1.bf16.msra.mxu0 %v1789_v60  ;;  %1222 = vmatpush1.bf16.msra.mxu1 %v1790_v61  ;;  %v1886_v60 = vld [vmem:[%s2016_s7 + $0x3a4] ss:$16 sps:$4 sm:$0xff]   ;;  %v1889_v61 = vld [vmem:[%s2016_s7 + $0x3ac] ss:$16 sps:$4 sm:$0xff]  }
  0x5e   : > { %1137 = vmatprep.subr.bf16.mxu0 %v1791_v62  ;;  %1223 = vmatprep.subr.bf16.mxu1 %v1793_v63  ;;  %v1884_v62 = vld [vmem:[%s2016_s7 + $0x3a0] ss:$16 sps:$4 sm:$0xff]   ;;  %v1887_v63 = vld [vmem:[%s2016_s7 + $0x3a8] ss:$16 sps:$4 sm:$0xff]  }
  0x61   : > { %1138 = vmatpush1.bf16.msra.mxu0 %v1795_v0  ;;  %1224 = vmatpush1.bf16.msra.mxu1 %v1796_v1  ;;  %v1892_v0 = vld [vmem:[%s2016_s7 + $0x3c4] ss:$16 sps:$4 sm:$0xff]   ;;  %v1895_v1 = vld [vmem:[%s2016_s7 + $0x3cc] ss:$16 sps:$4 sm:$0xff]  }
  0x62   : > { %1139 = vmatprep.subr.bf16.mxu0 %v1797_v2  ;;  %1225 = vmatprep.subr.bf16.mxu1 %v1799_v3  ;;  %v1890_v2 = vld [vmem:[%s2016_s7 + $0x3c0] ss:$16 sps:$4 sm:$0xff]   ;;  %v1893_v3 = vld [vmem:[%s2016_s7 + $0x3c8] ss:$16 sps:$4 sm:$0xff]  }
  0x65   : > { %1140 = vmatpush1.bf16.msra.mxu0 %v1801_v4  ;;  %1226 = vmatpush1.bf16.msra.mxu1 %v1802_v5  ;;  %v1898_v4 = vld [vmem:[%s2016_s7 + $0x3e4] ss:$16 sps:$4 sm:$0xff]   ;;  %v1901_v5 = vld [vmem:[%s2016_s7 + $0x3ec] ss:$16 sps:$4 sm:$0xff]  }
  0x66   : > { %1152 = vmatprep.subr.bf16.mxu0 %v1808_v6  ;;  %1238 = vmatprep.subr.bf16.mxu1 %v1811_v7  ;;  %v1896_v6 = vld [vmem:[%s2016_s7 + $0x3e0] ss:$16 sps:$4 sm:$0xff]   ;;  %v1899_v7 = vld [vmem:[%s2016_s7 + $0x3e8] ss:$16 sps:$4 sm:$0xff]  }
  0x68   : > { %1142 = vmatmul.mubr.bf16.vlgmr.msra.gmra.mrb[0].mxu0 %v1803_v8  ;;  %1228 = vmatmul.mubr.bf16.vlgmr.msra.gmra.mrb[0].mxu1 %v1803_v8  ;;  %v1902_v8 = vld [vmem:[%s2018_s8 + $0x8] ss:$16 sps:$4 sm:$0xff]  }
  0x69   : > { %1153 = vmatpush1.bf16.msra.mxu0 %v1806_v9  ;;  %1239 = vmatpush1.bf16.msra.mxu1 %v1809_v10  ;;  %v309_v9 = vld [vmem:[#allocation2] sm:$0xff]  ;;  %v311_v10 = vld [vmem:[#allocation2 + $0x10] sm:$0xff] }
  0x6a   : > { %1154 = vmatprep.subr.bf16.mxu0 %v1814_v11  ;;  %1240 = vmatprep.subr.bf16.mxu1 %v1817_v12  ;;  %v310_v11 = vld [vmem:[#allocation2 + $0x8] sm:$0xff]  ;;  %v312_v12 = vld [vmem:[#allocation2 + $0x18] sm:$0xff] }
  0x6b   : > { %1184 = vmatprep.mubr.bf16.mxu0 %v1904_v33  ;;  %1270 = vmatprep.mubr.bf16.mxu1 %v1904_v33  ;;  %v1311_v33 = vlaneseq (!%p1643_p11) }
  0x6d   : > { %1155 = vmatpush1.bf16.msra.mxu0 %v1812_v13  ;;  %1241 = vmatpush1.bf16.msra.mxu1 %v1815_v14 }
  0x6e   : > { %1156 = vmatprep.subr.bf16.mxu0 %v1820_v15  ;;  %1242 = vmatprep.subr.bf16.mxu1 %v1823_v16  ;;  %v313_v15 = vld [vmem:[#allocation2 + $0x20] sm:$0xff]  ;;  %v315_v16 = vld [vmem:[#allocation2 + $0x30] sm:$0xff] }
  0x71   : > { %1157 = vmatpush1.bf16.msra.mxu0 %v1818_v17  ;;  %1243 = vmatpush1.bf16.msra.mxu1 %v1821_v18 }
  0x72   : > { %1158 = vmatprep.subr.bf16.mxu0 %v1826_v19  ;;  %1244 = vmatprep.subr.bf16.mxu1 %v1829_v20 }
  0x75   : > { %1159 = vmatpush1.bf16.msra.mxu0 %v1824_v21  ;;  %1245 = vmatpush1.bf16.msra.mxu1 %v1827_v22  ;;  %v314_v21 = vld [vmem:[#allocation2 + $0x28] sm:$0xff]  ;;  %v316_v22 = vld [vmem:[#allocation2 + $0x38] sm:$0xff] }
  0x76   : > { %1160 = vmatprep.subr.bf16.mxu0 %v1832_v23  ;;  %1246 = vmatprep.subr.bf16.mxu1 %v1835_v24 }
  0x79   : > { %1161 = vmatpush1.bf16.msra.mxu0 %v1830_v25  ;;  %1247 = vmatpush1.bf16.msra.mxu1 %v1833_v26 }
  0x7a   : > { %1162 = vmatprep.subr.bf16.mxu0 %v1838_v27  ;;  %1248 = vmatprep.subr.bf16.mxu1 %v1841_v28 }
  0x7d   : > { %1163 = vmatpush1.bf16.msra.mxu0 %v1836_v29  ;;  %1249 = vmatpush1.bf16.msra.mxu1 %v1839_v30 }
  0x7e   : > { %1164 = vmatprep.subr.bf16.mxu0 %v1844_v31  ;;  %1250 = vmatprep.subr.bf16.mxu1 %v1847_v32 }
  0x81   : > { %1165 = vmatpush1.bf16.msra.mxu0 %v1842_v34  ;;  %1251 = vmatpush1.bf16.msra.mxu1 %v1845_v35  ;;  %v1312_v34 = vshrl.u32 (!%p1643_p11), %v1311_v33, 7  ;;  %v1309_v35 = vld [vmem:[%s2186_s2] sm:$0xf] (!%p1643_p11) }
  0x82   : > { %1166 = vmatprep.subr.bf16.mxu0 %v1850_v36  ;;  %1252 = vmatprep.subr.bf16.mxu1 %v1853_v37 }
  0x85   : > { %1167 = vmatpush1.bf16.msra.mxu0 %v1848_v38  ;;  %1253 = vmatpush1.bf16.msra.mxu1 %v1851_v39  ;;  %v1313_v38 = vsub.s32 (!%p1643_p11), 0, %v1312_v34  ;;  %v1317_v39 = vsub.s32 (!%p1643_p11), 1, %v1312_v34 }
  0x86   : > { %1168 = vmatprep.subr.bf16.mxu0 %v1856_v40  ;;  %1254 = vmatprep.subr.bf16.mxu1 %v1859_v41  ;;  %v1321_v40 = vsub.s32 (!%p1643_p11), 2, %v1312_v34  ;;  %v1325_v41 = vsub.s32 (!%p1643_p11), 3, %v1312_v34 }
  0x89   : > { %1169 = vmatpush1.bf16.msra.mxu0 %v1854_v42  ;;  %1255 = vmatpush1.bf16.msra.mxu1 %v1857_v43 }
  0x8a   : > { %1170 = vmatprep.subr.bf16.mxu0 %v1862_v44  ;;  %1256 = vmatprep.subr.bf16.mxu1 %v1865_v45  ;;  %v1314_v45 = vrot.slane (!%p1643_p11), %v1309_v35, %v1313_v38 }
  0x8d   : > { %1171 = vmatpush1.bf16.msra.mxu0 %v1860_v46  ;;  %1257 = vmatpush1.bf16.msra.mxu1 %v1863_v47  ;;  %v1318_v46 = vrot.slane (!%p1643_p11), %v1309_v35, %v1317_v39  ;;  %v1322_v47 = vrot.slane (!%p1643_p11), %v1309_v35, %v1321_v40 }
  0x8e   : > { %1172 = vmatprep.subr.bf16.mxu0 %v1868_v48  ;;  %1258 = vmatprep.subr.bf16.mxu1 %v1871_v49  ;;  %v1326_v48 = vrot.slane (!%p1643_p11), %v1309_v35, %v1325_v41 }
  0x91   : > { %1173 = vmatpush1.bf16.msra.mxu0 %v1866_v50  ;;  %1259 = vmatpush1.bf16.msra.mxu1 %v1869_v51 }
  0x92   : > { %1174 = vmatprep.subr.bf16.mxu0 %v1874_v52  ;;  %1260 = vmatprep.subr.bf16.mxu1 %v1877_v53 }
  0x95   : > { %1175 = vmatpush1.bf16.msra.mxu0 %v1872_v54  ;;  %1261 = vmatpush1.bf16.msra.mxu1 %v1875_v55 }
  0x96   : > { %1176 = vmatprep.subr.bf16.mxu0 %v1880_v56  ;;  %1262 = vmatprep.subr.bf16.mxu1 %v1883_v57 }
  0x99   : > { %1177 = vmatpush1.bf16.msra.mxu0 %v1878_v58  ;;  %1263 = vmatpush1.bf16.msra.mxu1 %v1881_v59 }
  0x9a   : > { %1178 = vmatprep.subr.bf16.mxu0 %v1886_v60  ;;  %1264 = vmatprep.subr.bf16.mxu1 %v1889_v61 }
  0x9d   : > { %1179 = vmatpush1.bf16.msra.mxu0 %v1884_v62  ;;  %1265 = vmatpush1.bf16.msra.mxu1 %v1887_v63 }
  0x9e   : > { %1180 = vmatprep.subr.bf16.mxu0 %v1892_v0  ;;  %1266 = vmatprep.subr.bf16.mxu1 %v1895_v1 }
  0xa1   : > { %1181 = vmatpush1.bf16.msra.mxu0 %v1890_v2  ;;  %1267 = vmatpush1.bf16.msra.mxu1 %v1893_v3 }
  0xa2   : > { %1182 = vmatprep.subr.bf16.mxu0 %v1898_v4  ;;  %1268 = vmatprep.subr.bf16.mxu1 %v1901_v5 }
  0xa5   : > { %1183 = vmatpush1.bf16.msra.mxu0 %v1896_v6  ;;  %1269 = vmatpush1.bf16.msra.mxu1 %v1899_v7 }
  0xa8   : > { %1185 = vmatmul.mubr.bf16.vlgmr.msra.gmra.mrb[0].mxu0 %v1902_v8  ;;  %1271 = vmatmul.mubr.bf16.vlgmr.msra.gmra.mrb[0].mxu1 %v1902_v8 }
 0x17b   : > { %v1186_v13 = vpop.f32.mrb[0].mxu0  ;;  %v1272_v14 = vpop.f32.mrb[0].mxu1  ;;  %1300 = sbr.rel (%p1643_p11) target bundleno = 400 (0x190), region = 63 }
 0x17c   : > { %v1281_v17 = vadd.f32 %v1186_v13, %v309_v9  ;;  %v1283_v18 = vadd.f32 %v1272_v14, %v311_v10  ;;  %v1188_v19 = vpop.f32.mrb[1].mxu0  ;;  %v1274_v20 = vpop.f32.mrb[1].mxu1 }
 0x17d   : > { %v1282_v23 = vadd.f32 %v1188_v19, %v310_v11  ;;  %v1284_v24 = vadd.f32 %v1274_v20, %v312_v12  ;;  %v1190_v25 = vpop.f32.mrb[2].mxu0  ;;  %v1276_v26 = vpop.f32.mrb[2].mxu1 }
 0x17e   : > { %1289 = vst [vmem:[#allocation2] sm:$0xff] %v1281_v17  ;;  %1291 = vst [vmem:[#allocation2 + $0x10] sm:$0xff] %v1283_v18  ;;  %v1285_v27 = vadd.f32 %v1190_v25, %v313_v15  ;;  %v1287_v28 = vadd.f32 %v1276_v26, %v315_v16  ;;  %v1192_v29 = vpop.f32.mrb[3].mxu0  ;;  %v1278_v30 = vpop.f32.mrb[3].mxu1 }
 0x17f   : > { %1290 = vst [vmem:[#allocation2 + $0x8] sm:$0xff] %v1282_v23  ;;  %1292 = vst [vmem:[#allocation2 + $0x18] sm:$0xff] %v1284_v24  ;;  %v1286_v31 = vadd.f32 %v1192_v29, %v314_v21  ;;  %v1288_v32 = vadd.f32 %v1278_v30, %v316_v22 }
 0x180   : > { %1293 = vst [vmem:[#allocation2 + $0x20] sm:$0xff] %v1285_v27  ;;  %1295 = vst [vmem:[#allocation2 + $0x30] sm:$0xff] %v1287_v28 }
 0x181   : > { %1294 = vst [vmem:[#allocation2 + $0x28] sm:$0xff] %v1286_v31  ;;  %1296 = vst [vmem:[#allocation2 + $0x38] sm:$0xff] %v1288_v32 }
 0x185   : > { %v1301_v36 = vld [vmem:[#allocation2] sm:$0xff]  ;;  %v1303_v42 = vld [vmem:[#allocation2 + $0x10] sm:$0xff] }
 0x186   : > { %v1302_v37 = vld [vmem:[#allocation2 + $0x8] sm:$0xff]  ;;  %v1304_v43 = vld [vmem:[#allocation2 + $0x18] sm:$0xff]  ;;  %v1331_v52 = vadd.f32 %v1314_v45, %v1301_v36  ;;  %v1333_v54 = vadd.f32 %v1322_v47, %v1303_v42 }
 0x187   : > { %v1305_v44 = vld [vmem:[#allocation2 + $0x20] sm:$0xff]  ;;  %v1307_v50 = vld [vmem:[#allocation2 + $0x30] sm:$0xff]  ;;  %v1332_v53 = vadd.f32 %v1318_v46, %v1302_v37  ;;  %v1334_v55 = vadd.f32 %v1326_v48, %v1304_v43 }
 0x188   : > { %v1306_v49 = vld [vmem:[#allocation2 + $0x28] sm:$0xff]  ;;  %v1308_v51 = vld [vmem:[#allocation2 + $0x38] sm:$0xff]  ;;  %v1335_v56 = vadd.f32 %v1314_v45, %v1305_v44  ;;  %v1337_v58 = vadd.f32 %v1322_v47, %v1307_v50  ;;  %v1339_v60 = vmax.f32 %v1331_v52, 0.0  ;;  %v1341_v62 = vmax.f32 %v1333_v54, 0.0 }
 0x189   : > { %v1336_v57 = vadd.f32 %v1318_v46, %v1306_v49  ;;  %v1338_v59 = vadd.f32 %v1326_v48, %v1308_v51  ;;  %v1340_v61 = vmax.f32 %v1332_v53, 0.0  ;;  %v1342_v63 = vmax.f32 %v1334_v55, 0.0 }
 0x18a   : > { %v1343_v0 = vmax.f32 %v1335_v56, 0.0  ;;  %v1345_v2 = vmax.f32 %v1337_v58, 0.0 }
 0x18b   : > { %v1344_v1 = vmax.f32 %v1336_v57, 0.0  ;;  %v1346_v3 = vmax.f32 %v1338_v59, 0.0  ;;  %v1654_v4 = vpack.c.bf16 %v1340_v61, %v1339_v60  ;;  %v1655_v5 = vpack.c.bf16 %v1342_v63, %v1341_v62 }
 0x18d   : > { %v1656_v6 = vpack.c.bf16 %v1344_v1, %v1343_v0  ;;  %v1657_v7 = vpack.c.bf16 %v1346_v3, %v1345_v2  ;;  %1371 = vst [vmem:[%s2187_s3] sm:$0xff] %v1654_v4  ;;  %1372 = vst [vmem:[%s2187_s3 + $0x8] sm:$0xff] %v1655_v5 }
 0x18f   : > { %1373 = vst [vmem:[%s2187_s3 + $0x10] sm:$0xff] %v1656_v6  ;;  %1374 = vst [vmem:[%s2187_s3 + $0x18] sm:$0xff] %v1657_v7 }
 0x190 PF: > { %s13_s16 = sadd.s32 1, %s1943_s16   ;;  %s2188_s12 = smov %s1931_s13 }
 0x191   : > { %p10_p12 = scmp.ge.s32.totalorder %s13_s16, 11   ;;  %s2189_s13 = smov %s2001_s20 }
 0x192   : > { %s2190_s14 = smov %s1939_s15  ;;  %s2191_s15 = smov %s2193_s17 }
 0x193   :  { %12 = sbr.rel (!%p10_p12) target bundleno = 3 (0x3), region = 104 }

// kernel: forward.42
= control target key start
LH: loop header
LB: loop body
LE: loop exit
PB: predicated region body
PF: predicated region fallthrough
CT: control target
= control target key end

     0   :  { %s679_s1 = inlined_call_operand.vmem [shape: bf16[512,128], index: 1, kind: input, shape index: {}]   ;;  %s680_s0 = inlined_call_operand.vmem [shape: bf16[16,512], index: 0, kind: input, shape index: {}]   ;;  %s681_s2 = inlined_call_operand.vmem [shape: f32[1,128], index: 2, kind: input, shape index: {}]   ;;  %s682_s3 = inlined_call_operand.vmem [shape: bf16[16,128], index: 3, kind: output, shape index: {}]  }
   0x1   :  { %v507_v0 = vld [vmem:[%s679_s1 + $0x40] sm:$0xff]   ;;  %v511_v4 = vld [vmem:[%s679_s1 + $0x48] sm:$0xff]   ;;  %v515_v8 = vld [vmem:[%s679_s1 + $0x50] sm:$0xff]  }
   0x2   :  { %v508_v1 = vld [vmem:[%s679_s1 + $0xc0] sm:$0xff]   ;;  %463 = vmatprep.subr.bf16.mxu0 %v507_v0  ;;  %v512_v5 = vld [vmem:[%s679_s1 + $0xc8] sm:$0xff]   ;;  %v516_v9 = vld [vmem:[%s679_s1 + $0xd0] sm:$0xff]  }
   0x3   :  { %v509_v2 = vld [vmem:[%s679_s1] sm:$0xff]   ;;  %485 = vmatprep.subr.bf16.mxu1 %v508_v1  ;;  %v513_v6 = vld [vmem:[%s679_s1 + $0x8] sm:$0xff]   ;;  %v517_v10 = vld [vmem:[%s679_s1 + $0x10] sm:$0xff]  }
   0x4   :  { %v510_v3 = vld [vmem:[%s679_s1 + $0x80] sm:$0xff]   ;;  %464 = vmatpush3.bf16.msra.mxu0 %v509_v2  ;;  %v514_v7 = vld [vmem:[%s679_s1 + $0x88] sm:$0xff]   ;;  %v518_v11 = vld [vmem:[%s679_s1 + $0x90] sm:$0xff]  }
   0x5   :  { %486 = vmatpush3.bf16.msra.mxu1 %v510_v3  ;;  %465 = vmatprep.subr.bf16.mxu0 %v511_v4  ;;  %v519_v12 = vld [vmem:[%s679_s1 + $0x58] sm:$0xff]   ;;  %v523_v16 = vld [vmem:[%s679_s1 + $0x60] sm:$0xff]   ;;  %v527_v20 = vld [vmem:[%s679_s1 + $0x68] sm:$0xff]  }
   0x6   :  { %487 = vmatprep.subr.bf16.mxu1 %v512_v5  ;;  %v520_v13 = vld [vmem:[%s679_s1 + $0xd8] sm:$0xff]   ;;  %v524_v17 = vld [vmem:[%s679_s1 + $0xe0] sm:$0xff]   ;;  %v528_v21 = vld [vmem:[%s679_s1 + $0xe8] sm:$0xff]  }
   0x7   :  { %v521_v14 = vld [vmem:[%s679_s1 + $0x18] sm:$0xff]   ;;  %v525_v18 = vld [vmem:[%s679_s1 + $0x20] sm:$0xff]   ;;  %v529_v22 = vld [vmem:[%s679_s1 + $0x28] sm:$0xff]  }
   0x8   :  { %466 = vmatpush3.bf16.msra.mxu0 %v513_v6  ;;  %v522_v15 = vld [vmem:[%s679_s1 + $0x98] sm:$0xff]   ;;  %v526_v19 = vld [vmem:[%s679_s1 + $0xa0] sm:$0xff]   ;;  %v530_v23 = vld [vmem:[%s679_s1 + $0xa8] sm:$0xff]  }
   0x9   :  { %488 = vmatpush3.bf16.msra.mxu1 %v514_v7  ;;  %467 = vmatprep.subr.bf16.mxu0 %v515_v8  ;;  %v531_v24 = vld [vmem:[%s679_s1 + $0x70] sm:$0xff]   ;;  %v535_v28 = vld [vmem:[%s679_s1 + $0x78] sm:$0xff]   ;;  %v453_v49 = vld [vmem:[%s681_s2] ss:$0 sm:$0xff] }
   0xa   :  { %489 = vmatprep.subr.bf16.mxu1 %v516_v9  ;;  %v532_v25 = vld [vmem:[%s679_s1 + $0xf0] sm:$0xff]   ;;  %v536_v29 = vld [vmem:[%s679_s1 + $0xf8] sm:$0xff]  }
   0xb   :  { %v533_v26 = vld [vmem:[%s679_s1 + $0x30] sm:$0xff]   ;;  %v537_v30 = vld [vmem:[%s679_s1 + $0x38] sm:$0xff]  }
   0xc   :  { %468 = vmatpush3.bf16.msra.mxu0 %v517_v10  ;;  %v534_v27 = vld [vmem:[%s679_s1 + $0xb0] sm:$0xff]   ;;  %v538_v31 = vld [vmem:[%s679_s1 + $0xb8] sm:$0xff]  }
   0xd   :  { %490 = vmatpush3.bf16.msra.mxu1 %v518_v11  ;;  %469 = vmatprep.subr.bf16.mxu0 %v519_v12  ;;  %v539_v32 = vld [vmem:[%s680_s0] ss:$16 sps:$4 sm:$0xff]   ;;  %v541_v33 = vld [vmem:[%s680_s0 + $0x4] ss:$16 sps:$4 sm:$0xff]   ;;  %v542_v34 = vld [vmem:[%s680_s0 + $0x8] ss:$16 sps:$4 sm:$0xff]  }
   0xe   :  { %491 = vmatprep.subr.bf16.mxu1 %v520_v13  ;;  %v544_v35 = vld [vmem:[%s680_s0 + $0xc] ss:$16 sps:$4 sm:$0xff]   ;;  %335 = vmatprep.mubr.bf16.mxu0 %v541_v33 }
   0xf   :  { %376 = vmatprep.mubr.bf16.mxu1 %v544_v35 }
  0x10   :  { %470 = vmatpush3.bf16.msra.mxu0 %v521_v14 }
  0x11   :  { %492 = vmatpush3.bf16.msra.mxu1 %v522_v15  ;;  %471 = vmatprep.subr.bf16.mxu0 %v523_v16 }
  0x12   :  { %493 = vmatprep.subr.bf16.mxu1 %v524_v17 }
  0x14   :  { %472 = vmatpush3.bf16.msra.mxu0 %v525_v18 }
  0x15   :  { %494 = vmatpush3.bf16.msra.mxu1 %v526_v19  ;;  %473 = vmatprep.subr.bf16.mxu0 %v527_v20 }
  0x16   :  { %495 = vmatprep.subr.bf16.mxu1 %v528_v21 }
  0x18   :  { %474 = vmatpush3.bf16.msra.mxu0 %v529_v22 }
  0x19   :  { %496 = vmatpush3.bf16.msra.mxu1 %v530_v23  ;;  %475 = vmatprep.subr.bf16.mxu0 %v531_v24 }
  0x1a   :  { %497 = vmatprep.subr.bf16.mxu1 %v532_v25 }
  0x1c   :  { %476 = vmatpush3.bf16.msra.mxu0 %v533_v26 }
  0x1d   :  { %498 = vmatpush3.bf16.msra.mxu1 %v534_v27  ;;  %477 = vmatprep.subr.bf16.mxu0 %v535_v28 }
  0x1e   :  { %499 = vmatprep.subr.bf16.mxu1 %v536_v29 }
  0x20   :  { %478 = vmatpush3.bf16.msra.mxu0 %v537_v30 }
  0x21   :  { %500 = vmatpush3.bf16.msra.mxu1 %v538_v31 }
  0x23   :  { %336 = vmatmul.mubr.bf16.vlgmr.msra.gmra.mrb[0].mxu0 %v539_v32 }
  0x24   :  { %377 = vmatmul.mubr.bf16.vlgmr.msra.gmra.mrb[0].mxu1 %v542_v34 }
  0xf6   :  { %v479_v36 = vpop.f32.mrb[0].mxu0 }
  0xf7   :  { %v501_v37 = vpop.f32.mrb[0].mxu1  ;;  %v480_v38 = vpop.f32.mrb[1].mxu0 }
  0xf8   :  { %v481_v39 = vadd.f32 %v480_v38, %v479_v36  ;;  %v502_v40 = vpop.f32.mrb[1].mxu1  ;;  %v482_v41 = vpop.f32.mrb[2].mxu0 }
  0xf9   :  { %v503_v42 = vadd.f32 %v502_v40, %v501_v37  ;;  %v504_v43 = vpop.f32.mrb[2].mxu1  ;;  %v483_v44 = vpop.f32.mrb[3].mxu0 }
  0xfa   :  { %v484_v45 = vadd.f32 %v483_v44, %v482_v41  ;;  %v505_v46 = vpop.f32.mrb[3].mxu1 }
  0xfb   :  { %v379_v47 = vadd.f32 %v503_v42, %v481_v39  ;;  %v506_v48 = vadd.f32 %v505_v46, %v504_v43 }
  0xfd   :  { %v382_v50 = vadd.f32 %v506_v48, %v484_v45  ;;  %v401_v51 = vadd.f32 %v453_v49, %v379_v47 }
  0xff   :  { %v402_v52 = vadd.f32 %v453_v49, %v382_v50 }
 0x101   :  { %v461_v53 = vpack.c.bf16 %v402_v52, %v401_v51 }
 0x103   :  { %462 = vst [vmem:[%s682_s3] sm:$0xff] %v461_v53  }

// kernel: forward.43
= control target key start
LH: loop header
LB: loop body
LE: loop exit
PB: predicated region body
PF: predicated region fallthrough
CT: control target
= control target key end

     0   :  { %s1042_s12 = smov 0   ;;  %s1044_s13 = smov 0   ;;  %s1199_s0 = inlined_call_operand.vmem [shape: bf16[16,32], index: 0, kind: input, shape index: {}]   ;;  %s1200_s1 = inlined_call_operand.vmem [shape: bf16[32,86016], index: 1, kind: input, shape index: {}]   ;;  %s1201_s2 = inlined_call_operand.vmem [shape: f32[1,86016], index: 2, kind: input, shape index: {}]   ;;  %s1202_s3 = inlined_call_operand.vmem [shape: f32[16,86016], index: 3, kind: output, shape index: {}]  }
   0x1   :  { %s1046_s14 = smov 0   ;;  %s1048_s15 = smov 0  }
   0x2   :  { %s1050_s16 = smov 0  }
   0x3 LB: > { %s28_s17 = sadd.s32 1, %s1015_s15  ;;  %s899_s18 = sadd.s32 4294967295, %s1019_s16   ;;  %s1019_s16 = sphi %s1050_s16, %s13_s16   ;;  %s1015_s15 = sphi %s1048_s15, %s1207_s15   ;;  %s1011_s14 = sphi %s1046_s14, %s1206_s14   ;;  %s1007_s13 = sphi %s1044_s13, %s1205_s13   ;;  %s1003_s12 = sphi %s1042_s12, %s1204_s12  }
   0x4   : > { %p30_p0 = scmp.ge.s32.totalorder %s28_s17, 84  ;;  %p76_p1 = scmp.ne.s32.totalorder %s1007_s13, %s1003_s12 }
   0x5   : > { %p77_p2 = scmp.eq.s32.totalorder %s1019_s16, 0  ;;  %p134_p4 = scmp.eq.s32.totalorder %s899_s18, 83 }
   0x6   : > { %s1209_s17 = smov (%p30_p0, %s28_s17), 0  ;;  %s69_s20 = sadd.s32 1, %s1007_s13 }
   0x7   : > { %p78_p3 = por %p77_p2, %p76_p1  ;;  %s65_s19 = ssub.s32 %s1015_s15, %s1209_s17 }
   0x8   : > { %p67_p5 = scmp.eq.s32.totalorder %s65_s19, 0  ;;  %p1077_p6 = por %p134_p4, %p76_p1 }
   0x9   : > { %p903_p7 = scmp.ge.s32.totalorder %s1019_s16, 84 }
   0xa   : > { %s1082_s22 = scalar_select %p67_p5, %s1007_s13, %s69_s20  }
   0xb   : > { %168 = sbr.rel (%p903_p7) target bundleno = 30 (0x1e), region = 20 }
  0x12   : > { %171 = sbr.rel (!%p78_p3) target bundleno = 30 (0x1e), region = 24  ;;  %s173_s23 = sand.u32 (%p78_p3), 1, %s1007_s13  }
  0x13   : > { %s937_s24 = sshll.u32 (%p78_p3), %s1015_s15, 5  ;;  %s904_s25 = sshll.u32 (%p78_p3), %s173_s23, 7 }
  0x14   : > { %s1090_s28 = scalar_lea.vmem (%p78_p3), %s1200_s1, %s937_s24  ;;  %s175_s29 = scalar_lea.vmem (%p78_p3), [#allocation3], %s904_s25 }
  0x15   : > { %v194_v0 = vld [vmem:[%s1090_s28] sm:$0xff] (%p78_p3)  ;;  %v196_v1 = vld [vmem:[%s1090_s28 + $0x8] sm:$0xff] (%p78_p3)  ;;  %v198_v2 = vld [vmem:[%s1090_s28 + $0x10] sm:$0xff] (%p78_p3) }
  0x16   : > { %195 = vst [vmem:[%s175_s29] sm:$0xff] (%p78_p3), %v194_v0  ;;  %197 = vst [vmem:[%s175_s29 + $0x8] sm:$0xff] (%p78_p3), %v196_v1  ;;  %v200_v3 = vld [vmem:[%s1090_s28 + $0x18] sm:$0xff] (%p78_p3)  ;;  %v202_v4 = vld [vmem:[%s1090_s28 + $0xa80] sm:$0xff] (%p78_p3) }
  0x17   : > { %199 = vst [vmem:[%s175_s29 + $0x10] sm:$0xff] (%p78_p3), %v198_v2  ;;  %v204_v5 = vld [vmem:[%s1090_s28 + $0xa88] sm:$0xff] (%p78_p3)  ;;  %201 = vst [vmem:[%s175_s29 + $0x18] sm:$0xff] (%p78_p3), %v200_v3  ;;  %v206_v6 = vld [vmem:[%s1090_s28 + $0xa90] sm:$0xff] (%p78_p3) }
  0x18   : > { %203 = vst [vmem:[%s175_s29 + $0x20] sm:$0xff] (%p78_p3), %v202_v4  ;;  %205 = vst [vmem:[%s175_s29 + $0x28] sm:$0xff] (%p78_p3), %v204_v5  ;;  %v208_v7 = vld [vmem:[%s1090_s28 + $0xa98] sm:$0xff] (%p78_p3)  ;;  %v210_v8 = vld [vmem:[%s1090_s28 + $0x1500] sm:$0xff] (%p78_p3) }
  0x19   : > { %207 = vst [vmem:[%s175_s29 + $0x30] sm:$0xff] %v206_v6  ;;  %209 = vst [vmem:[%s175_s29 + $0x38] sm:$0xff] %v208_v7  ;;  %v212_v9 = vld [vmem:[%s1090_s28 + $0x1508] sm:$0xff]  ;;  %v214_v10 = vld [vmem:[%s1090_s28 + $0x1510] sm:$0xff] }
  0x1a   : > { %211 = vst [vmem:[%s175_s29 + $0x40] sm:$0xff] %v210_v8  ;;  %v216_v11 = vld [vmem:[%s1090_s28 + $0x1518] sm:$0xff]  ;;  %213 = vst [vmem:[%s175_s29 + $0x48] sm:$0xff] %v212_v9  ;;  %v218_v12 = vld [vmem:[%s1090_s28 + $0x1f80] sm:$0xff] }
  0x1b   : > { %215 = vst [vmem:[%s175_s29 + $0x50] sm:$0xff] %v214_v10  ;;  %217 = vst [vmem:[%s175_s29 + $0x58] sm:$0xff] %v216_v11  ;;  %v220_v13 = vld [vmem:[%s1090_s28 + $0x1f88] sm:$0xff]  ;;  %v222_v14 = vld [vmem:[%s1090_s28 + $0x1f90] sm:$0xff] }
  0x1c   : > { %219 = vst [vmem:[%s175_s29 + $0x60] sm:$0xff] %v218_v12  ;;  %221 = vst [vmem:[%s175_s29 + $0x68] sm:$0xff] %v220_v13  ;;  %v224_v15 = vld [vmem:[%s1090_s28 + $0x1f98] sm:$0xff] }
  0x1d   : > { %223 = vst [vmem:[%s175_s29 + $0x70] sm:$0xff] %v222_v14  ;;  %225 = vst [vmem:[%s175_s29 + $0x78] sm:$0xff] %v224_v15 }
  0x1e PF: > { %p907_p8 = scmp.ge.s32.totalorder %s1019_s16, 1  ;;  %p238_p9 = scmp.lt.s32.totalorder %s1019_s16, 85 }
  0x20   : > { %p239_p10 = pnand %p907_p8, %p238_p9 }
  0x21   : > { %s245_s30 = sand.u32 (!%p239_p10), 1, %s1003_s12   ;;  %v1021_v16 = vmov (!%p239_p10), 0   ;;  %v980_v41 = vld [vmem:[%s1199_s0] sm:$0xff] (!%p239_p10)   ;;  %vm437_vm0 = vcmask (!%p239_p10), 261120   ;;  %s910_s8 = sshll.u32 (!%p239_p10), %s1011_s14, 3  ;;  %v666_v50 = vlaneseq (!%p239_p10) }
  0x22   : > { %242 = sbr.rel (%p239_p10) target bundleno = 282 (0x11a), region = 51  ;;  %s1111_s4 = sshll.u32 (!%p239_p10), %s245_s30, 7  ;;  %473 = vmatprep.mubr.bf16.mxu0 (!%p239_p10), %v1021_v16  ;;  %516 = vmatprep.mubr.bf16.mxu1 (!%p239_p10), %v1021_v16 }
  0x23   : > { %s1114_s5 = scalar_lea.vmem (!%p239_p10), [#allocation3], %s1111_s4  ;;  %p291_p11 = scmp.lt.s32.totalorder (!%p239_p10), %s910_s8, 671  ;;  %v667_v51 = vshrl.u32 (!%p239_p10), %v666_v50, 7 }
  0x24   : > { %v336_v17 = vld [vmem:[%s1114_s5] sm:$0xff] (!%p239_p10)  ;;  %v337_v19 = vld [vmem:[%s1114_s5 + $0x8] sm:$0xff] (!%p239_p10)  ;;  %v338_v30 = vld [vmem:[%s1114_s5 + $0x10] sm:$0xff] (!%p239_p10)  ;;  %s1144_s12 = scalar_lea.vmem (!%p239_p10), [#allocation4], %s1111_s4 }
  0x25   : > { %v340_v18 = vld [vmem:[%s1114_s5 + $0x20] sm:$0xff] (!%p239_p10)  ;;  %v341_v21 = vld [vmem:[%s1114_s5 + $0x28] sm:$0xff] (!%p239_p10)  ;;  %v342_v32 = vld [vmem:[%s1114_s5 + $0x30] sm:$0xff] (!%p239_p10)  ;;  %v668_v52 = vsub.s32 (!%p239_p10), 0, %v667_v51  ;;  %v676_v54 = vsub.s32 (!%p239_p10), 2, %v667_v51  ;;  %v672_v55 = vsub.s32 (!%p239_p10), 1, %v667_v51 }
  0x26   : > { %v913_v20 = vcombine.high (!%p239_p10), %v336_v17, %v340_v18  ;;  %v912_v22 = vcombine.low (!%p239_p10), %v336_v17, %v340_v18  ;;  %v344_v23 = vld [vmem:[%s1114_s5 + $0x40] sm:$0xff] (!%p239_p10)  ;;  %v915_v25 = vcombine.high (!%p239_p10), %v337_v19, %v341_v21  ;;  %v914_v26 = vcombine.low (!%p239_p10), %v337_v19, %v341_v21  ;;  %v345_v28 = vld [vmem:[%s1114_s5 + $0x48] sm:$0xff] (!%p239_p10)  ;;  %v339_v33 = vld [vmem:[%s1114_s5 + $0x18] sm:$0xff] (!%p239_p10) }
  0x27   : > { %v348_v24 = vld [vmem:[%s1114_s5 + $0x60] sm:$0xff] (!%p239_p10)  ;;  %v349_v29 = vld [vmem:[%s1114_s5 + $0x68] sm:$0xff] (!%p239_p10)  ;;  %v343_v34 = vld [vmem:[%s1114_s5 + $0x38] sm:$0xff] (!%p239_p10)  ;;  %v917_v37 = vcombine.high (!%p239_p10), %v338_v30, %v342_v32  ;;  %v916_v44 = vcombine.low (!%p239_p10), %v338_v30, %v342_v32  ;;  %v680_v56 = vsub.s32 (!%p239_p10), 3, %v667_v51  ;;  %v684_v1 = vsub.s32 (!%p239_p10), 4, %v667_v51 }
  0x28   : > { %v921_v27 = vcombine.high (!%p239_p10), %v344_v23, %v348_v24  ;;  %441 = vmatprep.subr.bf16.mxu0 (!%p239_p10), %v913_v20  ;;  %v923_v31 = vcombine.high (!%p239_p10), %v345_v28, %v349_v29  ;;  %484 = vmatprep.subr.bf16.mxu1 (!%p239_p10), %v915_v25  ;;  %v920_v35 = vcombine.low (!%p239_p10), %v344_v23, %v348_v24  ;;  %v346_v39 = vld [vmem:[%s1114_s5 + $0x50] sm:$0xff] (!%p239_p10)  ;;  %v347_v42 = vld [vmem:[%s1114_s5 + $0x58] sm:$0xff] (!%p239_p10)  ;;  %v692_v6 = vsub.s32 (!%p239_p10), 6, %v667_v51 }
  0x29   : > { %442 = vmatpush1.bf16.msra.mxu0 %v912_v22  ;;  %485 = vmatpush1.bf16.msra.mxu1 %v914_v26  ;;  %v922_v36 = vcombine.low %v345_v28, %v349_v29  ;;  %v919_v38 = vcombine.high %v339_v33, %v343_v34  ;;  %v350_v40 = vld [vmem:[%s1114_s5 + $0x70] sm:$0xff]  ;;  %v351_v43 = vld [vmem:[%s1114_s5 + $0x78] sm:$0xff]  ;;  %v918_v45 = vcombine.low %v339_v33, %v343_v34  ;;  %s1211_s8 = smov (!%p291_p11, %s910_s8), 671  ;;  %v688_v7 = vsub.s32 5, %v667_v51  ;;  %s938_s18 = sshll.u32 (%p1077_p6), %s1011_s14, 6 }
  0x2a   : > { %443 = vmatprep.subr.bf16.mxu0 %v921_v27  ;;  %486 = vmatprep.subr.bf16.mxu1 %v923_v31  ;;  %v925_v46 = vcombine.high %v346_v39, %v350_v40  ;;  %v927_v47 = vcombine.high %v347_v42, %v351_v43  ;;  %v924_v48 = vcombine.low %v346_v39, %v350_v40  ;;  %s293_s11 = scalar_lea.vmem %s1201_s2, %s1211_s8  ;;  %v696_v12 = vsub.s32 7, %v667_v51  ;;  %s750_s23 = scalar_lea.vmem (%p1077_p6), %s1202_s3, %s938_s18 }
  0x2b   : > { %v926_v49 = vcombine.low %v347_v42, %v351_v43  ;;  %v664_v53 = vld [vmem:[%s293_s11] sm:$0xff] }
  0x2c   : > { %v669_v57 = vrot.slane %v664_v53, %v668_v52  ;;  %v677_v58 = vrot.slane %v664_v53, %v676_v54  ;;  %v673_v59 = vrot.slane %v664_v53, %v672_v55  ;;  %v681_v60 = vrot.slane %v664_v53, %v680_v56 }
  0x2d   : > { %444 = vmatpush1.bf16.msra.mxu0 %v920_v35  ;;  %487 = vmatpush1.bf16.msra.mxu1 %v922_v36  ;;  %v685_v17 = vrot.slane %v664_v53, %v684_v1  ;;  %v693_v18 = vrot.slane %v664_v53, %v692_v6  ;;  %v689_v19 = vrot.slane %v664_v53, %v688_v7 }
  0x2e   : > { %527 = vmatprep.subr.bf16.mxu0 %v917_v37  ;;  %570 = vmatprep.subr.bf16.mxu1 %v919_v38  ;;  %v697_v20 = vrot.slane %v664_v53, %v696_v12 }
  0x30   : > { %928 = vmatmul.mubr.msk.bf16.vlgmr.msra.gmra.mrb[0].mxu0 %vm437_vm0, %v980_v41  ;;  %929 = vmatmul.mubr.msk.bf16.vlgmr.msra.gmra.mrb[0].mxu1 %vm437_vm0, %v980_v41 }
  0x31   : > { %528 = vmatpush1.bf16.msra.mxu0 %v916_v44  ;;  %571 = vmatpush1.bf16.msra.mxu1 %v918_v45 }
  0x32   : > { %529 = vmatprep.subr.bf16.mxu0 %v925_v46  ;;  %572 = vmatprep.subr.bf16.mxu1 %v927_v47 }
  0x33   : > { %559 = vmatprep.mubr.bf16.mxu0 %v1021_v16  ;;  %602 = vmatprep.mubr.bf16.mxu1 %v1021_v16 }
  0x35   : > { %530 = vmatpush1.bf16.msra.mxu0 %v924_v48  ;;  %573 = vmatpush1.bf16.msra.mxu1 %v926_v49 }
  0x38   : > { %930 = vmatmul.mubr.msk.bf16.vlgmr.msra.gmra.mrb[4].mxu0 %vm437_vm0, %v980_v41  ;;  %931 = vmatmul.mubr.msk.bf16.vlgmr.msra.gmra.mrb[4].mxu1 %vm437_vm0, %v980_v41 }
 0x103   : > { %v475_v61 = vpop.f32.mrb[0].mxu0  ;;  %v518_v63 = vpop.f32.mrb[0].mxu1 }
 0x104   : > { %v706_v62 = vadd.f32 %v669_v57, %v475_v61  ;;  %v477_v0 = vpop.f32.mrb[1].mxu0  ;;  %v708_v2 = vadd.f32 %v677_v58, %v518_v63  ;;  %v520_v4 = vpop.f32.mrb[1].mxu1 }
 0x105   : > { %v707_v3 = vadd.f32 %v673_v59, %v477_v0  ;;  %v479_v5 = vpop.f32.mrb[2].mxu0  ;;  %v709_v8 = vadd.f32 %v681_v60, %v520_v4  ;;  %v522_v10 = vpop.f32.mrb[2].mxu1 }
 0x106   : > { %722 = vst [vmem:[%s1144_s12] sm:$0xff] %v706_v62  ;;  %v714_v9 = vadd.f32 %v669_v57, %v479_v5  ;;  %v481_v11 = vpop.f32.mrb[3].mxu0  ;;  %724 = vst [vmem:[%s1144_s12 + $0x10] sm:$0xff] %v708_v2  ;;  %v716_v13 = vadd.f32 %v677_v58, %v522_v10  ;;  %v524_v15 = vpop.f32.mrb[3].mxu1 }
 0x107   : > { %723 = vst [vmem:[%s1144_s12 + $0x8] sm:$0xff] %v707_v3  ;;  %v715_v14 = vadd.f32 %v673_v59, %v481_v11  ;;  %725 = vst [vmem:[%s1144_s12 + $0x18] sm:$0xff] %v709_v8  ;;  %v717_v16 = vadd.f32 %v681_v60, %v524_v15 }
 0x108   : > { %730 = vst [vmem:[%s1144_s12 + $0x40] sm:$0xff] %v714_v9  ;;  %732 = vst [vmem:[%s1144_s12 + $0x50] sm:$0xff] %v716_v13 }
 0x109   : > { %731 = vst [vmem:[%s1144_s12 + $0x48] sm:$0xff] %v715_v14  ;;  %733 = vst [vmem:[%s1144_s12 + $0x58] sm:$0xff] %v717_v16 }
 0x10b   : > { %v561_v21 = vpop.f32.mrb[4].mxu0  ;;  %v604_v23 = vpop.f32.mrb[4].mxu1  ;;  %744 = sbr.rel (!%p1077_p6) target bundleno = 282 (0x11a), region = 67 }
 0x10c   : > { %v710_v22 = vadd.f32 %v685_v17, %v561_v21  ;;  %v563_v24 = vpop.f32.mrb[5].mxu0  ;;  %v712_v25 = vadd.f32 %v693_v18, %v604_v23  ;;  %v606_v27 = vpop.f32.mrb[5].mxu1 }
 0x10d   : > { %v711_v26 = vadd.f32 %v689_v19, %v563_v24  ;;  %v565_v28 = vpop.f32.mrb[6].mxu0  ;;  %v713_v29 = vadd.f32 %v697_v20, %v606_v27  ;;  %v608_v31 = vpop.f32.mrb[6].mxu1  ;;  %v763_v37 = vld [vmem:[%s1144_s12] sm:$0xff] (%p1077_p6)  ;;  %v767_v39 = vld [vmem:[%s1144_s12 + $0x10] sm:$0xff] (%p1077_p6) }
 0x10e   : > { %726 = vst [vmem:[%s1144_s12 + $0x20] sm:$0xff] %v710_v22  ;;  %v718_v30 = vadd.f32 %v685_v17, %v565_v28  ;;  %v567_v32 = vpop.f32.mrb[7].mxu0  ;;  %728 = vst [vmem:[%s1144_s12 + $0x30] sm:$0xff] %v712_v25  ;;  %v720_v33 = vadd.f32 %v693_v18, %v608_v31  ;;  %v610_v35 = vpop.f32.mrb[7].mxu1  ;;  %v765_v38 = vld [vmem:[%s1144_s12 + $0x8] sm:$0xff] (%p1077_p6)  ;;  %v769_v40 = vld [vmem:[%s1144_s12 + $0x18] sm:$0xff] (%p1077_p6) }
 0x10f   : > { %727 = vst [vmem:[%s1144_s12 + $0x28] sm:$0xff] %v711_v26  ;;  %v719_v34 = vadd.f32 %v689_v19, %v567_v32  ;;  %729 = vst [vmem:[%s1144_s12 + $0x38] sm:$0xff] %v713_v29  ;;  %v721_v36 = vadd.f32 %v697_v20, %v610_v35  ;;  %v779_v45 = vld [vmem:[%s1144_s12 + $0x40] sm:$0xff] (%p1077_p6)  ;;  %v783_v47 = vld [vmem:[%s1144_s12 + $0x50] sm:$0xff] (%p1077_p6) }
 0x110   : > { %734 = vst [vmem:[%s1144_s12 + $0x60] sm:$0xff] %v718_v30  ;;  %736 = vst [vmem:[%s1144_s12 + $0x70] sm:$0xff] %v720_v33  ;;  %v781_v46 = vld [vmem:[%s1144_s12 + $0x48] sm:$0xff] (%p1077_p6)  ;;  %v785_v48 = vld [vmem:[%s1144_s12 + $0x58] sm:$0xff] (%p1077_p6) }
 0x111   : > { %735 = vst [vmem:[%s1144_s12 + $0x68] sm:$0xff] %v719_v34  ;;  %737 = vst [vmem:[%s1144_s12 + $0x78] sm:$0xff] %v721_v36 }
 0x112   : > { %764 = vst [vmem:[%s750_s23] sm:$0xff] %v763_v37  ;;  %766 = vst [vmem:[%s750_s23 + $0x8] sm:$0xff] %v765_v38 }
 0x113   : > { %768 = vst [vmem:[%s750_s23 + $0x10] sm:$0xff] %v767_v39  ;;  %770 = vst [vmem:[%s750_s23 + $0x18] sm:$0xff] %v769_v40 }
 0x114   : > { %780 = vst [vmem:[%s750_s23 + $0x1500] sm:$0xff] %v779_v45  ;;  %782 = vst [vmem:[%s750_s23 + $0x1508] sm:$0xff] %v781_v46 }
 0x115   : > { %v771_v41 = vld [vmem:[%s1144_s12 + $0x20] sm:$0xff]  ;;  %v775_v43 = vld [vmem:[%s1144_s12 + $0x30] sm:$0xff]  ;;  %784 = vst [vmem:[%s750_s23 + $0x1510] sm:$0xff] %v783_v47  ;;  %786 = vst [vmem:[%s750_s23 + $0x1518] sm:$0xff] %v785_v48 }
 0x116   : > { %v773_v42 = vld [vmem:[%s1144_s12 + $0x28] sm:$0xff]  ;;  %772 = vst [vmem:[%s750_s23 + $0x20] sm:$0xff] %v771_v41  ;;  %v777_v44 = vld [vmem:[%s1144_s12 + $0x38] sm:$0xff]  ;;  %776 = vst [vmem:[%s750_s23 + $0x30] sm:$0xff] %v775_v43 }
 0x117   : > { %774 = vst [vmem:[%s750_s23 + $0x28] sm:$0xff] %v773_v42  ;;  %778 = vst [vmem:[%s750_s23 + $0x38] sm:$0xff] %v777_v44  ;;  %v787_v49 = vld [vmem:[%s1144_s12 + $0x60] sm:$0xff]  ;;  %v791_v51 = vld [vmem:[%s1144_s12 + $0x70] sm:$0xff] }
 0x118   : > { %v789_v50 = vld [vmem:[%s1144_s12 + $0x68] sm:$0xff]  ;;  %788 = vst [vmem:[%s750_s23 + $0x1520] sm:$0xff] %v787_v49  ;;  %792 = vst [vmem:[%s750_s23 + $0x1530] sm:$0xff] %v791_v51  ;;  %v793_v52 = vld [vmem:[%s1144_s12 + $0x78] sm:$0xff] }
 0x119   : > { %790 = vst [vmem:[%s750_s23 + $0x1528] sm:$0xff] %v789_v50  ;;  %794 = vst [vmem:[%s750_s23 + $0x1538] sm:$0xff] %v793_v52 }
 0x11a PF: > { %s13_s16 = sadd.s32 1, %s1019_s16   ;;  %s1204_s12 = smov %s1007_s13 }
 0x11b   : > { %p10_p12 = scmp.ge.s32.totalorder %s13_s16, 86   ;;  %s1205_s13 = smov %s1082_s22 }
 0x11c   : > { %s1206_s14 = smov %s1015_s15  ;;  %s1207_s15 = smov %s1209_s17 }
 0x11d   :  { %12 = sbr.rel (!%p10_p12) target bundleno = 3 (0x3), region = 127 }

</bundles_post_ra>
